<compile_context>
chip_gen: v7x
topology: tpu7x:2x2x1
jax: 0.10.0
libtpu: 0.0.40
codegen_flags: <defaults>
</compile_context>

<pallas_src>
import math

import jax
import jax.numpy as jnp
from jax import lax
from jax.experimental import pallas as pl
from jax.experimental.pallas import tpu as pltpu


LANE = 128          # lane quantum
SUBLANE_BF16 = 16   # bf16 sublane quantum
EPS = 1e-5          # InstanceNorm2d default eps


def _round_up(x, m):
    return (x + m - 1) // m * m


def _default_vmem_limit():
    # Generation-aware VMEM budget: ~3/4 of physical (96 MiB on v5e/v6e,
    # 48 MiB on v7x).  Conservative 48 MiB fallback if the query fails.
    cap = 64 * 1024 * 1024
    try:
        cap = int(getattr(pltpu.get_tpu_info(), "vmem_capacity_bytes", cap))
    except Exception:
        pass
    return int(min(cap * 3 // 4, 100 * 1024 * 1024))


VMEM_LIMIT = _default_vmem_limit()


# ----------------------------------------------------------------------------
# Fused conv (+ instance-norm + affine + ReLU) Pallas kernel
#   in-kernel patch extraction: shifted lane-slices of the flattened padded
#   activation, one small matmul per tap, f32 accumulation in registers.
# ----------------------------------------------------------------------------

def _make_conv_kernel(offsets, l_out, use_norm, use_relu, inv_count):
    n_taps = len(offsets)

    def kernel(*refs):
        if use_norm:
            x_ref, w_ref, g_ref, b_ref, m_ref, o_ref = refs
        else:
            x_ref, w_ref, o_ref = refs

        x = x_ref[0]                                    # (Cin_eff, Lin) bf16
        acc = None
        for t in range(n_taps):
            off = offsets[t]
            xt = x[:, off:off + l_out]                  # shifted view (relayout)
            p = jnp.dot(w_ref[t], xt,
                        preferred_element_type=jnp.float32)
            acc = p if acc is None else acc + p         # (Cp, Lout) f32
        v = acc

        if use_norm:
            # Instance-norm over the valid spatial positions only (mask is 1
            # on the H*W real pixels, 0 on flattening / lane padding).
            m = m_ref[...]                              # (1, Lout) f32
            mean = jnp.sum(v * m, axis=-1, keepdims=True) * inv_count
            d = v - mean
            var = jnp.sum(d * d * m, axis=-1, keepdims=True) * inv_count
            v = d * lax.rsqrt(var + EPS)
            v = v * g_ref[...] + b_ref[...]
        if use_relu:
            v = jnp.maximum(v, 0.0)
        o_ref[0] = v.astype(o_ref.dtype)

    return kernel


def conv_norm_act(x, w, gamma=None, beta=None, *, stride=1, use_norm=False,
                  use_relu=False, upsample2=False, out_dtype=jnp.bfloat16):
    """Fused 3x3 conv (stride 1 or 2, optional nearest-x2 pre-upsample)
    [+ instance-norm(+affine)] [+ ReLU].  x: (B, Cin, H, W) NCHW, no bias."""
    B, Cin, H, W = x.shape
    Cout = w.shape[0]
    x = x.astype(jnp.bfloat16)

    if upsample2:
        assert stride == 1
        # Nearest x2 upsample as a contiguous repeat (replaces the previous
        # fancy-index HBM gathers); the conv itself never materializes im2col.
        x = jnp.repeat(jnp.repeat(x, 2, axis=2), 2, axis=3)
        H, W = 2 * H, 2 * W

    if stride == 1:
        # Pad by 1, flatten (Hp, Wp) row-major.  Tap (di, dj) of the 3x3
        # kernel is a shifted view at flat offset di*Wp + dj.
        Ho, Wo, rowW, nrow = H, W, W + 2, H + 2
        planes = jnp.pad(x, ((0, 0), (0, 0), (1, 1), (1, 1)))
        planes = planes.reshape(B, Cin, nrow * rowW)
        cin_eff = Cin
        offsets = tuple(di * rowW + dj for di in range(3) for dj in range(3))
        w_eff = jnp.transpose(w, (2, 3, 0, 1)).reshape(9, Cout, Cin)
    else:
        assert stride == 2 and H % 2 == 0 and W % 2 == 0
        # Space-to-depth: the stride-2 3x3 conv becomes a stride-1 2x2 conv
        # over 4*Cin parity planes -> 4 shifted views, no strided loads.
        Ho, Wo = H // 2, W // 2
        rowW, nrow = Wo + 1, Ho + 1
        xp2 = jnp.pad(x, ((0, 0), (0, 0), (2, 0), (2, 0)))
        pp = xp2.reshape(B, Cin, nrow, 2, rowW, 2)
        pp = pp.transpose(0, 3, 5, 1, 2, 4).reshape(B, 4 * Cin, nrow * rowW)
        planes = pp
        cin_eff = 4 * Cin
        offsets = tuple(ty * rowW + tx for ty in range(2) for tx in range(2))
        dmap = {(0, 1): 0, (1, 0): 1, (1, 1): 2}   # (tap, parity) -> 3x3 index
        w_taps = []
        for ty in range(2):
            for tx in range(2):
                blk = []
                for py in range(2):
                    for px in range(2):
                        di, dj = dmap.get((ty, py)), dmap.get((tx, px))
                        if di is None or dj is None:
                            blk.append(jnp.zeros((Cout, Cin), w.dtype))
                        else:
                            blk.append(w[:, :, di, dj])
                w_taps.append(jnp.concatenate(blk, axis=1))     # (Cout, 4Cin)
        w_eff = jnp.stack(w_taps, axis=0)                       # (4, Cout, 4Cin)

    L = nrow * rowW
    l_out = _round_up(L, LANE)                    # lane-dense output width
    l_in = _round_up(l_out + max(offsets), LANE)  # lane-dense input width
    cp = _round_up(Cout, SUBLANE_BF16)

    planes = jnp.pad(planes, ((0, 0), (0, 0), (0, l_in - L)))
    w_eff = jnp.pad(w_eff, ((0, 0), (0, cp - Cout), (0, 0))).astype(jnp.bfloat16)

    args = [planes, w_eff]
    in_specs = [
        pl.BlockSpec((1, cin_eff, l_in), lambda b: (b, 0, 0)),
        pl.BlockSpec((w_eff.shape[0], cp, cin_eff), lambda b: (0, 0, 0)),
    ]
    if use_norm:
        if gamma is None:
            gamma = jnp.ones((Cout,), jnp.float32)
        if beta is None:
            beta = jnp.zeros((Cout,), jnp.float32)
        g = jnp.pad(gamma.astype(jnp.float32), (0, cp - Cout)).reshape(cp, 1)
        bt = jnp.pad(beta.astype(jnp.float32), (0, cp - Cout)).reshape(cp, 1)
        qidx = jnp.arange(l_out)
        mask = (((qidx // rowW) < Ho) & ((qidx % rowW) < Wo))
        mask = mask.astype(jnp.float32).reshape(1, l_out)
        args += [g, bt, mask]
        in_specs += [pl.BlockSpec((cp, 1), lambda b: (0, 0)),
                     pl.BlockSpec((cp, 1), lambda b: (0, 0)),
                     pl.BlockSpec((1, l_out), lambda b: (0, 0))]

    out = pl.pallas_call(
        _make_conv_kernel(offsets, l_out, use_norm, use_relu,
                          1.0 / float(Ho * Wo)),
        out_shape=jax.ShapeDtypeStruct((B, cp, l_out), out_dtype),
        grid=(B,),
        in_specs=in_specs,
        out_specs=pl.BlockSpec((1, cp, l_out), lambda b: (b, 0, 0)),
        compiler_params=pltpu.CompilerParams(
            dimension_semantics=("parallel",),
            vmem_limit_bytes=VMEM_LIMIT),
    )(*args)

    out = out[:, :Cout, :L].reshape(B, Cout, nrow, rowW)[:, :, :Ho, :Wo]
    return out


# ----------------------------------------------------------------------------
# Fused QKV-projection + spatial-attention Pallas kernel
# ----------------------------------------------------------------------------

def _make_attn_kernel(scale, hw_valid, hw_p):
    def kernel(x_ref, w_ref, kp_ref, qp_ref, vo_ref, a_ref):
        x = x_ref[0]                                    # (3, C, HWp) bf16
        # Single batched MXU launch for the three 1x1 projections.
        proj = jnp.einsum('xoc,xch->xoh', w_ref[...], x,
                          preferred_element_type=jnp.float32)
        kp, qp, vp = proj[0], proj[1], proj[2]          # (Cp, HWp) f32
        # s[i, j] = sum_c qp[c, i] * kp[c, j]   (contract C in place, no .T copy)
        s = lax.dot_general(qp.astype(jnp.bfloat16), kp.astype(jnp.bfloat16),
                            (((0,), (0,)), ((), ())),
                            preferred_element_type=jnp.float32) * scale
        if hw_valid < hw_p:                             # mask padded key lanes
            col = lax.broadcasted_iota(jnp.int32, (1, hw_p), 1)
            s = s + jnp.where(col < hw_valid, 0.0, -1e30)
        s = s - jnp.max(s, axis=-1, keepdims=True)
        p = jnp.exp(s)                                  # f32 softmax (VPU/EUP)
        a = p / jnp.sum(p, axis=-1, keepdims=True)      # exact reciprocal
        # vo[c, i] = sum_j vp[c, j] * a[i, j]
        vo = lax.dot_general(vp.astype(jnp.bfloat16), a.astype(jnp.bfloat16),
                             (((1,), (1,)), ((), ())),
                             preferred_element_type=jnp.float32)
        kp_ref[0] = kp.astype(kp_ref.dtype)
        qp_ref[0] = qp.astype(qp_ref.dtype)
        vo_ref[0] = (vp + vo).astype(vo_ref.dtype)      # residual on projected V
        a_ref[0] = a

    return kernel


def spatial_transformer_block(params, k, q, v):
    """k, q, v: (N, T, C, h, w).  Returns updated (k, q, v, attn)."""
    N, T, C, h, w = k.shape
    B, HW = N * T, h * w
    hw_p = max(_round_up(HW, LANE), LANE)
    cp = _round_up(C, SUBLANE_BF16)

    def prep(t):
        t = t.reshape(B, C, HW).astype(jnp.bfloat16)
        return jnp.pad(t, ((0, 0), (0, 0), (0, hw_p - HW)))

    x = jnp.stack([prep(k), prep(q), prep(v)], axis=1)          # (B, 3, C, HWp)
    wkqv = jnp.stack([params["wk"], params["wq"], params["wv"]], axis=0)
    wkqv = jnp.pad(wkqv, ((0, 0), (0, cp - C), (0, 0))).astype(jnp.bfloat16)

    act_spec = pl.BlockSpec((1, cp, hw_p), lambda b: (b, 0, 0))
    kp, qp, vo, a = pl.pallas_call(
        _make_attn_kernel(1.0 / math.sqrt(C), HW, hw_p),
        out_shape=(jax.ShapeDtypeStruct((B, cp, hw_p), jnp.bfloat16),
                   jax.ShapeDtypeStruct((B, cp, hw_p), jnp.bfloat16),
                   jax.ShapeDtypeStruct((B, cp, hw_p), jnp.bfloat16),
                   jax.ShapeDtypeStruct((B, hw_p, hw_p), jnp.float32)),
        grid=(B,),
        in_specs=[pl.BlockSpec((1, 3, C, hw_p), lambda b: (b, 0, 0, 0)),
                  pl.BlockSpec((3, cp, C), lambda b: (0, 0, 0))],
        out_specs=(act_spec, act_spec, act_spec,
                   pl.BlockSpec((1, hw_p, hw_p), lambda b: (b, 0, 0))),
        compiler_params=pltpu.CompilerParams(
            dimension_semantics=("parallel",),
            vmem_limit_bytes=VMEM_LIMIT),
    )(x, wkqv)

    def unpack(t):
        return t[:, :C, :HW].reshape(N, T, C, h, w)

    return (unpack(kp), unpack(qp), unpack(vo),
            a[:, :HW, :HW].reshape(N, T, HW, HW))


# ----------------------------------------------------------------------------
# Sub-modules
# ----------------------------------------------------------------------------

def encoder_x8(params, x, use_norm):
    """3x (conv3x3 stride-2, [inst-norm], ReLU) -> x8 downsample, no bias."""
    for layer in params["layers"]:
        x = conv_norm_act(x, layer["w"], layer["gamma"], layer["beta"],
                          stride=2, use_norm=use_norm, use_relu=True)
    return x


def decoder_x8(params, x, out_dtype=jnp.float32):
    """3x (nearest x2 up + conv3x3 + ReLU) then conv3x3 -> 3 channels."""
    for layer in params["up_layers"]:
        x = conv_norm_act(x, layer["w"], stride=1, upsample2=True,
                          use_norm=False, use_relu=True)
    return conv_norm_act(x, params["w_out"], stride=1, use_norm=False,
                         use_relu=False, out_dtype=out_dtype)


def get_temporal_feat(frames, module_fn):
    """Apply a per-frame module over the temporal axis."""
    N, T = frames.shape[:2]
    flat = frames.reshape((N * T,) + frames.shape[2:])
    out = module_fn(flat)
    return out.reshape((N, T) + out.shape[1:])


def extend(x):
    # TODO(synk): ModelUtils.extend definition not provided; identity.
    return x


# ----------------------------------------------------------------------------
# Full ViewTransformer forward
# ----------------------------------------------------------------------------

def view_transformer_forward(params, k_frames, q_frames, v_frames):
    enc_k = lambda x: encoder_x8(params["encoderk"], x, use_norm=True)
    enc_q = lambda x: encoder_x8(params["encoderq"], x, use_norm=True)
    enc_v = lambda x: encoder_x8(params["encoderv"], x, use_norm=False)

    k = get_temporal_feat(k_frames, enc_k)
    q = get_temporal_feat(q_frames, enc_q)
    v = get_temporal_feat(v_frames, enc_v)
    k = extend(k)
    q = extend(q)

    attn_maps = []
    early_v = []
    for lp in params["transformers"]:
        k, q, v, a = spatial_transformer_block(lp, k, q, v)
        attn_maps.append(a)
        early_v.append(v)

    n, t, c, h, w = v.shape
    v_main = v.reshape(n, t * c, h, w)            # t*c == channel (T=1)

    # Batch the main decode and every early-prediction decode into ONE pass:
    # a single set of conv kernels with a larger parallel batch grid axis.
    dec_in = jnp.concatenate(
        [v_main] + [ev.reshape(n * t, c, h, w) for ev in early_v], axis=0)
    dec_out = decoder_x8(params["decoder"], dec_in)
    Hd, Wd = dec_out.shape[2], dec_out.shape[3]

    output = dec_out[:n]
    early_pred = []
    for i in range(len(early_v)):
        s = n + i * n * t
        early_pred.append(dec_out[s:s + n * t].reshape(n, t, 3, Hd, Wd))
    return output, attn_maps, early_pred


# ----------------------------------------------------------------------------
# Deterministic parameter init
# ----------------------------------------------------------------------------

def _conv_init(key, cout, cin, k):
    return jax.random.normal(key, (cout, cin, k, k),
                             jnp.float32) / math.sqrt(cin * k * k)


def init_params(key, channel, n_layers):
    keys = iter(jax.random.split(key, 64))

    def enc_params():
        layers = []
        cin = 3
        for _ in range(3):
            layers.append({"w": _conv_init(next(keys), channel, cin, 3),
                           "gamma": jnp.ones((channel,), jnp.float32),
                           "beta": jnp.zeros((channel,), jnp.float32)})
            cin = channel
        return {"layers": layers}

    def dec_params():
        up = [{"w": _conv_init(next(keys), channel, channel, 3)}
              for _ in range(3)]
        return {"up_layers": up,
                "w_out": _conv_init(next(keys), 3, channel, 3)}

    def block_params():
        s = 1.0 / math.sqrt(channel)
        return {"wq": jax.random.normal(next(keys), (channel, channel), jnp.float32) * s,
                "wk": jax.random.normal(next(keys), (channel, channel), jnp.float32) * s,
                "wv": jax.random.normal(next(keys), (channel, channel), jnp.float32) * s}

    return {"encoderk": enc_params(),
            "encoderq": enc_params(),
            "encoderv": enc_params(),
            "decoder": dec_params(),
            "transformers": [block_params() for _ in range(n_layers)]}


# ----------------------------------------------------------------------------

if __name__ == "__main__":
    N, T, H, W = 2, 1, 32, 32          # T=1 so t*c == channel at the decoder
    channel, n_layers = 8, 3

    root = jax.random.PRNGKey(0)
    pkey, kk, kq, kv = jax.random.split(root, 4)
    params = init_params(pkey, channel, n_layers)

    k_frames = jax.random.normal(kk, (N, T, 3, H, W), jnp.float32)
    q_frames = jax.random.normal(kq, (N, T, 3, H, W), jnp.float32)
    v_frames = jax.random.normal(kv, (N, T, 3, H, W), jnp.float32)

    fwd = jax.jit(view_transformer_forward)
    output, attn_maps, early_pred = fwd(params, k_frames, q_frames, v_frames)
    jax.block_until_ready((output, attn_maps, early_pred))

    assert output.shape == (N, 3, H, W)
    assert len(attn_maps) == n_layers and len(early_pred) == n_layers
    assert attn_maps[0].shape == (N, T, (H // 8) * (W // 8), (H // 8) * (W // 8))
    assert early_pred[0].shape == (N, T, 3, H, W)
    print("KERNEL_OK")
</pallas_src>

<mosaic_0001>
module attributes {stable_mosaic.version = 11 : i64} {
  func.func @kernel(%arg0: i32, %arg1: memref<1x12x512xbf16, #tpu.memory_space<vmem>>, %arg2: memref<4x16x12xbf16, #tpu.memory_space<vmem>>, %arg3: memref<16x1xf32, #tpu.memory_space<vmem>>, %arg4: memref<16x1xf32, #tpu.memory_space<vmem>>, %arg5: memref<1x384xf32, #tpu.memory_space<vmem>>, %arg6: memref<1x16x384xbf16, #tpu.memory_space<vmem>>) attributes {dimension_semantics = [#tpu.dimension_semantics<parallel>], iteration_bounds = array<i64: 2>, scalar_prefetch = 0 : i64, scratch_operands = 0 : i64, tpu.core_type = #tpu.core_type<tc>, window_params = [{transform_indices = @transform_0, window_bounds = array<i64: 1, 12, 512>}, {pipeline_mode = #tpu.pipeline_mode<synchronous>, transform_indices = @transform_1, window_bounds = array<i64: 4, 16, 12>}, {pipeline_mode = #tpu.pipeline_mode<synchronous>, transform_indices = @transform_2, window_bounds = array<i64: 16, 1>}, {pipeline_mode = #tpu.pipeline_mode<synchronous>, transform_indices = @transform_3, window_bounds = array<i64: 16, 1>}, {pipeline_mode = #tpu.pipeline_mode<synchronous>, transform_indices = @transform_4, window_bounds = array<i64: 1, 384>}, {transform_indices = @transform_5, window_bounds = array<i64: 1, 16, 384>}]} {
    %c0 = arith.constant 0 : index
    %c0_0 = arith.constant 0 : index
    %c0_1 = arith.constant 0 : index
    %0 = vector.load %arg1[%c0, %c0_0, %c0_1] : memref<1x12x512xbf16, #tpu.memory_space<vmem>>, vector<1x12x512xbf16>
    %1 = vector.shape_cast %0 : vector<1x12x512xbf16> to vector<12x512xbf16>
    %2 = vector.extract_strided_slice %1 {offsets = [0, 0], sizes = [12, 384], strides = [1, 1]} : vector<12x512xbf16> to vector<12x384xbf16>
    %c0_2 = arith.constant 0 : index
    %c0_3 = arith.constant 0 : index
    %c0_4 = arith.constant 0 : index
    %3 = vector.load %arg2[%c0_2, %c0_3, %c0_4] : memref<4x16x12xbf16, #tpu.memory_space<vmem>>, vector<1x16x12xbf16>
    %4 = vector.shape_cast %3 : vector<1x16x12xbf16> to vector<16x12xbf16>
    %cst = arith.constant dense<0.000000e+00> : vector<16x384xf32>
    %5 = tpu.matmul %4, %2, %cst {dimension_numbers = #tpu.dot_dimension_numbers<[1], [0], [0], [1], [0, 0, 1, 1], [], []>} : vector<16x12xbf16>, vector<12x384xbf16>, vector<16x384xf32> -> vector<16x384xf32>
    %6 = vector.extract_strided_slice %1 {offsets = [0, 1], sizes = [12, 384], strides = [1, 1]} : vector<12x512xbf16> to vector<12x384xbf16>
    %c1 = arith.constant 1 : index
    %c0_5 = arith.constant 0 : index
    %c0_6 = arith.constant 0 : index
    %7 = vector.load %arg2[%c1, %c0_5, %c0_6] : memref<4x16x12xbf16, #tpu.memory_space<vmem>>, vector<1x16x12xbf16>
    %8 = vector.shape_cast %7 : vector<1x16x12xbf16> to vector<16x12xbf16>
    %cst_7 = arith.constant dense<0.000000e+00> : vector<16x384xf32>
    %9 = tpu.matmul %8, %6, %cst_7 {dimension_numbers = #tpu.dot_dimension_numbers<[1], [0], [0], [1], [0, 0, 1, 1], [], []>} : vector<16x12xbf16>, vector<12x384xbf16>, vector<16x384xf32> -> vector<16x384xf32>
    %10 = arith.addf %5, %9 : vector<16x384xf32>
    %11 = vector.extract_strided_slice %1 {offsets = [0, 17], sizes = [12, 384], strides = [1, 1]} : vector<12x512xbf16> to vector<12x384xbf16>
    %c2 = arith.constant 2 : index
    %c0_8 = arith.constant 0 : index
    %c0_9 = arith.constant 0 : index
    %12 = vector.load %arg2[%c2, %c0_8, %c0_9] : memref<4x16x12xbf16, #tpu.memory_space<vmem>>, vector<1x16x12xbf16>
    %13 = vector.shape_cast %12 : vector<1x16x12xbf16> to vector<16x12xbf16>
    %cst_10 = arith.constant dense<0.000000e+00> : vector<16x384xf32>
    %14 = tpu.matmul %13, %11, %cst_10 {dimension_numbers = #tpu.dot_dimension_numbers<[1], [0], [0], [1], [0, 0, 1, 1], [], []>} : vector<16x12xbf16>, vector<12x384xbf16>, vector<16x384xf32> -> vector<16x384xf32>
    %15 = arith.addf %10, %14 : vector<16x384xf32>
    %16 = vector.extract_strided_slice %1 {offsets = [0, 18], sizes = [12, 384], strides = [1, 1]} : vector<12x512xbf16> to vector<12x384xbf16>
    %c3 = arith.constant 3 : index
    %c0_11 = arith.constant 0 : index
    %c0_12 = arith.constant 0 : index
    %17 = vector.load %arg2[%c3, %c0_11, %c0_12] : memref<4x16x12xbf16, #tpu.memory_space<vmem>>, vector<1x16x12xbf16>
    %18 = vector.shape_cast %17 : vector<1x16x12xbf16> to vector<16x12xbf16>
    %cst_13 = arith.constant dense<0.000000e+00> : vector<16x384xf32>
    %19 = tpu.matmul %18, %16, %cst_13 {dimension_numbers = #tpu.dot_dimension_numbers<[1], [0], [0], [1], [0, 0, 1, 1], [], []>} : vector<16x12xbf16>, vector<12x384xbf16>, vector<16x384xf32> -> vector<16x384xf32>
    %20 = arith.addf %15, %19 : vector<16x384xf32>
    %c0_14 = arith.constant 0 : index
    %c0_15 = arith.constant 0 : index
    %21 = vector.load %arg5[%c0_14, %c0_15] : memref<1x384xf32, #tpu.memory_space<vmem>>, vector<1x384xf32>
    %22 = vector.broadcast %21 : vector<1x384xf32> to vector<16x384xf32>
    %23 = arith.mulf %20, %22 : vector<16x384xf32>
    %cst_16 = arith.constant dense<0.000000e+00> : vector<16xf32>
    %24 = vector.multi_reduction <add>, %23, %cst_16 [1] : vector<16x384xf32> to vector<16xf32>
    %25 = vector.shape_cast %24 : vector<16xf32> to vector<16x1xf32>
    %cst_17 = arith.constant 3.906250e-03 : f32
    %26 = vector.broadcast %cst_17 : f32 to vector<16x1xf32>
    %27 = arith.mulf %25, %26 : vector<16x1xf32>
    %28 = vector.broadcast %27 : vector<16x1xf32> to vector<16x384xf32>
    %29 = arith.subf %20, %28 : vector<16x384xf32>
    %30 = arith.mulf %29, %29 : vector<16x384xf32>
    %31 = vector.broadcast %21 : vector<1x384xf32> to vector<16x384xf32>
    %32 = arith.mulf %30, %31 : vector<16x384xf32>
    %cst_18 = arith.constant dense<0.000000e+00> : vector<16xf32>
    %33 = vector.multi_reduction <add>, %32, %cst_18 [1] : vector<16x384xf32> to vector<16xf32>
    %34 = vector.shape_cast %33 : vector<16xf32> to vector<16x1xf32>
    %cst_19 = arith.constant 3.906250e-03 : f32
    %35 = vector.broadcast %cst_19 : f32 to vector<16x1xf32>
    %36 = arith.mulf %34, %35 : vector<16x1xf32>
    %cst_20 = arith.constant 9.99999974E-6 : f32
    %37 = vector.broadcast %cst_20 : f32 to vector<16x1xf32>
    %38 = arith.addf %36, %37 : vector<16x1xf32>
    %39 = math.rsqrt %38 : vector<16x1xf32>
    %40 = vector.broadcast %39 : vector<16x1xf32> to vector<16x384xf32>
    %41 = arith.mulf %29, %40 : vector<16x384xf32>
    %c0_21 = arith.constant 0 : index
    %c0_22 = arith.constant 0 : index
    %42 = vector.load %arg3[%c0_21, %c0_22] : memref<16x1xf32, #tpu.memory_space<vmem>>, vector<16x1xf32>
    %43 = vector.broadcast %42 : vector<16x1xf32> to vector<16x384xf32>
    %44 = arith.mulf %41, %43 : vector<16x384xf32>
    %c0_23 = arith.constant 0 : index
    %c0_24 = arith.constant 0 : index
    %45 = vector.load %arg4[%c0_23, %c0_24] : memref<16x1xf32, #tpu.memory_space<vmem>>, vector<16x1xf32>
    %46 = vector.broadcast %45 : vector<16x1xf32> to vector<16x384xf32>
    %47 = arith.addf %44, %46 : vector<16x384xf32>
    %cst_25 = arith.constant 0.000000e+00 : f32
    %48 = vector.broadcast %cst_25 : f32 to vector<16x384xf32>
    %49 = arith.maximumf %47, %48 : vector<16x384xf32>
    %50 = arith.truncf %49 : vector<16x384xf32> to vector<16x384xbf16>
    %c0_26 = arith.constant 0 : index
    %c0_27 = arith.constant 0 : index
    %c0_28 = arith.constant 0 : index
    %51 = vector.load %arg6[%c0_26, %c0_27, %c0_28] : memref<1x16x384xbf16, #tpu.memory_space<vmem>>, vector<1x16x384xbf16>
    %52 = vector.shape_cast %51 : vector<1x16x384xbf16> to vector<16x384xbf16>
    %53 = vector.shape_cast %50 : vector<16x384xbf16> to vector<1x16x384xbf16>
    tpu.vector_store %arg6[%c0_26, %c0_27, %c0_28], %53 {strides = array<i32>} : memref<1x16x384xbf16, #tpu.memory_space<vmem>>, vector<1x16x384xbf16>,
    return
  }
  func.func @transform_0(%arg0: i32) -> (i32, i32, i32) {
    %c0_i32 = arith.constant 0 : i32
    %c0_i32_0 = arith.constant 0 : i32
    %c0_i32_1 = arith.constant 0 : i32
    return %arg0, %c0_i32, %c0_i32_0 : i32, i32, i32
  }
  func.func @transform_1(%arg0: i32) -> (i32, i32, i32) {
    %c0_i32 = arith.constant 0 : i32
    %c0_i32_0 = arith.constant 0 : i32
    %c0_i32_1 = arith.constant 0 : i32
    %c0_i32_2 = arith.constant 0 : i32
    return %c0_i32, %c0_i32_0, %c0_i32_1 : i32, i32, i32
  }
  func.func @transform_2(%arg0: i32) -> (i32, i32) {
    %c0_i32 = arith.constant 0 : i32
    %c0_i32_0 = arith.constant 0 : i32
    %c0_i32_1 = arith.constant 0 : i32
    return %c0_i32, %c0_i32_0 : i32, i32
  }
  func.func @transform_3(%arg0: i32) -> (i32, i32) {
    %c0_i32 = arith.constant 0 : i32
    %c0_i32_0 = arith.constant 0 : i32
    %c0_i32_1 = arith.constant 0 : i32
    return %c0_i32, %c0_i32_0 : i32, i32
  }
  func.func @transform_4(%arg0: i32) -> (i32, i32) {
    %c0_i32 = arith.constant 0 : i32
    %c0_i32_0 = arith.constant 0 : i32
    %c0_i32_1 = arith.constant 0 : i32
    return %c0_i32, %c0_i32_0 : i32, i32
  }
  func.func @transform_5(%arg0: i32) -> (i32, i32, i32) {
    %c0_i32 = arith.constant 0 : i32
    %c0_i32_0 = arith.constant 0 : i32
    %c0_i32_1 = arith.constant 0 : i32
    return %arg0, %c0_i32, %c0_i32_0 : i32, i32, i32
  }
}

module attributes {stable_mosaic.version = 11 : i64} {
  func.func @kernel(%arg0: i32, %arg1: memref<1x32x256xbf16, #tpu.memory_space<vmem>>, %arg2: memref<4x16x32xbf16, #tpu.memory_space<vmem>>, %arg3: memref<16x1xf32, #tpu.memory_space<vmem>>, %arg4: memref<16x1xf32, #tpu.memory_space<vmem>>, %arg5: memref<1x128xf32, #tpu.memory_space<vmem>>, %arg6: memref<1x16x128xbf16, #tpu.memory_space<vmem>>) attributes {dimension_semantics = [#tpu.dimension_semantics<parallel>], iteration_bounds = array<i64: 2>, scalar_prefetch = 0 : i64, scratch_operands = 0 : i64, tpu.core_type = #tpu.core_type<tc>, window_params = [{transform_indices = @transform_0, window_bounds = array<i64: 1, 32, 256>}, {pipeline_mode = #tpu.pipeline_mode<synchronous>, transform_indices = @transform_1, window_bounds = array<i64: 4, 16, 32>}, {pipeline_mode = #tpu.pipeline_mode<synchronous>, transform_indices = @transform_2, window_bounds = array<i64: 16, 1>}, {pipeline_mode = #tpu.pipeline_mode<synchronous>, transform_indices = @transform_3, window_bounds = array<i64: 16, 1>}, {pipeline_mode = #tpu.pipeline_mode<synchronous>, transform_indices = @transform_4, window_bounds = array<i64: 1, 128>}, {transform_indices = @transform_5, window_bounds = array<i64: 1, 16, 128>}]} {
    %c0 = arith.constant 0 : index
    %c0_0 = arith.constant 0 : index
    %c0_1 = arith.constant 0 : index
    %0 = vector.load %arg1[%c0, %c0_0, %c0_1] : memref<1x32x256xbf16, #tpu.memory_space<vmem>>, vector<1x32x256xbf16>
    %1 = vector.shape_cast %0 : vector<1x32x256xbf16> to vector<32x256xbf16>
    %2 = vector.extract_strided_slice %1 {offsets = [0, 0], sizes = [32, 128], strides = [1, 1]} : vector<32x256xbf16> to vector<32x128xbf16>
    %c0_2 = arith.constant 0 : index
    %c0_3 = arith.constant 0 : index
    %c0_4 = arith.constant 0 : index
    %3 = vector.load %arg2[%c0_2, %c0_3, %c0_4] : memref<4x16x32xbf16, #tpu.memory_space<vmem>>, vector<1x16x32xbf16>
    %4 = vector.shape_cast %3 : vector<1x16x32xbf16> to vector<16x32xbf16>
    %cst = arith.constant dense<0.000000e+00> : vector<16x128xf32>
    %5 = tpu.matmul %4, %2, %cst {dimension_numbers = #tpu.dot_dimension_numbers<[1], [0], [0], [1], [0, 0, 1, 1], [], []>} : vector<16x32xbf16>, vector<32x128xbf16>, vector<16x128xf32> -> vector<16x128xf32>
    %6 = vector.extract_strided_slice %1 {offsets = [0, 1], sizes = [32, 128], strides = [1, 1]} : vector<32x256xbf16> to vector<32x128xbf16>
    %c1 = arith.constant 1 : index
    %c0_5 = arith.constant 0 : index
    %c0_6 = arith.constant 0 : index
    %7 = vector.load %arg2[%c1, %c0_5, %c0_6] : memref<4x16x32xbf16, #tpu.memory_space<vmem>>, vector<1x16x32xbf16>
    %8 = vector.shape_cast %7 : vector<1x16x32xbf16> to vector<16x32xbf16>
    %cst_7 = arith.constant dense<0.000000e+00> : vector<16x128xf32>
    %9 = tpu.matmul %8, %6, %cst_7 {dimension_numbers = #tpu.dot_dimension_numbers<[1], [0], [0], [1], [0, 0, 1, 1], [], []>} : vector<16x32xbf16>, vector<32x128xbf16>, vector<16x128xf32> -> vector<16x128xf32>
    %10 = arith.addf %5, %9 : vector<16x128xf32>
    %11 = vector.extract_strided_slice %1 {offsets = [0, 9], sizes = [32, 128], strides = [1, 1]} : vector<32x256xbf16> to vector<32x128xbf16>
    %c2 = arith.constant 2 : index
    %c0_8 = arith.constant 0 : index
    %c0_9 = arith.constant 0 : index
    %12 = vector.load %arg2[%c2, %c0_8, %c0_9] : memref<4x16x32xbf16, #tpu.memory_space<vmem>>, vector<1x16x32xbf16>
    %13 = vector.shape_cast %12 : vector<1x16x32xbf16> to vector<16x32xbf16>
    %cst_10 = arith.constant dense<0.000000e+00> : vector<16x128xf32>
    %14 = tpu.matmul %13, %11, %cst_10 {dimension_numbers = #tpu.dot_dimension_numbers<[1], [0], [0], [1], [0, 0, 1, 1], [], []>} : vector<16x32xbf16>, vector<32x128xbf16>, vector<16x128xf32> -> vector<16x128xf32>
    %15 = arith.addf %10, %14 : vector<16x128xf32>
    %16 = vector.extract_strided_slice %1 {offsets = [0, 10], sizes = [32, 128], strides = [1, 1]} : vector<32x256xbf16> to vector<32x128xbf16>
    %c3 = arith.constant 3 : index
    %c0_11 = arith.constant 0 : index
    %c0_12 = arith.constant 0 : index
    %17 = vector.load %arg2[%c3, %c0_11, %c0_12] : memref<4x16x32xbf16, #tpu.memory_space<vmem>>, vector<1x16x32xbf16>
    %18 = vector.shape_cast %17 : vector<1x16x32xbf16> to vector<16x32xbf16>
    %cst_13 = arith.constant dense<0.000000e+00> : vector<16x128xf32>
    %19 = tpu.matmul %18, %16, %cst_13 {dimension_numbers = #tpu.dot_dimension_numbers<[1], [0], [0], [1], [0, 0, 1, 1], [], []>} : vector<16x32xbf16>, vector<32x128xbf16>, vector<16x128xf32> -> vector<16x128xf32>
    %20 = arith.addf %15, %19 : vector<16x128xf32>
    %c0_14 = arith.constant 0 : index
    %c0_15 = arith.constant 0 : index
    %21 = vector.load %arg5[%c0_14, %c0_15] : memref<1x128xf32, #tpu.memory_space<vmem>>, vector<1x128xf32>
    %22 = vector.broadcast %21 : vector<1x128xf32> to vector<16x128xf32>
    %23 = arith.mulf %20, %22 : vector<16x128xf32>
    %cst_16 = arith.constant dense<0.000000e+00> : vector<16xf32>
    %24 = vector.multi_reduction <add>, %23, %cst_16 [1] : vector<16x128xf32> to vector<16xf32>
    %25 = vector.shape_cast %24 : vector<16xf32> to vector<16x1xf32>
    %cst_17 = arith.constant 1.562500e-02 : f32
    %26 = vector.broadcast %cst_17 : f32 to vector<16x1xf32>
    %27 = arith.mulf %25, %26 : vector<16x1xf32>
    %28 = vector.broadcast %27 : vector<16x1xf32> to vector<16x128xf32>
    %29 = arith.subf %20, %28 : vector<16x128xf32>
    %30 = arith.mulf %29, %29 : vector<16x128xf32>
    %31 = vector.broadcast %21 : vector<1x128xf32> to vector<16x128xf32>
    %32 = arith.mulf %30, %31 : vector<16x128xf32>
    %cst_18 = arith.constant dense<0.000000e+00> : vector<16xf32>
    %33 = vector.multi_reduction <add>, %32, %cst_18 [1] : vector<16x128xf32> to vector<16xf32>
    %34 = vector.shape_cast %33 : vector<16xf32> to vector<16x1xf32>
    %cst_19 = arith.constant 1.562500e-02 : f32
    %35 = vector.broadcast %cst_19 : f32 to vector<16x1xf32>
    %36 = arith.mulf %34, %35 : vector<16x1xf32>
    %cst_20 = arith.constant 9.99999974E-6 : f32
    %37 = vector.broadcast %cst_20 : f32 to vector<16x1xf32>
    %38 = arith.addf %36, %37 : vector<16x1xf32>
    %39 = math.rsqrt %38 : vector<16x1xf32>
    %40 = vector.broadcast %39 : vector<16x1xf32> to vector<16x128xf32>
    %41 = arith.mulf %29, %40 : vector<16x128xf32>
    %c0_21 = arith.constant 0 : index
    %c0_22 = arith.constant 0 : index
    %42 = vector.load %arg3[%c0_21, %c0_22] : memref<16x1xf32, #tpu.memory_space<vmem>>, vector<16x1xf32>
    %43 = vector.broadcast %42 : vector<16x1xf32> to vector<16x128xf32>
    %44 = arith.mulf %41, %43 : vector<16x128xf32>
    %c0_23 = arith.constant 0 : index
    %c0_24 = arith.constant 0 : index
    %45 = vector.load %arg4[%c0_23, %c0_24] : memref<16x1xf32, #tpu.memory_space<vmem>>, vector<16x1xf32>
    %46 = vector.broadcast %45 : vector<16x1xf32> to vector<16x128xf32>
    %47 = arith.addf %44, %46 : vector<16x128xf32>
    %cst_25 = arith.constant 0.000000e+00 : f32
    %48 = vector.broadcast %cst_25 : f32 to vector<16x128xf32>
    %49 = arith.maximumf %47, %48 : vector<16x128xf32>
    %50 = arith.truncf %49 : vector<16x128xf32> to vector<16x128xbf16>
    %c0_26 = arith.constant 0 : index
    %c0_27 = arith.constant 0 : index
    %c0_28 = arith.constant 0 : index
    %51 = vector.load %arg6[%c0_26, %c0_27, %c0_28] : memref<1x16x128xbf16, #tpu.memory_space<vmem>>, vector<1x16x128xbf16>
    %52 = vector.shape_cast %51 : vector<1x16x128xbf16> to vector<16x128xbf16>
    %53 = vector.shape_cast %50 : vector<16x128xbf16> to vector<1x16x128xbf16>
    tpu.vector_store %arg6[%c0_26, %c0_27, %c0_28], %53 {strides = array<i32>} : memref<1x16x128xbf16, #tpu.memory_space<vmem>>, vector<1x16x128xbf16>,
    return
  }
  func.func @transform_0(%arg0: i32) -> (i32, i32, i32) {
    %c0_i32 = arith.constant 0 : i32
    %c0_i32_0 = arith.constant 0 : i32
    %c0_i32_1 = arith.constant 0 : i32
    return %arg0, %c0_i32, %c0_i32_0 : i32, i32, i32
  }
  func.func @transform_1(%arg0: i32) -> (i32, i32, i32) {
    %c0_i32 = arith.constant 0 : i32
    %c0_i32_0 = arith.constant 0 : i32
    %c0_i32_1 = arith.constant 0 : i32
    %c0_i32_2 = arith.constant 0 : i32
    return %c0_i32, %c0_i32_0, %c0_i32_1 : i32, i32, i32
  }
  func.func @transform_2(%arg0: i32) -> (i32, i32) {
    %c0_i32 = arith.constant 0 : i32
    %c0_i32_0 = arith.constant 0 : i32
    %c0_i32_1 = arith.constant 0 : i32
    return %c0_i32, %c0_i32_0 : i32, i32
  }
  func.func @transform_3(%arg0: i32) -> (i32, i32) {
    %c0_i32 = arith.constant 0 : i32
    %c0_i32_0 = arith.constant 0 : i32
    %c0_i32_1 = arith.constant 0 : i32
    return %c0_i32, %c0_i32_0 : i32, i32
  }
  func.func @transform_4(%arg0: i32) -> (i32, i32) {
    %c0_i32 = arith.constant 0 : i32
    %c0_i32_0 = arith.constant 0 : i32
    %c0_i32_1 = arith.constant 0 : i32
    return %c0_i32, %c0_i32_0 : i32, i32
  }
  func.func @transform_5(%arg0: i32) -> (i32, i32, i32) {
    %c0_i32 = arith.constant 0 : i32
    %c0_i32_0 = arith.constant 0 : i32
    %c0_i32_1 = arith.constant 0 : i32
    return %arg0, %c0_i32, %c0_i32_0 : i32, i32, i32
  }
}

module attributes {stable_mosaic.version = 11 : i64} {
  func.func @kernel(%arg0: i32, %arg1: memref<1x32x256xbf16, #tpu.memory_space<vmem>>, %arg2: memref<4x16x32xbf16, #tpu.memory_space<vmem>>, %arg3: memref<16x1xf32, #tpu.memory_space<vmem>>, %arg4: memref<16x1xf32, #tpu.memory_space<vmem>>, %arg5: memref<1x128xf32, #tpu.memory_space<vmem>>, %arg6: memref<1x16x128xbf16, #tpu.memory_space<vmem>>) attributes {dimension_semantics = [#tpu.dimension_semantics<parallel>], iteration_bounds = array<i64: 2>, scalar_prefetch = 0 : i64, scratch_operands = 0 : i64, tpu.core_type = #tpu.core_type<tc>, window_params = [{transform_indices = @transform_0, window_bounds = array<i64: 1, 32, 256>}, {pipeline_mode = #tpu.pipeline_mode<synchronous>, transform_indices = @transform_1, window_bounds = array<i64: 4, 16, 32>}, {pipeline_mode = #tpu.pipeline_mode<synchronous>, transform_indices = @transform_2, window_bounds = array<i64: 16, 1>}, {pipeline_mode = #tpu.pipeline_mode<synchronous>, transform_indices = @transform_3, window_bounds = array<i64: 16, 1>}, {pipeline_mode = #tpu.pipeline_mode<synchronous>, transform_indices = @transform_4, window_bounds = array<i64: 1, 128>}, {transform_indices = @transform_5, window_bounds = array<i64: 1, 16, 128>}]} {
    %c0 = arith.constant 0 : index
    %c0_0 = arith.constant 0 : index
    %c0_1 = arith.constant 0 : index
    %0 = vector.load %arg1[%c0, %c0_0, %c0_1] : memref<1x32x256xbf16, #tpu.memory_space<vmem>>, vector<1x32x256xbf16>
    %1 = vector.shape_cast %0 : vector<1x32x256xbf16> to vector<32x256xbf16>
    %2 = vector.extract_strided_slice %1 {offsets = [0, 0], sizes = [32, 128], strides = [1, 1]} : vector<32x256xbf16> to vector<32x128xbf16>
    %c0_2 = arith.constant 0 : index
    %c0_3 = arith.constant 0 : index
    %c0_4 = arith.constant 0 : index
    %3 = vector.load %arg2[%c0_2, %c0_3, %c0_4] : memref<4x16x32xbf16, #tpu.memory_space<vmem>>, vector<1x16x32xbf16>
    %4 = vector.shape_cast %3 : vector<1x16x32xbf16> to vector<16x32xbf16>
    %cst = arith.constant dense<0.000000e+00> : vector<16x128xf32>
    %5 = tpu.matmul %4, %2, %cst {dimension_numbers = #tpu.dot_dimension_numbers<[1], [0], [0], [1], [0, 0, 1, 1], [], []>} : vector<16x32xbf16>, vector<32x128xbf16>, vector<16x128xf32> -> vector<16x128xf32>
    %6 = vector.extract_strided_slice %1 {offsets = [0, 1], sizes = [32, 128], strides = [1, 1]} : vector<32x256xbf16> to vector<32x128xbf16>
    %c1 = arith.constant 1 : index
    %c0_5 = arith.constant 0 : index
    %c0_6 = arith.constant 0 : index
    %7 = vector.load %arg2[%c1, %c0_5, %c0_6] : memref<4x16x32xbf16, #tpu.memory_space<vmem>>, vector<1x16x32xbf16>
    %8 = vector.shape_cast %7 : vector<1x16x32xbf16> to vector<16x32xbf16>
    %cst_7 = arith.constant dense<0.000000e+00> : vector<16x128xf32>
    %9 = tpu.matmul %8, %6, %cst_7 {dimension_numbers = #tpu.dot_dimension_numbers<[1], [0], [0], [1], [0, 0, 1, 1], [], []>} : vector<16x32xbf16>, vector<32x128xbf16>, vector<16x128xf32> -> vector<16x128xf32>
    %10 = arith.addf %5, %9 : vector<16x128xf32>
    %11 = vector.extract_strided_slice %1 {offsets = [0, 5], sizes = [32, 128], strides = [1, 1]} : vector<32x256xbf16> to vector<32x128xbf16>
    %c2 = arith.constant 2 : index
    %c0_8 = arith.constant 0 : index
    %c0_9 = arith.constant 0 : index
    %12 = vector.load %arg2[%c2, %c0_8, %c0_9] : memref<4x16x32xbf16, #tpu.memory_space<vmem>>, vector<1x16x32xbf16>
    %13 = vector.shape_cast %12 : vector<1x16x32xbf16> to vector<16x32xbf16>
    %cst_10 = arith.constant dense<0.000000e+00> : vector<16x128xf32>
    %14 = tpu.matmul %13, %11, %cst_10 {dimension_numbers = #tpu.dot_dimension_numbers<[1], [0], [0], [1], [0, 0, 1, 1], [], []>} : vector<16x32xbf16>, vector<32x128xbf16>, vector<16x128xf32> -> vector<16x128xf32>
    %15 = arith.addf %10, %14 : vector<16x128xf32>
    %16 = vector.extract_strided_slice %1 {offsets = [0, 6], sizes = [32, 128], strides = [1, 1]} : vector<32x256xbf16> to vector<32x128xbf16>
    %c3 = arith.constant 3 : index
    %c0_11 = arith.constant 0 : index
    %c0_12 = arith.constant 0 : index
    %17 = vector.load %arg2[%c3, %c0_11, %c0_12] : memref<4x16x32xbf16, #tpu.memory_space<vmem>>, vector<1x16x32xbf16>
    %18 = vector.shape_cast %17 : vector<1x16x32xbf16> to vector<16x32xbf16>
    %cst_13 = arith.constant dense<0.000000e+00> : vector<16x128xf32>
    %19 = tpu.matmul %18, %16, %cst_13 {dimension_numbers = #tpu.dot_dimension_numbers<[1], [0], [0], [1], [0, 0, 1, 1], [], []>} : vector<16x32xbf16>, vector<32x128xbf16>, vector<16x128xf32> -> vector<16x128xf32>
    %20 = arith.addf %15, %19 : vector<16x128xf32>
    %c0_14 = arith.constant 0 : index
    %c0_15 = arith.constant 0 : index
    %21 = vector.load %arg5[%c0_14, %c0_15] : memref<1x128xf32, #tpu.memory_space<vmem>>, vector<1x128xf32>
    %22 = vector.broadcast %21 : vector<1x128xf32> to vector<16x128xf32>
    %23 = arith.mulf %20, %22 : vector<16x128xf32>
    %cst_16 = arith.constant dense<0.000000e+00> : vector<16xf32>
    %24 = vector.multi_reduction <add>, %23, %cst_16 [1] : vector<16x128xf32> to vector<16xf32>
    %25 = vector.shape_cast %24 : vector<16xf32> to vector<16x1xf32>
    %cst_17 = arith.constant 6.250000e-02 : f32
    %26 = vector.broadcast %cst_17 : f32 to vector<16x1xf32>
    %27 = arith.mulf %25, %26 : vector<16x1xf32>
    %28 = vector.broadcast %27 : vector<16x1xf32> to vector<16x128xf32>
    %29 = arith.subf %20, %28 : vector<16x128xf32>
    %30 = arith.mulf %29, %29 : vector<16x128xf32>
    %31 = vector.broadcast %21 : vector<1x128xf32> to vector<16x128xf32>
    %32 = arith.mulf %30, %31 : vector<16x128xf32>
    %cst_18 = arith.constant dense<0.000000e+00> : vector<16xf32>
    %33 = vector.multi_reduction <add>, %32, %cst_18 [1] : vector<16x128xf32> to vector<16xf32>
    %34 = vector.shape_cast %33 : vector<16xf32> to vector<16x1xf32>
    %cst_19 = arith.constant 6.250000e-02 : f32
    %35 = vector.broadcast %cst_19 : f32 to vector<16x1xf32>
    %36 = arith.mulf %34, %35 : vector<16x1xf32>
    %cst_20 = arith.constant 9.99999974E-6 : f32
    %37 = vector.broadcast %cst_20 : f32 to vector<16x1xf32>
    %38 = arith.addf %36, %37 : vector<16x1xf32>
    %39 = math.rsqrt %38 : vector<16x1xf32>
    %40 = vector.broadcast %39 : vector<16x1xf32> to vector<16x128xf32>
    %41 = arith.mulf %29, %40 : vector<16x128xf32>
    %c0_21 = arith.constant 0 : index
    %c0_22 = arith.constant 0 : index
    %42 = vector.load %arg3[%c0_21, %c0_22] : memref<16x1xf32, #tpu.memory_space<vmem>>, vector<16x1xf32>
    %43 = vector.broadcast %42 : vector<16x1xf32> to vector<16x128xf32>
    %44 = arith.mulf %41, %43 : vector<16x128xf32>
    %c0_23 = arith.constant 0 : index
    %c0_24 = arith.constant 0 : index
    %45 = vector.load %arg4[%c0_23, %c0_24] : memref<16x1xf32, #tpu.memory_space<vmem>>, vector<16x1xf32>
    %46 = vector.broadcast %45 : vector<16x1xf32> to vector<16x128xf32>
    %47 = arith.addf %44, %46 : vector<16x128xf32>
    %cst_25 = arith.constant 0.000000e+00 : f32
    %48 = vector.broadcast %cst_25 : f32 to vector<16x128xf32>
    %49 = arith.maximumf %47, %48 : vector<16x128xf32>
    %50 = arith.truncf %49 : vector<16x128xf32> to vector<16x128xbf16>
    %c0_26 = arith.constant 0 : index
    %c0_27 = arith.constant 0 : index
    %c0_28 = arith.constant 0 : index
    %51 = vector.load %arg6[%c0_26, %c0_27, %c0_28] : memref<1x16x128xbf16, #tpu.memory_space<vmem>>, vector<1x16x128xbf16>
    %52 = vector.shape_cast %51 : vector<1x16x128xbf16> to vector<16x128xbf16>
    %53 = vector.shape_cast %50 : vector<16x128xbf16> to vector<1x16x128xbf16>
    tpu.vector_store %arg6[%c0_26, %c0_27, %c0_28], %53 {strides = array<i32>} : memref<1x16x128xbf16, #tpu.memory_space<vmem>>, vector<1x16x128xbf16>,
    return
  }
  func.func @transform_0(%arg0: i32) -> (i32, i32, i32) {
    %c0_i32 = arith.constant 0 : i32
    %c0_i32_0 = arith.constant 0 : i32
    %c0_i32_1 = arith.constant 0 : i32
    return %arg0, %c0_i32, %c0_i32_0 : i32, i32, i32
  }
  func.func @transform_1(%arg0: i32) -> (i32, i32, i32) {
    %c0_i32 = arith.constant 0 : i32
    %c0_i32_0 = arith.constant 0 : i32
    %c0_i32_1 = arith.constant 0 : i32
    %c0_i32_2 = arith.constant 0 : i32
    return %c0_i32, %c0_i32_0, %c0_i32_1 : i32, i32, i32
  }
  func.func @transform_2(%arg0: i32) -> (i32, i32) {
    %c0_i32 = arith.constant 0 : i32
    %c0_i32_0 = arith.constant 0 : i32
    %c0_i32_1 = arith.constant 0 : i32
    return %c0_i32, %c0_i32_0 : i32, i32
  }
  func.func @transform_3(%arg0: i32) -> (i32, i32) {
    %c0_i32 = arith.constant 0 : i32
    %c0_i32_0 = arith.constant 0 : i32
    %c0_i32_1 = arith.constant 0 : i32
    return %c0_i32, %c0_i32_0 : i32, i32
  }
  func.func @transform_4(%arg0: i32) -> (i32, i32) {
    %c0_i32 = arith.constant 0 : i32
    %c0_i32_0 = arith.constant 0 : i32
    %c0_i32_1 = arith.constant 0 : i32
    return %c0_i32, %c0_i32_0 : i32, i32
  }
  func.func @transform_5(%arg0: i32) -> (i32, i32, i32) {
    %c0_i32 = arith.constant 0 : i32
    %c0_i32_0 = arith.constant 0 : i32
    %c0_i32_1 = arith.constant 0 : i32
    return %arg0, %c0_i32, %c0_i32_0 : i32, i32, i32
  }
}

module attributes {stable_mosaic.version = 11 : i64} {
  func.func @kernel(%arg0: i32, %arg1: memref<1x32x256xbf16, #tpu.memory_space<vmem>>, %arg2: memref<4x16x32xbf16, #tpu.memory_space<vmem>>, %arg3: memref<1x16x128xbf16, #tpu.memory_space<vmem>>) attributes {dimension_semantics = [#tpu.dimension_semantics<parallel>], iteration_bounds = array<i64: 2>, scalar_prefetch = 0 : i64, scratch_operands = 0 : i64, tpu.core_type = #tpu.core_type<tc>, window_params = [{transform_indices = @transform_0, window_bounds = array<i64: 1, 32, 256>}, {pipeline_mode = #tpu.pipeline_mode<synchronous>, transform_indices = @transform_1, window_bounds = array<i64: 4, 16, 32>}, {transform_indices = @transform_2, window_bounds = array<i64: 1, 16, 128>}]} {
    %c0 = arith.constant 0 : index
    %c0_0 = arith.constant 0 : index
    %c0_1 = arith.constant 0 : index
    %0 = vector.load %arg1[%c0, %c0_0, %c0_1] : memref<1x32x256xbf16, #tpu.memory_space<vmem>>, vector<1x32x256xbf16>
    %1 = vector.shape_cast %0 : vector<1x32x256xbf16> to vector<32x256xbf16>
    %2 = vector.extract_strided_slice %1 {offsets = [0, 0], sizes = [32, 128], strides = [1, 1]} : vector<32x256xbf16> to vector<32x128xbf16>
    %c0_2 = arith.constant 0 : index
    %c0_3 = arith.constant 0 : index
    %c0_4 = arith.constant 0 : index
    %3 = vector.load %arg2[%c0_2, %c0_3, %c0_4] : memref<4x16x32xbf16, #tpu.memory_space<vmem>>, vector<1x16x32xbf16>
    %4 = vector.shape_cast %3 : vector<1x16x32xbf16> to vector<16x32xbf16>
    %cst = arith.constant dense<0.000000e+00> : vector<16x128xf32>
    %5 = tpu.matmul %4, %2, %cst {dimension_numbers = #tpu.dot_dimension_numbers<[1], [0], [0], [1], [0, 0, 1, 1], [], []>} : vector<16x32xbf16>, vector<32x128xbf16>, vector<16x128xf32> -> vector<16x128xf32>
    %6 = vector.extract_strided_slice %1 {offsets = [0, 1], sizes = [32, 128], strides = [1, 1]} : vector<32x256xbf16> to vector<32x128xbf16>
    %c1 = arith.constant 1 : index
    %c0_5 = arith.constant 0 : index
    %c0_6 = arith.constant 0 : index
    %7 = vector.load %arg2[%c1, %c0_5, %c0_6] : memref<4x16x32xbf16, #tpu.memory_space<vmem>>, vector<1x16x32xbf16>
    %8 = vector.shape_cast %7 : vector<1x16x32xbf16> to vector<16x32xbf16>
    %cst_7 = arith.constant dense<0.000000e+00> : vector<16x128xf32>
    %9 = tpu.matmul %8, %6, %cst_7 {dimension_numbers = #tpu.dot_dimension_numbers<[1], [0], [0], [1], [0, 0, 1, 1], [], []>} : vector<16x32xbf16>, vector<32x128xbf16>, vector<16x128xf32> -> vector<16x128xf32>
    %10 = arith.addf %5, %9 : vector<16x128xf32>
    %11 = vector.extract_strided_slice %1 {offsets = [0, 9], sizes = [32, 128], strides = [1, 1]} : vector<32x256xbf16> to vector<32x128xbf16>
    %c2 = arith.constant 2 : index
    %c0_8 = arith.constant 0 : index
    %c0_9 = arith.constant 0 : index
    %12 = vector.load %arg2[%c2, %c0_8, %c0_9] : memref<4x16x32xbf16, #tpu.memory_space<vmem>>, vector<1x16x32xbf16>
    %13 = vector.shape_cast %12 : vector<1x16x32xbf16> to vector<16x32xbf16>
    %cst_10 = arith.constant dense<0.000000e+00> : vector<16x128xf32>
    %14 = tpu.matmul %13, %11, %cst_10 {dimension_numbers = #tpu.dot_dimension_numbers<[1], [0], [0], [1], [0, 0, 1, 1], [], []>} : vector<16x32xbf16>, vector<32x128xbf16>, vector<16x128xf32> -> vector<16x128xf32>
    %15 = arith.addf %10, %14 : vector<16x128xf32>
    %16 = vector.extract_strided_slice %1 {offsets = [0, 10], sizes = [32, 128], strides = [1, 1]} : vector<32x256xbf16> to vector<32x128xbf16>
    %c3 = arith.constant 3 : index
    %c0_11 = arith.constant 0 : index
    %c0_12 = arith.constant 0 : index
    %17 = vector.load %arg2[%c3, %c0_11, %c0_12] : memref<4x16x32xbf16, #tpu.memory_space<vmem>>, vector<1x16x32xbf16>
    %18 = vector.shape_cast %17 : vector<1x16x32xbf16> to vector<16x32xbf16>
    %cst_13 = arith.constant dense<0.000000e+00> : vector<16x128xf32>
    %19 = tpu.matmul %18, %16, %cst_13 {dimension_numbers = #tpu.dot_dimension_numbers<[1], [0], [0], [1], [0, 0, 1, 1], [], []>} : vector<16x32xbf16>, vector<32x128xbf16>, vector<16x128xf32> -> vector<16x128xf32>
    %20 = arith.addf %15, %19 : vector<16x128xf32>
    %cst_14 = arith.constant 0.000000e+00 : f32
    %21 = vector.broadcast %cst_14 : f32 to vector<16x128xf32>
    %22 = arith.maximumf %20, %21 : vector<16x128xf32>
    %23 = arith.truncf %22 : vector<16x128xf32> to vector<16x128xbf16>
    %c0_15 = arith.constant 0 : index
    %c0_16 = arith.constant 0 : index
    %c0_17 = arith.constant 0 : index
    %24 = vector.load %arg3[%c0_15, %c0_16, %c0_17] : memref<1x16x128xbf16, #tpu.memory_space<vmem>>, vector<1x16x128xbf16>
    %25 = vector.shape_cast %24 : vector<1x16x128xbf16> to vector<16x128xbf16>
    %26 = vector.shape_cast %23 : vector<16x128xbf16> to vector<1x16x128xbf16>
    tpu.vector_store %arg3[%c0_15, %c0_16, %c0_17], %26 {strides = array<i32>} : memref<1x16x128xbf16, #tpu.memory_space<vmem>>, vector<1x16x128xbf16>,
    return
  }
  func.func @transform_0(%arg0: i32) -> (i32, i32, i32) {
    %c0_i32 = arith.constant 0 : i32
    %c0_i32_0 = arith.constant 0 : i32
    %c0_i32_1 = arith.constant 0 : i32
    return %arg0, %c0_i32, %c0_i32_0 : i32, i32, i32
  }
  func.func @transform_1(%arg0: i32) -> (i32, i32, i32) {
    %c0_i32 = arith.constant 0 : i32
    %c0_i32_0 = arith.constant 0 : i32
    %c0_i32_1 = arith.constant 0 : i32
    %c0_i32_2 = arith.constant 0 : i32
    return %c0_i32, %c0_i32_0, %c0_i32_1 : i32, i32, i32
  }
  func.func @transform_2(%arg0: i32) -> (i32, i32, i32) {
    %c0_i32 = arith.constant 0 : i32
    %c0_i32_0 = arith.constant 0 : i32
    %c0_i32_1 = arith.constant 0 : i32
    return %arg0, %c0_i32, %c0_i32_0 : i32, i32, i32
  }
}

module attributes {stable_mosaic.version = 11 : i64} {
  func.func @kernel(%arg0: i32, %arg1: memref<1x12x512xbf16, #tpu.memory_space<vmem>>, %arg2: memref<4x16x12xbf16, #tpu.memory_space<vmem>>, %arg3: memref<1x16x384xbf16, #tpu.memory_space<vmem>>) attributes {dimension_semantics = [#tpu.dimension_semantics<parallel>], iteration_bounds = array<i64: 2>, scalar_prefetch = 0 : i64, scratch_operands = 0 : i64, tpu.core_type = #tpu.core_type<tc>, window_params = [{transform_indices = @transform_0, window_bounds = array<i64: 1, 12, 512>}, {pipeline_mode = #tpu.pipeline_mode<synchronous>, transform_indices = @transform_1, window_bounds = array<i64: 4, 16, 12>}, {transform_indices = @transform_2, window_bounds = array<i64: 1, 16, 384>}]} {
    %c0 = arith.constant 0 : index
    %c0_0 = arith.constant 0 : index
    %c0_1 = arith.constant 0 : index
    %0 = vector.load %arg1[%c0, %c0_0, %c0_1] : memref<1x12x512xbf16, #tpu.memory_space<vmem>>, vector<1x12x512xbf16>
    %1 = vector.shape_cast %0 : vector<1x12x512xbf16> to vector<12x512xbf16>
    %2 = vector.extract_strided_slice %1 {offsets = [0, 0], sizes = [12, 384], strides = [1, 1]} : vector<12x512xbf16> to vector<12x384xbf16>
    %c0_2 = arith.constant 0 : index
    %c0_3 = arith.constant 0 : index
    %c0_4 = arith.constant 0 : index
    %3 = vector.load %arg2[%c0_2, %c0_3, %c0_4] : memref<4x16x12xbf16, #tpu.memory_space<vmem>>, vector<1x16x12xbf16>
    %4 = vector.shape_cast %3 : vector<1x16x12xbf16> to vector<16x12xbf16>
    %cst = arith.constant dense<0.000000e+00> : vector<16x384xf32>
    %5 = tpu.matmul %4, %2, %cst {dimension_numbers = #tpu.dot_dimension_numbers<[1], [0], [0], [1], [0, 0, 1, 1], [], []>} : vector<16x12xbf16>, vector<12x384xbf16>, vector<16x384xf32> -> vector<16x384xf32>
    %6 = vector.extract_strided_slice %1 {offsets = [0, 1], sizes = [12, 384], strides = [1, 1]} : vector<12x512xbf16> to vector<12x384xbf16>
    %c1 = arith.constant 1 : index
    %c0_5 = arith.constant 0 : index
    %c0_6 = arith.constant 0 : index
    %7 = vector.load %arg2[%c1, %c0_5, %c0_6] : memref<4x16x12xbf16, #tpu.memory_space<vmem>>, vector<1x16x12xbf16>
    %8 = vector.shape_cast %7 : vector<1x16x12xbf16> to vector<16x12xbf16>
    %cst_7 = arith.constant dense<0.000000e+00> : vector<16x384xf32>
    %9 = tpu.matmul %8, %6, %cst_7 {dimension_numbers = #tpu.dot_dimension_numbers<[1], [0], [0], [1], [0, 0, 1, 1], [], []>} : vector<16x12xbf16>, vector<12x384xbf16>, vector<16x384xf32> -> vector<16x384xf32>
    %10 = arith.addf %5, %9 : vector<16x384xf32>
    %11 = vector.extract_strided_slice %1 {offsets = [0, 17], sizes = [12, 384], strides = [1, 1]} : vector<12x512xbf16> to vector<12x384xbf16>
    %c2 = arith.constant 2 : index
    %c0_8 = arith.constant 0 : index
    %c0_9 = arith.constant 0 : index
    %12 = vector.load %arg2[%c2, %c0_8, %c0_9] : memref<4x16x12xbf16, #tpu.memory_space<vmem>>, vector<1x16x12xbf16>
    %13 = vector.shape_cast %12 : vector<1x16x12xbf16> to vector<16x12xbf16>
    %cst_10 = arith.constant dense<0.000000e+00> : vector<16x384xf32>
    %14 = tpu.matmul %13, %11, %cst_10 {dimension_numbers = #tpu.dot_dimension_numbers<[1], [0], [0], [1], [0, 0, 1, 1], [], []>} : vector<16x12xbf16>, vector<12x384xbf16>, vector<16x384xf32> -> vector<16x384xf32>
    %15 = arith.addf %10, %14 : vector<16x384xf32>
    %16 = vector.extract_strided_slice %1 {offsets = [0, 18], sizes = [12, 384], strides = [1, 1]} : vector<12x512xbf16> to vector<12x384xbf16>
    %c3 = arith.constant 3 : index
    %c0_11 = arith.constant 0 : index
    %c0_12 = arith.constant 0 : index
    %17 = vector.load %arg2[%c3, %c0_11, %c0_12] : memref<4x16x12xbf16, #tpu.memory_space<vmem>>, vector<1x16x12xbf16>
    %18 = vector.shape_cast %17 : vector<1x16x12xbf16> to vector<16x12xbf16>
    %cst_13 = arith.constant dense<0.000000e+00> : vector<16x384xf32>
    %19 = tpu.matmul %18, %16, %cst_13 {dimension_numbers = #tpu.dot_dimension_numbers<[1], [0], [0], [1], [0, 0, 1, 1], [], []>} : vector<16x12xbf16>, vector<12x384xbf16>, vector<16x384xf32> -> vector<16x384xf32>
    %20 = arith.addf %15, %19 : vector<16x384xf32>
    %cst_14 = arith.constant 0.000000e+00 : f32
    %21 = vector.broadcast %cst_14 : f32 to vector<16x384xf32>
    %22 = arith.maximumf %20, %21 : vector<16x384xf32>
    %23 = arith.truncf %22 : vector<16x384xf32> to vector<16x384xbf16>
    %c0_15 = arith.constant 0 : index
    %c0_16 = arith.constant 0 : index
    %c0_17 = arith.constant 0 : index
    %24 = vector.load %arg3[%c0_15, %c0_16, %c0_17] : memref<1x16x384xbf16, #tpu.memory_space<vmem>>, vector<1x16x384xbf16>
    %25 = vector.shape_cast %24 : vector<1x16x384xbf16> to vector<16x384xbf16>
    %26 = vector.shape_cast %23 : vector<16x384xbf16> to vector<1x16x384xbf16>
    tpu.vector_store %arg3[%c0_15, %c0_16, %c0_17], %26 {strides = array<i32>} : memref<1x16x384xbf16, #tpu.memory_space<vmem>>, vector<1x16x384xbf16>,
    return
  }
  func.func @transform_0(%arg0: i32) -> (i32, i32, i32) {
    %c0_i32 = arith.constant 0 : i32
    %c0_i32_0 = arith.constant 0 : i32
    %c0_i32_1 = arith.constant 0 : i32
    return %arg0, %c0_i32, %c0_i32_0 : i32, i32, i32
  }
  func.func @transform_1(%arg0: i32) -> (i32, i32, i32) {
    %c0_i32 = arith.constant 0 : i32
    %c0_i32_0 = arith.constant 0 : i32
    %c0_i32_1 = arith.constant 0 : i32
    %c0_i32_2 = arith.constant 0 : i32
    return %c0_i32, %c0_i32_0, %c0_i32_1 : i32, i32, i32
  }
  func.func @transform_2(%arg0: i32) -> (i32, i32, i32) {
    %c0_i32 = arith.constant 0 : i32
    %c0_i32_0 = arith.constant 0 : i32
    %c0_i32_1 = arith.constant 0 : i32
    return %arg0, %c0_i32, %c0_i32_0 : i32, i32, i32
  }
}

module attributes {stable_mosaic.version = 11 : i64} {
  func.func @kernel(%arg0: i32, %arg1: memref<1x32x256xbf16, #tpu.memory_space<vmem>>, %arg2: memref<4x16x32xbf16, #tpu.memory_space<vmem>>, %arg3: memref<1x16x128xbf16, #tpu.memory_space<vmem>>) attributes {dimension_semantics = [#tpu.dimension_semantics<parallel>], iteration_bounds = array<i64: 2>, scalar_prefetch = 0 : i64, scratch_operands = 0 : i64, tpu.core_type = #tpu.core_type<tc>, window_params = [{transform_indices = @transform_0, window_bounds = array<i64: 1, 32, 256>}, {pipeline_mode = #tpu.pipeline_mode<synchronous>, transform_indices = @transform_1, window_bounds = array<i64: 4, 16, 32>}, {transform_indices = @transform_2, window_bounds = array<i64: 1, 16, 128>}]} {
    %c0 = arith.constant 0 : index
    %c0_0 = arith.constant 0 : index
    %c0_1 = arith.constant 0 : index
    %0 = vector.load %arg1[%c0, %c0_0, %c0_1] : memref<1x32x256xbf16, #tpu.memory_space<vmem>>, vector<1x32x256xbf16>
    %1 = vector.shape_cast %0 : vector<1x32x256xbf16> to vector<32x256xbf16>
    %2 = vector.extract_strided_slice %1 {offsets = [0, 0], sizes = [32, 128], strides = [1, 1]} : vector<32x256xbf16> to vector<32x128xbf16>
    %c0_2 = arith.constant 0 : index
    %c0_3 = arith.constant 0 : index
    %c0_4 = arith.constant 0 : index
    %3 = vector.load %arg2[%c0_2, %c0_3, %c0_4] : memref<4x16x32xbf16, #tpu.memory_space<vmem>>, vector<1x16x32xbf16>
    %4 = vector.shape_cast %3 : vector<1x16x32xbf16> to vector<16x32xbf16>
    %cst = arith.constant dense<0.000000e+00> : vector<16x128xf32>
    %5 = tpu.matmul %4, %2, %cst {dimension_numbers = #tpu.dot_dimension_numbers<[1], [0], [0], [1], [0, 0, 1, 1], [], []>} : vector<16x32xbf16>, vector<32x128xbf16>, vector<16x128xf32> -> vector<16x128xf32>
    %6 = vector.extract_strided_slice %1 {offsets = [0, 1], sizes = [32, 128], strides = [1, 1]} : vector<32x256xbf16> to vector<32x128xbf16>
    %c1 = arith.constant 1 : index
    %c0_5 = arith.constant 0 : index
    %c0_6 = arith.constant 0 : index
    %7 = vector.load %arg2[%c1, %c0_5, %c0_6] : memref<4x16x32xbf16, #tpu.memory_space<vmem>>, vector<1x16x32xbf16>
    %8 = vector.shape_cast %7 : vector<1x16x32xbf16> to vector<16x32xbf16>
    %cst_7 = arith.constant dense<0.000000e+00> : vector<16x128xf32>
    %9 = tpu.matmul %8, %6, %cst_7 {dimension_numbers = #tpu.dot_dimension_numbers<[1], [0], [0], [1], [0, 0, 1, 1], [], []>} : vector<16x32xbf16>, vector<32x128xbf16>, vector<16x128xf32> -> vector<16x128xf32>
    %10 = arith.addf %5, %9 : vector<16x128xf32>
    %11 = vector.extract_strided_slice %1 {offsets = [0, 5], sizes = [32, 128], strides = [1, 1]} : vector<32x256xbf16> to vector<32x128xbf16>
    %c2 = arith.constant 2 : index
    %c0_8 = arith.constant 0 : index
    %c0_9 = arith.constant 0 : index
    %12 = vector.load %arg2[%c2, %c0_8, %c0_9] : memref<4x16x32xbf16, #tpu.memory_space<vmem>>, vector<1x16x32xbf16>
    %13 = vector.shape_cast %12 : vector<1x16x32xbf16> to vector<16x32xbf16>
    %cst_10 = arith.constant dense<0.000000e+00> : vector<16x128xf32>
    %14 = tpu.matmul %13, %11, %cst_10 {dimension_numbers = #tpu.dot_dimension_numbers<[1], [0], [0], [1], [0, 0, 1, 1], [], []>} : vector<16x32xbf16>, vector<32x128xbf16>, vector<16x128xf32> -> vector<16x128xf32>
    %15 = arith.addf %10, %14 : vector<16x128xf32>
    %16 = vector.extract_strided_slice %1 {offsets = [0, 6], sizes = [32, 128], strides = [1, 1]} : vector<32x256xbf16> to vector<32x128xbf16>
    %c3 = arith.constant 3 : index
    %c0_11 = arith.constant 0 : index
    %c0_12 = arith.constant 0 : index
    %17 = vector.load %arg2[%c3, %c0_11, %c0_12] : memref<4x16x32xbf16, #tpu.memory_space<vmem>>, vector<1x16x32xbf16>
    %18 = vector.shape_cast %17 : vector<1x16x32xbf16> to vector<16x32xbf16>
    %cst_13 = arith.constant dense<0.000000e+00> : vector<16x128xf32>
    %19 = tpu.matmul %18, %16, %cst_13 {dimension_numbers = #tpu.dot_dimension_numbers<[1], [0], [0], [1], [0, 0, 1, 1], [], []>} : vector<16x32xbf16>, vector<32x128xbf16>, vector<16x128xf32> -> vector<16x128xf32>
    %20 = arith.addf %15, %19 : vector<16x128xf32>
    %cst_14 = arith.constant 0.000000e+00 : f32
    %21 = vector.broadcast %cst_14 : f32 to vector<16x128xf32>
    %22 = arith.maximumf %20, %21 : vector<16x128xf32>
    %23 = arith.truncf %22 : vector<16x128xf32> to vector<16x128xbf16>
    %c0_15 = arith.constant 0 : index
    %c0_16 = arith.constant 0 : index
    %c0_17 = arith.constant 0 : index
    %24 = vector.load %arg3[%c0_15, %c0_16, %c0_17] : memref<1x16x128xbf16, #tpu.memory_space<vmem>>, vector<1x16x128xbf16>
    %25 = vector.shape_cast %24 : vector<1x16x128xbf16> to vector<16x128xbf16>
    %26 = vector.shape_cast %23 : vector<16x128xbf16> to vector<1x16x128xbf16>
    tpu.vector_store %arg3[%c0_15, %c0_16, %c0_17], %26 {strides = array<i32>} : memref<1x16x128xbf16, #tpu.memory_space<vmem>>, vector<1x16x128xbf16>,
    return
  }
  func.func @transform_0(%arg0: i32) -> (i32, i32, i32) {
    %c0_i32 = arith.constant 0 : i32
    %c0_i32_0 = arith.constant 0 : i32
    %c0_i32_1 = arith.constant 0 : i32
    return %arg0, %c0_i32, %c0_i32_0 : i32, i32, i32
  }
  func.func @transform_1(%arg0: i32) -> (i32, i32, i32) {
    %c0_i32 = arith.constant 0 : i32
    %c0_i32_0 = arith.constant 0 : i32
    %c0_i32_1 = arith.constant 0 : i32
    %c0_i32_2 = arith.constant 0 : i32
    return %c0_i32, %c0_i32_0, %c0_i32_1 : i32, i32, i32
  }
  func.func @transform_2(%arg0: i32) -> (i32, i32, i32) {
    %c0_i32 = arith.constant 0 : i32
    %c0_i32_0 = arith.constant 0 : i32
    %c0_i32_1 = arith.constant 0 : i32
    return %arg0, %c0_i32, %c0_i32_0 : i32, i32, i32
  }
}

module attributes {stable_mosaic.version = 11 : i64} {
  func.func @kernel(%arg0: i32, %arg1: memref<1x3x8x128xbf16, #tpu.memory_space<vmem>>, %arg2: memref<3x16x8xbf16, #tpu.memory_space<vmem>>, %arg3: memref<1x16x128xbf16, #tpu.memory_space<vmem>>, %arg4: memref<1x16x128xbf16, #tpu.memory_space<vmem>>, %arg5: memref<1x16x128xbf16, #tpu.memory_space<vmem>>, %arg6: memref<1x128x128xf32, #tpu.memory_space<vmem>>) attributes {dimension_semantics = [#tpu.dimension_semantics<parallel>], iteration_bounds = array<i64: 2>, scalar_prefetch = 0 : i64, scratch_operands = 0 : i64, tpu.core_type = #tpu.core_type<tc>, window_params = [{transform_indices = @transform_0, window_bounds = array<i64: 1, 3, 8, 128>}, {pipeline_mode = #tpu.pipeline_mode<synchronous>, transform_indices = @transform_1, window_bounds = array<i64: 3, 16, 8>}, {transform_indices = @transform_2, window_bounds = array<i64: 1, 16, 128>}, {transform_indices = @transform_3, window_bounds = array<i64: 1, 16, 128>}, {transform_indices = @transform_4, window_bounds = array<i64: 1, 16, 128>}, {transform_indices = @transform_5, window_bounds = array<i64: 1, 128, 128>}]} {
    %c0 = arith.constant 0 : index
    %c0_0 = arith.constant 0 : index
    %c0_1 = arith.constant 0 : index
    %c0_2 = arith.constant 0 : index
    %0 = vector.load %arg1[%c0, %c0_0, %c0_1, %c0_2] : memref<1x3x8x128xbf16, #tpu.memory_space<vmem>>, vector<1x3x8x128xbf16>
    %1 = vector.shape_cast %0 : vector<1x3x8x128xbf16> to vector<3x8x128xbf16>
    %c0_3 = arith.constant 0 : index
    %c0_4 = arith.constant 0 : index
    %c0_5 = arith.constant 0 : index
    %2 = vector.load %arg2[%c0_3, %c0_4, %c0_5] : memref<3x16x8xbf16, #tpu.memory_space<vmem>>, vector<3x16x8xbf16>
    "tpu.trace_start"() <{level = 10 : i32, message = "xoc,xch->xoh"}> : () -> ()
    %cst = arith.constant dense<0.000000e+00> : vector<3x16x128xf32>
    %3 = tpu.matmul %2, %1, %cst {dimension_numbers = #tpu.dot_dimension_numbers<[2], [1], [1], [2], [0, 0, 0, 1, 1, 2], [0], [0]>} : vector<3x16x8xbf16>, vector<3x8x128xbf16>, vector<3x16x128xf32> -> vector<3x16x128xf32>
    "tpu.trace_stop"() : () -> ()
    %4 = vector.extract_strided_slice %3 {offsets = [0, 0, 0], sizes = [1, 16, 128], strides = [1, 1, 1]} : vector<3x16x128xf32> to vector<1x16x128xf32>
    %5 = vector.shape_cast %4 : vector<1x16x128xf32> to vector<16x128xf32>
    %6 = vector.extract_strided_slice %3 {offsets = [1, 0, 0], sizes = [1, 16, 128], strides = [1, 1, 1]} : vector<3x16x128xf32> to vector<1x16x128xf32>
    %7 = vector.shape_cast %6 : vector<1x16x128xf32> to vector<16x128xf32>
    %8 = vector.extract_strided_slice %3 {offsets = [2, 0, 0], sizes = [1, 16, 128], strides = [1, 1, 1]} : vector<3x16x128xf32> to vector<1x16x128xf32>
    %9 = vector.shape_cast %8 : vector<1x16x128xf32> to vector<16x128xf32>
    %10 = arith.truncf %7 : vector<16x128xf32> to vector<16x128xbf16>
    %11 = arith.truncf %5 : vector<16x128xf32> to vector<16x128xbf16>
    %cst_6 = arith.constant dense<0.000000e+00> : vector<128x128xf32>
    %12 = tpu.matmul %10, %11, %cst_6 {dimension_numbers = #tpu.dot_dimension_numbers<[0], [0], [1], [1], [0, 1, 1, 1], [], []>} : vector<16x128xbf16>, vector<16x128xbf16>, vector<128x128xf32> -> vector<128x128xf32>
    %cst_7 = arith.constant 0.353553385 : f32
    %13 = vector.broadcast %cst_7 : f32 to vector<128x128xf32>
    %14 = arith.mulf %12, %13 : vector<128x128xf32>
    %15 = tpu.iota {dimensions = array<i32: 1>} : vector<1x128xi32>
    %c16_i32 = arith.constant 16 : i32
    %16 = vector.broadcast %c16_i32 : i32 to vector<1x128xi32>
    %17 = arith.cmpi slt, %15, %16 : vector<1x128xi32>
    %cst_8 = arith.constant 0.000000e+00 : f32
    %cst_9 = arith.constant -1.000000e+30 : f32
    %18 = vector.broadcast %cst_8 : f32 to vector<1x128xf32>
    %19 = vector.broadcast %cst_9 : f32 to vector<1x128xf32>
    %20 = arith.select %17, %18, %19 : vector<1x128xi1>, vector<1x128xf32>
    %21 = vector.broadcast %20 : vector<1x128xf32> to vector<128x128xf32>
    %22 = arith.addf %14, %21 : vector<128x128xf32>
    %cst_10 = arith.constant dense<0xFF800000> : vector<128xf32>
    %23 = vector.multi_reduction <maximumf>, %22, %cst_10 [1] : vector<128x128xf32> to vector<128xf32>
    %24 = vector.shape_cast %23 : vector<128xf32> to vector<128x1xf32>
    %25 = vector.broadcast %24 : vector<128x1xf32> to vector<128x128xf32>
    %26 = arith.subf %22, %25 : vector<128x128xf32>
    %27 = math.exp %26 : vector<128x128xf32>
    %cst_11 = arith.constant dense<0.000000e+00> : vector<128xf32>
    %28 = vector.multi_reduction <add>, %27, %cst_11 [1] : vector<128x128xf32> to vector<128xf32>
    %29 = vector.shape_cast %28 : vector<128xf32> to vector<128x1xf32>
    %30 = vector.broadcast %29 : vector<128x1xf32> to vector<128x128xf32>
    %31 = arith.divf %27, %30 : vector<128x128xf32>
    %32 = arith.truncf %9 : vector<16x128xf32> to vector<16x128xbf16>
    %33 = arith.truncf %31 : vector<128x128xf32> to vector<128x128xbf16>
    %cst_12 = arith.constant dense<0.000000e+00> : vector<16x128xf32>
    %34 = tpu.matmul %32, %33, %cst_12 {dimension_numbers = #tpu.dot_dimension_numbers<[1], [1], [0], [0], [0, 0, 1, 0], [], []>} : vector<16x128xbf16>, vector<128x128xbf16>, vector<16x128xf32> -> vector<16x128xf32>
    %35 = arith.truncf %5 : vector<16x128xf32> to vector<16x128xbf16>
    %c0_13 = arith.constant 0 : index
    %c0_14 = arith.constant 0 : index
    %c0_15 = arith.constant 0 : index
    %36 = vector.load %arg3[%c0_13, %c0_14, %c0_15] : memref<1x16x128xbf16, #tpu.memory_space<vmem>>, vector<1x16x128xbf16>
    %37 = vector.shape_cast %36 : vector<1x16x128xbf16> to vector<16x128xbf16>
    %38 = vector.shape_cast %35 : vector<16x128xbf16> to vector<1x16x128xbf16>
    tpu.vector_store %arg3[%c0_13, %c0_14, %c0_15], %38 {strides = array<i32>} : memref<1x16x128xbf16, #tpu.memory_space<vmem>>, vector<1x16x128xbf16>,
    %39 = arith.truncf %7 : vector<16x128xf32> to vector<16x128xbf16>
    %c0_16 = arith.constant 0 : index
    %c0_17 = arith.constant 0 : index
    %c0_18 = arith.constant 0 : index
    %40 = vector.load %arg4[%c0_16, %c0_17, %c0_18] : memref<1x16x128xbf16, #tpu.memory_space<vmem>>, vector<1x16x128xbf16>
    %41 = vector.shape_cast %40 : vector<1x16x128xbf16> to vector<16x128xbf16>
    %42 = vector.shape_cast %39 : vector<16x128xbf16> to vector<1x16x128xbf16>
    tpu.vector_store %arg4[%c0_16, %c0_17, %c0_18], %42 {strides = array<i32>} : memref<1x16x128xbf16, #tpu.memory_space<vmem>>, vector<1x16x128xbf16>,
    %43 = arith.addf %9, %34 : vector<16x128xf32>
    %44 = arith.truncf %43 : vector<16x128xf32> to vector<16x128xbf16>
    %c0_19 = arith.constant 0 : index
    %c0_20 = arith.constant 0 : index
    %c0_21 = arith.constant 0 : index
    %45 = vector.load %arg5[%c0_19, %c0_20, %c0_21] : memref<1x16x128xbf16, #tpu.memory_space<vmem>>, vector<1x16x128xbf16>
    %46 = vector.shape_cast %45 : vector<1x16x128xbf16> to vector<16x128xbf16>
    %47 = vector.shape_cast %44 : vector<16x128xbf16> to vector<1x16x128xbf16>
    tpu.vector_store %arg5[%c0_19, %c0_20, %c0_21], %47 {strides = array<i32>} : memref<1x16x128xbf16, #tpu.memory_space<vmem>>, vector<1x16x128xbf16>,
    %c0_22 = arith.constant 0 : index
    %c0_23 = arith.constant 0 : index
    %c0_24 = arith.constant 0 : index
    %48 = vector.load %arg6[%c0_22, %c0_23, %c0_24] : memref<1x128x128xf32, #tpu.memory_space<vmem>>, vector<1x128x128xf32>
    %49 = vector.shape_cast %48 : vector<1x128x128xf32> to vector<128x128xf32>
    %50 = vector.shape_cast %31 : vector<128x128xf32> to vector<1x128x128xf32>
    tpu.vector_store %arg6[%c0_22, %c0_23, %c0_24], %50 {strides = array<i32>} : memref<1x128x128xf32, #tpu.memory_space<vmem>>, vector<1x128x128xf32>,
    return
  }
  func.func @transform_0(%arg0: i32) -> (i32, i32, i32, i32) {
    %c0_i32 = arith.constant 0 : i32
    %c0_i32_0 = arith.constant 0 : i32
    %c0_i32_1 = arith.constant 0 : i32
    %c0_i32_2 = arith.constant 0 : i32
    return %arg0, %c0_i32, %c0_i32_0, %c0_i32_1 : i32, i32, i32, i32
  }
  func.func @transform_1(%arg0: i32) -> (i32, i32, i32) {
    %c0_i32 = arith.constant 0 : i32
    %c0_i32_0 = arith.constant 0 : i32
    %c0_i32_1 = arith.constant 0 : i32
    %c0_i32_2 = arith.constant 0 : i32
    return %c0_i32, %c0_i32_0, %c0_i32_1 : i32, i32, i32
  }
  func.func @transform_2(%arg0: i32) -> (i32, i32, i32) {
    %c0_i32 = arith.constant 0 : i32
    %c0_i32_0 = arith.constant 0 : i32
    %c0_i32_1 = arith.constant 0 : i32
    return %arg0, %c0_i32, %c0_i32_0 : i32, i32, i32
  }
  func.func @transform_3(%arg0: i32) -> (i32, i32, i32) {
    %c0_i32 = arith.constant 0 : i32
    %c0_i32_0 = arith.constant 0 : i32
    %c0_i32_1 = arith.constant 0 : i32
    return %arg0, %c0_i32, %c0_i32_0 : i32, i32, i32
  }
  func.func @transform_4(%arg0: i32) -> (i32, i32, i32) {
    %c0_i32 = arith.constant 0 : i32
    %c0_i32_0 = arith.constant 0 : i32
    %c0_i32_1 = arith.constant 0 : i32
    return %arg0, %c0_i32, %c0_i32_0 : i32, i32, i32
  }
  func.func @transform_5(%arg0: i32) -> (i32, i32, i32) {
    %c0_i32 = arith.constant 0 : i32
    %c0_i32_0 = arith.constant 0 : i32
    %c0_i32_1 = arith.constant 0 : i32
    return %arg0, %c0_i32, %c0_i32_0 : i32, i32, i32
  }
}

module attributes {stable_mosaic.version = 11 : i64} {
  func.func @kernel(%arg0: i32, %arg1: memref<1x3x8x128xbf16, #tpu.memory_space<vmem>>, %arg2: memref<3x16x8xbf16, #tpu.memory_space<vmem>>, %arg3: memref<1x16x128xbf16, #tpu.memory_space<vmem>>, %arg4: memref<1x16x128xbf16, #tpu.memory_space<vmem>>, %arg5: memref<1x16x128xbf16, #tpu.memory_space<vmem>>, %arg6: memref<1x128x128xf32, #tpu.memory_space<vmem>>) attributes {dimension_semantics = [#tpu.dimension_semantics<parallel>], iteration_bounds = array<i64: 2>, scalar_prefetch = 0 : i64, scratch_operands = 0 : i64, tpu.core_type = #tpu.core_type<tc>, window_params = [{transform_indices = @transform_0, window_bounds = array<i64: 1, 3, 8, 128>}, {pipeline_mode = #tpu.pipeline_mode<synchronous>, transform_indices = @transform_1, window_bounds = array<i64: 3, 16, 8>}, {transform_indices = @transform_2, window_bounds = array<i64: 1, 16, 128>}, {transform_indices = @transform_3, window_bounds = array<i64: 1, 16, 128>}, {transform_indices = @transform_4, window_bounds = array<i64: 1, 16, 128>}, {transform_indices = @transform_5, window_bounds = array<i64: 1, 128, 128>}]} {
    %c0 = arith.constant 0 : index
    %c0_0 = arith.constant 0 : index
    %c0_1 = arith.constant 0 : index
    %c0_2 = arith.constant 0 : index
    %0 = vector.load %arg1[%c0, %c0_0, %c0_1, %c0_2] : memref<1x3x8x128xbf16, #tpu.memory_space<vmem>>, vector<1x3x8x128xbf16>
    %1 = vector.shape_cast %0 : vector<1x3x8x128xbf16> to vector<3x8x128xbf16>
    %c0_3 = arith.constant 0 : index
    %c0_4 = arith.constant 0 : index
    %c0_5 = arith.constant 0 : index
    %2 = vector.load %arg2[%c0_3, %c0_4, %c0_5] : memref<3x16x8xbf16, #tpu.memory_space<vmem>>, vector<3x16x8xbf16>
    "tpu.trace_start"() <{level = 10 : i32, message = "xoc,xch->xoh"}> : () -> ()
    %cst = arith.constant dense<0.000000e+00> : vector<3x16x128xf32>
    %3 = tpu.matmul %2, %1, %cst {dimension_numbers = #tpu.dot_dimension_numbers<[2], [1], [1], [2], [0, 0, 0, 1, 1, 2], [0], [0]>} : vector<3x16x8xbf16>, vector<3x8x128xbf16>, vector<3x16x128xf32> -> vector<3x16x128xf32>
    "tpu.trace_stop"() : () -> ()
    %4 = vector.extract_strided_slice %3 {offsets = [0, 0, 0], sizes = [1, 16, 128], strides = [1, 1, 1]} : vector<3x16x128xf32> to vector<1x16x128xf32>
    %5 = vector.shape_cast %4 : vector<1x16x128xf32> to vector<16x128xf32>
    %6 = vector.extract_strided_slice %3 {offsets = [1, 0, 0], sizes = [1, 16, 128], strides = [1, 1, 1]} : vector<3x16x128xf32> to vector<1x16x128xf32>
    %7 = vector.shape_cast %6 : vector<1x16x128xf32> to vector<16x128xf32>
    %8 = vector.extract_strided_slice %3 {offsets = [2, 0, 0], sizes = [1, 16, 128], strides = [1, 1, 1]} : vector<3x16x128xf32> to vector<1x16x128xf32>
    %9 = vector.shape_cast %8 : vector<1x16x128xf32> to vector<16x128xf32>
    %10 = arith.truncf %7 : vector<16x128xf32> to vector<16x128xbf16>
    %11 = arith.truncf %5 : vector<16x128xf32> to vector<16x128xbf16>
    %cst_6 = arith.constant dense<0.000000e+00> : vector<128x128xf32>
    %12 = tpu.matmul %10, %11, %cst_6 {dimension_numbers = #tpu.dot_dimension_numbers<[0], [0], [1], [1], [0, 1, 1, 1], [], []>} : vector<16x128xbf16>, vector<16x128xbf16>, vector<128x128xf32> -> vector<128x128xf32>
    %cst_7 = arith.constant 0.353553385 : f32
    %13 = vector.broadcast %cst_7 : f32 to vector<128x128xf32>
    %14 = arith.mulf %12, %13 : vector<128x128xf32>
    %15 = tpu.iota {dimensions = array<i32: 1>} : vector<1x128xi32>
    %c16_i32 = arith.constant 16 : i32
    %16 = vector.broadcast %c16_i32 : i32 to vector<1x128xi32>
    %17 = arith.cmpi slt, %15, %16 : vector<1x128xi32>
    %cst_8 = arith.constant 0.000000e+00 : f32
    %cst_9 = arith.constant -1.000000e+30 : f32
    %18 = vector.broadcast %cst_8 : f32 to vector<1x128xf32>
    %19 = vector.broadcast %cst_9 : f32 to vector<1x128xf32>
    %20 = arith.select %17, %18, %19 : vector<1x128xi1>, vector<1x128xf32>
    %21 = vector.broadcast %20 : vector<1x128xf32> to vector<128x128xf32>
    %22 = arith.addf %14, %21 : vector<128x128xf32>
    %cst_10 = arith.constant dense<0xFF800000> : vector<128xf32>
    %23 = vector.multi_reduction <maximumf>, %22, %cst_10 [1] : vector<128x128xf32> to vector<128xf32>
    %24 = vector.shape_cast %23 : vector<128xf32> to vector<128x1xf32>
    %25 = vector.broadcast %24 : vector<128x1xf32> to vector<128x128xf32>
    %26 = arith.subf %22, %25 : vector<128x128xf32>
    %27 = math.exp %26 : vector<128x128xf32>
    %cst_11 = arith.constant dense<0.000000e+00> : vector<128xf32>
    %28 = vector.multi_reduction <add>, %27, %cst_11 [1] : vector<128x128xf32> to vector<128xf32>
    %29 = vector.shape_cast %28 : vector<128xf32> to vector<128x1xf32>
    %30 = vector.broadcast %29 : vector<128x1xf32> to vector<128x128xf32>
    %31 = arith.divf %27, %30 : vector<128x128xf32>
    %32 = arith.truncf %9 : vector<16x128xf32> to vector<16x128xbf16>
    %33 = arith.truncf %31 : vector<128x128xf32> to vector<128x128xbf16>
    %cst_12 = arith.constant dense<0.000000e+00> : vector<16x128xf32>
    %34 = tpu.matmul %32, %33, %cst_12 {dimension_numbers = #tpu.dot_dimension_numbers<[1], [1], [0], [0], [0, 0, 1, 0], [], []>} : vector<16x128xbf16>, vector<128x128xbf16>, vector<16x128xf32> -> vector<16x128xf32>
    %35 = arith.truncf %5 : vector<16x128xf32> to vector<16x128xbf16>
    %c0_13 = arith.constant 0 : index
    %c0_14 = arith.constant 0 : index
    %c0_15 = arith.constant 0 : index
    %36 = vector.load %arg3[%c0_13, %c0_14, %c0_15] : memref<1x16x128xbf16, #tpu.memory_space<vmem>>, vector<1x16x128xbf16>
    %37 = vector.shape_cast %36 : vector<1x16x128xbf16> to vector<16x128xbf16>
    %38 = vector.shape_cast %35 : vector<16x128xbf16> to vector<1x16x128xbf16>
    tpu.vector_store %arg3[%c0_13, %c0_14, %c0_15], %38 {strides = array<i32>} : memref<1x16x128xbf16, #tpu.memory_space<vmem>>, vector<1x16x128xbf16>,
    %39 = arith.truncf %7 : vector<16x128xf32> to vector<16x128xbf16>
    %c0_16 = arith.constant 0 : index
    %c0_17 = arith.constant 0 : index
    %c0_18 = arith.constant 0 : index
    %40 = vector.load %arg4[%c0_16, %c0_17, %c0_18] : memref<1x16x128xbf16, #tpu.memory_space<vmem>>, vector<1x16x128xbf16>
    %41 = vector.shape_cast %40 : vector<1x16x128xbf16> to vector<16x128xbf16>
    %42 = vector.shape_cast %39 : vector<16x128xbf16> to vector<1x16x128xbf16>
    tpu.vector_store %arg4[%c0_16, %c0_17, %c0_18], %42 {strides = array<i32>} : memref<1x16x128xbf16, #tpu.memory_space<vmem>>, vector<1x16x128xbf16>,
    %43 = arith.addf %9, %34 : vector<16x128xf32>
    %44 = arith.truncf %43 : vector<16x128xf32> to vector<16x128xbf16>
    %c0_19 = arith.constant 0 : index
    %c0_20 = arith.constant 0 : index
    %c0_21 = arith.constant 0 : index
    %45 = vector.load %arg5[%c0_19, %c0_20, %c0_21] : memref<1x16x128xbf16, #tpu.memory_space<vmem>>, vector<1x16x128xbf16>
    %46 = vector.shape_cast %45 : vector<1x16x128xbf16> to vector<16x128xbf16>
    %47 = vector.shape_cast %44 : vector<16x128xbf16> to vector<1x16x128xbf16>
    tpu.vector_store %arg5[%c0_19, %c0_20, %c0_21], %47 {strides = array<i32>} : memref<1x16x128xbf16, #tpu.memory_space<vmem>>, vector<1x16x128xbf16>,
    %c0_22 = arith.constant 0 : index
    %c0_23 = arith.constant 0 : index
    %c0_24 = arith.constant 0 : index
    %48 = vector.load %arg6[%c0_22, %c0_23, %c0_24] : memref<1x128x128xf32, #tpu.memory_space<vmem>>, vector<1x128x128xf32>
    %49 = vector.shape_cast %48 : vector<1x128x128xf32> to vector<128x128xf32>
    %50 = vector.shape_cast %31 : vector<128x128xf32> to vector<1x128x128xf32>
    tpu.vector_store %arg6[%c0_22, %c0_23, %c0_24], %50 {strides = array<i32>} : memref<1x128x128xf32, #tpu.memory_space<vmem>>, vector<1x128x128xf32>,
    return
  }
  func.func @transform_0(%arg0: i32) -> (i32, i32, i32, i32) {
    %c0_i32 = arith.constant 0 : i32
    %c0_i32_0 = arith.constant 0 : i32
    %c0_i32_1 = arith.constant 0 : i32
    %c0_i32_2 = arith.constant 0 : i32
    return %arg0, %c0_i32, %c0_i32_0, %c0_i32_1 : i32, i32, i32, i32
  }
  func.func @transform_1(%arg0: i32) -> (i32, i32, i32) {
    %c0_i32 = arith.constant 0 : i32
    %c0_i32_0 = arith.constant 0 : i32
    %c0_i32_1 = arith.constant 0 : i32
    %c0_i32_2 = arith.constant 0 : i32
    return %c0_i32, %c0_i32_0, %c0_i32_1 : i32, i32, i32
  }
  func.func @transform_2(%arg0: i32) -> (i32, i32, i32) {
    %c0_i32 = arith.constant 0 : i32
    %c0_i32_0 = arith.constant 0 : i32
    %c0_i32_1 = arith.constant 0 : i32
    return %arg0, %c0_i32, %c0_i32_0 : i32, i32, i32
  }
  func.func @transform_3(%arg0: i32) -> (i32, i32, i32) {
    %c0_i32 = arith.constant 0 : i32
    %c0_i32_0 = arith.constant 0 : i32
    %c0_i32_1 = arith.constant 0 : i32
    return %arg0, %c0_i32, %c0_i32_0 : i32, i32, i32
  }
  func.func @transform_4(%arg0: i32) -> (i32, i32, i32) {
    %c0_i32 = arith.constant 0 : i32
    %c0_i32_0 = arith.constant 0 : i32
    %c0_i32_1 = arith.constant 0 : i32
    return %arg0, %c0_i32, %c0_i32_0 : i32, i32, i32
  }
  func.func @transform_5(%arg0: i32) -> (i32, i32, i32) {
    %c0_i32 = arith.constant 0 : i32
    %c0_i32_0 = arith.constant 0 : i32
    %c0_i32_1 = arith.constant 0 : i32
    return %arg0, %c0_i32, %c0_i32_0 : i32, i32, i32
  }
}

module attributes {stable_mosaic.version = 11 : i64} {
  func.func @kernel(%arg0: i32, %arg1: memref<1x8x256xbf16, #tpu.memory_space<vmem>>, %arg2: memref<9x16x8xbf16, #tpu.memory_space<vmem>>, %arg3: memref<1x16x128xbf16, #tpu.memory_space<vmem>>) attributes {dimension_semantics = [#tpu.dimension_semantics<parallel>], iteration_bounds = array<i64: 8>, scalar_prefetch = 0 : i64, scratch_operands = 0 : i64, tpu.core_type = #tpu.core_type<tc>, window_params = [{transform_indices = @transform_0, window_bounds = array<i64: 1, 8, 256>}, {pipeline_mode = #tpu.pipeline_mode<synchronous>, transform_indices = @transform_1, window_bounds = array<i64: 9, 16, 8>}, {transform_indices = @transform_2, window_bounds = array<i64: 1, 16, 128>}]} {
    %c0 = arith.constant 0 : index
    %c0_0 = arith.constant 0 : index
    %c0_1 = arith.constant 0 : index
    %0 = vector.load %arg1[%c0, %c0_0, %c0_1] : memref<1x8x256xbf16, #tpu.memory_space<vmem>>, vector<1x8x256xbf16>
    %1 = vector.shape_cast %0 : vector<1x8x256xbf16> to vector<8x256xbf16>
    %2 = vector.extract_strided_slice %1 {offsets = [0, 0], sizes = [8, 128], strides = [1, 1]} : vector<8x256xbf16> to vector<8x128xbf16>
    %c0_2 = arith.constant 0 : index
    %c0_3 = arith.constant 0 : index
    %c0_4 = arith.constant 0 : index
    %3 = vector.load %arg2[%c0_2, %c0_3, %c0_4] : memref<9x16x8xbf16, #tpu.memory_space<vmem>>, vector<1x16x8xbf16>
    %4 = vector.shape_cast %3 : vector<1x16x8xbf16> to vector<16x8xbf16>
    %cst = arith.constant dense<0.000000e+00> : vector<16x128xf32>
    %5 = tpu.matmul %4, %2, %cst {dimension_numbers = #tpu.dot_dimension_numbers<[1], [0], [0], [1], [0, 0, 1, 1], [], []>} : vector<16x8xbf16>, vector<8x128xbf16>, vector<16x128xf32> -> vector<16x128xf32>
    %6 = vector.extract_strided_slice %1 {offsets = [0, 1], sizes = [8, 128], strides = [1, 1]} : vector<8x256xbf16> to vector<8x128xbf16>
    %c1 = arith.constant 1 : index
    %c0_5 = arith.constant 0 : index
    %c0_6 = arith.constant 0 : index
    %7 = vector.load %arg2[%c1, %c0_5, %c0_6] : memref<9x16x8xbf16, #tpu.memory_space<vmem>>, vector<1x16x8xbf16>
    %8 = vector.shape_cast %7 : vector<1x16x8xbf16> to vector<16x8xbf16>
    %cst_7 = arith.constant dense<0.000000e+00> : vector<16x128xf32>
    %9 = tpu.matmul %8, %6, %cst_7 {dimension_numbers = #tpu.dot_dimension_numbers<[1], [0], [0], [1], [0, 0, 1, 1], [], []>} : vector<16x8xbf16>, vector<8x128xbf16>, vector<16x128xf32> -> vector<16x128xf32>
    %10 = arith.addf %5, %9 : vector<16x128xf32>
    %11 = vector.extract_strided_slice %1 {offsets = [0, 2], sizes = [8, 128], strides = [1, 1]} : vector<8x256xbf16> to vector<8x128xbf16>
    %c2 = arith.constant 2 : index
    %c0_8 = arith.constant 0 : index
    %c0_9 = arith.constant 0 : index
    %12 = vector.load %arg2[%c2, %c0_8, %c0_9] : memref<9x16x8xbf16, #tpu.memory_space<vmem>>, vector<1x16x8xbf16>
    %13 = vector.shape_cast %12 : vector<1x16x8xbf16> to vector<16x8xbf16>
    %cst_10 = arith.constant dense<0.000000e+00> : vector<16x128xf32>
    %14 = tpu.matmul %13, %11, %cst_10 {dimension_numbers = #tpu.dot_dimension_numbers<[1], [0], [0], [1], [0, 0, 1, 1], [], []>} : vector<16x8xbf16>, vector<8x128xbf16>, vector<16x128xf32> -> vector<16x128xf32>
    %15 = arith.addf %10, %14 : vector<16x128xf32>
    %16 = vector.extract_strided_slice %1 {offsets = [0, 10], sizes = [8, 128], strides = [1, 1]} : vector<8x256xbf16> to vector<8x128xbf16>
    %c3 = arith.constant 3 : index
    %c0_11 = arith.constant 0 : index
    %c0_12 = arith.constant 0 : index
    %17 = vector.load %arg2[%c3, %c0_11, %c0_12] : memref<9x16x8xbf16, #tpu.memory_space<vmem>>, vector<1x16x8xbf16>
    %18 = vector.shape_cast %17 : vector<1x16x8xbf16> to vector<16x8xbf16>
    %cst_13 = arith.constant dense<0.000000e+00> : vector<16x128xf32>
    %19 = tpu.matmul %18, %16, %cst_13 {dimension_numbers = #tpu.dot_dimension_numbers<[1], [0], [0], [1], [0, 0, 1, 1], [], []>} : vector<16x8xbf16>, vector<8x128xbf16>, vector<16x128xf32> -> vector<16x128xf32>
    %20 = arith.addf %15, %19 : vector<16x128xf32>
    %21 = vector.extract_strided_slice %1 {offsets = [0, 11], sizes = [8, 128], strides = [1, 1]} : vector<8x256xbf16> to vector<8x128xbf16>
    %c4 = arith.constant 4 : index
    %c0_14 = arith.constant 0 : index
    %c0_15 = arith.constant 0 : index
    %22 = vector.load %arg2[%c4, %c0_14, %c0_15] : memref<9x16x8xbf16, #tpu.memory_space<vmem>>, vector<1x16x8xbf16>
    %23 = vector.shape_cast %22 : vector<1x16x8xbf16> to vector<16x8xbf16>
    %cst_16 = arith.constant dense<0.000000e+00> : vector<16x128xf32>
    %24 = tpu.matmul %23, %21, %cst_16 {dimension_numbers = #tpu.dot_dimension_numbers<[1], [0], [0], [1], [0, 0, 1, 1], [], []>} : vector<16x8xbf16>, vector<8x128xbf16>, vector<16x128xf32> -> vector<16x128xf32>
    %25 = arith.addf %20, %24 : vector<16x128xf32>
    %26 = vector.extract_strided_slice %1 {offsets = [0, 12], sizes = [8, 128], strides = [1, 1]} : vector<8x256xbf16> to vector<8x128xbf16>
    %c5 = arith.constant 5 : index
    %c0_17 = arith.constant 0 : index
    %c0_18 = arith.constant 0 : index
    %27 = vector.load %arg2[%c5, %c0_17, %c0_18] : memref<9x16x8xbf16, #tpu.memory_space<vmem>>, vector<1x16x8xbf16>
    %28 = vector.shape_cast %27 : vector<1x16x8xbf16> to vector<16x8xbf16>
    %cst_19 = arith.constant dense<0.000000e+00> : vector<16x128xf32>
    %29 = tpu.matmul %28, %26, %cst_19 {dimension_numbers = #tpu.dot_dimension_numbers<[1], [0], [0], [1], [0, 0, 1, 1], [], []>} : vector<16x8xbf16>, vector<8x128xbf16>, vector<16x128xf32> -> vector<16x128xf32>
    %30 = arith.addf %25, %29 : vector<16x128xf32>
    %31 = vector.extract_strided_slice %1 {offsets = [0, 20], sizes = [8, 128], strides = [1, 1]} : vector<8x256xbf16> to vector<8x128xbf16>
    %c6 = arith.constant 6 : index
    %c0_20 = arith.constant 0 : index
    %c0_21 = arith.constant 0 : index
    %32 = vector.load %arg2[%c6, %c0_20, %c0_21] : memref<9x16x8xbf16, #tpu.memory_space<vmem>>, vector<1x16x8xbf16>
    %33 = vector.shape_cast %32 : vector<1x16x8xbf16> to vector<16x8xbf16>
    %cst_22 = arith.constant dense<0.000000e+00> : vector<16x128xf32>
    %34 = tpu.matmul %33, %31, %cst_22 {dimension_numbers = #tpu.dot_dimension_numbers<[1], [0], [0], [1], [0, 0, 1, 1], [], []>} : vector<16x8xbf16>, vector<8x128xbf16>, vector<16x128xf32> -> vector<16x128xf32>
    %35 = arith.addf %30, %34 : vector<16x128xf32>
    %36 = vector.extract_strided_slice %1 {offsets = [0, 21], sizes = [8, 128], strides = [1, 1]} : vector<8x256xbf16> to vector<8x128xbf16>
    %c7 = arith.constant 7 : index
    %c0_23 = arith.constant 0 : index
    %c0_24 = arith.constant 0 : index
    %37 = vector.load %arg2[%c7, %c0_23, %c0_24] : memref<9x16x8xbf16, #tpu.memory_space<vmem>>, vector<1x16x8xbf16>
    %38 = vector.shape_cast %37 : vector<1x16x8xbf16> to vector<16x8xbf16>
    %cst_25 = arith.constant dense<0.000000e+00> : vector<16x128xf32>
    %39 = tpu.matmul %38, %36, %cst_25 {dimension_numbers = #tpu.dot_dimension_numbers<[1], [0], [0], [1], [0, 0, 1, 1], [], []>} : vector<16x8xbf16>, vector<8x128xbf16>, vector<16x128xf32> -> vector<16x128xf32>
    %40 = arith.addf %35, %39 : vector<16x128xf32>
    %41 = vector.extract_strided_slice %1 {offsets = [0, 22], sizes = [8, 128], strides = [1, 1]} : vector<8x256xbf16> to vector<8x128xbf16>
    %c8 = arith.constant 8 : index
    %c0_26 = arith.constant 0 : index
    %c0_27 = arith.constant 0 : index
    %42 = vector.load %arg2[%c8, %c0_26, %c0_27] : memref<9x16x8xbf16, #tpu.memory_space<vmem>>, vector<1x16x8xbf16>
    %43 = vector.shape_cast %42 : vector<1x16x8xbf16> to vector<16x8xbf16>
    %cst_28 = arith.constant dense<0.000000e+00> : vector<16x128xf32>
    %44 = tpu.matmul %43, %41, %cst_28 {dimension_numbers = #tpu.dot_dimension_numbers<[1], [0], [0], [1], [0, 0, 1, 1], [], []>} : vector<16x8xbf16>, vector<8x128xbf16>, vector<16x128xf32> -> vector<16x128xf32>
    %45 = arith.addf %40, %44 : vector<16x128xf32>
    %cst_29 = arith.constant 0.000000e+00 : f32
    %46 = vector.broadcast %cst_29 : f32 to vector<16x128xf32>
    %47 = arith.maximumf %45, %46 : vector<16x128xf32>
    %48 = arith.truncf %47 : vector<16x128xf32> to vector<16x128xbf16>
    %c0_30 = arith.constant 0 : index
    %c0_31 = arith.constant 0 : index
    %c0_32 = arith.constant 0 : index
    %49 = vector.load %arg3[%c0_30, %c0_31, %c0_32] : memref<1x16x128xbf16, #tpu.memory_space<vmem>>, vector<1x16x128xbf16>
    %50 = vector.shape_cast %49 : vector<1x16x128xbf16> to vector<16x128xbf16>
    %51 = vector.shape_cast %48 : vector<16x128xbf16> to vector<1x16x128xbf16>
    tpu.vector_store %arg3[%c0_30, %c0_31, %c0_32], %51 {strides = array<i32>} : memref<1x16x128xbf16, #tpu.memory_space<vmem>>, vector<1x16x128xbf16>,
    return
  }
  func.func @transform_0(%arg0: i32) -> (i32, i32, i32) {
    %c0_i32 = arith.constant 0 : i32
    %c0_i32_0 = arith.constant 0 : i32
    %c0_i32_1 = arith.constant 0 : i32
    return %arg0, %c0_i32, %c0_i32_0 : i32, i32, i32
  }
  func.func @transform_1(%arg0: i32) -> (i32, i32, i32) {
    %c0_i32 = arith.constant 0 : i32
    %c0_i32_0 = arith.constant 0 : i32
    %c0_i32_1 = arith.constant 0 : i32
    %c0_i32_2 = arith.constant 0 : i32
    return %c0_i32, %c0_i32_0, %c0_i32_1 : i32, i32, i32
  }
  func.func @transform_2(%arg0: i32) -> (i32, i32, i32) {
    %c0_i32 = arith.constant 0 : i32
    %c0_i32_0 = arith.constant 0 : i32
    %c0_i32_1 = arith.constant 0 : i32
    return %arg0, %c0_i32, %c0_i32_0 : i32, i32, i32
  }
}

module attributes {stable_mosaic.version = 11 : i64} {
  func.func @kernel(%arg0: i32, %arg1: memref<1x8x512xbf16, #tpu.memory_space<vmem>>, %arg2: memref<9x16x8xbf16, #tpu.memory_space<vmem>>, %arg3: memref<1x16x384xbf16, #tpu.memory_space<vmem>>) attributes {dimension_semantics = [#tpu.dimension_semantics<parallel>], iteration_bounds = array<i64: 8>, scalar_prefetch = 0 : i64, scratch_operands = 0 : i64, tpu.core_type = #tpu.core_type<tc>, window_params = [{transform_indices = @transform_0, window_bounds = array<i64: 1, 8, 512>}, {pipeline_mode = #tpu.pipeline_mode<synchronous>, transform_indices = @transform_1, window_bounds = array<i64: 9, 16, 8>}, {transform_indices = @transform_2, window_bounds = array<i64: 1, 16, 384>}]} {
    %c0 = arith.constant 0 : index
    %c0_0 = arith.constant 0 : index
    %c0_1 = arith.constant 0 : index
    %0 = vector.load %arg1[%c0, %c0_0, %c0_1] : memref<1x8x512xbf16, #tpu.memory_space<vmem>>, vector<1x8x512xbf16>
    %1 = vector.shape_cast %0 : vector<1x8x512xbf16> to vector<8x512xbf16>
    %2 = vector.extract_strided_slice %1 {offsets = [0, 0], sizes = [8, 384], strides = [1, 1]} : vector<8x512xbf16> to vector<8x384xbf16>
    %c0_2 = arith.constant 0 : index
    %c0_3 = arith.constant 0 : index
    %c0_4 = arith.constant 0 : index
    %3 = vector.load %arg2[%c0_2, %c0_3, %c0_4] : memref<9x16x8xbf16, #tpu.memory_space<vmem>>, vector<1x16x8xbf16>
    %4 = vector.shape_cast %3 : vector<1x16x8xbf16> to vector<16x8xbf16>
    %cst = arith.constant dense<0.000000e+00> : vector<16x384xf32>
    %5 = tpu.matmul %4, %2, %cst {dimension_numbers = #tpu.dot_dimension_numbers<[1], [0], [0], [1], [0, 0, 1, 1], [], []>} : vector<16x8xbf16>, vector<8x384xbf16>, vector<16x384xf32> -> vector<16x384xf32>
    %6 = vector.extract_strided_slice %1 {offsets = [0, 1], sizes = [8, 384], strides = [1, 1]} : vector<8x512xbf16> to vector<8x384xbf16>
    %c1 = arith.constant 1 : index
    %c0_5 = arith.constant 0 : index
    %c0_6 = arith.constant 0 : index
    %7 = vector.load %arg2[%c1, %c0_5, %c0_6] : memref<9x16x8xbf16, #tpu.memory_space<vmem>>, vector<1x16x8xbf16>
    %8 = vector.shape_cast %7 : vector<1x16x8xbf16> to vector<16x8xbf16>
    %cst_7 = arith.constant dense<0.000000e+00> : vector<16x384xf32>
    %9 = tpu.matmul %8, %6, %cst_7 {dimension_numbers = #tpu.dot_dimension_numbers<[1], [0], [0], [1], [0, 0, 1, 1], [], []>} : vector<16x8xbf16>, vector<8x384xbf16>, vector<16x384xf32> -> vector<16x384xf32>
    %10 = arith.addf %5, %9 : vector<16x384xf32>
    %11 = vector.extract_strided_slice %1 {offsets = [0, 2], sizes = [8, 384], strides = [1, 1]} : vector<8x512xbf16> to vector<8x384xbf16>
    %c2 = arith.constant 2 : index
    %c0_8 = arith.constant 0 : index
    %c0_9 = arith.constant 0 : index
    %12 = vector.load %arg2[%c2, %c0_8, %c0_9] : memref<9x16x8xbf16, #tpu.memory_space<vmem>>, vector<1x16x8xbf16>
    %13 = vector.shape_cast %12 : vector<1x16x8xbf16> to vector<16x8xbf16>
    %cst_10 = arith.constant dense<0.000000e+00> : vector<16x384xf32>
    %14 = tpu.matmul %13, %11, %cst_10 {dimension_numbers = #tpu.dot_dimension_numbers<[1], [0], [0], [1], [0, 0, 1, 1], [], []>} : vector<16x8xbf16>, vector<8x384xbf16>, vector<16x384xf32> -> vector<16x384xf32>
    %15 = arith.addf %10, %14 : vector<16x384xf32>
    %16 = vector.extract_strided_slice %1 {offsets = [0, 18], sizes = [8, 384], strides = [1, 1]} : vector<8x512xbf16> to vector<8x384xbf16>
    %c3 = arith.constant 3 : index
    %c0_11 = arith.constant 0 : index
    %c0_12 = arith.constant 0 : index
    %17 = vector.load %arg2[%c3, %c0_11, %c0_12] : memref<9x16x8xbf16, #tpu.memory_space<vmem>>, vector<1x16x8xbf16>
    %18 = vector.shape_cast %17 : vector<1x16x8xbf16> to vector<16x8xbf16>
    %cst_13 = arith.constant dense<0.000000e+00> : vector<16x384xf32>
    %19 = tpu.matmul %18, %16, %cst_13 {dimension_numbers = #tpu.dot_dimension_numbers<[1], [0], [0], [1], [0, 0, 1, 1], [], []>} : vector<16x8xbf16>, vector<8x384xbf16>, vector<16x384xf32> -> vector<16x384xf32>
    %20 = arith.addf %15, %19 : vector<16x384xf32>
    %21 = vector.extract_strided_slice %1 {offsets = [0, 19], sizes = [8, 384], strides = [1, 1]} : vector<8x512xbf16> to vector<8x384xbf16>
    %c4 = arith.constant 4 : index
    %c0_14 = arith.constant 0 : index
    %c0_15 = arith.constant 0 : index
    %22 = vector.load %arg2[%c4, %c0_14, %c0_15] : memref<9x16x8xbf16, #tpu.memory_space<vmem>>, vector<1x16x8xbf16>
    %23 = vector.shape_cast %22 : vector<1x16x8xbf16> to vector<16x8xbf16>
    %cst_16 = arith.constant dense<0.000000e+00> : vector<16x384xf32>
    %24 = tpu.matmul %23, %21, %cst_16 {dimension_numbers = #tpu.dot_dimension_numbers<[1], [0], [0], [1], [0, 0, 1, 1], [], []>} : vector<16x8xbf16>, vector<8x384xbf16>, vector<16x384xf32> -> vector<16x384xf32>
    %25 = arith.addf %20, %24 : vector<16x384xf32>
    %26 = vector.extract_strided_slice %1 {offsets = [0, 20], sizes = [8, 384], strides = [1, 1]} : vector<8x512xbf16> to vector<8x384xbf16>
    %c5 = arith.constant 5 : index
    %c0_17 = arith.constant 0 : index
    %c0_18 = arith.constant 0 : index
    %27 = vector.load %arg2[%c5, %c0_17, %c0_18] : memref<9x16x8xbf16, #tpu.memory_space<vmem>>, vector<1x16x8xbf16>
    %28 = vector.shape_cast %27 : vector<1x16x8xbf16> to vector<16x8xbf16>
    %cst_19 = arith.constant dense<0.000000e+00> : vector<16x384xf32>
    %29 = tpu.matmul %28, %26, %cst_19 {dimension_numbers = #tpu.dot_dimension_numbers<[1], [0], [0], [1], [0, 0, 1, 1], [], []>} : vector<16x8xbf16>, vector<8x384xbf16>, vector<16x384xf32> -> vector<16x384xf32>
    %30 = arith.addf %25, %29 : vector<16x384xf32>
    %31 = vector.extract_strided_slice %1 {offsets = [0, 36], sizes = [8, 384], strides = [1, 1]} : vector<8x512xbf16> to vector<8x384xbf16>
    %c6 = arith.constant 6 : index
    %c0_20 = arith.constant 0 : index
    %c0_21 = arith.constant 0 : index
    %32 = vector.load %arg2[%c6, %c0_20, %c0_21] : memref<9x16x8xbf16, #tpu.memory_space<vmem>>, vector<1x16x8xbf16>
    %33 = vector.shape_cast %32 : vector<1x16x8xbf16> to vector<16x8xbf16>
    %cst_22 = arith.constant dense<0.000000e+00> : vector<16x384xf32>
    %34 = tpu.matmul %33, %31, %cst_22 {dimension_numbers = #tpu.dot_dimension_numbers<[1], [0], [0], [1], [0, 0, 1, 1], [], []>} : vector<16x8xbf16>, vector<8x384xbf16>, vector<16x384xf32> -> vector<16x384xf32>
    %35 = arith.addf %30, %34 : vector<16x384xf32>
    %36 = vector.extract_strided_slice %1 {offsets = [0, 37], sizes = [8, 384], strides = [1, 1]} : vector<8x512xbf16> to vector<8x384xbf16>
    %c7 = arith.constant 7 : index
    %c0_23 = arith.constant 0 : index
    %c0_24 = arith.constant 0 : index
    %37 = vector.load %arg2[%c7, %c0_23, %c0_24] : memref<9x16x8xbf16, #tpu.memory_space<vmem>>, vector<1x16x8xbf16>
    %38 = vector.shape_cast %37 : vector<1x16x8xbf16> to vector<16x8xbf16>
    %cst_25 = arith.constant dense<0.000000e+00> : vector<16x384xf32>
    %39 = tpu.matmul %38, %36, %cst_25 {dimension_numbers = #tpu.dot_dimension_numbers<[1], [0], [0], [1], [0, 0, 1, 1], [], []>} : vector<16x8xbf16>, vector<8x384xbf16>, vector<16x384xf32> -> vector<16x384xf32>
    %40 = arith.addf %35, %39 : vector<16x384xf32>
    %41 = vector.extract_strided_slice %1 {offsets = [0, 38], sizes = [8, 384], strides = [1, 1]} : vector<8x512xbf16> to vector<8x384xbf16>
    %c8 = arith.constant 8 : index
    %c0_26 = arith.constant 0 : index
    %c0_27 = arith.constant 0 : index
    %42 = vector.load %arg2[%c8, %c0_26, %c0_27] : memref<9x16x8xbf16, #tpu.memory_space<vmem>>, vector<1x16x8xbf16>
    %43 = vector.shape_cast %42 : vector<1x16x8xbf16> to vector<16x8xbf16>
    %cst_28 = arith.constant dense<0.000000e+00> : vector<16x384xf32>
    %44 = tpu.matmul %43, %41, %cst_28 {dimension_numbers = #tpu.dot_dimension_numbers<[1], [0], [0], [1], [0, 0, 1, 1], [], []>} : vector<16x8xbf16>, vector<8x384xbf16>, vector<16x384xf32> -> vector<16x384xf32>
    %45 = arith.addf %40, %44 : vector<16x384xf32>
    %cst_29 = arith.constant 0.000000e+00 : f32
    %46 = vector.broadcast %cst_29 : f32 to vector<16x384xf32>
    %47 = arith.maximumf %45, %46 : vector<16x384xf32>
    %48 = arith.truncf %47 : vector<16x384xf32> to vector<16x384xbf16>
    %c0_30 = arith.constant 0 : index
    %c0_31 = arith.constant 0 : index
    %c0_32 = arith.constant 0 : index
    %49 = vector.load %arg3[%c0_30, %c0_31, %c0_32] : memref<1x16x384xbf16, #tpu.memory_space<vmem>>, vector<1x16x384xbf16>
    %50 = vector.shape_cast %49 : vector<1x16x384xbf16> to vector<16x384xbf16>
    %51 = vector.shape_cast %48 : vector<16x384xbf16> to vector<1x16x384xbf16>
    tpu.vector_store %arg3[%c0_30, %c0_31, %c0_32], %51 {strides = array<i32>} : memref<1x16x384xbf16, #tpu.memory_space<vmem>>, vector<1x16x384xbf16>,
    return
  }
  func.func @transform_0(%arg0: i32) -> (i32, i32, i32) {
    %c0_i32 = arith.constant 0 : i32
    %c0_i32_0 = arith.constant 0 : i32
    %c0_i32_1 = arith.constant 0 : i32
    return %arg0, %c0_i32, %c0_i32_0 : i32, i32, i32
  }
  func.func @transform_1(%arg0: i32) -> (i32, i32, i32) {
    %c0_i32 = arith.constant 0 : i32
    %c0_i32_0 = arith.constant 0 : i32
    %c0_i32_1 = arith.constant 0 : i32
    %c0_i32_2 = arith.constant 0 : i32
    return %c0_i32, %c0_i32_0, %c0_i32_1 : i32, i32, i32
  }
  func.func @transform_2(%arg0: i32) -> (i32, i32, i32) {
    %c0_i32 = arith.constant 0 : i32
    %c0_i32_0 = arith.constant 0 : i32
    %c0_i32_1 = arith.constant 0 : i32
    return %arg0, %c0_i32, %c0_i32_0 : i32, i32, i32
  }
}

module attributes {stable_mosaic.version = 11 : i64} {
  func.func @kernel(%arg0: i32, %arg1: memref<1x8x1408xbf16, #tpu.memory_space<vmem>>, %arg2: memref<9x16x8xbf16, #tpu.memory_space<vmem>>, %arg3: memref<1x16x1280xbf16, #tpu.memory_space<vmem>>) attributes {dimension_semantics = [#tpu.dimension_semantics<parallel>], iteration_bounds = array<i64: 8>, scalar_prefetch = 0 : i64, scratch_operands = 0 : i64, tpu.core_type = #tpu.core_type<tc>, window_params = [{transform_indices = @transform_0, window_bounds = array<i64: 1, 8, 1408>}, {pipeline_mode = #tpu.pipeline_mode<synchronous>, transform_indices = @transform_1, window_bounds = array<i64: 9, 16, 8>}, {transform_indices = @transform_2, window_bounds = array<i64: 1, 16, 1280>}]} {
    %c0 = arith.constant 0 : index
    %c0_0 = arith.constant 0 : index
    %c0_1 = arith.constant 0 : index
    %0 = vector.load %arg1[%c0, %c0_0, %c0_1] : memref<1x8x1408xbf16, #tpu.memory_space<vmem>>, vector<1x8x1408xbf16>
    %1 = vector.shape_cast %0 : vector<1x8x1408xbf16> to vector<8x1408xbf16>
    %2 = vector.extract_strided_slice %1 {offsets = [0, 0], sizes = [8, 1280], strides = [1, 1]} : vector<8x1408xbf16> to vector<8x1280xbf16>
    %c0_2 = arith.constant 0 : index
    %c0_3 = arith.constant 0 : index
    %c0_4 = arith.constant 0 : index
    %3 = vector.load %arg2[%c0_2, %c0_3, %c0_4] : memref<9x16x8xbf16, #tpu.memory_space<vmem>>, vector<1x16x8xbf16>
    %4 = vector.shape_cast %3 : vector<1x16x8xbf16> to vector<16x8xbf16>
    %cst = arith.constant dense<0.000000e+00> : vector<16x1280xf32>
    %5 = tpu.matmul %4, %2, %cst {dimension_numbers = #tpu.dot_dimension_numbers<[1], [0], [0], [1], [0, 0, 1, 1], [], []>} : vector<16x8xbf16>, vector<8x1280xbf16>, vector<16x1280xf32> -> vector<16x1280xf32>
    %6 = vector.extract_strided_slice %1 {offsets = [0, 1], sizes = [8, 1280], strides = [1, 1]} : vector<8x1408xbf16> to vector<8x1280xbf16>
    %c1 = arith.constant 1 : index
    %c0_5 = arith.constant 0 : index
    %c0_6 = arith.constant 0 : index
    %7 = vector.load %arg2[%c1, %c0_5, %c0_6] : memref<9x16x8xbf16, #tpu.memory_space<vmem>>, vector<1x16x8xbf16>
    %8 = vector.shape_cast %7 : vector<1x16x8xbf16> to vector<16x8xbf16>
    %cst_7 = arith.constant dense<0.000000e+00> : vector<16x1280xf32>
    %9 = tpu.matmul %8, %6, %cst_7 {dimension_numbers = #tpu.dot_dimension_numbers<[1], [0], [0], [1], [0, 0, 1, 1], [], []>} : vector<16x8xbf16>, vector<8x1280xbf16>, vector<16x1280xf32> -> vector<16x1280xf32>
    %10 = arith.addf %5, %9 : vector<16x1280xf32>
    %11 = vector.extract_strided_slice %1 {offsets = [0, 2], sizes = [8, 1280], strides = [1, 1]} : vector<8x1408xbf16> to vector<8x1280xbf16>
    %c2 = arith.constant 2 : index
    %c0_8 = arith.constant 0 : index
    %c0_9 = arith.constant 0 : index
    %12 = vector.load %arg2[%c2, %c0_8, %c0_9] : memref<9x16x8xbf16, #tpu.memory_space<vmem>>, vector<1x16x8xbf16>
    %13 = vector.shape_cast %12 : vector<1x16x8xbf16> to vector<16x8xbf16>
    %cst_10 = arith.constant dense<0.000000e+00> : vector<16x1280xf32>
    %14 = tpu.matmul %13, %11, %cst_10 {dimension_numbers = #tpu.dot_dimension_numbers<[1], [0], [0], [1], [0, 0, 1, 1], [], []>} : vector<16x8xbf16>, vector<8x1280xbf16>, vector<16x1280xf32> -> vector<16x1280xf32>
    %15 = arith.addf %10, %14 : vector<16x1280xf32>
    %16 = vector.extract_strided_slice %1 {offsets = [0, 34], sizes = [8, 1280], strides = [1, 1]} : vector<8x1408xbf16> to vector<8x1280xbf16>
    %c3 = arith.constant 3 : index
    %c0_11 = arith.constant 0 : index
    %c0_12 = arith.constant 0 : index
    %17 = vector.load %arg2[%c3, %c0_11, %c0_12] : memref<9x16x8xbf16, #tpu.memory_space<vmem>>, vector<1x16x8xbf16>
    %18 = vector.shape_cast %17 : vector<1x16x8xbf16> to vector<16x8xbf16>
    %cst_13 = arith.constant dense<0.000000e+00> : vector<16x1280xf32>
    %19 = tpu.matmul %18, %16, %cst_13 {dimension_numbers = #tpu.dot_dimension_numbers<[1], [0], [0], [1], [0, 0, 1, 1], [], []>} : vector<16x8xbf16>, vector<8x1280xbf16>, vector<16x1280xf32> -> vector<16x1280xf32>
    %20 = arith.addf %15, %19 : vector<16x1280xf32>
    %21 = vector.extract_strided_slice %1 {offsets = [0, 35], sizes = [8, 1280], strides = [1, 1]} : vector<8x1408xbf16> to vector<8x1280xbf16>
    %c4 = arith.constant 4 : index
    %c0_14 = arith.constant 0 : index
    %c0_15 = arith.constant 0 : index
    %22 = vector.load %arg2[%c4, %c0_14, %c0_15] : memref<9x16x8xbf16, #tpu.memory_space<vmem>>, vector<1x16x8xbf16>
    %23 = vector.shape_cast %22 : vector<1x16x8xbf16> to vector<16x8xbf16>
    %cst_16 = arith.constant dense<0.000000e+00> : vector<16x1280xf32>
    %24 = tpu.matmul %23, %21, %cst_16 {dimension_numbers = #tpu.dot_dimension_numbers<[1], [0], [0], [1], [0, 0, 1, 1], [], []>} : vector<16x8xbf16>, vector<8x1280xbf16>, vector<16x1280xf32> -> vector<16x1280xf32>
    %25 = arith.addf %20, %24 : vector<16x1280xf32>
    %26 = vector.extract_strided_slice %1 {offsets = [0, 36], sizes = [8, 1280], strides = [1, 1]} : vector<8x1408xbf16> to vector<8x1280xbf16>
    %c5 = arith.constant 5 : index
    %c0_17 = arith.constant 0 : index
    %c0_18 = arith.constant 0 : index
    %27 = vector.load %arg2[%c5, %c0_17, %c0_18] : memref<9x16x8xbf16, #tpu.memory_space<vmem>>, vector<1x16x8xbf16>
    %28 = vector.shape_cast %27 : vector<1x16x8xbf16> to vector<16x8xbf16>
    %cst_19 = arith.constant dense<0.000000e+00> : vector<16x1280xf32>
    %29 = tpu.matmul %28, %26, %cst_19 {dimension_numbers = #tpu.dot_dimension_numbers<[1], [0], [0], [1], [0, 0, 1, 1], [], []>} : vector<16x8xbf16>, vector<8x1280xbf16>, vector<16x1280xf32> -> vector<16x1280xf32>
    %30 = arith.addf %25, %29 : vector<16x1280xf32>
    %31 = vector.extract_strided_slice %1 {offsets = [0, 68], sizes = [8, 1280], strides = [1, 1]} : vector<8x1408xbf16> to vector<8x1280xbf16>
    %c6 = arith.constant 6 : index
    %c0_20 = arith.constant 0 : index
    %c0_21 = arith.constant 0 : index
    %32 = vector.load %arg2[%c6, %c0_20, %c0_21] : memref<9x16x8xbf16, #tpu.memory_space<vmem>>, vector<1x16x8xbf16>
    %33 = vector.shape_cast %32 : vector<1x16x8xbf16> to vector<16x8xbf16>
    %cst_22 = arith.constant dense<0.000000e+00> : vector<16x1280xf32>
    %34 = tpu.matmul %33, %31, %cst_22 {dimension_numbers = #tpu.dot_dimension_numbers<[1], [0], [0], [1], [0, 0, 1, 1], [], []>} : vector<16x8xbf16>, vector<8x1280xbf16>, vector<16x1280xf32> -> vector<16x1280xf32>
    %35 = arith.addf %30, %34 : vector<16x1280xf32>
    %36 = vector.extract_strided_slice %1 {offsets = [0, 69], sizes = [8, 1280], strides = [1, 1]} : vector<8x1408xbf16> to vector<8x1280xbf16>
    %c7 = arith.constant 7 : index
    %c0_23 = arith.constant 0 : index
    %c0_24 = arith.constant 0 : index
    %37 = vector.load %arg2[%c7, %c0_23, %c0_24] : memref<9x16x8xbf16, #tpu.memory_space<vmem>>, vector<1x16x8xbf16>
    %38 = vector.shape_cast %37 : vector<1x16x8xbf16> to vector<16x8xbf16>
    %cst_25 = arith.constant dense<0.000000e+00> : vector<16x1280xf32>
    %39 = tpu.matmul %38, %36, %cst_25 {dimension_numbers = #tpu.dot_dimension_numbers<[1], [0], [0], [1], [0, 0, 1, 1], [], []>} : vector<16x8xbf16>, vector<8x1280xbf16>, vector<16x1280xf32> -> vector<16x1280xf32>
    %40 = arith.addf %35, %39 : vector<16x1280xf32>
    %41 = vector.extract_strided_slice %1 {offsets = [0, 70], sizes = [8, 1280], strides = [1, 1]} : vector<8x1408xbf16> to vector<8x1280xbf16>
    %c8 = arith.constant 8 : index
    %c0_26 = arith.constant 0 : index
    %c0_27 = arith.constant 0 : index
    %42 = vector.load %arg2[%c8, %c0_26, %c0_27] : memref<9x16x8xbf16, #tpu.memory_space<vmem>>, vector<1x16x8xbf16>
    %43 = vector.shape_cast %42 : vector<1x16x8xbf16> to vector<16x8xbf16>
    %cst_28 = arith.constant dense<0.000000e+00> : vector<16x1280xf32>
    %44 = tpu.matmul %43, %41, %cst_28 {dimension_numbers = #tpu.dot_dimension_numbers<[1], [0], [0], [1], [0, 0, 1, 1], [], []>} : vector<16x8xbf16>, vector<8x1280xbf16>, vector<16x1280xf32> -> vector<16x1280xf32>
    %45 = arith.addf %40, %44 : vector<16x1280xf32>
    %cst_29 = arith.constant 0.000000e+00 : f32
    %46 = vector.broadcast %cst_29 : f32 to vector<16x1280xf32>
    %47 = arith.maximumf %45, %46 : vector<16x1280xf32>
    %48 = arith.truncf %47 : vector<16x1280xf32> to vector<16x1280xbf16>
    %c0_30 = arith.constant 0 : index
    %c0_31 = arith.constant 0 : index
    %c0_32 = arith.constant 0 : index
    %49 = vector.load %arg3[%c0_30, %c0_31, %c0_32] : memref<1x16x1280xbf16, #tpu.memory_space<vmem>>, vector<1x16x1280xbf16>
    %50 = vector.shape_cast %49 : vector<1x16x1280xbf16> to vector<16x1280xbf16>
    %51 = vector.shape_cast %48 : vector<16x1280xbf16> to vector<1x16x1280xbf16>
    tpu.vector_store %arg3[%c0_30, %c0_31, %c0_32], %51 {strides = array<i32>} : memref<1x16x1280xbf16, #tpu.memory_space<vmem>>, vector<1x16x1280xbf16>,
    return
  }
  func.func @transform_0(%arg0: i32) -> (i32, i32, i32) {
    %c0_i32 = arith.constant 0 : i32
    %c0_i32_0 = arith.constant 0 : i32
    %c0_i32_1 = arith.constant 0 : i32
    return %arg0, %c0_i32, %c0_i32_0 : i32, i32, i32
  }
  func.func @transform_1(%arg0: i32) -> (i32, i32, i32) {
    %c0_i32 = arith.constant 0 : i32
    %c0_i32_0 = arith.constant 0 : i32
    %c0_i32_1 = arith.constant 0 : i32
    %c0_i32_2 = arith.constant 0 : i32
    return %c0_i32, %c0_i32_0, %c0_i32_1 : i32, i32, i32
  }
  func.func @transform_2(%arg0: i32) -> (i32, i32, i32) {
    %c0_i32 = arith.constant 0 : i32
    %c0_i32_0 = arith.constant 0 : i32
    %c0_i32_1 = arith.constant 0 : i32
    return %arg0, %c0_i32, %c0_i32_0 : i32, i32, i32
  }
}

module attributes {stable_mosaic.version = 11 : i64} {
  func.func @kernel(%arg0: i32, %arg1: memref<1x8x1408xbf16, #tpu.memory_space<vmem>>, %arg2: memref<9x16x8xbf16, #tpu.memory_space<vmem>>, %arg3: memref<1x16x1280xf32, #tpu.memory_space<vmem>>) attributes {dimension_semantics = [#tpu.dimension_semantics<parallel>], iteration_bounds = array<i64: 8>, scalar_prefetch = 0 : i64, scratch_operands = 0 : i64, tpu.core_type = #tpu.core_type<tc>, window_params = [{transform_indices = @transform_0, window_bounds = array<i64: 1, 8, 1408>}, {pipeline_mode = #tpu.pipeline_mode<synchronous>, transform_indices = @transform_1, window_bounds = array<i64: 9, 16, 8>}, {transform_indices = @transform_2, window_bounds = array<i64: 1, 16, 1280>}]} {
    %c0 = arith.constant 0 : index
    %c0_0 = arith.constant 0 : index
    %c0_1 = arith.constant 0 : index
    %0 = vector.load %arg1[%c0, %c0_0, %c0_1] : memref<1x8x1408xbf16, #tpu.memory_space<vmem>>, vector<1x8x1408xbf16>
    %1 = vector.shape_cast %0 : vector<1x8x1408xbf16> to vector<8x1408xbf16>
    %2 = vector.extract_strided_slice %1 {offsets = [0, 0], sizes = [8, 1280], strides = [1, 1]} : vector<8x1408xbf16> to vector<8x1280xbf16>
    %c0_2 = arith.constant 0 : index
    %c0_3 = arith.constant 0 : index
    %c0_4 = arith.constant 0 : index
    %3 = vector.load %arg2[%c0_2, %c0_3, %c0_4] : memref<9x16x8xbf16, #tpu.memory_space<vmem>>, vector<1x16x8xbf16>
    %4 = vector.shape_cast %3 : vector<1x16x8xbf16> to vector<16x8xbf16>
    %cst = arith.constant dense<0.000000e+00> : vector<16x1280xf32>
    %5 = tpu.matmul %4, %2, %cst {dimension_numbers = #tpu.dot_dimension_numbers<[1], [0], [0], [1], [0, 0, 1, 1], [], []>} : vector<16x8xbf16>, vector<8x1280xbf16>, vector<16x1280xf32> -> vector<16x1280xf32>
    %6 = vector.extract_strided_slice %1 {offsets = [0, 1], sizes = [8, 1280], strides = [1, 1]} : vector<8x1408xbf16> to vector<8x1280xbf16>
    %c1 = arith.constant 1 : index
    %c0_5 = arith.constant 0 : index
    %c0_6 = arith.constant 0 : index
    %7 = vector.load %arg2[%c1, %c0_5, %c0_6] : memref<9x16x8xbf16, #tpu.memory_space<vmem>>, vector<1x16x8xbf16>
    %8 = vector.shape_cast %7 : vector<1x16x8xbf16> to vector<16x8xbf16>
    %cst_7 = arith.constant dense<0.000000e+00> : vector<16x1280xf32>
    %9 = tpu.matmul %8, %6, %cst_7 {dimension_numbers = #tpu.dot_dimension_numbers<[1], [0], [0], [1], [0, 0, 1, 1], [], []>} : vector<16x8xbf16>, vector<8x1280xbf16>, vector<16x1280xf32> -> vector<16x1280xf32>
    %10 = arith.addf %5, %9 : vector<16x1280xf32>
    %11 = vector.extract_strided_slice %1 {offsets = [0, 2], sizes = [8, 1280], strides = [1, 1]} : vector<8x1408xbf16> to vector<8x1280xbf16>
    %c2 = arith.constant 2 : index
    %c0_8 = arith.constant 0 : index
    %c0_9 = arith.constant 0 : index
    %12 = vector.load %arg2[%c2, %c0_8, %c0_9] : memref<9x16x8xbf16, #tpu.memory_space<vmem>>, vector<1x16x8xbf16>
    %13 = vector.shape_cast %12 : vector<1x16x8xbf16> to vector<16x8xbf16>
    %cst_10 = arith.constant dense<0.000000e+00> : vector<16x1280xf32>
    %14 = tpu.matmul %13, %11, %cst_10 {dimension_numbers = #tpu.dot_dimension_numbers<[1], [0], [0], [1], [0, 0, 1, 1], [], []>} : vector<16x8xbf16>, vector<8x1280xbf16>, vector<16x1280xf32> -> vector<16x1280xf32>
    %15 = arith.addf %10, %14 : vector<16x1280xf32>
    %16 = vector.extract_strided_slice %1 {offsets = [0, 34], sizes = [8, 1280], strides = [1, 1]} : vector<8x1408xbf16> to vector<8x1280xbf16>
    %c3 = arith.constant 3 : index
    %c0_11 = arith.constant 0 : index
    %c0_12 = arith.constant 0 : index
    %17 = vector.load %arg2[%c3, %c0_11, %c0_12] : memref<9x16x8xbf16, #tpu.memory_space<vmem>>, vector<1x16x8xbf16>
    %18 = vector.shape_cast %17 : vector<1x16x8xbf16> to vector<16x8xbf16>
    %cst_13 = arith.constant dense<0.000000e+00> : vector<16x1280xf32>
    %19 = tpu.matmul %18, %16, %cst_13 {dimension_numbers = #tpu.dot_dimension_numbers<[1], [0], [0], [1], [0, 0, 1, 1], [], []>} : vector<16x8xbf16>, vector<8x1280xbf16>, vector<16x1280xf32> -> vector<16x1280xf32>
    %20 = arith.addf %15, %19 : vector<16x1280xf32>
    %21 = vector.extract_strided_slice %1 {offsets = [0, 35], sizes = [8, 1280], strides = [1, 1]} : vector<8x1408xbf16> to vector<8x1280xbf16>
    %c4 = arith.constant 4 : index
    %c0_14 = arith.constant 0 : index
    %c0_15 = arith.constant 0 : index
    %22 = vector.load %arg2[%c4, %c0_14, %c0_15] : memref<9x16x8xbf16, #tpu.memory_space<vmem>>, vector<1x16x8xbf16>
    %23 = vector.shape_cast %22 : vector<1x16x8xbf16> to vector<16x8xbf16>
    %cst_16 = arith.constant dense<0.000000e+00> : vector<16x1280xf32>
    %24 = tpu.matmul %23, %21, %cst_16 {dimension_numbers = #tpu.dot_dimension_numbers<[1], [0], [0], [1], [0, 0, 1, 1], [], []>} : vector<16x8xbf16>, vector<8x1280xbf16>, vector<16x1280xf32> -> vector<16x1280xf32>
    %25 = arith.addf %20, %24 : vector<16x1280xf32>
    %26 = vector.extract_strided_slice %1 {offsets = [0, 36], sizes = [8, 1280], strides = [1, 1]} : vector<8x1408xbf16> to vector<8x1280xbf16>
    %c5 = arith.constant 5 : index
    %c0_17 = arith.constant 0 : index
    %c0_18 = arith.constant 0 : index
    %27 = vector.load %arg2[%c5, %c0_17, %c0_18] : memref<9x16x8xbf16, #tpu.memory_space<vmem>>, vector<1x16x8xbf16>
    %28 = vector.shape_cast %27 : vector<1x16x8xbf16> to vector<16x8xbf16>
    %cst_19 = arith.constant dense<0.000000e+00> : vector<16x1280xf32>
    %29 = tpu.matmul %28, %26, %cst_19 {dimension_numbers = #tpu.dot_dimension_numbers<[1], [0], [0], [1], [0, 0, 1, 1], [], []>} : vector<16x8xbf16>, vector<8x1280xbf16>, vector<16x1280xf32> -> vector<16x1280xf32>
    %30 = arith.addf %25, %29 : vector<16x1280xf32>
    %31 = vector.extract_strided_slice %1 {offsets = [0, 68], sizes = [8, 1280], strides = [1, 1]} : vector<8x1408xbf16> to vector<8x1280xbf16>
    %c6 = arith.constant 6 : index
    %c0_20 = arith.constant 0 : index
    %c0_21 = arith.constant 0 : index
    %32 = vector.load %arg2[%c6, %c0_20, %c0_21] : memref<9x16x8xbf16, #tpu.memory_space<vmem>>, vector<1x16x8xbf16>
    %33 = vector.shape_cast %32 : vector<1x16x8xbf16> to vector<16x8xbf16>
    %cst_22 = arith.constant dense<0.000000e+00> : vector<16x1280xf32>
    %34 = tpu.matmul %33, %31, %cst_22 {dimension_numbers = #tpu.dot_dimension_numbers<[1], [0], [0], [1], [0, 0, 1, 1], [], []>} : vector<16x8xbf16>, vector<8x1280xbf16>, vector<16x1280xf32> -> vector<16x1280xf32>
    %35 = arith.addf %30, %34 : vector<16x1280xf32>
    %36 = vector.extract_strided_slice %1 {offsets = [0, 69], sizes = [8, 1280], strides = [1, 1]} : vector<8x1408xbf16> to vector<8x1280xbf16>
    %c7 = arith.constant 7 : index
    %c0_23 = arith.constant 0 : index
    %c0_24 = arith.constant 0 : index
    %37 = vector.load %arg2[%c7, %c0_23, %c0_24] : memref<9x16x8xbf16, #tpu.memory_space<vmem>>, vector<1x16x8xbf16>
    %38 = vector.shape_cast %37 : vector<1x16x8xbf16> to vector<16x8xbf16>
    %cst_25 = arith.constant dense<0.000000e+00> : vector<16x1280xf32>
    %39 = tpu.matmul %38, %36, %cst_25 {dimension_numbers = #tpu.dot_dimension_numbers<[1], [0], [0], [1], [0, 0, 1, 1], [], []>} : vector<16x8xbf16>, vector<8x1280xbf16>, vector<16x1280xf32> -> vector<16x1280xf32>
    %40 = arith.addf %35, %39 : vector<16x1280xf32>
    %41 = vector.extract_strided_slice %1 {offsets = [0, 70], sizes = [8, 1280], strides = [1, 1]} : vector<8x1408xbf16> to vector<8x1280xbf16>
    %c8 = arith.constant 8 : index
    %c0_26 = arith.constant 0 : index
    %c0_27 = arith.constant 0 : index
    %42 = vector.load %arg2[%c8, %c0_26, %c0_27] : memref<9x16x8xbf16, #tpu.memory_space<vmem>>, vector<1x16x8xbf16>
    %43 = vector.shape_cast %42 : vector<1x16x8xbf16> to vector<16x8xbf16>
    %cst_28 = arith.constant dense<0.000000e+00> : vector<16x1280xf32>
    %44 = tpu.matmul %43, %41, %cst_28 {dimension_numbers = #tpu.dot_dimension_numbers<[1], [0], [0], [1], [0, 0, 1, 1], [], []>} : vector<16x8xbf16>, vector<8x1280xbf16>, vector<16x1280xf32> -> vector<16x1280xf32>
    %45 = arith.addf %40, %44 : vector<16x1280xf32>
    %c0_29 = arith.constant 0 : index
    %c0_30 = arith.constant 0 : index
    %c0_31 = arith.constant 0 : index
    %46 = vector.load %arg3[%c0_29, %c0_30, %c0_31] : memref<1x16x1280xf32, #tpu.memory_space<vmem>>, vector<1x16x1280xf32>
    %47 = vector.shape_cast %46 : vector<1x16x1280xf32> to vector<16x1280xf32>
    %48 = vector.shape_cast %45 : vector<16x1280xf32> to vector<1x16x1280xf32>
    tpu.vector_store %arg3[%c0_29, %c0_30, %c0_31], %48 {strides = array<i32>} : memref<1x16x1280xf32, #tpu.memory_space<vmem>>, vector<1x16x1280xf32>,
    return
  }
  func.func @transform_0(%arg0: i32) -> (i32, i32, i32) {
    %c0_i32 = arith.constant 0 : i32
    %c0_i32_0 = arith.constant 0 : i32
    %c0_i32_1 = arith.constant 0 : i32
    return %arg0, %c0_i32, %c0_i32_0 : i32, i32, i32
  }
  func.func @transform_1(%arg0: i32) -> (i32, i32, i32) {
    %c0_i32 = arith.constant 0 : i32
    %c0_i32_0 = arith.constant 0 : i32
    %c0_i32_1 = arith.constant 0 : i32
    %c0_i32_2 = arith.constant 0 : i32
    return %c0_i32, %c0_i32_0, %c0_i32_1 : i32, i32, i32
  }
  func.func @transform_2(%arg0: i32) -> (i32, i32, i32) {
    %c0_i32 = arith.constant 0 : i32
    %c0_i32_0 = arith.constant 0 : i32
    %c0_i32_1 = arith.constant 0 : i32
    return %arg0, %c0_i32, %c0_i32_0 : i32, i32, i32
  }
}

</mosaic_0001>

<bundles_post_ra>
// kernel: view_transformer_forward.16
= control target key start
LH: loop header
LB: loop body
LE: loop exit
PB: predicated region body
PF: predicated region fallthrough
CT: control target
= control target key end

     0   :  { %s1079_s18 = smov 0   ;;  %s1168_s0 = inlined_call_operand.vmem [shape: bf16[2,12,512], index: 0, kind: input, shape index: {}]   ;;  %s1169_s1 = inlined_call_operand.vmem [shape: bf16[4,16,12], index: 1, kind: input, shape index: {}]   ;;  %s1170_s2 = inlined_call_operand.vmem [shape: f32[16,1], index: 2, kind: input, shape index: {}]   ;;  %s1171_s3 = inlined_call_operand.vmem [shape: f32[16,1], index: 3, kind: input, shape index: {}]   ;;  %s1172_s4 = inlined_call_operand.vmem [shape: f32[1,384], index: 4, kind: input, shape index: {}]   ;;  %s1173_s5 = inlined_call_operand.vmem [shape: bf16[2,16,384], index: 5, kind: output, shape index: {}]  }
   0x1 LB: > { %s903_s19 = sadd.s32 4294967295, %s1041_s18   ;;  %p907_p0 = scmp.ge.s32.totalorder %s1041_s18, 1  ;;  %s1041_s18 = sphi %s1079_s18, %s15_s18  }
   0x2   : > { %p187_p1 = scmp.lt.s32.totalorder %s1041_s18, 3 }
   0x4   : > { %p188_p2 = pnand %p907_p0, %p187_p1 }
   0x5   : > { %p215_p3 = scmp.lt.s32.totalorder (!%p188_p2), %s903_s19, 1  ;;  %v1043_v0 = vmov (!%p188_p2), 0.0   ;;  %v1044_v1 = vmov (!%p188_p2), 0   ;;  %vm1045_vm0 = vmmov (!%p188_p2), 0   ;;  %s1046_s24 = smov (!%p188_p2), 127   ;;  %vm264_vm1 = vcmask (!%p188_p2), 1039360  }
   0x6   : > { %191 = sbr.rel (%p188_p2) target bundleno = 723 (0x2d3), region = 40  ;;  %956 = vmatprep.subr.bf16.mxu1 (!%p188_p2), %v1043_v0  ;;  %314 = vmatprep.mubr.bf16.mxu0 (!%p188_p2), %v1044_v1  ;;  %s1047_s25 = smov (!%p188_p2), 111   ;;  %vm272_vm2 = vcmask (!%p188_p2), 1045504   ;;  %v1027_v14 = vld [vmem:[%s1169_s1 + $0x8] sm:$0xff] (!%p188_p2)   ;;  %vm268_vm3 = vcmask (!%p188_p2), 97280   ;;  %vm483_vm4 = vcmask (!%p188_p2), 908288   ;;  %v713_v39 = vlaneseq (!%p188_p2) }
   0x7   : > { %958 = vmatprep.mubr.msk.bf16.mxu1 (!%p188_p2), %vm1045_vm0, %v1043_v0  ;;  %1019 = vset.pattern.permute.xlu1 (!%p188_p2), %v1044_v1  ;;  %s1048_s26 = smov (!%p188_p2), 110   ;;  %v1028_v26 = vld [vmem:[%s1169_s1] sm:$0xff] (!%p188_p2)   ;;  %vm605_vm5 = vcmask (!%p188_p2), 900096   ;;  %v1029_v35 = vld [vmem:[%s1169_s1 + $0x10] sm:$0xff] (!%p188_p2)   ;;  %v1030_v38 = vld [vmem:[%s1169_s1 + $0x18] sm:$0xff] (!%p188_p2)  }
   0x8   : > { %1020 = vset.pattern.permute.xlu0 (!%p188_p2), %v1044_v1  ;;  %v714_v40 = vshrl.u32 (!%p188_p2), %v713_v39, 7  ;;  %v711_v42 = vld [vmem:[%s1172_s4] sm:$0x7] (!%p188_p2) }
   0xa   : > { %v715_v41 = vsub.s32 (!%p188_p2), 0, %v714_v40  ;;  %v719_v43 = vsub.s32 (!%p188_p2), 1, %v714_v40  ;;  %v723_v44 = vsub.s32 (!%p188_p2), 2, %v714_v40 }
   0xc   : > { %v716_v45 = vrot.slane (!%p188_p2), %v711_v42, %v715_v41  ;;  %v720_v46 = vrot.slane (!%p188_p2), %v711_v42, %v719_v43  ;;  %v724_v49 = vrot.slane (!%p188_p2), %v711_v42, %v723_v44 }
   0xd   : > { %s1175_s19 = smov (!%p215_p3, %s903_s19), 1 }
   0xe   : > { %s943_s20 = sshll.u32 %s1175_s19, 5  ;;  %s1004_s22 = smul.u32 24, %s1175_s19 }
   0xf   : > { %s219_s23 = scalar_lea.vmem %s1168_s0, %s943_s20 }
  0x10   : > { %v1021_v2 = vld [vmem:[%s219_s23 + $0x8] ss:$16 sps:$4 sm:$0x3f]   ;;  %v1023_v3 = vld [vmem:[%s219_s23] ss:$16 sps:$4 sm:$0x3f]  }
  0x11   : > { %260 = vrot.lane.b32.xlu1 %v1021_v2, %s1046_s24  ;;  %v1025_v4 = vld [vmem:[%s219_s23 + $0xc] ss:$16 sps:$4 sm:$0x3f]   ;;  %256 = vrot.lane.b32.xlu0 %v1023_v3, %s1046_s24  ;;  %v1026_v5 = vld [vmem:[%s219_s23 + $0x4] ss:$16 sps:$4 sm:$0x3f]  }
  0x12   : > { %v381_v16 = vsel %vm272_vm2, %v1021_v2, 0  ;;  %v375_v18 = vsel %vm272_vm2, %v1023_v3, 0 }
  0x15   : > { %262 = vrot.lane.b32.xlu1 %v1025_v4, %s1046_s24  ;;  %258 = vrot.lane.b32.xlu0 %v1026_v5, %s1046_s24 }
  0x19   : > { %477 = vrot.lane.b32.xlu1 %v1026_v5, %s1047_s25  ;;  %475 = vrot.lane.b32.xlu0 %v1023_v3, %s1047_s25 }
  0x1d   : > { %481 = vrot.lane.b32.xlu1 %v1025_v4, %s1047_s25  ;;  %479 = vrot.lane.b32.xlu0 %v1021_v2, %s1047_s25  ;;  %s224_s25 = scalar_lea.vmem %s1173_s5, %s1004_s22 }
  0x21   : > { %599 = vrot.lane.b32.xlu1 %v1026_v5, %s1048_s26  ;;  %597 = vrot.lane.b32.xlu0 %v1023_v3, %s1048_s26  ;;  %v800_v3 = vld [vmem:[%s1171_s3] sm:$0xff] }
  0x25   : > { %603 = vrot.lane.b32.xlu1 %v1025_v4, %s1048_s26  ;;  %601 = vrot.lane.b32.xlu0 %v1021_v2, %s1048_s26  ;;  %v782_v2 = vld [vmem:[%s1170_s2] sm:$0xff]  ;;  %v801_v4 = vld [vmem:[%s1171_s3 + $0x8] sm:$0xff] }
  0x83   : > { %v261_v6 = vpop.permute.xlu1 %260  ;;  %v257_v7 = vpop.permute.xlu0 %256 }
  0x87   : > { %v263_v8 = vpop.permute.xlu1 %262  ;;  %v259_v9 = vpop.permute.xlu0 %258 }
  0x88   : > { %v267_v10 = vsel %vm264_vm1, %v261_v6, %v263_v8  ;;  %v266_v11 = vsel %vm264_vm1, %v259_v9, %v261_v6  ;;  %v265_v12 = vsel %vm264_vm1, %v257_v7, %v259_v9 }
  0x89   : > { %v280_v13 = vsel %vm272_vm2, %v267_v10, 0  ;;  %918 = vmatprep.subr.msk.bf16.mxu0 %vm272_vm2, %v266_v11  ;;  %v274_v15 = vsel %vm272_vm2, %v265_v12, 0 }
  0x8a   : > { %957 = vmatpush3.bf16.msra.mxu1 %v280_v13  ;;  %283 = vmatpush1.bf16.msra.mxu0 %v274_v15 }
  0x8b   : > { %962 = vmatprep.subr.bf16.mxu1 %v1043_v0  ;;  %v478_v17 = vpop.permute.xlu1 %477  ;;  %922 = vmatprep.subr.msk.bf16.mxu0 %vm272_vm2, %v1026_v5  ;;  %v476_v19 = vpop.permute.xlu0 %475 }
  0x8c   : > { %v484_v25 = vsel %vm483_vm4, %v476_v19, %v478_v17 }
  0x8d   : > { %959 = vmatmul.mubr.msk.bf16.vlgmr.msra.gmra.mrb[0].mxu1 %vm268_vm3, %v1027_v14  ;;  %919 = vmatmul.mubr.msk.bf16.vlgmr.msra.gmra.mrb[0].mxu0 %vm268_vm3, %v1027_v14  ;;  %v491_v29 = vsel %vm272_vm2, %v484_v25, 0 }
  0x8e   : > { %963 = vmatpush3.bf16.msra.mxu1 %v381_v16  ;;  %384 = vmatpush1.bf16.msra.mxu0 %v375_v18 }
  0x8f   : > { %415 = vmatprep.mubr.bf16.mxu0 %v1044_v1  ;;  %v480_v20 = vpop.permute.xlu0 %479  ;;  %964 = vmatprep.mubr.msk.bf16.mxu1 %vm1045_vm0, %v1043_v0  ;;  %v482_v22 = vpop.permute.xlu1 %481 }
  0x90   : > { %968 = vmatprep.subr.bf16.mxu1 %v1043_v0  ;;  %v485_v21 = vsel %vm483_vm4, %v478_v17, %v480_v20  ;;  %v486_v23 = vsel %vm483_vm4, %v480_v20, %v482_v22 }
  0x91   : > { %928 = vmatprep.subr.msk.bf16.mxu0 %vm272_vm2, %v485_v21  ;;  %v497_v28 = vsel %vm272_vm2, %v486_v23, 0 }
  0x93   : > { %v598_v24 = vpop.permute.xlu0 %597  ;;  %v600_v27 = vpop.permute.xlu1 %599 }
  0x94   : > { %v606_v34 = vsel %vm605_vm5, %v598_v24, %v600_v27 }
  0x95   : > { %v613_v37 = vsel %vm272_vm2, %v606_v34, 0 }
  0x97   : > { %v602_v30 = vpop.permute.xlu0 %601  ;;  %v604_v32 = vpop.permute.xlu1 %603 }
  0x98   : > { %v607_v31 = vsel %vm605_vm5, %v600_v27, %v602_v30  ;;  %v608_v33 = vsel %vm605_vm5, %v602_v30, %v604_v32 }
  0x99   : > { %965 = vmatmul.mubr.msk.bf16.vlgmr.msra.gmra.mrb[0].mxu1 %vm268_vm3, %v1028_v26  ;;  %923 = vmatmul.mubr.msk.bf16.vlgmr.msra.gmra.mrb[0].mxu0 %vm268_vm3, %v1028_v26  ;;  %v619_v36 = vsel %vm272_vm2, %v608_v33, 0 }
  0x9a   : > { %969 = vmatpush3.bf16.msra.mxu1 %v497_v28  ;;  %500 = vmatpush1.bf16.msra.mxu0 %v491_v29 }
  0x9b   : > { %531 = vmatprep.mubr.bf16.mxu0 %v1044_v1  ;;  %970 = vmatprep.mubr.msk.bf16.mxu1 %vm1045_vm0, %v1043_v0 }
  0x9c   : > { %934 = vmatprep.subr.msk.bf16.mxu0 %vm272_vm2, %v607_v31  ;;  %974 = vmatprep.subr.bf16.mxu1 %v1043_v0  ;;  %v783_v31 = vld [vmem:[%s1170_s2 + $0x8] sm:$0xff] }
  0xa5   : > { %971 = vmatmul.mubr.msk.bf16.vlgmr.msra.gmra.mrb[0].mxu1 %vm268_vm3, %v1029_v35  ;;  %929 = vmatmul.mubr.msk.bf16.vlgmr.msra.gmra.mrb[0].mxu0 %vm268_vm3, %v1029_v35 }
  0xa6   : > { %975 = vmatpush3.bf16.msra.mxu1 %v619_v36  ;;  %622 = vmatpush1.bf16.msra.mxu0 %v613_v37 }
  0xa7   : > { %653 = vmatprep.mubr.bf16.mxu0 %v1044_v1  ;;  %976 = vmatprep.mubr.msk.bf16.mxu1 %vm1045_vm0, %v1043_v0 }
  0xb1   : > { %977 = vmatmul.mubr.msk.bf16.vlgmr.msra.gmra.mrb[0].mxu1 %vm268_vm3, %v1030_v38  ;;  %935 = vmatmul.mubr.msk.bf16.vlgmr.msra.gmra.mrb[0].mxu0 %vm268_vm3, %v1030_v38 }
 0x184   : > { %v698_v47 = vpop.f32.mrb[0].mxu1  ;;  %v655_v48 = vpop.f32.mrb[0].mxu0 }
 0x185   : > { %v978_v50 = vpop.f32.mrb[1].mxu1  ;;  %v728_v51 = vmul.f32 %v716_v45, %v655_v48  ;;  %v657_v52 = vpop.f32.mrb[1].mxu0  ;;  %v730_v59 = vmul.f32 %v724_v49, %v698_v47 }
 0x186   : > { %v701_v53 = vpop.f32.mrb[2].mxu1  ;;  %v729_v54 = vmul.f32 %v720_v46, %v657_v52  ;;  %v659_v55 = vpop.f32.mrb[2].mxu0 }
 0x187   : > { %v979_v56 = vpop.f32.mrb[3].mxu1  ;;  %v731_v57 = vmul.f32 %v716_v45, %v659_v55  ;;  %v661_v58 = vpop.f32.mrb[3].mxu0  ;;  %v733_v62 = vmul.f32 %v724_v49, %v701_v53 }
 0x188   : > { %v732_v60 = vmul.f32 %v720_v46, %v661_v58  ;;  %v734_v61 = vadd.f32 %v729_v54, %v728_v51 }
 0x18a   : > { %v738_v63 = vadd.f32 %v732_v60, %v731_v57  ;;  %v735_v0 = vadd.f32 %v734_v61, %v730_v59 }
 0x18c   : > { %736 = vadd.xlane.f32.xlu0 %v735_v0  ;;  %v739_v1 = vadd.f32 %v738_v63, %v733_v62 }
 0x18e   : > { %740 = vadd.xlane.f32.xlu1 %v739_v1 }
 0x19f   : > { %786 = vperm.xlu1 %1019, %v782_v2  }
 0x1a3   : > { %804 = vperm.xlu1 %1019, %v800_v3  }
 0x1a7   : > { %809 = vperm.xlu1 %1019, %v801_v4  }
 0x219   : > { %v737_v5 = vpop.xlane.xlu0 %736 }
 0x21a   : > { %v742_v6 = vmul.f32 0.00390625, %v737_v5 }
 0x21b   : > { %v741_v7 = vpop.xlane.xlu1 %740 }
 0x21c   : > { %v744_v8 = vsub.f32 %v655_v48, %v742_v6  ;;  %v745_v9 = vsub.f32 %v657_v52, %v742_v6  ;;  %v746_v10 = vsub.f32 %v698_v47, %v742_v6  ;;  %v743_v11 = vmul.f32 0.00390625, %v741_v7 }
 0x21e   : > { %v750_v12 = vmul.f32 %v744_v8, %v744_v8  ;;  %v751_v13 = vmul.f32 %v745_v9, %v745_v9  ;;  %v747_v14 = vsub.f32 %v659_v55, %v743_v11  ;;  %v748_v15 = vsub.f32 %v661_v58, %v743_v11 }
 0x21f   : > { %v749_v16 = vsub.f32 %v701_v53, %v743_v11  ;;  %v752_v17 = vmul.f32 %v746_v10, %v746_v10  ;;  %v787_v38 = vpop.permute.xlu1 %786 }
 0x220   : > { %v753_v18 = vmul.f32 %v747_v14, %v747_v14  ;;  %v754_v19 = vmul.f32 %v748_v15, %v748_v15  ;;  %v756_v20 = vmul.f32 %v750_v12, %v716_v45  ;;  %v757_v21 = vmul.f32 %v751_v13, %v720_v46 }
 0x221   : > { %v758_v22 = vmul.f32 %v752_v17, %v724_v49  ;;  %v755_v24 = vmul.f32 %v749_v16, %v749_v16 }
 0x222   : > { %v762_v23 = vadd.f32 %v757_v21, %v756_v20  ;;  %v759_v25 = vmul.f32 %v753_v18, %v716_v45  ;;  %v760_v26 = vmul.f32 %v754_v19, %v720_v46 }
 0x223   : > { %v761_v29 = vmul.f32 %v755_v24, %v724_v49  ;;  %v805_v43 = vpop.permute.xlu1 %804 }
 0x224   : > { %v763_v27 = vadd.f32 %v762_v23, %v758_v22  ;;  %v766_v28 = vadd.f32 %v760_v26, %v759_v25 }
 0x226   : > { %764 = vadd.xlane.f32.xlu0 %v763_v27  ;;  %v767_v30 = vadd.f32 %v766_v28, %v761_v29 }
 0x227   : > { %v810_v59 = vpop.permute.xlu1 %809 }
 0x22a   : > { %768 = vadd.xlane.f32.xlu0 %v767_v30 }
 0x240   : > { %791 = vperm.xlu0 %1020, %v783_v31  }
 0x2b3   : > { %v765_v32 = vpop.xlane.xlu0 %764 }
 0x2b4   : > { %v770_v33 = vmul.f32 0.00390625, %v765_v32 }
 0x2b6   : > { %v772_v34 = vadd.f32 1e-05, %v770_v33 }
 0x2b7   : > { %v769_v35 = vpop.xlane.xlu0 %768 }
 0x2b8   : > { %1031 = vrsqrt.f32 %v772_v34  ;;  %v771_v36 = vmul.f32 0.00390625, %v769_v35 }
 0x2ba   : > { %v773_v37 = vadd.f32 1e-05, %v771_v36 }
 0x2bc   : > { %1033 = vrsqrt.f32 %v773_v37 }
 0x2bf   : > { %v792_v48 = vpop.permute.xlu0 %791 }
 0x2c2   : > { %v1032_v39 = vpop.eup %1031 }
 0x2c3   : > { %v776_v40 = vmul.f32 %v1032_v39, %v744_v8  ;;  %v777_v41 = vmul.f32 %v1032_v39, %v745_v9  ;;  %v778_v42 = vmul.f32 %v1032_v39, %v746_v10 }
 0x2c5   : > { %v794_v44 = vmul.f32 %v787_v38, %v776_v40  ;;  %v795_v45 = vmul.f32 %v787_v38, %v777_v41  ;;  %v796_v46 = vmul.f32 %v787_v38, %v778_v42 }
 0x2c6   : > { %v1034_v47 = vpop.eup %1033 }
 0x2c7   : > { %v812_v49 = vadd.f32 %v805_v43, %v794_v44  ;;  %v813_v50 = vadd.f32 %v805_v43, %v795_v45  ;;  %v814_v51 = vadd.f32 %v805_v43, %v796_v46  ;;  %v779_v52 = vmul.f32 %v1034_v47, %v747_v14 }
 0x2c8   : > { %v780_v53 = vmul.f32 %v1034_v47, %v748_v15  ;;  %v781_v54 = vmul.f32 %v1034_v47, %v749_v16 }
 0x2c9   : > { %v818_v55 = vmax.f32 %v812_v49, 0.0  ;;  %v819_v56 = vmax.f32 %v813_v50, 0.0  ;;  %v820_v57 = vmax.f32 %v814_v51, 0.0  ;;  %v797_v58 = vmul.f32 %v792_v48, %v779_v52 }
 0x2ca   : > { %v798_v60 = vmul.f32 %v792_v48, %v780_v53  ;;  %v799_v61 = vmul.f32 %v792_v48, %v781_v54 }
 0x2cb   : > { %v944_v62 = vpack.c.bf16 %v819_v56, %v818_v55  ;;  %v945_v63 = vpack.c.bf16 %v820_v57, %v820_v57  ;;  %v815_v0 = vadd.f32 %v810_v59, %v797_v58 }
 0x2cc   : > { %v816_v1 = vadd.f32 %v810_v59, %v798_v60  ;;  %v817_v2 = vadd.f32 %v810_v59, %v799_v61 }
 0x2cd   : > { %844 = vst [vmem:[%s224_s25] sm:$0xff] %v944_v62  ;;  %845 = vst [vmem:[%s224_s25 + $0x8] sm:$0xf] %v945_v63  ;;  %v821_v3 = vmax.f32 %v815_v0, 0.0 }
 0x2ce   : > { %v822_v4 = vmax.f32 %v816_v1, 0.0  ;;  %v823_v5 = vmax.f32 %v817_v2, 0.0 }
 0x2d0   : > { %v946_v6 = vpack.c.bf16 %v822_v4, %v821_v3  ;;  %v947_v7 = vpack.c.bf16 %v823_v5, %v823_v5 }
 0x2d2   : > { %846 = vst [vmem:[%s224_s25 + $0xc] sm:$0xff] %v946_v6  ;;  %847 = vst [vmem:[%s224_s25 + $0x14] sm:$0xf] %v947_v7 }
 0x2d3 PF: > { %s15_s18 = sadd.s32 1, %s1041_s18  }
 0x2d4   : > { %p12_p4 = scmp.ge.s32.totalorder %s15_s18, 4  }
 0x2d6   :  { %14 = sbr.rel (!%p12_p4) target bundleno = 1 (0x1), region = 73 }

// kernel: view_transformer_forward.17
= control target key start
LH: loop header
LB: loop body
LE: loop exit
PB: predicated region body
PF: predicated region fallthrough
CT: control target
= control target key end

     0   :  { %s796_s18 = smov 0   ;;  %s866_s0 = inlined_call_operand.vmem [shape: bf16[2,32,256], index: 0, kind: input, shape index: {}]   ;;  %s867_s1 = inlined_call_operand.vmem [shape: bf16[4,16,32], index: 1, kind: input, shape index: {}]   ;;  %s868_s2 = inlined_call_operand.vmem [shape: f32[16,1], index: 2, kind: input, shape index: {}]   ;;  %s869_s3 = inlined_call_operand.vmem [shape: f32[16,1], index: 3, kind: input, shape index: {}]   ;;  %s870_s4 = inlined_call_operand.vmem [shape: f32[1,128], index: 4, kind: input, shape index: {}]   ;;  %s871_s5 = inlined_call_operand.vmem [shape: bf16[2,16,128], index: 5, kind: output, shape index: {}]  }
   0x1 LB: > { %s627_s19 = sadd.s32 4294967295, %s758_s18   ;;  %p631_p0 = scmp.ge.s32.totalorder %s758_s18, 1  ;;  %s758_s18 = sphi %s796_s18, %s15_s18  }
   0x2   : > { %p187_p1 = scmp.lt.s32.totalorder %s758_s18, 3 }
   0x4   : > { %p188_p2 = pnand %p631_p0, %p187_p1 }
   0x5   : > { %p215_p3 = scmp.lt.s32.totalorder (!%p188_p2), %s627_s19, 1  ;;  %v760_v0 = vmov (!%p188_p2), 0.0   ;;  %vm761_vm0 = vmmov (!%p188_p2), 0   ;;  %s762_s24 = smov (!%p188_p2), 119   ;;  %vm264_vm1 = vcmask (!%p188_p2), 1039360   ;;  %vm381_vm2 = vcmask (!%p188_p2), 973824  }
   0x6   : > { %191 = sbr.rel (%p188_p2) target bundleno = 698 (0x2ba), region = 40  ;;  %680 = vmatprep.subr.bf16.mxu1 (!%p188_p2), %v760_v0  ;;  %696 = vmatprep.subr.bf16.mxu0 (!%p188_p2), %v760_v0  ;;  %s763_s25 = smov (!%p188_p2), 127   ;;  %v744_v14 = vld [vmem:[%s867_s1 + $0x8] sm:$0xff] (!%p188_p2)   ;;  %vm269_vm3 = vcmask (!%p188_p2), 261120   ;;  %v745_v18 = vld [vmem:[%s867_s1 + $0x10] sm:$0xff] (!%p188_p2)   ;;  %vm448_vm4 = vcmask (!%p188_p2), 965632  }
   0x7   : > { %684 = vmatprep.mubr.msk.bf16.mxu1 (!%p188_p2), %vm761_vm0, %v760_v0  ;;  %700 = vmatprep.mubr.msk.bf16.mxu0 (!%p188_p2), %vm761_vm0, %v760_v0  ;;  %s764_s26 = smov (!%p188_p2), 118   ;;  %v746_v25 = vld [vmem:[%s867_s1] sm:$0xff] (!%p188_p2)   ;;  %v747_v26 = vld [vmem:[%s867_s1 + $0x18] sm:$0xff] (!%p188_p2)   ;;  %v765_v41 = vmov (!%p188_p2), 0   ;;  %v547_v43 = vld [vmem:[%s869_s3 + $0x8] sm:$0xff] (!%p188_p2) }
   0x8   : > { %v654_v32 = vld [vmem:[%s870_s4] ss:$0 sm:$0xff] (!%p188_p2)  ;;  %736 = vset.pattern.permute.xlu1 (!%p188_p2), %v765_v41  ;;  %737 = vset.pattern.permute.xlu0 (!%p188_p2), %v765_v41  ;;  %v533_v54 = vld [vmem:[%s868_s2 + $0x8] sm:$0xff] (!%p188_p2) }
   0x9   : > { %v532_v40 = vld [vmem:[%s868_s2] sm:$0xff] (!%p188_p2) }
   0xa   : > { %v546_v42 = vld [vmem:[%s869_s3] sm:$0xff] (!%p188_p2) }
   0xd   : > { %s873_s19 = smov (!%p215_p3, %s627_s19), 1 }
   0xe   : > { %s659_s20 = sshll.u32 %s873_s19, 5  ;;  %s660_s22 = sshll.u32 %s873_s19, 3 }
   0xf   : > { %s219_s23 = scalar_lea.vmem %s866_s0, %s659_s20 }
  0x10   : > { %v738_v1 = vld [vmem:[%s219_s23] ss:$8 sps:$4 sm:$0xff]   ;;  %v740_v2 = vld [vmem:[%s219_s23 + $0x4] ss:$8 sps:$4 sm:$0xff]   ;;  %v741_v3 = vld [vmem:[%s219_s23 + $0x10] ss:$8 sps:$4 sm:$0xff]  }
  0x11   : > { %373 = vrot.lane.b32.xlu1 %v738_v1, %s762_s24  ;;  %256 = vrot.lane.b32.xlu0 %v738_v1, %s763_s25  ;;  %v743_v4 = vld [vmem:[%s219_s23 + $0x14] ss:$8 sps:$4 sm:$0xff]  }
  0x15   : > { %375 = vrot.lane.b32.xlu1 %v740_v2, %s762_s24  ;;  %258 = vrot.lane.b32.xlu0 %v740_v2, %s763_s25 }
  0x19   : > { %262 = vrot.lane.b32.xlu1 %v743_v4, %s763_s25  ;;  %260 = vrot.lane.b32.xlu0 %v741_v3, %s763_s25  ;;  %s224_s25 = scalar_lea.vmem %s871_s5, %s660_s22 }
  0x1d   : > { %379 = vrot.lane.b32.xlu1 %v743_v4, %s762_s24  ;;  %377 = vrot.lane.b32.xlu0 %v741_v3, %s762_s24 }
  0x21   : > { %442 = vrot.lane.b32.xlu1 %v740_v2, %s764_s26  ;;  %440 = vrot.lane.b32.xlu0 %v738_v1, %s764_s26 }
  0x25   : > { %446 = vrot.lane.b32.xlu1 %v743_v4, %s764_s26  ;;  %444 = vrot.lane.b32.xlu0 %v741_v3, %s764_s26 }
  0x83   : > { %v374_v5 = vpop.permute.xlu1 %373  ;;  %v257_v6 = vpop.permute.xlu0 %256 }
  0x87   : > { %v376_v7 = vpop.permute.xlu1 %375  ;;  %v259_v8 = vpop.permute.xlu0 %258 }
  0x88   : > { %v265_v9 = vsel %vm264_vm1, %v257_v6, %v259_v8  ;;  %v382_v10 = vsel %vm381_vm2, %v374_v5, %v376_v7 }
  0x89   : > { %681 = vmatpush3.bf16.msra.mxu1 %v265_v9  ;;  %697 = vmatpush3.bf16.msra.mxu0 %v382_v10 }
  0x8a   : > { %682 = vmatprep.subr.bf16.mxu1 %v760_v0  ;;  %698 = vmatprep.subr.bf16.mxu0 %v760_v0 }
  0x8b   : > { %v263_v11 = vpop.permute.xlu1 %262  ;;  %v261_v12 = vpop.permute.xlu0 %260 }
  0x8c   : > { %v266_v13 = vsel %vm264_vm1, %v261_v12, %v263_v11 }
  0x8d   : > { %683 = vmatpush3.bf16.msra.mxu1 %v266_v13 }
  0x8e   : > { %688 = vmatprep.subr.bf16.mxu1 %v760_v0 }
  0x8f   : > { %v380_v15 = vpop.permute.xlu1 %379  ;;  %v378_v16 = vpop.permute.xlu0 %377 }
  0x90   : > { %685 = vmatmul.mubr.msk.bf16.vlgmr.msra.gmra.mrb[0].mxu1 %vm269_vm3, %v744_v14  ;;  %v383_v17 = vsel %vm381_vm2, %v378_v16, %v380_v15 }
  0x91   : > { %699 = vmatpush3.bf16.msra.mxu0 %v383_v17  ;;  %689 = vmatpush3.bf16.msra.mxu1 %v738_v1 }
  0x92   : > { %704 = vmatprep.subr.bf16.mxu0 %v760_v0  ;;  %690 = vmatprep.subr.bf16.mxu1 %v760_v0 }
  0x93   : > { %v443_v19 = vpop.permute.xlu1 %442  ;;  %v441_v20 = vpop.permute.xlu0 %440  ;;  %692 = vmatprep.mubr.msk.bf16.mxu1 %vm761_vm0, %v760_v0 }
  0x94   : > { %v449_v21 = vsel %vm448_vm4, %v441_v20, %v443_v19  ;;  %701 = vmatmul.mubr.msk.bf16.vlgmr.msra.gmra.mrb[0].mxu0 %vm269_vm3, %v745_v18 }
  0x95   : > { %705 = vmatpush3.bf16.msra.mxu0 %v449_v21  ;;  %691 = vmatpush3.bf16.msra.mxu1 %v741_v3 }
  0x96   : > { %706 = vmatprep.subr.bf16.mxu0 %v760_v0  ;;  %708 = vmatprep.mubr.msk.bf16.mxu0 %vm761_vm0, %v760_v0 }
  0x97   : > { %v447_v22 = vpop.permute.xlu1 %446  ;;  %v445_v23 = vpop.permute.xlu0 %444 }
  0x98   : > { %v450_v24 = vsel %vm448_vm4, %v445_v23, %v447_v22 }
  0x99   : > { %707 = vmatpush3.bf16.msra.mxu0 %v450_v24 }
  0x9c   : > { %693 = vmatmul.mubr.msk.bf16.vlgmr.msra.gmra.mrb[0].mxu1 %vm269_vm3, %v746_v25 }
  0xa0   : > { %709 = vmatmul.mubr.msk.bf16.vlgmr.msra.gmra.mrb[0].mxu0 %vm269_vm3, %v747_v26 }
 0x16f   : > { %v358_v27 = vpop.f32.mrb[0].mxu1 }
 0x170   : > { %v694_v28 = vpop.f32.mrb[1].mxu1 }
 0x171   : > { %v361_v29 = vpop.f32.mrb[2].mxu1 }
 0x172   : > { %v695_v30 = vpop.f32.mrb[3].mxu1 }
 0x173   : > { %v490_v31 = vpop.f32.mrb[0].mxu0 }
 0x174   : > { %v712_v33 = vadd.f32 %v490_v31, %v358_v27  ;;  %v710_v34 = vpop.f32.mrb[1].mxu0 }
 0x175   : > { %v493_v35 = vpop.f32.mrb[2].mxu0 }
 0x176   : > { %v713_v36 = vadd.f32 %v493_v35, %v361_v29  ;;  %v711_v37 = vpop.f32.mrb[3].mxu0  ;;  %v506_v38 = vmul.f32 %v712_v33, %v654_v32 }
 0x178   : > { %508 = vadd.xlane.f32.xlu0 %v506_v38  ;;  %v507_v39 = vmul.f32 %v713_v36, %v654_v32 }
 0x17a   : > { %510 = vadd.xlane.f32.xlu1 %v507_v39 }
 0x18b   : > { %536 = vperm.xlu1 %736, %v532_v40  }
 0x18f   : > { %550 = vperm.xlu1 %736, %v546_v42  }
 0x193   : > { %555 = vperm.xlu1 %736, %v547_v43  }
 0x205   : > { %v509_v44 = vpop.xlane.xlu0 %508 }
 0x206   : > { %v512_v45 = vmul.f32 0.015625, %v509_v44 }
 0x207   : > { %v511_v46 = vpop.xlane.xlu1 %510 }
 0x208   : > { %v514_v47 = vsub.f32 %v712_v33, %v512_v45  ;;  %v513_v48 = vmul.f32 0.015625, %v511_v46 }
 0x20a   : > { %v515_v49 = vsub.f32 %v713_v36, %v513_v48  ;;  %v516_v50 = vmul.f32 %v514_v47, %v514_v47 }
 0x20b   : > { %v537_v61 = vpop.permute.xlu1 %536 }
 0x20c   : > { %v518_v51 = vmul.f32 %v654_v32, %v516_v50  ;;  %v517_v52 = vmul.f32 %v515_v49, %v515_v49 }
 0x20e   : > { %520 = vadd.xlane.f32.xlu0 %v518_v51  ;;  %v519_v53 = vmul.f32 %v654_v32, %v517_v52 }
 0x20f   : > { %v551_v0 = vpop.permute.xlu1 %550 }
 0x212   : > { %522 = vadd.xlane.f32.xlu0 %v519_v53 }
 0x213   : > { %v556_v7 = vpop.permute.xlu1 %555 }
 0x228   : > { %541 = vperm.xlu0 %737, %v533_v54  }
 0x29b   : > { %v521_v55 = vpop.xlane.xlu0 %520 }
 0x29c   : > { %v524_v56 = vmul.f32 0.015625, %v521_v55 }
 0x29e   : > { %v526_v57 = vadd.f32 1e-05, %v524_v56 }
 0x29f   : > { %v523_v58 = vpop.xlane.xlu0 %522 }
 0x2a0   : > { %748 = vrsqrt.f32 %v526_v57  ;;  %v525_v59 = vmul.f32 0.015625, %v523_v58 }
 0x2a2   : > { %v527_v60 = vadd.f32 1e-05, %v525_v59 }
 0x2a4   : > { %750 = vrsqrt.f32 %v527_v60 }
 0x2a7   : > { %v542_v3 = vpop.permute.xlu0 %541 }
 0x2aa   : > { %v749_v62 = vpop.eup %748 }
 0x2ab   : > { %v530_v63 = vmul.f32 %v749_v62, %v514_v47 }
 0x2ad   : > { %v544_v1 = vmul.f32 %v537_v61, %v530_v63 }
 0x2ae   : > { %v751_v2 = vpop.eup %750 }
 0x2af   : > { %v531_v4 = vmul.f32 %v751_v2, %v515_v49  ;;  %v558_v5 = vadd.f32 %v551_v0, %v544_v1 }
 0x2b1   : > { %v545_v6 = vmul.f32 %v542_v3, %v531_v4  ;;  %v560_v9 = vmax.f32 %v558_v5, 0.0 }
 0x2b3   : > { %v559_v8 = vadd.f32 %v556_v7, %v545_v6 }
 0x2b5   : > { %v561_v10 = vmax.f32 %v559_v8, 0.0 }
 0x2b7   : > { %v666_v11 = vpack.c.bf16 %v561_v10, %v560_v9 }
 0x2b9   : > { %667 = vst [vmem:[%s224_s25] sm:$0xff] %v666_v11  }
 0x2ba PF: > { %s15_s18 = sadd.s32 1, %s758_s18  }
 0x2bb   : > { %p12_p4 = scmp.ge.s32.totalorder %s15_s18, 4  }
 0x2bd   :  { %14 = sbr.rel (!%p12_p4) target bundleno = 1 (0x1), region = 73 }

// kernel: view_transformer_forward.18
= control target key start
LH: loop header
LB: loop body
LE: loop exit
PB: predicated region body
PF: predicated region fallthrough
CT: control target
= control target key end

     0   :  { %s796_s18 = smov 0   ;;  %s866_s0 = inlined_call_operand.vmem [shape: bf16[2,32,256], index: 0, kind: input, shape index: {}]   ;;  %s867_s1 = inlined_call_operand.vmem [shape: bf16[4,16,32], index: 1, kind: input, shape index: {}]   ;;  %s868_s2 = inlined_call_operand.vmem [shape: f32[16,1], index: 2, kind: input, shape index: {}]   ;;  %s869_s3 = inlined_call_operand.vmem [shape: f32[16,1], index: 3, kind: input, shape index: {}]   ;;  %s870_s4 = inlined_call_operand.vmem [shape: f32[1,128], index: 4, kind: input, shape index: {}]   ;;  %s871_s5 = inlined_call_operand.vmem [shape: bf16[2,16,128], index: 5, kind: output, shape index: {}]  }
   0x1 LB: > { %s627_s19 = sadd.s32 4294967295, %s758_s18   ;;  %p631_p0 = scmp.ge.s32.totalorder %s758_s18, 1  ;;  %s758_s18 = sphi %s796_s18, %s15_s18  }
   0x2   : > { %p187_p1 = scmp.lt.s32.totalorder %s758_s18, 3 }
   0x4   : > { %p188_p2 = pnand %p631_p0, %p187_p1 }
   0x5   : > { %p215_p3 = scmp.lt.s32.totalorder (!%p188_p2), %s627_s19, 1  ;;  %v760_v0 = vmov (!%p188_p2), 0.0   ;;  %vm761_vm0 = vmmov (!%p188_p2), 0   ;;  %s762_s24 = smov (!%p188_p2), 123   ;;  %vm264_vm1 = vcmask (!%p188_p2), 1039360   ;;  %vm381_vm2 = vcmask (!%p188_p2), 1006592  }
   0x6   : > { %191 = sbr.rel (%p188_p2) target bundleno = 698 (0x2ba), region = 40  ;;  %680 = vmatprep.subr.bf16.mxu1 (!%p188_p2), %v760_v0  ;;  %696 = vmatprep.subr.bf16.mxu0 (!%p188_p2), %v760_v0  ;;  %s763_s25 = smov (!%p188_p2), 127   ;;  %v744_v14 = vld [vmem:[%s867_s1 + $0x8] sm:$0xff] (!%p188_p2)   ;;  %vm269_vm3 = vcmask (!%p188_p2), 261120   ;;  %v745_v18 = vld [vmem:[%s867_s1 + $0x10] sm:$0xff] (!%p188_p2)   ;;  %vm448_vm4 = vcmask (!%p188_p2), 998400  }
   0x7   : > { %684 = vmatprep.mubr.msk.bf16.mxu1 (!%p188_p2), %vm761_vm0, %v760_v0  ;;  %700 = vmatprep.mubr.msk.bf16.mxu0 (!%p188_p2), %vm761_vm0, %v760_v0  ;;  %s764_s26 = smov (!%p188_p2), 122   ;;  %v746_v25 = vld [vmem:[%s867_s1] sm:$0xff] (!%p188_p2)   ;;  %v747_v26 = vld [vmem:[%s867_s1 + $0x18] sm:$0xff] (!%p188_p2)   ;;  %v765_v41 = vmov (!%p188_p2), 0   ;;  %v547_v43 = vld [vmem:[%s869_s3 + $0x8] sm:$0xff] (!%p188_p2) }
   0x8   : > { %v654_v32 = vld [vmem:[%s870_s4] ss:$0 sm:$0xff] (!%p188_p2)  ;;  %736 = vset.pattern.permute.xlu1 (!%p188_p2), %v765_v41  ;;  %737 = vset.pattern.permute.xlu0 (!%p188_p2), %v765_v41  ;;  %v533_v54 = vld [vmem:[%s868_s2 + $0x8] sm:$0xff] (!%p188_p2) }
   0x9   : > { %v532_v40 = vld [vmem:[%s868_s2] sm:$0xff] (!%p188_p2) }
   0xa   : > { %v546_v42 = vld [vmem:[%s869_s3] sm:$0xff] (!%p188_p2) }
   0xd   : > { %s873_s19 = smov (!%p215_p3, %s627_s19), 1 }
   0xe   : > { %s659_s20 = sshll.u32 %s873_s19, 5  ;;  %s660_s22 = sshll.u32 %s873_s19, 3 }
   0xf   : > { %s219_s23 = scalar_lea.vmem %s866_s0, %s659_s20 }
  0x10   : > { %v738_v1 = vld [vmem:[%s219_s23] ss:$8 sps:$4 sm:$0xff]   ;;  %v740_v2 = vld [vmem:[%s219_s23 + $0x4] ss:$8 sps:$4 sm:$0xff]   ;;  %v741_v3 = vld [vmem:[%s219_s23 + $0x10] ss:$8 sps:$4 sm:$0xff]  }
  0x11   : > { %373 = vrot.lane.b32.xlu1 %v738_v1, %s762_s24  ;;  %256 = vrot.lane.b32.xlu0 %v738_v1, %s763_s25  ;;  %v743_v4 = vld [vmem:[%s219_s23 + $0x14] ss:$8 sps:$4 sm:$0xff]  }
  0x15   : > { %375 = vrot.lane.b32.xlu1 %v740_v2, %s762_s24  ;;  %258 = vrot.lane.b32.xlu0 %v740_v2, %s763_s25 }
  0x19   : > { %262 = vrot.lane.b32.xlu1 %v743_v4, %s763_s25  ;;  %260 = vrot.lane.b32.xlu0 %v741_v3, %s763_s25  ;;  %s224_s25 = scalar_lea.vmem %s871_s5, %s660_s22 }
  0x1d   : > { %379 = vrot.lane.b32.xlu1 %v743_v4, %s762_s24  ;;  %377 = vrot.lane.b32.xlu0 %v741_v3, %s762_s24 }
  0x21   : > { %442 = vrot.lane.b32.xlu1 %v740_v2, %s764_s26  ;;  %440 = vrot.lane.b32.xlu0 %v738_v1, %s764_s26 }
  0x25   : > { %446 = vrot.lane.b32.xlu1 %v743_v4, %s764_s26  ;;  %444 = vrot.lane.b32.xlu0 %v741_v3, %s764_s26 }
  0x83   : > { %v374_v5 = vpop.permute.xlu1 %373  ;;  %v257_v6 = vpop.permute.xlu0 %256 }
  0x87   : > { %v376_v7 = vpop.permute.xlu1 %375  ;;  %v259_v8 = vpop.permute.xlu0 %258 }
  0x88   : > { %v265_v9 = vsel %vm264_vm1, %v257_v6, %v259_v8  ;;  %v382_v10 = vsel %vm381_vm2, %v374_v5, %v376_v7 }
  0x89   : > { %681 = vmatpush3.bf16.msra.mxu1 %v265_v9  ;;  %697 = vmatpush3.bf16.msra.mxu0 %v382_v10 }
  0x8a   : > { %682 = vmatprep.subr.bf16.mxu1 %v760_v0  ;;  %698 = vmatprep.subr.bf16.mxu0 %v760_v0 }
  0x8b   : > { %v263_v11 = vpop.permute.xlu1 %262  ;;  %v261_v12 = vpop.permute.xlu0 %260 }
  0x8c   : > { %v266_v13 = vsel %vm264_vm1, %v261_v12, %v263_v11 }
  0x8d   : > { %683 = vmatpush3.bf16.msra.mxu1 %v266_v13 }
  0x8e   : > { %688 = vmatprep.subr.bf16.mxu1 %v760_v0 }
  0x8f   : > { %v380_v15 = vpop.permute.xlu1 %379  ;;  %v378_v16 = vpop.permute.xlu0 %377 }
  0x90   : > { %685 = vmatmul.mubr.msk.bf16.vlgmr.msra.gmra.mrb[0].mxu1 %vm269_vm3, %v744_v14  ;;  %v383_v17 = vsel %vm381_vm2, %v378_v16, %v380_v15 }
  0x91   : > { %699 = vmatpush3.bf16.msra.mxu0 %v383_v17  ;;  %689 = vmatpush3.bf16.msra.mxu1 %v738_v1 }
  0x92   : > { %704 = vmatprep.subr.bf16.mxu0 %v760_v0  ;;  %690 = vmatprep.subr.bf16.mxu1 %v760_v0 }
  0x93   : > { %v443_v19 = vpop.permute.xlu1 %442  ;;  %v441_v20 = vpop.permute.xlu0 %440  ;;  %692 = vmatprep.mubr.msk.bf16.mxu1 %vm761_vm0, %v760_v0 }
  0x94   : > { %v449_v21 = vsel %vm448_vm4, %v441_v20, %v443_v19  ;;  %701 = vmatmul.mubr.msk.bf16.vlgmr.msra.gmra.mrb[0].mxu0 %vm269_vm3, %v745_v18 }
  0x95   : > { %705 = vmatpush3.bf16.msra.mxu0 %v449_v21  ;;  %691 = vmatpush3.bf16.msra.mxu1 %v741_v3 }
  0x96   : > { %706 = vmatprep.subr.bf16.mxu0 %v760_v0  ;;  %708 = vmatprep.mubr.msk.bf16.mxu0 %vm761_vm0, %v760_v0 }
  0x97   : > { %v447_v22 = vpop.permute.xlu1 %446  ;;  %v445_v23 = vpop.permute.xlu0 %444 }
  0x98   : > { %v450_v24 = vsel %vm448_vm4, %v445_v23, %v447_v22 }
  0x99   : > { %707 = vmatpush3.bf16.msra.mxu0 %v450_v24 }
  0x9c   : > { %693 = vmatmul.mubr.msk.bf16.vlgmr.msra.gmra.mrb[0].mxu1 %vm269_vm3, %v746_v25 }
  0xa0   : > { %709 = vmatmul.mubr.msk.bf16.vlgmr.msra.gmra.mrb[0].mxu0 %vm269_vm3, %v747_v26 }
 0x16f   : > { %v358_v27 = vpop.f32.mrb[0].mxu1 }
 0x170   : > { %v694_v28 = vpop.f32.mrb[1].mxu1 }
 0x171   : > { %v361_v29 = vpop.f32.mrb[2].mxu1 }
 0x172   : > { %v695_v30 = vpop.f32.mrb[3].mxu1 }
 0x173   : > { %v490_v31 = vpop.f32.mrb[0].mxu0 }
 0x174   : > { %v712_v33 = vadd.f32 %v490_v31, %v358_v27  ;;  %v710_v34 = vpop.f32.mrb[1].mxu0 }
 0x175   : > { %v493_v35 = vpop.f32.mrb[2].mxu0 }
 0x176   : > { %v713_v36 = vadd.f32 %v493_v35, %v361_v29  ;;  %v711_v37 = vpop.f32.mrb[3].mxu0  ;;  %v506_v38 = vmul.f32 %v712_v33, %v654_v32 }
 0x178   : > { %508 = vadd.xlane.f32.xlu0 %v506_v38  ;;  %v507_v39 = vmul.f32 %v713_v36, %v654_v32 }
 0x17a   : > { %510 = vadd.xlane.f32.xlu1 %v507_v39 }
 0x18b   : > { %536 = vperm.xlu1 %736, %v532_v40  }
 0x18f   : > { %550 = vperm.xlu1 %736, %v546_v42  }
 0x193   : > { %555 = vperm.xlu1 %736, %v547_v43  }
 0x205   : > { %v509_v44 = vpop.xlane.xlu0 %508 }
 0x206   : > { %v512_v45 = vmul.f32 0.0625, %v509_v44 }
 0x207   : > { %v511_v46 = vpop.xlane.xlu1 %510 }
 0x208   : > { %v514_v47 = vsub.f32 %v712_v33, %v512_v45  ;;  %v513_v48 = vmul.f32 0.0625, %v511_v46 }
 0x20a   : > { %v515_v49 = vsub.f32 %v713_v36, %v513_v48  ;;  %v516_v50 = vmul.f32 %v514_v47, %v514_v47 }
 0x20b   : > { %v537_v61 = vpop.permute.xlu1 %536 }
 0x20c   : > { %v518_v51 = vmul.f32 %v654_v32, %v516_v50  ;;  %v517_v52 = vmul.f32 %v515_v49, %v515_v49 }
 0x20e   : > { %520 = vadd.xlane.f32.xlu0 %v518_v51  ;;  %v519_v53 = vmul.f32 %v654_v32, %v517_v52 }
 0x20f   : > { %v551_v0 = vpop.permute.xlu1 %550 }
 0x212   : > { %522 = vadd.xlane.f32.xlu0 %v519_v53 }
 0x213   : > { %v556_v7 = vpop.permute.xlu1 %555 }
 0x228   : > { %541 = vperm.xlu0 %737, %v533_v54  }
 0x29b   : > { %v521_v55 = vpop.xlane.xlu0 %520 }
 0x29c   : > { %v524_v56 = vmul.f32 0.0625, %v521_v55 }
 0x29e   : > { %v526_v57 = vadd.f32 1e-05, %v524_v56 }
 0x29f   : > { %v523_v58 = vpop.xlane.xlu0 %522 }
 0x2a0   : > { %748 = vrsqrt.f32 %v526_v57  ;;  %v525_v59 = vmul.f32 0.0625, %v523_v58 }
 0x2a2   : > { %v527_v60 = vadd.f32 1e-05, %v525_v59 }
 0x2a4   : > { %750 = vrsqrt.f32 %v527_v60 }
 0x2a7   : > { %v542_v3 = vpop.permute.xlu0 %541 }
 0x2aa   : > { %v749_v62 = vpop.eup %748 }
 0x2ab   : > { %v530_v63 = vmul.f32 %v749_v62, %v514_v47 }
 0x2ad   : > { %v544_v1 = vmul.f32 %v537_v61, %v530_v63 }
 0x2ae   : > { %v751_v2 = vpop.eup %750 }
 0x2af   : > { %v531_v4 = vmul.f32 %v751_v2, %v515_v49  ;;  %v558_v5 = vadd.f32 %v551_v0, %v544_v1 }
 0x2b1   : > { %v545_v6 = vmul.f32 %v542_v3, %v531_v4  ;;  %v560_v9 = vmax.f32 %v558_v5, 0.0 }
 0x2b3   : > { %v559_v8 = vadd.f32 %v556_v7, %v545_v6 }
 0x2b5   : > { %v561_v10 = vmax.f32 %v559_v8, 0.0 }
 0x2b7   : > { %v666_v11 = vpack.c.bf16 %v561_v10, %v560_v9 }
 0x2b9   : > { %667 = vst [vmem:[%s224_s25] sm:$0xff] %v666_v11  }
 0x2ba PF: > { %s15_s18 = sadd.s32 1, %s758_s18  }
 0x2bb   : > { %p12_p4 = scmp.ge.s32.totalorder %s15_s18, 4  }
 0x2bd   :  { %14 = sbr.rel (!%p12_p4) target bundleno = 1 (0x1), region = 73 }

// kernel: view_transformer_forward.23
= control target key start
LH: loop header
LB: loop body
LE: loop exit
PB: predicated region body
PF: predicated region fallthrough
CT: control target
= control target key end

     0   :  { %s630_s9 = smov 0   ;;  %s685_s0 = inlined_call_operand.vmem [shape: bf16[2,32,256], index: 0, kind: input, shape index: {}]   ;;  %s686_s1 = inlined_call_operand.vmem [shape: bf16[4,16,32], index: 1, kind: input, shape index: {}]   ;;  %s687_s2 = inlined_call_operand.vmem [shape: bf16[2,16,128], index: 2, kind: output, shape index: {}]  }
   0x1 LB: > { %s485_s10 = sadd.s32 4294967295, %s608_s9   ;;  %p489_p0 = scmp.ge.s32.totalorder %s608_s9, 1  ;;  %s608_s9 = sphi %s630_s9, %s12_s9  }
   0x2   : > { %p112_p1 = scmp.lt.s32.totalorder %s608_s9, 3 }
   0x4   : > { %p113_p2 = pnand %p489_p0, %p112_p1 }
   0x5   : > { %p134_p3 = scmp.lt.s32.totalorder (!%p113_p2), %s485_s10, 1  ;;  %v610_v0 = vmov (!%p113_p2), 0.0   ;;  %vm611_vm0 = vmmov (!%p113_p2), 0   ;;  %s612_s15 = smov (!%p113_p2), 119   ;;  %vm183_vm1 = vcmask (!%p113_p2), 1039360   ;;  %vm300_vm2 = vcmask (!%p113_p2), 973824  }
   0x6   : > { %116 = sbr.rel (%p113_p2) target bundleno = 381 (0x17d), region = 28  ;;  %537 = vmatprep.subr.bf16.mxu1 (!%p113_p2), %v610_v0  ;;  %553 = vmatprep.subr.bf16.mxu0 (!%p113_p2), %v610_v0  ;;  %s613_s16 = smov (!%p113_p2), 127   ;;  %v598_v14 = vld [vmem:[%s686_s1 + $0x8] sm:$0xff] (!%p113_p2)   ;;  %vm188_vm3 = vcmask (!%p113_p2), 261120   ;;  %v599_v18 = vld [vmem:[%s686_s1 + $0x10] sm:$0xff] (!%p113_p2)   ;;  %vm367_vm4 = vcmask (!%p113_p2), 965632  }
   0x7   : > { %541 = vmatprep.mubr.msk.bf16.mxu1 (!%p113_p2), %vm611_vm0, %v610_v0  ;;  %557 = vmatprep.mubr.msk.bf16.mxu0 (!%p113_p2), %vm611_vm0, %v610_v0  ;;  %s614_s17 = smov (!%p113_p2), 118   ;;  %v600_v25 = vld [vmem:[%s686_s1] sm:$0xff] (!%p113_p2)   ;;  %v601_v26 = vld [vmem:[%s686_s1 + $0x18] sm:$0xff] (!%p113_p2)  }
   0xd   : > { %s689_s10 = smov (!%p134_p3, %s485_s10), 1 }
   0xe   : > { %s516_s11 = sshll.u32 %s689_s10, 5  ;;  %s517_s26 = sshll.u32 %s689_s10, 3 }
   0xf   : > { %s138_s14 = scalar_lea.vmem %s685_s0, %s516_s11  ;;  %s143_s29 = scalar_lea.vmem %s687_s2, %s517_s26 }
  0x10   : > { %v592_v1 = vld [vmem:[%s138_s14] ss:$8 sps:$4 sm:$0xff]   ;;  %v594_v2 = vld [vmem:[%s138_s14 + $0x4] ss:$8 sps:$4 sm:$0xff]   ;;  %v595_v3 = vld [vmem:[%s138_s14 + $0x10] ss:$8 sps:$4 sm:$0xff]  }
  0x11   : > { %292 = vrot.lane.b32.xlu1 %v592_v1, %s612_s15  ;;  %175 = vrot.lane.b32.xlu0 %v592_v1, %s613_s16  ;;  %v597_v4 = vld [vmem:[%s138_s14 + $0x14] ss:$8 sps:$4 sm:$0xff]  }
  0x15   : > { %294 = vrot.lane.b32.xlu1 %v594_v2, %s612_s15  ;;  %177 = vrot.lane.b32.xlu0 %v594_v2, %s613_s16 }
  0x19   : > { %181 = vrot.lane.b32.xlu1 %v597_v4, %s613_s16  ;;  %179 = vrot.lane.b32.xlu0 %v595_v3, %s613_s16 }
  0x1d   : > { %298 = vrot.lane.b32.xlu1 %v597_v4, %s612_s15  ;;  %296 = vrot.lane.b32.xlu0 %v595_v3, %s612_s15 }
  0x21   : > { %361 = vrot.lane.b32.xlu1 %v594_v2, %s614_s17  ;;  %359 = vrot.lane.b32.xlu0 %v592_v1, %s614_s17 }
  0x25   : > { %365 = vrot.lane.b32.xlu1 %v597_v4, %s614_s17  ;;  %363 = vrot.lane.b32.xlu0 %v595_v3, %s614_s17 }
  0x83   : > { %v293_v5 = vpop.permute.xlu1 %292  ;;  %v176_v6 = vpop.permute.xlu0 %175 }
  0x87   : > { %v295_v7 = vpop.permute.xlu1 %294  ;;  %v178_v8 = vpop.permute.xlu0 %177 }
  0x88   : > { %v184_v9 = vsel %vm183_vm1, %v176_v6, %v178_v8  ;;  %v301_v10 = vsel %vm300_vm2, %v293_v5, %v295_v7 }
  0x89   : > { %538 = vmatpush3.bf16.msra.mxu1 %v184_v9  ;;  %554 = vmatpush3.bf16.msra.mxu0 %v301_v10 }
  0x8a   : > { %539 = vmatprep.subr.bf16.mxu1 %v610_v0  ;;  %555 = vmatprep.subr.bf16.mxu0 %v610_v0 }
  0x8b   : > { %v182_v11 = vpop.permute.xlu1 %181  ;;  %v180_v12 = vpop.permute.xlu0 %179 }
  0x8c   : > { %v185_v13 = vsel %vm183_vm1, %v180_v12, %v182_v11 }
  0x8d   : > { %540 = vmatpush3.bf16.msra.mxu1 %v185_v13 }
  0x8e   : > { %545 = vmatprep.subr.bf16.mxu1 %v610_v0 }
  0x8f   : > { %v299_v15 = vpop.permute.xlu1 %298  ;;  %v297_v16 = vpop.permute.xlu0 %296 }
  0x90   : > { %542 = vmatmul.mubr.msk.bf16.vlgmr.msra.gmra.mrb[0].mxu1 %vm188_vm3, %v598_v14  ;;  %v302_v17 = vsel %vm300_vm2, %v297_v16, %v299_v15 }
  0x91   : > { %556 = vmatpush3.bf16.msra.mxu0 %v302_v17  ;;  %546 = vmatpush3.bf16.msra.mxu1 %v592_v1 }
  0x92   : > { %561 = vmatprep.subr.bf16.mxu0 %v610_v0  ;;  %547 = vmatprep.subr.bf16.mxu1 %v610_v0 }
  0x93   : > { %v362_v19 = vpop.permute.xlu1 %361  ;;  %v360_v20 = vpop.permute.xlu0 %359  ;;  %549 = vmatprep.mubr.msk.bf16.mxu1 %vm611_vm0, %v610_v0 }
  0x94   : > { %v368_v21 = vsel %vm367_vm4, %v360_v20, %v362_v19  ;;  %558 = vmatmul.mubr.msk.bf16.vlgmr.msra.gmra.mrb[0].mxu0 %vm188_vm3, %v599_v18 }
  0x95   : > { %562 = vmatpush3.bf16.msra.mxu0 %v368_v21  ;;  %548 = vmatpush3.bf16.msra.mxu1 %v595_v3 }
  0x96   : > { %563 = vmatprep.subr.bf16.mxu0 %v610_v0  ;;  %565 = vmatprep.mubr.msk.bf16.mxu0 %vm611_vm0, %v610_v0 }
  0x97   : > { %v366_v22 = vpop.permute.xlu1 %365  ;;  %v364_v23 = vpop.permute.xlu0 %363 }
  0x98   : > { %v369_v24 = vsel %vm367_vm4, %v364_v23, %v366_v22 }
  0x99   : > { %564 = vmatpush3.bf16.msra.mxu0 %v369_v24 }
  0x9c   : > { %550 = vmatmul.mubr.msk.bf16.vlgmr.msra.gmra.mrb[0].mxu1 %vm188_vm3, %v600_v25 }
  0xa0   : > { %566 = vmatmul.mubr.msk.bf16.vlgmr.msra.gmra.mrb[0].mxu0 %vm188_vm3, %v601_v26 }
 0x16f   : > { %v277_v27 = vpop.f32.mrb[0].mxu1 }
 0x170   : > { %v551_v28 = vpop.f32.mrb[1].mxu1 }
 0x171   : > { %v280_v29 = vpop.f32.mrb[2].mxu1 }
 0x172   : > { %v552_v30 = vpop.f32.mrb[3].mxu1 }
 0x173   : > { %v409_v31 = vpop.f32.mrb[0].mxu0 }
 0x174   : > { %v569_v32 = vadd.f32 %v409_v31, %v277_v27  ;;  %v567_v33 = vpop.f32.mrb[1].mxu0 }
 0x175   : > { %v412_v34 = vpop.f32.mrb[2].mxu0 }
 0x176   : > { %v570_v35 = vadd.f32 %v412_v34, %v280_v29  ;;  %v568_v36 = vpop.f32.mrb[3].mxu0  ;;  %v418_v37 = vmax.f32 %v569_v32, 0.0 }
 0x178   : > { %v419_v38 = vmax.f32 %v570_v35, 0.0 }
 0x17a   : > { %v523_v39 = vpack.c.bf16 %v419_v38, %v418_v37 }
 0x17c   : > { %524 = vst [vmem:[%s143_s29] sm:$0xff] %v523_v39  }
 0x17d PF: > { %s12_s9 = sadd.s32 1, %s608_s9  }
 0x17e   : > { %p9_p4 = scmp.ge.s32.totalorder %s12_s9, 4  }
 0x180   :  { %11 = sbr.rel (!%p9_p4) target bundleno = 1 (0x1), region = 61 }

// kernel: view_transformer_forward.22
= control target key start
LH: loop header
LB: loop body
LE: loop exit
PB: predicated region body
PF: predicated region fallthrough
CT: control target
= control target key end

     0   :  { %s870_s9 = smov 0   ;;  %s942_s0 = inlined_call_operand.vmem [shape: bf16[2,12,512], index: 0, kind: input, shape index: {}]   ;;  %s943_s1 = inlined_call_operand.vmem [shape: bf16[4,16,12], index: 1, kind: input, shape index: {}]   ;;  %s944_s2 = inlined_call_operand.vmem [shape: bf16[2,16,384], index: 2, kind: output, shape index: {}]  }
   0x1 LB: > { %s715_s10 = sadd.s32 4294967295, %s847_s9   ;;  %p719_p0 = scmp.ge.s32.totalorder %s847_s9, 1  ;;  %s847_s9 = sphi %s870_s9, %s12_s9  }
   0x2   : > { %p112_p1 = scmp.lt.s32.totalorder %s847_s9, 3 }
   0x4   : > { %p113_p2 = pnand %p719_p0, %p112_p1 }
   0x5   : > { %p134_p3 = scmp.lt.s32.totalorder (!%p113_p2), %s715_s10, 1  ;;  %v849_v0 = vmov (!%p113_p2), 0.0   ;;  %v850_v1 = vmov (!%p113_p2), 0   ;;  %vm851_vm0 = vmmov (!%p113_p2), 0   ;;  %s852_s15 = smov (!%p113_p2), 127   ;;  %vm183_vm1 = vcmask (!%p113_p2), 1039360  }
   0x6   : > { %116 = sbr.rel (%p113_p2) target bundleno = 397 (0x18d), region = 28  ;;  %768 = vmatprep.subr.bf16.mxu1 (!%p113_p2), %v849_v0  ;;  %233 = vmatprep.mubr.bf16.mxu0 (!%p113_p2), %v850_v1  ;;  %s853_s16 = smov (!%p113_p2), 111   ;;  %vm191_vm2 = vcmask (!%p113_p2), 1045504   ;;  %v837_v14 = vld [vmem:[%s943_s1 + $0x8] sm:$0xff] (!%p113_p2)   ;;  %vm187_vm3 = vcmask (!%p113_p2), 97280   ;;  %vm402_vm4 = vcmask (!%p113_p2), 908288  }
   0x7   : > { %770 = vmatprep.mubr.msk.bf16.mxu1 (!%p113_p2), %vm851_vm0, %v849_v0  ;;  %s854_s17 = smov (!%p113_p2), 110   ;;  %v838_v26 = vld [vmem:[%s943_s1] sm:$0xff] (!%p113_p2)   ;;  %vm524_vm5 = vcmask (!%p113_p2), 900096   ;;  %v839_v35 = vld [vmem:[%s943_s1 + $0x10] sm:$0xff] (!%p113_p2)   ;;  %v840_v38 = vld [vmem:[%s943_s1 + $0x18] sm:$0xff] (!%p113_p2)  }
   0xd   : > { %s946_s10 = smov (!%p134_p3, %s715_s10), 1 }
   0xe   : > { %s755_s11 = sshll.u32 %s946_s10, 5  ;;  %s816_s26 = smul.u32 24, %s946_s10 }
   0xf   : > { %s138_s14 = scalar_lea.vmem %s942_s0, %s755_s11 }
  0x10   : > { %v831_v2 = vld [vmem:[%s138_s14 + $0x8] ss:$16 sps:$4 sm:$0x3f]   ;;  %v833_v3 = vld [vmem:[%s138_s14] ss:$16 sps:$4 sm:$0x3f]   ;;  %s143_s29 = scalar_lea.vmem %s944_s2, %s816_s26 }
  0x11   : > { %179 = vrot.lane.b32.xlu1 %v831_v2, %s852_s15  ;;  %v835_v4 = vld [vmem:[%s138_s14 + $0xc] ss:$16 sps:$4 sm:$0x3f]   ;;  %175 = vrot.lane.b32.xlu0 %v833_v3, %s852_s15  ;;  %v836_v5 = vld [vmem:[%s138_s14 + $0x4] ss:$16 sps:$4 sm:$0x3f]  }
  0x12   : > { %v300_v16 = vsel %vm191_vm2, %v831_v2, 0  ;;  %v294_v18 = vsel %vm191_vm2, %v833_v3, 0 }
  0x15   : > { %181 = vrot.lane.b32.xlu1 %v835_v4, %s852_s15  ;;  %177 = vrot.lane.b32.xlu0 %v836_v5, %s852_s15 }
  0x19   : > { %396 = vrot.lane.b32.xlu1 %v836_v5, %s853_s16  ;;  %394 = vrot.lane.b32.xlu0 %v833_v3, %s853_s16 }
  0x1d   : > { %400 = vrot.lane.b32.xlu1 %v835_v4, %s853_s16  ;;  %398 = vrot.lane.b32.xlu0 %v831_v2, %s853_s16 }
  0x21   : > { %518 = vrot.lane.b32.xlu1 %v836_v5, %s854_s17  ;;  %516 = vrot.lane.b32.xlu0 %v833_v3, %s854_s17 }
  0x25   : > { %522 = vrot.lane.b32.xlu1 %v835_v4, %s854_s17  ;;  %520 = vrot.lane.b32.xlu0 %v831_v2, %s854_s17 }
  0x83   : > { %v180_v6 = vpop.permute.xlu1 %179  ;;  %v176_v7 = vpop.permute.xlu0 %175 }
  0x87   : > { %v182_v8 = vpop.permute.xlu1 %181  ;;  %v178_v9 = vpop.permute.xlu0 %177 }
  0x88   : > { %v186_v10 = vsel %vm183_vm1, %v180_v6, %v182_v8  ;;  %v185_v11 = vsel %vm183_vm1, %v178_v9, %v180_v6  ;;  %v184_v12 = vsel %vm183_vm1, %v176_v7, %v178_v9 }
  0x89   : > { %v199_v13 = vsel %vm191_vm2, %v186_v10, 0  ;;  %730 = vmatprep.subr.msk.bf16.mxu0 %vm191_vm2, %v185_v11  ;;  %v193_v15 = vsel %vm191_vm2, %v184_v12, 0 }
  0x8a   : > { %769 = vmatpush3.bf16.msra.mxu1 %v199_v13  ;;  %202 = vmatpush1.bf16.msra.mxu0 %v193_v15 }
  0x8b   : > { %774 = vmatprep.subr.bf16.mxu1 %v849_v0  ;;  %v397_v17 = vpop.permute.xlu1 %396  ;;  %734 = vmatprep.subr.msk.bf16.mxu0 %vm191_vm2, %v836_v5  ;;  %v395_v19 = vpop.permute.xlu0 %394 }
  0x8c   : > { %v403_v25 = vsel %vm402_vm4, %v395_v19, %v397_v17 }
  0x8d   : > { %771 = vmatmul.mubr.msk.bf16.vlgmr.msra.gmra.mrb[0].mxu1 %vm187_vm3, %v837_v14  ;;  %731 = vmatmul.mubr.msk.bf16.vlgmr.msra.gmra.mrb[0].mxu0 %vm187_vm3, %v837_v14  ;;  %v410_v29 = vsel %vm191_vm2, %v403_v25, 0 }
  0x8e   : > { %775 = vmatpush3.bf16.msra.mxu1 %v300_v16  ;;  %303 = vmatpush1.bf16.msra.mxu0 %v294_v18 }
  0x8f   : > { %334 = vmatprep.mubr.bf16.mxu0 %v850_v1  ;;  %v399_v20 = vpop.permute.xlu0 %398  ;;  %776 = vmatprep.mubr.msk.bf16.mxu1 %vm851_vm0, %v849_v0  ;;  %v401_v22 = vpop.permute.xlu1 %400 }
  0x90   : > { %780 = vmatprep.subr.bf16.mxu1 %v849_v0  ;;  %v404_v21 = vsel %vm402_vm4, %v397_v17, %v399_v20  ;;  %v405_v23 = vsel %vm402_vm4, %v399_v20, %v401_v22 }
  0x91   : > { %740 = vmatprep.subr.msk.bf16.mxu0 %vm191_vm2, %v404_v21  ;;  %v416_v28 = vsel %vm191_vm2, %v405_v23, 0 }
  0x93   : > { %v517_v24 = vpop.permute.xlu0 %516  ;;  %v519_v27 = vpop.permute.xlu1 %518 }
  0x94   : > { %v525_v34 = vsel %vm524_vm5, %v517_v24, %v519_v27 }
  0x95   : > { %v532_v37 = vsel %vm191_vm2, %v525_v34, 0 }
  0x97   : > { %v521_v30 = vpop.permute.xlu0 %520  ;;  %v523_v32 = vpop.permute.xlu1 %522 }
  0x98   : > { %v526_v31 = vsel %vm524_vm5, %v519_v27, %v521_v30  ;;  %v527_v33 = vsel %vm524_vm5, %v521_v30, %v523_v32 }
  0x99   : > { %777 = vmatmul.mubr.msk.bf16.vlgmr.msra.gmra.mrb[0].mxu1 %vm187_vm3, %v838_v26  ;;  %735 = vmatmul.mubr.msk.bf16.vlgmr.msra.gmra.mrb[0].mxu0 %vm187_vm3, %v838_v26  ;;  %v538_v36 = vsel %vm191_vm2, %v527_v33, 0 }
  0x9a   : > { %781 = vmatpush3.bf16.msra.mxu1 %v416_v28  ;;  %419 = vmatpush1.bf16.msra.mxu0 %v410_v29 }
  0x9b   : > { %450 = vmatprep.mubr.bf16.mxu0 %v850_v1  ;;  %746 = vmatprep.subr.msk.bf16.mxu0 %vm191_vm2, %v526_v31 }
  0x9c   : > { %782 = vmatprep.mubr.msk.bf16.mxu1 %vm851_vm0, %v849_v0  ;;  %786 = vmatprep.subr.bf16.mxu1 %v849_v0 }
  0xa5   : > { %783 = vmatmul.mubr.msk.bf16.vlgmr.msra.gmra.mrb[0].mxu1 %vm187_vm3, %v839_v35  ;;  %741 = vmatmul.mubr.msk.bf16.vlgmr.msra.gmra.mrb[0].mxu0 %vm187_vm3, %v839_v35 }
  0xa6   : > { %787 = vmatpush3.bf16.msra.mxu1 %v538_v36  ;;  %541 = vmatpush1.bf16.msra.mxu0 %v532_v37 }
  0xa7   : > { %572 = vmatprep.mubr.bf16.mxu0 %v850_v1  ;;  %788 = vmatprep.mubr.msk.bf16.mxu1 %vm851_vm0, %v849_v0 }
  0xb1   : > { %789 = vmatmul.mubr.msk.bf16.vlgmr.msra.gmra.mrb[0].mxu1 %vm187_vm3, %v840_v38  ;;  %747 = vmatmul.mubr.msk.bf16.vlgmr.msra.gmra.mrb[0].mxu0 %vm187_vm3, %v840_v38 }
 0x184   : > { %v617_v39 = vpop.f32.mrb[0].mxu1  ;;  %v574_v40 = vpop.f32.mrb[0].mxu0 }
 0x185   : > { %v632_v41 = vmax.f32 %v617_v39, 0.0  ;;  %v790_v42 = vpop.f32.mrb[1].mxu1  ;;  %v630_v43 = vmax.f32 %v574_v40, 0.0  ;;  %v576_v44 = vpop.f32.mrb[1].mxu0 }
 0x186   : > { %v620_v45 = vpop.f32.mrb[2].mxu1  ;;  %v631_v47 = vmax.f32 %v576_v44, 0.0  ;;  %v578_v48 = vpop.f32.mrb[2].mxu0 }
 0x187   : > { %v757_v46 = vpack.c.bf16 %v632_v41, %v632_v41  ;;  %v635_v49 = vmax.f32 %v620_v45, 0.0  ;;  %v791_v50 = vpop.f32.mrb[3].mxu1  ;;  %v633_v51 = vmax.f32 %v578_v48, 0.0  ;;  %v580_v52 = vpop.f32.mrb[3].mxu0 }
 0x188   : > { %v756_v53 = vpack.c.bf16 %v631_v47, %v630_v43  ;;  %v634_v55 = vmax.f32 %v580_v52, 0.0 }
 0x189   : > { %657 = vst [vmem:[%s143_s29 + $0x8] sm:$0xf] %v757_v46  ;;  %v759_v54 = vpack.c.bf16 %v635_v49, %v635_v49 }
 0x18a   : > { %656 = vst [vmem:[%s143_s29] sm:$0xff] %v756_v53  ;;  %v758_v56 = vpack.c.bf16 %v634_v55, %v633_v51 }
 0x18b   : > { %659 = vst [vmem:[%s143_s29 + $0x14] sm:$0xf] %v759_v54 }
 0x18c   : > { %658 = vst [vmem:[%s143_s29 + $0xc] sm:$0xff] %v758_v56 }
 0x18d PF: > { %s12_s9 = sadd.s32 1, %s847_s9  }
 0x18e   : > { %p9_p4 = scmp.ge.s32.totalorder %s12_s9, 4  }
 0x190   :  { %11 = sbr.rel (!%p9_p4) target bundleno = 1 (0x1), region = 61 }

// kernel: view_transformer_forward.24
= control target key start
LH: loop header
LB: loop body
LE: loop exit
PB: predicated region body
PF: predicated region fallthrough
CT: control target
= control target key end

     0   :  { %s630_s9 = smov 0   ;;  %s685_s0 = inlined_call_operand.vmem [shape: bf16[2,32,256], index: 0, kind: input, shape index: {}]   ;;  %s686_s1 = inlined_call_operand.vmem [shape: bf16[4,16,32], index: 1, kind: input, shape index: {}]   ;;  %s687_s2 = inlined_call_operand.vmem [shape: bf16[2,16,128], index: 2, kind: output, shape index: {}]  }
   0x1 LB: > { %s485_s10 = sadd.s32 4294967295, %s608_s9   ;;  %p489_p0 = scmp.ge.s32.totalorder %s608_s9, 1  ;;  %s608_s9 = sphi %s630_s9, %s12_s9  }
   0x2   : > { %p112_p1 = scmp.lt.s32.totalorder %s608_s9, 3 }
   0x4   : > { %p113_p2 = pnand %p489_p0, %p112_p1 }
   0x5   : > { %p134_p3 = scmp.lt.s32.totalorder (!%p113_p2), %s485_s10, 1  ;;  %v610_v0 = vmov (!%p113_p2), 0.0   ;;  %vm611_vm0 = vmmov (!%p113_p2), 0   ;;  %s612_s15 = smov (!%p113_p2), 123   ;;  %vm183_vm1 = vcmask (!%p113_p2), 1039360   ;;  %vm300_vm2 = vcmask (!%p113_p2), 1006592  }
   0x6   : > { %116 = sbr.rel (%p113_p2) target bundleno = 381 (0x17d), region = 28  ;;  %537 = vmatprep.subr.bf16.mxu1 (!%p113_p2), %v610_v0  ;;  %553 = vmatprep.subr.bf16.mxu0 (!%p113_p2), %v610_v0  ;;  %s613_s16 = smov (!%p113_p2), 127   ;;  %v598_v14 = vld [vmem:[%s686_s1 + $0x8] sm:$0xff] (!%p113_p2)   ;;  %vm188_vm3 = vcmask (!%p113_p2), 261120   ;;  %v599_v18 = vld [vmem:[%s686_s1 + $0x10] sm:$0xff] (!%p113_p2)   ;;  %vm367_vm4 = vcmask (!%p113_p2), 998400  }
   0x7   : > { %541 = vmatprep.mubr.msk.bf16.mxu1 (!%p113_p2), %vm611_vm0, %v610_v0  ;;  %557 = vmatprep.mubr.msk.bf16.mxu0 (!%p113_p2), %vm611_vm0, %v610_v0  ;;  %s614_s17 = smov (!%p113_p2), 122   ;;  %v600_v25 = vld [vmem:[%s686_s1] sm:$0xff] (!%p113_p2)   ;;  %v601_v26 = vld [vmem:[%s686_s1 + $0x18] sm:$0xff] (!%p113_p2)  }
   0xd   : > { %s689_s10 = smov (!%p134_p3, %s485_s10), 1 }
   0xe   : > { %s516_s11 = sshll.u32 %s689_s10, 5  ;;  %s517_s26 = sshll.u32 %s689_s10, 3 }
   0xf   : > { %s138_s14 = scalar_lea.vmem %s685_s0, %s516_s11  ;;  %s143_s29 = scalar_lea.vmem %s687_s2, %s517_s26 }
  0x10   : > { %v592_v1 = vld [vmem:[%s138_s14] ss:$8 sps:$4 sm:$0xff]   ;;  %v594_v2 = vld [vmem:[%s138_s14 + $0x4] ss:$8 sps:$4 sm:$0xff]   ;;  %v595_v3 = vld [vmem:[%s138_s14 + $0x10] ss:$8 sps:$4 sm:$0xff]  }
  0x11   : > { %292 = vrot.lane.b32.xlu1 %v592_v1, %s612_s15  ;;  %175 = vrot.lane.b32.xlu0 %v592_v1, %s613_s16  ;;  %v597_v4 = vld [vmem:[%s138_s14 + $0x14] ss:$8 sps:$4 sm:$0xff]  }
  0x15   : > { %294 = vrot.lane.b32.xlu1 %v594_v2, %s612_s15  ;;  %177 = vrot.lane.b32.xlu0 %v594_v2, %s613_s16 }
  0x19   : > { %181 = vrot.lane.b32.xlu1 %v597_v4, %s613_s16  ;;  %179 = vrot.lane.b32.xlu0 %v595_v3, %s613_s16 }
  0x1d   : > { %298 = vrot.lane.b32.xlu1 %v597_v4, %s612_s15  ;;  %296 = vrot.lane.b32.xlu0 %v595_v3, %s612_s15 }
  0x21   : > { %361 = vrot.lane.b32.xlu1 %v594_v2, %s614_s17  ;;  %359 = vrot.lane.b32.xlu0 %v592_v1, %s614_s17 }
  0x25   : > { %365 = vrot.lane.b32.xlu1 %v597_v4, %s614_s17  ;;  %363 = vrot.lane.b32.xlu0 %v595_v3, %s614_s17 }
  0x83   : > { %v293_v5 = vpop.permute.xlu1 %292  ;;  %v176_v6 = vpop.permute.xlu0 %175 }
  0x87   : > { %v295_v7 = vpop.permute.xlu1 %294  ;;  %v178_v8 = vpop.permute.xlu0 %177 }
  0x88   : > { %v184_v9 = vsel %vm183_vm1, %v176_v6, %v178_v8  ;;  %v301_v10 = vsel %vm300_vm2, %v293_v5, %v295_v7 }
  0x89   : > { %538 = vmatpush3.bf16.msra.mxu1 %v184_v9  ;;  %554 = vmatpush3.bf16.msra.mxu0 %v301_v10 }
  0x8a   : > { %539 = vmatprep.subr.bf16.mxu1 %v610_v0  ;;  %555 = vmatprep.subr.bf16.mxu0 %v610_v0 }
  0x8b   : > { %v182_v11 = vpop.permute.xlu1 %181  ;;  %v180_v12 = vpop.permute.xlu0 %179 }
  0x8c   : > { %v185_v13 = vsel %vm183_vm1, %v180_v12, %v182_v11 }
  0x8d   : > { %540 = vmatpush3.bf16.msra.mxu1 %v185_v13 }
  0x8e   : > { %545 = vmatprep.subr.bf16.mxu1 %v610_v0 }
  0x8f   : > { %v299_v15 = vpop.permute.xlu1 %298  ;;  %v297_v16 = vpop.permute.xlu0 %296 }
  0x90   : > { %542 = vmatmul.mubr.msk.bf16.vlgmr.msra.gmra.mrb[0].mxu1 %vm188_vm3, %v598_v14  ;;  %v302_v17 = vsel %vm300_vm2, %v297_v16, %v299_v15 }
  0x91   : > { %556 = vmatpush3.bf16.msra.mxu0 %v302_v17  ;;  %546 = vmatpush3.bf16.msra.mxu1 %v592_v1 }
  0x92   : > { %561 = vmatprep.subr.bf16.mxu0 %v610_v0  ;;  %547 = vmatprep.subr.bf16.mxu1 %v610_v0 }
  0x93   : > { %v362_v19 = vpop.permute.xlu1 %361  ;;  %v360_v20 = vpop.permute.xlu0 %359  ;;  %549 = vmatprep.mubr.msk.bf16.mxu1 %vm611_vm0, %v610_v0 }
  0x94   : > { %v368_v21 = vsel %vm367_vm4, %v360_v20, %v362_v19  ;;  %558 = vmatmul.mubr.msk.bf16.vlgmr.msra.gmra.mrb[0].mxu0 %vm188_vm3, %v599_v18 }
  0x95   : > { %562 = vmatpush3.bf16.msra.mxu0 %v368_v21  ;;  %548 = vmatpush3.bf16.msra.mxu1 %v595_v3 }
  0x96   : > { %563 = vmatprep.subr.bf16.mxu0 %v610_v0  ;;  %565 = vmatprep.mubr.msk.bf16.mxu0 %vm611_vm0, %v610_v0 }
  0x97   : > { %v366_v22 = vpop.permute.xlu1 %365  ;;  %v364_v23 = vpop.permute.xlu0 %363 }
  0x98   : > { %v369_v24 = vsel %vm367_vm4, %v364_v23, %v366_v22 }
  0x99   : > { %564 = vmatpush3.bf16.msra.mxu0 %v369_v24 }
  0x9c   : > { %550 = vmatmul.mubr.msk.bf16.vlgmr.msra.gmra.mrb[0].mxu1 %vm188_vm3, %v600_v25 }
  0xa0   : > { %566 = vmatmul.mubr.msk.bf16.vlgmr.msra.gmra.mrb[0].mxu0 %vm188_vm3, %v601_v26 }
 0x16f   : > { %v277_v27 = vpop.f32.mrb[0].mxu1 }
 0x170   : > { %v551_v28 = vpop.f32.mrb[1].mxu1 }
 0x171   : > { %v280_v29 = vpop.f32.mrb[2].mxu1 }
 0x172   : > { %v552_v30 = vpop.f32.mrb[3].mxu1 }
 0x173   : > { %v409_v31 = vpop.f32.mrb[0].mxu0 }
 0x174   : > { %v569_v32 = vadd.f32 %v409_v31, %v277_v27  ;;  %v567_v33 = vpop.f32.mrb[1].mxu0 }
 0x175   : > { %v412_v34 = vpop.f32.mrb[2].mxu0 }
 0x176   : > { %v570_v35 = vadd.f32 %v412_v34, %v280_v29  ;;  %v568_v36 = vpop.f32.mrb[3].mxu0  ;;  %v418_v37 = vmax.f32 %v569_v32, 0.0 }
 0x178   : > { %v419_v38 = vmax.f32 %v570_v35, 0.0 }
 0x17a   : > { %v523_v39 = vpack.c.bf16 %v419_v38, %v418_v37 }
 0x17c   : > { %524 = vst [vmem:[%s143_s29] sm:$0xff] %v523_v39  }
 0x17d PF: > { %s12_s9 = sadd.s32 1, %s608_s9  }
 0x17e   : > { %p9_p4 = scmp.ge.s32.totalorder %s12_s9, 4  }
 0x180   :  { %11 = sbr.rel (!%p9_p4) target bundleno = 1 (0x1), region = 61 }

// kernel: view_transformer_forward.25
= control target key start
LH: loop header
LB: loop body
LE: loop exit
PB: predicated region body
PF: predicated region fallthrough
CT: control target
= control target key end

     0   :  { %s1262_s18 = smov 0   ;;  %s1466_s0 = inlined_call_operand.vmem [shape: bf16[2,3,8,128], index: 0, kind: input, shape index: {}]   ;;  %s1467_s1 = inlined_call_operand.vmem [shape: bf16[3,16,8], index: 1, kind: input, shape index: {}]   ;;  %s1468_s2 = inlined_call_operand.vmem [shape: bf16[2,16,128], index: 2, kind: output, shape index: {0}]   ;;  %s1469_s3 = inlined_call_operand.vmem [shape: bf16[2,16,128], index: 3, kind: output, shape index: {1}]   ;;  %s1470_s4 = inlined_call_operand.vmem [shape: bf16[2,16,128], index: 4, kind: output, shape index: {2}]   ;;  %s1471_s5 = inlined_call_operand.vmem [shape: f32[2,128,128], index: 5, kind: output, shape index: {3}]  }
   0x1 LB: > { %s1000_s19 = sadd.s32 4294967295, %s1227_s18   ;;  %p1004_p0 = scmp.ge.s32.totalorder %s1227_s18, 1  ;;  %s1227_s18 = sphi %s1262_s18, %s16_s18  }
   0x2   : > { %p194_p1 = scmp.lt.s32.totalorder %s1227_s18, 3 }
   0x4   : > { %p195_p2 = pnand %p1004_p0, %p194_p1 }
   0x5   : > { %p237_p3 = scmp.lt.s32.totalorder (!%p195_p2), %s1000_s19, 1  ;;  %v1229_v0 = vmov (!%p195_p2), 0.0   ;;  %vm1230_vm0 = vmmov (!%p195_p2), 0   ;;  %vm281_vm1 = vcmask (!%p195_p2), 1043456   ;;  %v1154_v4 = vld [vmem:[%s1467_s1] sm:$0xff] (!%p195_p2)   ;;  %vm277_vm2 = vcmask (!%p195_p2), 64512  }
   0x6   : > { %198 = sbr.rel (%p195_p2) target bundleno = 1168 (0x490), region = 28  ;;  %1085 = vmatprep.subr.bf16.mxu1 (!%p195_p2), %v1229_v0  ;;  %1087 = vmatprep.mubr.msk.bf16.mxu1 (!%p195_p2), %vm1230_vm0, %v1229_v0  ;;  %v1155_v6 = vld [vmem:[%s1467_s1 + $0x8] sm:$0xff] (!%p195_p2)   ;;  %v1156_v9 = vld [vmem:[%s1467_s1 + $0x10] sm:$0xff] (!%p195_p2)   ;;  %vm448_vm3 = vcmask (!%p195_p2), 130048   ;;  %v586_v33 = vlaneseq (!%p195_p2)  ;;  %v1231_v37 = vmov (!%p195_p2), -1e+30  }
   0x7   : > { %1121 = vmatprep.subr.bf16.mxu0 (!%p195_p2), %v1229_v0  ;;  %1137 = vmatprep.mubr.msk.bf16.mxu0 (!%p195_p2), %vm1230_vm0, %v1229_v0 }
   0x8   : > { %v587_v34 = vand.u32 (!%p195_p2), 127, %v586_v33 }
   0xa   : > { %vm588_vm4 = vcmp.lt.s32.totalorder (!%p195_p2), %v587_v34, 16 }
   0xb   : > { %v589_v38 = vsel (!%p195_p2), %vm588_vm4, 0.0, %v1231_v37 }
   0xd   : > { %s1473_s19 = smov (!%p237_p3, %s1000_s19), 1 }
   0xe   : > { %s1141_s20 = smul.u32 12, %s1473_s19  ;;  %s1301_s30 = sshll.u32 %s1473_s19, 3 }
   0xf   : > { %s246_s8 = scalar_lea.vmem %s1468_s2, %s1301_s30  ;;  %s251_s11 = scalar_lea.vmem %s1469_s3, %s1301_s30 }
  0x10   : > { %s241_s23 = scalar_lea.vmem %s1466_s0, %s1141_s20  ;;  %s1039_s12 = sshll.u32 %s1473_s19, 7 }
  0x11   : > { %v263_v1 = vld [vmem:[%s241_s23] sm:$0xf]  ;;  %v264_v2 = vld [vmem:[%s241_s23 + $0x4] sm:$0xf]  ;;  %v265_v7 = vld [vmem:[%s241_s23 + $0x8] sm:$0xf]  ;;  %s1413_s15 = scalar_lea.vmem %s1471_s5, %s1039_s12  ;;  %s256_s19 = scalar_lea.vmem %s1470_s4, %s1301_s30 }
  0x12   : > { %v283_v3 = vsel %vm281_vm1, %v263_v1, 0  ;;  %v335_v5 = vsel %vm281_vm1, %v264_v2, 0  ;;  %v387_v8 = vsel %vm281_vm1, %v265_v7, 0 }
  0x13   : > { %1086 = vmatpush3.bf16.msra.mxu1 %v283_v3 }
  0x14   : > { %1091 = vmatprep.subr.bf16.mxu1 %v1229_v0 }
  0x16   : > { %1088 = vmatmul.mubr.msk.bf16.vlgmr.msra.gmra.mrb[0].mxu1 %vm277_vm2, %v1154_v4 }
  0x17   : > { %1092 = vmatpush3.bf16.msra.mxu1 %v335_v5  ;;  %1093 = vmatprep.mubr.msk.bf16.mxu1 %vm1230_vm0, %v1229_v0 }
  0x18   : > { %1097 = vmatprep.subr.bf16.mxu1 %v1229_v0 }
  0x1e   : > { %1094 = vmatmul.mubr.msk.bf16.vlgmr.msra.gmra.mrb[4].mxu1 %vm277_vm2, %v1155_v6 }
  0x1f   : > { %1099 = vmatprep.mubr.msk.bf16.mxu1 %vm1230_vm0, %v1229_v0  ;;  %1098 = vmatpush3.bf16.msra.mxu1 %v387_v8 }
  0x26   : > { %1100 = vmatmul.mubr.msk.bf16.vlgmr.msra.gmra.mrb[8].mxu1 %vm277_vm2, %v1156_v9 }
  0xe9   : > { %v319_v10 = vpop.f32.mrb[0].mxu1 }
  0xea   : > { %v1089_v11 = vpop.f32.mrb[1].mxu1 }
  0xeb   : > { %v322_v12 = vpop.f32.mrb[2].mxu1 }
  0xec   : > { %v431_v13 = vpack.c.bf16 %v322_v12, %v319_v10  ;;  %v1090_v14 = vpop.f32.mrb[3].mxu1 }
  0xee   : > { %1050 = vst [vmem:[%s246_s8] sm:$0xff] %v431_v13   ;;  %1103 = vmatprep.subr.bf16.mxu1 %v431_v13 }
  0xef   : > { %1104 = vmatpush3.bf16.msra.mxu1 %v431_v13 }
  0xf1   : > { %v371_v15 = vpop.f32.mrb[4].mxu1 }
  0xf2   : > { %v1095_v16 = vpop.f32.mrb[5].mxu1 }
  0xf3   : > { %v374_v17 = vpop.f32.mrb[6].mxu1 }
  0xf4   : > { %v430_v18 = vpack.c.bf16 %v374_v17, %v371_v15  ;;  %v1096_v19 = vpop.f32.mrb[7].mxu1 }
  0xf6   : > { %1055 = vst [vmem:[%s251_s11] sm:$0xff] %v430_v18   ;;  %432 = vxpose.xlu0.c.b16.start.end [1/1] (short) %v430_v18, 128 }
  0xf9   : > { %v1311_v20 = vpop.f32.mrb[8].mxu1 }
  0xfa   : > { %v1101_v21 = vpop.f32.mrb[9].mxu1 }
  0xfb   : > { %v1313_v22 = vpop.f32.mrb[10].mxu1 }
  0xfc   : > { %v750_v23 = vpack.c.bf16 %v1313_v22, %v1311_v20  ;;  %v1102_v24 = vpop.f32.mrb[11].mxu1 }
 0x15c   : > { %v440_v25 = vpop.trf.xlu0 }
 0x15d   : > { %1105 = vmatprep.mubr.msk.bf16.mxu1 %vm448_vm3, %v440_v25 }
 0x160   : > { %v441_v26 = vpop.trf.xlu0 }
 0x161   : > { %1106 = vmatmul.mubr.msk.bf16.vlgmr.msra.gmra.mrb[12].mxu1 %vm448_vm3, %v441_v26 }
 0x164   : > { %v442_v27 = vpop.trf.xlu0 }
 0x165   : > { %1109 = vmatprep.mubr.msk.bf16.mxu1 %vm448_vm3, %v442_v27 }
 0x168   : > { %v443_v28 = vpop.trf.xlu0 }
 0x169   : > { %1110 = vmatmul.mubr.msk.bf16.gmra.mrb[16].mxu1 %vm448_vm3, %v443_v28 }
 0x16c   : > { %v444_v29 = vpop.trf.xlu0 }
 0x16d   : > { %1113 = vmatprep.mubr.msk.bf16.mxu1 %vm448_vm3, %v444_v29 }
 0x170   : > { %v445_v30 = vpop.trf.xlu0 }
 0x171   : > { %1114 = vmatmul.mubr.msk.bf16.gmra.mrb[20].mxu1 %vm448_vm3, %v445_v30 }
 0x174   : > { %v446_v31 = vpop.trf.xlu0 }
 0x175   : > { %1117 = vmatprep.mubr.msk.bf16.mxu1 %vm448_vm3, %v446_v31 }
 0x178   : > { %v447_v32 = vpop.trf.xlu0 }
 0x179   : > { %1118 = vmatmul.mubr.msk.bf16.gmra.mrb[24].mxu1 %vm448_vm3, %v447_v32 }
 0x234   : > { %v1107_v35 = vpop.f32.mrb[12].mxu1 }
 0x235   : > { %v507_v36 = vpop.f32.mrb[13].mxu1  ;;  %v572_v44 = vmul.f32 0.35355338, %v1107_v35 }
 0x236   : > { %v570_v39 = vmul.f32 0.35355338, %v507_v36  ;;  %v1108_v40 = vpop.f32.mrb[14].mxu1 }
 0x237   : > { %v510_v41 = vpop.f32.mrb[15].mxu1  ;;  %v573_v48 = vmul.f32 0.35355338, %v1108_v40  ;;  %v592_v49 = vadd.f32 %v589_v38, %v572_v44 }
 0x238   : > { %v571_v42 = vmul.f32 0.35355338, %v510_v41  ;;  %v590_v43 = vadd.f32 %v589_v38, %v570_v39 }
 0x239   : > { %v593_v53 = vadd.f32 %v589_v38, %v573_v48 }
 0x23a   : > { %606 = vmax.xlane.f32.xlu0 %v590_v43  ;;  %v591_v45 = vadd.f32 %v589_v38, %v571_v42 }
 0x23c   : > { %608 = vmax.xlane.f32.xlu1 %v591_v45  ;;  %v1111_v46 = vpop.f32.mrb[16].mxu1 }
 0x23d   : > { %v523_v47 = vpop.f32.mrb[17].mxu1  ;;  %v576_v60 = vmul.f32 0.35355338, %v1111_v46 }
 0x23e   : > { %v1112_v50 = vpop.f32.mrb[18].mxu1  ;;  %v574_v52 = vmul.f32 0.35355338, %v523_v47 }
 0x23f   : > { %v526_v51 = vpop.f32.mrb[19].mxu1  ;;  %v577_v1 = vmul.f32 0.35355338, %v1112_v50  ;;  %v596_v3 = vadd.f32 %v589_v38, %v576_v60 }
 0x240   : > { %610 = vmax.xlane.f32.xlu1 %v592_v49  ;;  %v1325_v54 = vadd.f32 %v589_v38, %v574_v52  ;;  %v575_v57 = vmul.f32 0.35355338, %v526_v51 }
 0x241   : > { %v597_v8 = vadd.f32 %v589_v38, %v577_v1 }
 0x242   : > { %v595_v61 = vadd.f32 %v589_v38, %v575_v57 }
 0x244   : > { %612 = vmax.xlane.f32.xlu1 %v593_v53  ;;  %v1115_v55 = vpop.f32.mrb[20].mxu1 }
 0x245   : > { %v539_v56 = vpop.f32.mrb[21].mxu1  ;;  %v580_v13 = vmul.f32 0.35355338, %v1115_v55 }
 0x246   : > { %v1116_v58 = vpop.f32.mrb[22].mxu1  ;;  %v578_v5 = vmul.f32 0.35355338, %v539_v56 }
 0x247   : > { %v542_v59 = vpop.f32.mrb[23].mxu1  ;;  %v581_v15 = vmul.f32 0.35355338, %v1116_v58  ;;  %v1340_v16 = vadd.f32 %v589_v38, %v580_v13 }
 0x248   : > { %614 = vmax.xlane.f32.xlu1 %v1325_v54  ;;  %v1331_v10 = vadd.f32 %v589_v38, %v578_v5  ;;  %v579_v12 = vmul.f32 0.35355338, %v542_v59 }
 0x249   : > { %v1343_v18 = vadd.f32 %v589_v38, %v581_v15 }
 0x24a   : > { %v1337_v14 = vadd.f32 %v589_v38, %v579_v12 }
 0x24c   : > { %616 = vmax.xlane.f32.xlu1 %v595_v61  ;;  %v1119_v62 = vpop.f32.mrb[24].mxu1 }
 0x24d   : > { %v555_v63 = vpop.f32.mrb[25].mxu1  ;;  %v584_v21 = vmul.f32 0.35355338, %v1119_v62 }
 0x24e   : > { %v1120_v2 = vpop.f32.mrb[26].mxu1  ;;  %v582_v17 = vmul.f32 0.35355338, %v555_v63 }
 0x24f   : > { %v558_v4 = vpop.f32.mrb[27].mxu1  ;;  %v585_v6 = vmul.f32 0.35355338, %v1120_v2  ;;  %v1349_v24 = vadd.f32 %v589_v38, %v584_v21 }
 0x250   : > { %v583_v7 = vmul.f32 0.35355338, %v558_v4  ;;  %618 = vmax.xlane.f32.xlu1 %v596_v3  ;;  %v1346_v19 = vadd.f32 %v589_v38, %v582_v17 }
 0x251   : > { %v1333_v11 = vadd.f32 %v589_v38, %v585_v6 }
 0x252   : > { %v1328_v9 = vadd.f32 %v589_v38, %v583_v7 }
 0x254   : > { %620 = vmax.xlane.f32.xlu1 %v597_v8  ;;  %632 = vmax.xlane.f32.xlu0 %v1328_v9 }
 0x258   : > { %622 = vmax.xlane.f32.xlu1 %v1331_v10  ;;  %636 = vmax.xlane.f32.xlu0 %v1333_v11 }
 0x25c   : > { %624 = vmax.xlane.f32.xlu1 %v1337_v14 }
 0x260   : > { %626 = vmax.xlane.f32.xlu1 %v1340_v16 }
 0x264   : > { %628 = vmax.xlane.f32.xlu1 %v1343_v18 }
 0x268   : > { %630 = vmax.xlane.f32.xlu1 %v1346_v19 }
 0x26c   : > { %634 = vmax.xlane.f32.xlu1 %v1349_v24 }
 0x2c7   : > { %v607_v25 = vpop.xlane.xlu0 %606 }
 0x2c8   : > { %v638_v26 = vsub.f32 %v590_v43, %v607_v25 }
 0x2c9   : > { %v609_v27 = vpop.xlane.xlu1 %608 }
 0x2ca   : > { %v654_v28 = vmul.f32 1.442695, %v638_v26  ;;  %v639_v29 = vsub.f32 %v591_v45, %v609_v27 }
 0x2cc   : > { %1157 = vpow2.f32 %v654_v28  ;;  %v656_v30 = vmul.f32 1.442695, %v639_v29 }
 0x2cd   : > { %v611_v31 = vpop.xlane.xlu1 %610 }
 0x2ce   : > { %1159 = vpow2.f32 %v656_v30  ;;  %v640_v32 = vsub.f32 %v592_v49, %v611_v31 }
 0x2d0   : > { %v658_v33 = vmul.f32 1.442695, %v640_v32 }
 0x2d1   : > { %v613_v34 = vpop.xlane.xlu1 %612 }
 0x2d2   : > { %1161 = vpow2.f32 %v658_v33  ;;  %v641_v35 = vsub.f32 %v593_v53, %v613_v34 }
 0x2d4   : > { %v660_v36 = vmul.f32 1.442695, %v641_v35 }
 0x2d5   : > { %v615_v37 = vpop.xlane.xlu1 %614 }
 0x2d6   : > { %v1352_v38 = vpop.eup %1157  ;;  %1163 = vpow2.f32 %v660_v36  ;;  %v642_v39 = vsub.f32 %v1325_v54, %v615_v37 }
 0x2d7   : > { %686 = vadd.xlane.f32.xlu1 %v1352_v38 }
 0x2d8   : > { %v1356_v40 = vpop.eup %1159  ;;  %v662_v41 = vmul.f32 1.442695, %v642_v39 }
 0x2d9   : > { %v617_v42 = vpop.xlane.xlu1 %616  ;;  %688 = vadd.xlane.f32.xlu0 %v1356_v40 }
 0x2da   : > { %1165 = vpow2.f32 %v662_v41  ;;  %v643_v43 = vsub.f32 %v595_v61, %v617_v42 }
 0x2dc   : > { %v1359_v44 = vpop.eup %1161  ;;  %v664_v45 = vmul.f32 1.442695, %v643_v43 }
 0x2dd   : > { %v619_v46 = vpop.xlane.xlu1 %618  ;;  %690 = vadd.xlane.f32.xlu1 %v1359_v44 }
 0x2de   : > { %1167 = vpow2.f32 %v664_v45  ;;  %v644_v47 = vsub.f32 %v596_v3, %v619_v46 }
 0x2e0   : > { %v1362_v48 = vpop.eup %1163  ;;  %v666_v49 = vmul.f32 1.442695, %v644_v47 }
 0x2e1   : > { %v621_v50 = vpop.xlane.xlu1 %620  ;;  %692 = vadd.xlane.f32.xlu0 %v1362_v48  ;;  %v633_v61 = vpop.xlane.xlu0 %632 }
 0x2e2   : > { %1169 = vpow2.f32 %v666_v49  ;;  %v645_v51 = vsub.f32 %v597_v8, %v621_v50  ;;  %v651_v4 = vsub.f32 %v1328_v9, %v633_v61 }
 0x2e4   : > { %v1365_v52 = vpop.eup %1165  ;;  %v668_v53 = vmul.f32 1.442695, %v645_v51  ;;  %v680_v12 = vmul.f32 1.442695, %v651_v4 }
 0x2e5   : > { %v623_v54 = vpop.xlane.xlu1 %622  ;;  %694 = vadd.xlane.f32.xlu1 %v1365_v52  ;;  %v637_v6 = vpop.xlane.xlu0 %636 }
 0x2e6   : > { %1171 = vpow2.f32 %v668_v53  ;;  %v646_v55 = vsub.f32 %v1331_v10, %v623_v54  ;;  %v653_v13 = vsub.f32 %v1333_v11, %v637_v6 }
 0x2e8   : > { %v1369_v56 = vpop.eup %1167  ;;  %v670_v57 = vmul.f32 1.442695, %v646_v55  ;;  %v684_v17 = vmul.f32 1.442695, %v653_v13 }
 0x2e9   : > { %v625_v58 = vpop.xlane.xlu1 %624  ;;  %696 = vadd.xlane.f32.xlu0 %v1369_v56 }
 0x2ea   : > { %1173 = vpow2.f32 %v670_v57  ;;  %v647_v59 = vsub.f32 %v1337_v14, %v625_v58 }
 0x2ec   : > { %v1373_v60 = vpop.eup %1169  ;;  %v672_v62 = vmul.f32 1.442695, %v647_v59 }
 0x2ed   : > { %v627_v63 = vpop.xlane.xlu1 %626  ;;  %698 = vadd.xlane.f32.xlu1 %v1373_v60 }
 0x2ee   : > { %1175 = vpow2.f32 %v672_v62  ;;  %v648_v1 = vsub.f32 %v1340_v16, %v627_v63 }
 0x2f0   : > { %v1377_v2 = vpop.eup %1171  ;;  %v674_v3 = vmul.f32 1.442695, %v648_v1 }
 0x2f1   : > { %v629_v5 = vpop.xlane.xlu1 %628  ;;  %700 = vadd.xlane.f32.xlu0 %v1377_v2 }
 0x2f2   : > { %1177 = vpow2.f32 %v674_v3  ;;  %v649_v7 = vsub.f32 %v1343_v18, %v629_v5 }
 0x2f4   : > { %v1382_v8 = vpop.eup %1173  ;;  %v676_v10 = vmul.f32 1.442695, %v649_v7 }
 0x2f5   : > { %702 = vadd.xlane.f32.xlu1 %v1382_v8  ;;  %v631_v14 = vpop.xlane.xlu1 %630 }
 0x2f6   : > { %1179 = vpow2.f32 %v676_v10  ;;  %v650_v15 = vsub.f32 %v1346_v19, %v631_v14 }
 0x2f7   : > { %1181 = vpow2.f32 %v680_v12 }
 0x2f8   : > { %v1387_v9 = vpop.eup %1175  ;;  %v678_v16 = vmul.f32 1.442695, %v650_v15 }
 0x2f9   : > { %v635_v21 = vpop.xlane.xlu1 %634  ;;  %704 = vadd.xlane.f32.xlu0 %v1387_v9 }
 0x2fa   : > { %1183 = vpow2.f32 %v678_v16  ;;  %v652_v18 = vsub.f32 %v1349_v24, %v635_v21 }
 0x2fb   : > { %1185 = vpow2.f32 %v684_v17 }
 0x2fc   : > { %v1391_v25 = vpop.eup %1177  ;;  %v682_v11 = vmul.f32 1.442695, %v652_v18 }
 0x2fd   : > { %706 = vadd.xlane.f32.xlu1 %v1391_v25 }
 0x2fe   : > { %1187 = vpow2.f32 %v682_v11 }
 0x300   : > { %v1394_v26 = vpop.eup %1179 }
 0x301   : > { %708 = vadd.xlane.f32.xlu0 %v1394_v26  ;;  %v1397_v19 = vpop.eup %1181 }
 0x304   : > { %v1399_v27 = vpop.eup %1183 }
 0x305   : > { %710 = vadd.xlane.f32.xlu1 %v1399_v27  ;;  %712 = vadd.xlane.f32.xlu0 %v1397_v19  ;;  %v1403_v24 = vpop.eup %1185 }
 0x308   : > { %v1405_v28 = vpop.eup %1187 }
 0x309   : > { %714 = vadd.xlane.f32.xlu1 %v1405_v28  ;;  %716 = vadd.xlane.f32.xlu0 %v1403_v24 }
 0x364   : > { %v687_v29 = vpop.xlane.xlu1 %686 }
 0x365   : > { %1189 = vrcp.f32 %v687_v29 }
 0x366   : > { %v689_v30 = vpop.xlane.xlu0 %688 }
 0x367   : > { %1191 = vrcp.f32 %v689_v30 }
 0x36a   : > { %v691_v31 = vpop.xlane.xlu1 %690 }
 0x36b   : > { %1193 = vrcp.f32 %v691_v31 }
 0x36e   : > { %v693_v32 = vpop.xlane.xlu0 %692 }
 0x36f   : > { %v1190_v33 = vpop.eup %1189  ;;  %1195 = vrcp.f32 %v693_v32 }
 0x370   : > { %v719_v34 = vmul.f32 %v1190_v33, %v1352_v38 }
 0x371   : > { %v1192_v35 = vpop.eup %1191 }
 0x372   : > { %v695_v36 = vpop.xlane.xlu1 %694  ;;  %v721_v37 = vmul.f32 %v1192_v35, %v1356_v40  ;;  %830 = vst [vmem:[%s1413_s15] sm:$0xff] %v719_v34 }
 0x373   : > { %1197 = vrcp.f32 %v695_v36 }
 0x374   : > { %v751_v39 = vpack.c.bf16 %v721_v37, %v719_v34  ;;  %831 = vst [vmem:[%s1413_s15 + $0x8] sm:$0xff] %v721_v37 }
 0x375   : > { %v1194_v41 = vpop.eup %1193 }
 0x376   : > { %1122 = vmatpush3.bf16.xpose.msra.mxu0 %v751_v39  ;;  %v697_v42 = vpop.xlane.xlu0 %696  ;;  %v723_v43 = vmul.f32 %v1194_v41, %v1359_v44 }
 0x377   : > { %1199 = vrcp.f32 %v697_v42  ;;  %1123 = vmatprep.subr.bf16.mxu0 %v1229_v0 }
 0x378   : > { %832 = vst [vmem:[%s1413_s15 + $0x10] sm:$0xff] %v723_v43 }
 0x379   : > { %v1196_v38 = vpop.eup %1195 }
 0x37a   : > { %v699_v45 = vpop.xlane.xlu1 %698  ;;  %v725_v46 = vmul.f32 %v1196_v38, %v1362_v48 }
 0x37b   : > { %1201 = vrcp.f32 %v699_v45 }
 0x37c   : > { %v752_v40 = vpack.c.bf16 %v725_v46, %v723_v43  ;;  %833 = vst [vmem:[%s1413_s15 + $0x18] sm:$0xff] %v725_v46 }
 0x37d   : > { %v1198_v47 = vpop.eup %1197 }
 0x37e   : > { %1124 = vmatpush3.bf16.xpose.msra.mxu0 %v752_v40  ;;  %v701_v49 = vpop.xlane.xlu0 %700  ;;  %v727_v50 = vmul.f32 %v1198_v47, %v1365_v52 }
 0x37f   : > { %1203 = vrcp.f32 %v701_v49  ;;  %1125 = vmatprep.subr.bf16.mxu0 %v1229_v0 }
 0x380   : > { %834 = vst [vmem:[%s1413_s15 + $0x20] sm:$0xff] %v727_v50 }
 0x381   : > { %v1200_v44 = vpop.eup %1199 }
 0x382   : > { %v703_v51 = vpop.xlane.xlu1 %702  ;;  %v729_v53 = vmul.f32 %v1200_v44, %v1369_v56 }
 0x383   : > { %1205 = vrcp.f32 %v703_v51 }
 0x384   : > { %v753_v48 = vpack.c.bf16 %v729_v53, %v727_v50  ;;  %835 = vst [vmem:[%s1413_s15 + $0x28] sm:$0xff] %v729_v53 }
 0x385   : > { %v1202_v54 = vpop.eup %1201 }
 0x386   : > { %1126 = vmatpush3.bf16.xpose.msra.mxu0 %v753_v48  ;;  %v705_v55 = vpop.xlane.xlu0 %704  ;;  %v731_v57 = vmul.f32 %v1202_v54, %v1373_v60 }
 0x387   : > { %1207 = vrcp.f32 %v705_v55  ;;  %1127 = vmatprep.subr.bf16.mxu0 %v1229_v0 }
 0x388   : > { %836 = vst [vmem:[%s1413_s15 + $0x30] sm:$0xff] %v731_v57 }
 0x389   : > { %v1204_v52 = vpop.eup %1203 }
 0x38a   : > { %v707_v58 = vpop.xlane.xlu1 %706  ;;  %v733_v59 = vmul.f32 %v1204_v52, %v1377_v2 }
 0x38b   : > { %1209 = vrcp.f32 %v707_v58 }
 0x38c   : > { %v754_v56 = vpack.c.bf16 %v733_v59, %v731_v57  ;;  %837 = vst [vmem:[%s1413_s15 + $0x38] sm:$0xff] %v733_v59 }
 0x38d   : > { %v1206_v61 = vpop.eup %1205 }
 0x38e   : > { %1128 = vmatpush3.bf16.xpose.msra.mxu0 %v754_v56  ;;  %v709_v62 = vpop.xlane.xlu0 %708  ;;  %v735_v63 = vmul.f32 %v1206_v61, %v1382_v8 }
 0x38f   : > { %1211 = vrcp.f32 %v709_v62  ;;  %1129 = vmatprep.subr.bf16.mxu0 %v1229_v0 }
 0x390   : > { %838 = vst [vmem:[%s1413_s15 + $0x40] sm:$0xff] %v735_v63 }
 0x391   : > { %v1208_v60 = vpop.eup %1207 }
 0x392   : > { %v711_v1 = vpop.xlane.xlu1 %710  ;;  %v713_v3 = vpop.xlane.xlu0 %712  ;;  %v737_v4 = vmul.f32 %v1208_v60, %v1387_v9 }
 0x393   : > { %1213 = vrcp.f32 %v711_v1 }
 0x394   : > { %1215 = vrcp.f32 %v713_v3  ;;  %v755_v2 = vpack.c.bf16 %v737_v4, %v735_v63  ;;  %839 = vst [vmem:[%s1413_s15 + $0x48] sm:$0xff] %v737_v4 }
 0x395   : > { %v1210_v5 = vpop.eup %1209 }
 0x396   : > { %v715_v6 = vpop.xlane.xlu1 %714  ;;  %1130 = vmatpush3.bf16.xpose.msra.mxu0 %v755_v2  ;;  %v717_v7 = vpop.xlane.xlu0 %716  ;;  %v739_v8 = vmul.f32 %v1210_v5, %v1391_v25 }
 0x397   : > { %1217 = vrcp.f32 %v715_v6  ;;  %1131 = vmatprep.subr.bf16.mxu0 %v1229_v0 }
 0x398   : > { %1219 = vrcp.f32 %v717_v7  ;;  %840 = vst [vmem:[%s1413_s15 + $0x50] sm:$0xff] %v739_v8 }
 0x399   : > { %v1212_v10 = vpop.eup %1211 }
 0x39a   : > { %v741_v12 = vmul.f32 %v1212_v10, %v1394_v26 }
 0x39c   : > { %v756_v13 = vpack.c.bf16 %v741_v12, %v739_v8  ;;  %841 = vst [vmem:[%s1413_s15 + $0x58] sm:$0xff] %v741_v12 }
 0x39d   : > { %v1214_v14 = vpop.eup %1213 }
 0x39e   : > { %v1216_v15 = vpop.eup %1215  ;;  %1132 = vmatpush3.bf16.xpose.msra.mxu0 %v756_v13  ;;  %v743_v9 = vmul.f32 %v1214_v14, %v1399_v27 }
 0x39f   : > { %1133 = vmatprep.subr.bf16.mxu0 %v1229_v0  ;;  %v745_v16 = vmul.f32 %v1216_v15, %v1397_v19 }
 0x3a0   : > { %842 = vst [vmem:[%s1413_s15 + $0x60] sm:$0xff] %v743_v9 }
 0x3a1   : > { %v1218_v17 = vpop.eup %1217  ;;  %843 = vst [vmem:[%s1413_s15 + $0x68] sm:$0xff] %v745_v16  ;;  %v757_v11 = vpack.c.bf16 %v745_v16, %v743_v9 }
 0x3a2   : > { %v1220_v21 = vpop.eup %1219  ;;  %v747_v18 = vmul.f32 %v1218_v17, %v1405_v28 }
 0x3a3   : > { %v749_v25 = vmul.f32 %v1220_v21, %v1403_v24 }
 0x3a4   : > { %844 = vst [vmem:[%s1413_s15 + $0x70] sm:$0xff] %v747_v18 }
 0x3a5   : > { %845 = vst [vmem:[%s1413_s15 + $0x78] sm:$0xff] %v749_v25  ;;  %v758_v26 = vpack.c.bf16 %v749_v25, %v747_v18 }
 0x3a6   : > { %1134 = vmatpush3.bf16.xpose.msra.mxu0 %v757_v11 }
 0x3a7   : > { %1135 = vmatprep.subr.bf16.mxu0 %v1229_v0 }
 0x3ae   : > { %1136 = vmatpush3.bf16.xpose.msra.mxu0 %v758_v26 }
 0x3b5   : > { %1138 = vmatmul.mubr.bf16.vlgmr.msra.gmra.mrb[0].mxu0 %v750_v23 }
 0x488   : > { %v793_v19 = vpop.f32.mrb[0].mxu0 }
 0x489   : > { %v818_v27 = vadd.f32 %v793_v19, %v1311_v20  ;;  %v1139_v29 = vpop.f32.mrb[1].mxu0 }
 0x48a   : > { %v796_v28 = vpop.f32.mrb[2].mxu0 }
 0x48b   : > { %v819_v30 = vadd.f32 %v796_v28, %v1313_v22  ;;  %v1140_v24 = vpop.f32.mrb[3].mxu0 }
 0x48d   : > { %v1059_v31 = vpack.c.bf16 %v819_v30, %v818_v27 }
 0x48f   : > { %1060 = vst [vmem:[%s256_s19] sm:$0xff] %v1059_v31  }
 0x490 PF: > { %s16_s18 = sadd.s32 1, %s1227_s18  }
 0x491   : > { %p13_p4 = scmp.ge.s32.totalorder %s16_s18, 4  }
 0x493   :  { %15 = sbr.rel (!%p13_p4) target bundleno = 1 (0x1), region = 94 }

// kernel: view_transformer_forward.27
= control target key start
LH: loop header
LB: loop body
LE: loop exit
PB: predicated region body
PF: predicated region fallthrough
CT: control target
= control target key end

     0   :  { %s1766_s0 = inlined_call_operand.vmem [shape: bf16[2,3,8,128], index: 0, kind: input, shape index: {}]   ;;  %s1767_s1 = inlined_call_operand.vmem [shape: bf16[3,16,8], index: 1, kind: input, shape index: {}]   ;;  %s1768_s2 = inlined_call_operand.hbm [shape: bf16[2,16,128], index: 2, kind: output, shape index: {0}]   ;;  %s1769_s3 = inlined_call_operand.hbm [shape: bf16[2,16,128], index: 3, kind: output, shape index: {1}]   ;;  %s1770_s4 = inlined_call_operand.vmem [shape: bf16[2,16,128], index: 4, kind: output, shape index: {2}]   ;;  %s1771_s5 = inlined_call_operand.vmem [shape: f32[2,128,128], index: 5, kind: output, shape index: {3}]  }
   0x1   :  { %1772 = sst [smem:[#allocation8_spill]] %s1766_s0 }
   0x2   :  { %11 = vsyncpa [#allocation3], 0 }
   0x3   :  { %13 = vsyncpa [#allocation3 + $0x1], 0 }
   0x4   :  { %14 = vsyncpa [#allocation5], 0 }
   0x5   :  { %16 = vsyncpa [#allocation5 + $0x1], 0  ;;  %s1432_s18 = smov 0   ;;  %s1434_s19 = smov 0  }
   0x6   :  { %s1436_s20 = smov 0   ;;  %s1438_s21 = smov 0  }
   0x7 LB: > { %s1453_s22 = sadd.s32 4294967295, %s1393_s21   ;;  %s1037_s23 = sadd.s32 4294967294, %s1393_s21   ;;  %s1393_s21 = sphi %s1438_s21, %s1779_s21   ;;  %s1389_s20 = sphi %s1436_s20, %s1778_s20   ;;  %s1385_s19 = sphi %s1434_s19, %s1777_s19   ;;  %s1381_s18 = sphi %s1432_s18, %s1776_s18  }
   0x8   : > { %s1457_s24 = sadd.s32 1, %s1393_s21   ;;  %s76_s25 = sadd.s32 1, %s1389_s20 }
   0x9   : > { %s73_s26 = ssub.s32 %s1393_s21, %s1457_s24  ;;  %p86_p0 = scmp.ne.s32.totalorder %s1389_s20, %s1385_s19 }
   0xa   : > { %p74_p1 = scmp.eq.s32.totalorder %s73_s26, 0  ;;  %p87_p2 = scmp.eq.s32.totalorder %s1453_s22, 1 }
   0xb   : > { %p92_p3 = scmp.ne.s32.totalorder %s1385_s19, %s1381_s18  ;;  %p93_p4 = scmp.eq.s32.totalorder %s1037_s23, 1 }
   0xc   : > { %s1468_s27 = scalar_select %p74_p1, %s1389_s20, %s76_s25  }
   0xd   : > { %p1470_p5 = por %p87_p2, %p86_p0  ;;  %p1474_p6 = por %p93_p4, %p92_p3 }
   0xe   : > { %p1040_p7 = scmp.ge.s32.totalorder %s1393_s21, 1  ;;  %p200_p8 = scmp.lt.s32.totalorder %s1393_s21, 3 }
  0x10   : > { %p201_p9 = pnand %p1040_p7, %p200_p8 }
  0x11   : > { %p243_p10 = scmp.lt.s32.totalorder (!%p201_p9), %s1453_s22, 1  ;;  %v1395_v0 = vmov (!%p201_p9), 0.0   ;;  %vm1396_vm0 = vmmov (!%p201_p9), 0   ;;  %vm277_vm1 = vcmask (!%p201_p9), 1043456   ;;  %s1775_s0 = sld [smem:[#allocation8_spill]] (!%p201_p9)  ;;  %v1232_v4 = vld [vmem:[%s1767_s1] sm:$0xff] (!%p201_p9)   ;;  %v582_v33 = vlaneseq (!%p201_p9) }
  0x12   : > { %204 = sbr.rel (%p201_p9) target bundleno = 1181 (0x49d), region = 28  ;;  %1125 = vmatprep.subr.bf16.mxu1 (!%p201_p9), %v1395_v0  ;;  %1127 = vmatprep.mubr.msk.bf16.mxu1 (!%p201_p9), %vm1396_vm0, %v1395_v0  ;;  %vm273_vm2 = vcmask (!%p201_p9), 64512   ;;  %v1233_v6 = vld [vmem:[%s1767_s1 + $0x8] sm:$0xff] (!%p201_p9)   ;;  %v1234_v9 = vld [vmem:[%s1767_s1 + $0x10] sm:$0xff] (!%p201_p9)   ;;  %s1513_s16 = sand.u32 (!%p201_p9), 1, %s1385_s19   ;;  %vm444_vm3 = vcmask (!%p201_p9), 130048  }
  0x13   : > { %1161 = vmatprep.subr.bf16.mxu0 (!%p201_p9), %v1395_v0  ;;  %1177 = vmatprep.mubr.msk.bf16.mxu0 (!%p201_p9), %vm1396_vm0, %v1395_v0  ;;  %s1041_s17 = sshll.u32 (!%p201_p9), %s1513_s16, 3  ;;  %v583_v34 = vand.u32 (!%p201_p9), 127, %v582_v33  ;;  %v1397_v37 = vmov (!%p201_p9), -1e+30   ;;  %s1084_s11 = sshll.u32 (!%p201_p9), %s1453_s22, 7 }
  0x14   : > { %s1516_s23 = scalar_lea.vmem (!%p201_p9), [#allocation2], %s1041_s17  ;;  %s1519_s25 = scalar_lea.vmem (!%p201_p9), [#allocation4], %s1041_s17 }
  0x15   : > { %vm584_vm4 = vcmp.lt.s32.totalorder (!%p201_p9), %v583_v34, 16  ;;  %s887_s10 = sshll.u32 (!%p201_p9), %s1519_s25, 4  ;;  %s1680_s14 = scalar_lea.hbm (!%p201_p9), %s1768_s2, %s1084_s11  ;;  %s1672_s10 = int_to_ptr.vmem [resolvable:$true] %s887_s10 }
  0x16   : > { %v585_v38 = vsel (!%p201_p9), %vm584_vm4, 0.0, %v1397_v37  ;;  %s843_s15 = scalar_lea.sflag (!%p201_p9), [#allocation3], %s1513_s16 }
  0x19   : > { %s1485_s30 = scalar_select %p243_p10, %s1453_s22, 1 }
  0x1b   : > { %s1181_s6 = smul.u32 12, %s1485_s30  ;;  %s1077_s26 = sshll.u32 %s1485_s30, 7 }
  0x1c   : > { %s1624_s8 = scalar_lea.vmem %s1771_s5, %s1077_s26 }
  0x1d   : > { %s247_s9 = scalar_lea.vmem %s1775_s0, %s1181_s6 }
  0x1e   : > { %v259_v1 = vld [vmem:[%s247_s9] sm:$0xf]  ;;  %v260_v2 = vld [vmem:[%s247_s9 + $0x4] sm:$0xf]  ;;  %v261_v7 = vld [vmem:[%s247_s9 + $0x8] sm:$0xf] }
  0x1f   : > { %v279_v3 = vsel %vm277_vm1, %v259_v1, 0  ;;  %v331_v5 = vsel %vm277_vm1, %v260_v2, 0  ;;  %v383_v8 = vsel %vm277_vm1, %v261_v7, 0  ;;  %s871_s9 = sshll.u32 %s1516_s23, 4  ;;  %s1670_s9 = int_to_ptr.vmem [resolvable:$true] %s871_s9 }
  0x20   : > { %1126 = vmatpush3.bf16.msra.mxu1 %v279_v3  ;;  %s1299_s17 = scalar_lea.vmem %s1670_s9, 128 }
  0x21   : > { %1131 = vmatprep.subr.bf16.mxu1 %v1395_v0  ;;  %p1300_p11 = scmp.ne.s32.totalorder %s1670_s9, %s1299_s17 }
  0x23   : > { %1128 = vmatmul.mubr.msk.bf16.vlgmr.msra.gmra.mrb[0].mxu1 %vm273_vm2, %v1232_v4  ;;  %p1301_p12 = pnand %p1300_p11, %p1470_p5 }
  0x24   : > { %1132 = vmatpush3.bf16.msra.mxu1 %v331_v5  ;;  %1133 = vmatprep.mubr.msk.bf16.mxu1 %vm1396_vm0, %v1395_v0 }
  0x25   : > { %1137 = vmatprep.subr.bf16.mxu1 %v1395_v0  ;;  %p1302_p13 = pneg %p1301_p12 }
  0x2b   : > { %1134 = vmatmul.mubr.msk.bf16.vlgmr.msra.gmra.mrb[4].mxu1 %vm273_vm2, %v1233_v6 }
  0x2c   : > { %1139 = vmatprep.mubr.msk.bf16.mxu1 %vm1396_vm0, %v1395_v0  ;;  %1138 = vmatpush3.bf16.msra.mxu1 %v383_v8 }
  0x33   : > { %1140 = vmatmul.mubr.msk.bf16.vlgmr.msra.gmra.mrb[8].mxu1 %vm273_vm2, %v1234_v9 }
  0xf6   : > { %v315_v10 = vpop.f32.mrb[0].mxu1 }
  0xf7   : > { %v1129_v11 = vpop.f32.mrb[1].mxu1 }
  0xf8   : > { %v318_v12 = vpop.f32.mrb[2].mxu1 }
  0xf9   : > { %v427_v13 = vpack.c.bf16 %v318_v12, %v315_v10  ;;  %v1130_v14 = vpop.f32.mrb[3].mxu1 }
  0xfb   : > { %1143 = vmatprep.subr.bf16.mxu1 %v427_v13  ;;  %1090 = vst [vmem:[%s1516_s23] sm:$0xff] %v427_v13   ;;  %s1398_s23 = smov [#allocation2]  }
  0xfc   : > { %1144 = vmatpush3.bf16.msra.mxu1 %v427_v13 }
  0xfe   : > { %v367_v15 = vpop.f32.mrb[4].mxu1 }
  0xff   : > { %v1135_v16 = vpop.f32.mrb[5].mxu1 }
 0x100   : > { %v370_v17 = vpop.f32.mrb[6].mxu1 }
 0x101   : > { %v426_v18 = vpack.c.bf16 %v370_v17, %v367_v15  ;;  %v1136_v19 = vpop.f32.mrb[7].mxu1 }
 0x103   : > { %1095 = vst [vmem:[%s1519_s25] sm:$0xff] %v426_v18   ;;  %428 = vxpose.xlu0.c.b16.start.end [1/1] (short) %v426_v18, 128  ;;  %s1303_s25 = sshll.u32 %s1398_s23, 4  ;;  %s1304_s25 = int_to_ptr.vmem [resolvable:$false] %s1303_s25 }
 0x104   : > { %s1305_s26 = scalar_lea.vmem %s1304_s25, 256  ;;  %p1306_p0 = scmp.lt.s32.totalorder %s1670_s9, %s1304_s25 }
 0x105   : > { %p1307_p1 = scmp.lt.s32.totalorder %s1305_s26, %s1299_s17 }
 0x106   : > { %v1522_v20 = vpop.f32.mrb[8].mxu1 }
 0x107   : > { %v1141_v21 = vpop.f32.mrb[9].mxu1  ;;  %p1308_p2 = por %p1307_p1, %p1306_p0 }
 0x108   : > { %v1524_v22 = vpop.f32.mrb[10].mxu1 }
 0x109   : > { %v746_v23 = vpack.c.bf16 %v1524_v22, %v1522_v20  ;;  %v1142_v24 = vpop.f32.mrb[11].mxu1  ;;  %p1309_p3 = pnand %p1308_p2, %p1302_p13 }
 0x169   : > { %v436_v25 = vpop.trf.xlu0 }
 0x16a   : > { %1145 = vmatprep.mubr.msk.bf16.mxu1 %vm444_vm3, %v436_v25 }
 0x16d   : > { %v437_v26 = vpop.trf.xlu0 }
 0x16e   : > { %1146 = vmatmul.mubr.msk.bf16.vlgmr.msra.gmra.mrb[12].mxu1 %vm444_vm3, %v437_v26 }
 0x171   : > { %v438_v27 = vpop.trf.xlu0 }
 0x172   : > { %1149 = vmatprep.mubr.msk.bf16.mxu1 %vm444_vm3, %v438_v27 }
 0x175   : > { %v439_v28 = vpop.trf.xlu0 }
 0x176   : > { %1150 = vmatmul.mubr.msk.bf16.gmra.mrb[16].mxu1 %vm444_vm3, %v439_v28 }
 0x179   : > { %v440_v29 = vpop.trf.xlu0 }
 0x17a   : > { %1153 = vmatprep.mubr.msk.bf16.mxu1 %vm444_vm3, %v440_v29 }
 0x17d   : > { %v441_v30 = vpop.trf.xlu0 }
 0x17e   : > { %1154 = vmatmul.mubr.msk.bf16.gmra.mrb[20].mxu1 %vm444_vm3, %v441_v30 }
 0x181   : > { %v442_v31 = vpop.trf.xlu0 }
 0x182   : > { %1157 = vmatprep.mubr.msk.bf16.mxu1 %vm444_vm3, %v442_v31 }
 0x185   : > { %v443_v32 = vpop.trf.xlu0 }
 0x186   : > { %1158 = vmatmul.mubr.msk.bf16.gmra.mrb[24].mxu1 %vm444_vm3, %v443_v32 }
 0x241   : > { %v1147_v35 = vpop.f32.mrb[12].mxu1 }
 0x242   : > { %v503_v36 = vpop.f32.mrb[13].mxu1  ;;  %v568_v44 = vmul.f32 0.35355338, %v1147_v35 }
 0x243   : > { %v566_v39 = vmul.f32 0.35355338, %v503_v36  ;;  %v1148_v40 = vpop.f32.mrb[14].mxu1 }
 0x244   : > { %v506_v41 = vpop.f32.mrb[15].mxu1  ;;  %v569_v48 = vmul.f32 0.35355338, %v1148_v40  ;;  %v588_v49 = vadd.f32 %v585_v38, %v568_v44 }
 0x245   : > { %v567_v42 = vmul.f32 0.35355338, %v506_v41  ;;  %v586_v43 = vadd.f32 %v585_v38, %v566_v39 }
 0x246   : > { %v589_v53 = vadd.f32 %v585_v38, %v569_v48 }
 0x247   : > { %602 = vmax.xlane.f32.xlu0 %v586_v43  ;;  %v587_v45 = vadd.f32 %v585_v38, %v567_v42 }
 0x249   : > { %604 = vmax.xlane.f32.xlu1 %v587_v45  ;;  %v1151_v46 = vpop.f32.mrb[16].mxu1 }
 0x24a   : > { %v519_v47 = vpop.f32.mrb[17].mxu1  ;;  %v572_v60 = vmul.f32 0.35355338, %v1151_v46 }
 0x24b   : > { %v1152_v50 = vpop.f32.mrb[18].mxu1  ;;  %v570_v52 = vmul.f32 0.35355338, %v519_v47 }
 0x24c   : > { %v522_v51 = vpop.f32.mrb[19].mxu1  ;;  %v573_v1 = vmul.f32 0.35355338, %v1152_v50  ;;  %v592_v3 = vadd.f32 %v585_v38, %v572_v60 }
 0x24d   : > { %606 = vmax.xlane.f32.xlu1 %v588_v49  ;;  %v1536_v54 = vadd.f32 %v585_v38, %v570_v52  ;;  %v571_v57 = vmul.f32 0.35355338, %v522_v51 }
 0x24e   : > { %v593_v8 = vadd.f32 %v585_v38, %v573_v1 }
 0x24f   : > { %v591_v61 = vadd.f32 %v585_v38, %v571_v57 }
 0x251   : > { %608 = vmax.xlane.f32.xlu1 %v589_v53  ;;  %v1155_v55 = vpop.f32.mrb[20].mxu1 }
 0x252   : > { %v535_v56 = vpop.f32.mrb[21].mxu1  ;;  %v576_v13 = vmul.f32 0.35355338, %v1155_v55 }
 0x253   : > { %v1156_v58 = vpop.f32.mrb[22].mxu1  ;;  %v574_v5 = vmul.f32 0.35355338, %v535_v56 }
 0x254   : > { %v538_v59 = vpop.f32.mrb[23].mxu1  ;;  %v577_v15 = vmul.f32 0.35355338, %v1156_v58  ;;  %v1551_v16 = vadd.f32 %v585_v38, %v576_v13 }
 0x255   : > { %610 = vmax.xlane.f32.xlu1 %v1536_v54  ;;  %v1542_v10 = vadd.f32 %v585_v38, %v574_v5  ;;  %v575_v12 = vmul.f32 0.35355338, %v538_v59 }
 0x256   : > { %v1554_v18 = vadd.f32 %v585_v38, %v577_v15 }
 0x257   : > { %v1548_v14 = vadd.f32 %v585_v38, %v575_v12 }
 0x259   : > { %612 = vmax.xlane.f32.xlu1 %v591_v61  ;;  %v1159_v62 = vpop.f32.mrb[24].mxu1 }
 0x25a   : > { %v551_v63 = vpop.f32.mrb[25].mxu1  ;;  %v580_v21 = vmul.f32 0.35355338, %v1159_v62 }
 0x25b   : > { %v1160_v2 = vpop.f32.mrb[26].mxu1  ;;  %v578_v17 = vmul.f32 0.35355338, %v551_v63 }
 0x25c   : > { %v554_v4 = vpop.f32.mrb[27].mxu1  ;;  %v581_v6 = vmul.f32 0.35355338, %v1160_v2  ;;  %v1560_v24 = vadd.f32 %v585_v38, %v580_v21 }
 0x25d   : > { %v579_v7 = vmul.f32 0.35355338, %v554_v4  ;;  %614 = vmax.xlane.f32.xlu1 %v592_v3  ;;  %v1557_v19 = vadd.f32 %v585_v38, %v578_v17 }
 0x25e   : > { %v1544_v11 = vadd.f32 %v585_v38, %v581_v6 }
 0x25f   : > { %v1539_v9 = vadd.f32 %v585_v38, %v579_v7 }
 0x261   : > { %616 = vmax.xlane.f32.xlu1 %v593_v8  ;;  %628 = vmax.xlane.f32.xlu0 %v1539_v9 }
 0x265   : > { %618 = vmax.xlane.f32.xlu1 %v1542_v10  ;;  %632 = vmax.xlane.f32.xlu0 %v1544_v11 }
 0x269   : > { %620 = vmax.xlane.f32.xlu1 %v1548_v14 }
 0x26d   : > { %622 = vmax.xlane.f32.xlu1 %v1551_v16 }
 0x271   : > { %624 = vmax.xlane.f32.xlu1 %v1554_v18 }
 0x275   : > { %626 = vmax.xlane.f32.xlu1 %v1557_v19 }
 0x279   : > { %630 = vmax.xlane.f32.xlu1 %v1560_v24 }
 0x2d4   : > { %v603_v25 = vpop.xlane.xlu0 %602 }
 0x2d5   : > { %v634_v26 = vsub.f32 %v586_v43, %v603_v25 }
 0x2d6   : > { %v605_v27 = vpop.xlane.xlu1 %604 }
 0x2d7   : > { %v650_v28 = vmul.f32 1.442695, %v634_v26  ;;  %v635_v29 = vsub.f32 %v587_v45, %v605_v27 }
 0x2d9   : > { %1235 = vpow2.f32 %v650_v28  ;;  %v652_v30 = vmul.f32 1.442695, %v635_v29 }
 0x2da   : > { %v607_v31 = vpop.xlane.xlu1 %606 }
 0x2db   : > { %1237 = vpow2.f32 %v652_v30  ;;  %v636_v32 = vsub.f32 %v588_v49, %v607_v31 }
 0x2dd   : > { %v654_v33 = vmul.f32 1.442695, %v636_v32 }
 0x2de   : > { %v609_v34 = vpop.xlane.xlu1 %608 }
 0x2df   : > { %1239 = vpow2.f32 %v654_v33  ;;  %v637_v35 = vsub.f32 %v589_v53, %v609_v34 }
 0x2e1   : > { %v656_v36 = vmul.f32 1.442695, %v637_v35 }
 0x2e2   : > { %v611_v37 = vpop.xlane.xlu1 %610 }
 0x2e3   : > { %v1563_v38 = vpop.eup %1235  ;;  %1241 = vpow2.f32 %v656_v36  ;;  %v638_v39 = vsub.f32 %v1536_v54, %v611_v37 }
 0x2e4   : > { %682 = vadd.xlane.f32.xlu1 %v1563_v38 }
 0x2e5   : > { %v1567_v40 = vpop.eup %1237  ;;  %v658_v41 = vmul.f32 1.442695, %v638_v39 }
 0x2e6   : > { %v613_v42 = vpop.xlane.xlu1 %612  ;;  %684 = vadd.xlane.f32.xlu0 %v1567_v40 }
 0x2e7   : > { %1243 = vpow2.f32 %v658_v41  ;;  %v639_v43 = vsub.f32 %v591_v61, %v613_v42 }
 0x2e9   : > { %v1570_v44 = vpop.eup %1239  ;;  %v660_v45 = vmul.f32 1.442695, %v639_v43 }
 0x2ea   : > { %v615_v46 = vpop.xlane.xlu1 %614  ;;  %686 = vadd.xlane.f32.xlu1 %v1570_v44 }
 0x2eb   : > { %1245 = vpow2.f32 %v660_v45  ;;  %v640_v47 = vsub.f32 %v592_v3, %v615_v46 }
 0x2ed   : > { %v1573_v48 = vpop.eup %1241  ;;  %v662_v49 = vmul.f32 1.442695, %v640_v47 }
 0x2ee   : > { %v617_v50 = vpop.xlane.xlu1 %616  ;;  %688 = vadd.xlane.f32.xlu0 %v1573_v48  ;;  %v629_v61 = vpop.xlane.xlu0 %628 }
 0x2ef   : > { %1247 = vpow2.f32 %v662_v49  ;;  %v641_v51 = vsub.f32 %v593_v8, %v617_v50  ;;  %v647_v4 = vsub.f32 %v1539_v9, %v629_v61 }
 0x2f1   : > { %v1576_v52 = vpop.eup %1243  ;;  %v664_v53 = vmul.f32 1.442695, %v641_v51  ;;  %v676_v12 = vmul.f32 1.442695, %v647_v4 }
 0x2f2   : > { %v619_v54 = vpop.xlane.xlu1 %618  ;;  %690 = vadd.xlane.f32.xlu1 %v1576_v52  ;;  %v633_v6 = vpop.xlane.xlu0 %632 }
 0x2f3   : > { %1249 = vpow2.f32 %v664_v53  ;;  %v642_v55 = vsub.f32 %v1542_v10, %v619_v54  ;;  %v649_v13 = vsub.f32 %v1544_v11, %v633_v6 }
 0x2f5   : > { %v1580_v56 = vpop.eup %1245  ;;  %v666_v57 = vmul.f32 1.442695, %v642_v55  ;;  %v680_v17 = vmul.f32 1.442695, %v649_v13 }
 0x2f6   : > { %v621_v58 = vpop.xlane.xlu1 %620  ;;  %692 = vadd.xlane.f32.xlu0 %v1580_v56 }
 0x2f7   : > { %1251 = vpow2.f32 %v666_v57  ;;  %v643_v59 = vsub.f32 %v1548_v14, %v621_v58 }
 0x2f9   : > { %v1584_v60 = vpop.eup %1247  ;;  %v668_v62 = vmul.f32 1.442695, %v643_v59 }
 0x2fa   : > { %v623_v63 = vpop.xlane.xlu1 %622  ;;  %694 = vadd.xlane.f32.xlu1 %v1584_v60 }
 0x2fb   : > { %1253 = vpow2.f32 %v668_v62  ;;  %v644_v1 = vsub.f32 %v1551_v16, %v623_v63 }
 0x2fd   : > { %v1588_v2 = vpop.eup %1249  ;;  %v670_v3 = vmul.f32 1.442695, %v644_v1 }
 0x2fe   : > { %v625_v5 = vpop.xlane.xlu1 %624  ;;  %696 = vadd.xlane.f32.xlu0 %v1588_v2 }
 0x2ff   : > { %1255 = vpow2.f32 %v670_v3  ;;  %v645_v7 = vsub.f32 %v1554_v18, %v625_v5 }
 0x301   : > { %v1593_v8 = vpop.eup %1251  ;;  %v672_v10 = vmul.f32 1.442695, %v645_v7 }
 0x302   : > { %698 = vadd.xlane.f32.xlu1 %v1593_v8  ;;  %v627_v14 = vpop.xlane.xlu1 %626 }
 0x303   : > { %1257 = vpow2.f32 %v672_v10  ;;  %v646_v15 = vsub.f32 %v1557_v19, %v627_v14 }
 0x304   : > { %1259 = vpow2.f32 %v676_v12 }
 0x305   : > { %v1598_v9 = vpop.eup %1253  ;;  %v674_v16 = vmul.f32 1.442695, %v646_v15 }
 0x306   : > { %v631_v21 = vpop.xlane.xlu1 %630  ;;  %700 = vadd.xlane.f32.xlu0 %v1598_v9 }
 0x307   : > { %1261 = vpow2.f32 %v674_v16  ;;  %v648_v18 = vsub.f32 %v1560_v24, %v631_v21 }
 0x308   : > { %1263 = vpow2.f32 %v680_v17 }
 0x309   : > { %v1602_v25 = vpop.eup %1255  ;;  %v678_v11 = vmul.f32 1.442695, %v648_v18 }
 0x30a   : > { %702 = vadd.xlane.f32.xlu1 %v1602_v25 }
 0x30b   : > { %1265 = vpow2.f32 %v678_v11 }
 0x30d   : > { %v1605_v26 = vpop.eup %1257 }
 0x30e   : > { %704 = vadd.xlane.f32.xlu0 %v1605_v26  ;;  %v1608_v19 = vpop.eup %1259 }
 0x311   : > { %v1610_v27 = vpop.eup %1261 }
 0x312   : > { %706 = vadd.xlane.f32.xlu1 %v1610_v27  ;;  %708 = vadd.xlane.f32.xlu0 %v1608_v19  ;;  %v1614_v24 = vpop.eup %1263 }
 0x315   : > { %v1616_v28 = vpop.eup %1265 }
 0x316   : > { %710 = vadd.xlane.f32.xlu1 %v1616_v28  ;;  %712 = vadd.xlane.f32.xlu0 %v1614_v24 }
 0x371   : > { %v683_v29 = vpop.xlane.xlu1 %682 }
 0x372   : > { %1267 = vrcp.f32 %v683_v29 }
 0x373   : > { %v685_v30 = vpop.xlane.xlu0 %684 }
 0x374   : > { %1269 = vrcp.f32 %v685_v30 }
 0x377   : > { %v687_v31 = vpop.xlane.xlu1 %686 }
 0x378   : > { %1271 = vrcp.f32 %v687_v31 }
 0x37b   : > { %v689_v32 = vpop.xlane.xlu0 %688 }
 0x37c   : > { %v1268_v33 = vpop.eup %1267  ;;  %1273 = vrcp.f32 %v689_v32 }
 0x37d   : > { %v715_v34 = vmul.f32 %v1268_v33, %v1563_v38 }
 0x37e   : > { %v1270_v35 = vpop.eup %1269 }
 0x37f   : > { %v691_v36 = vpop.xlane.xlu1 %690  ;;  %v717_v37 = vmul.f32 %v1270_v35, %v1567_v40  ;;  %826 = vst [vmem:[%s1624_s8] sm:$0xff] %v715_v34 }
 0x380   : > { %1275 = vrcp.f32 %v691_v36 }
 0x381   : > { %v747_v39 = vpack.c.bf16 %v717_v37, %v715_v34  ;;  %827 = vst [vmem:[%s1624_s8 + $0x8] sm:$0xff] %v717_v37 }
 0x382   : > { %v1272_v41 = vpop.eup %1271 }
 0x383   : > { %1162 = vmatpush3.bf16.xpose.msra.mxu0 %v747_v39  ;;  %v693_v42 = vpop.xlane.xlu0 %692  ;;  %v719_v43 = vmul.f32 %v1272_v41, %v1570_v44 }
 0x384   : > { %1277 = vrcp.f32 %v693_v42  ;;  %1163 = vmatprep.subr.bf16.mxu0 %v1395_v0 }
 0x385   : > { %828 = vst [vmem:[%s1624_s8 + $0x10] sm:$0xff] %v719_v43 }
 0x386   : > { %v1274_v38 = vpop.eup %1273 }
 0x387   : > { %v695_v45 = vpop.xlane.xlu1 %694  ;;  %v721_v46 = vmul.f32 %v1274_v38, %v1573_v48 }
 0x388   : > { %1279 = vrcp.f32 %v695_v45 }
 0x389   : > { %v748_v40 = vpack.c.bf16 %v721_v46, %v719_v43  ;;  %829 = vst [vmem:[%s1624_s8 + $0x18] sm:$0xff] %v721_v46 }
 0x38a   : > { %v1276_v47 = vpop.eup %1275 }
 0x38b   : > { %1164 = vmatpush3.bf16.xpose.msra.mxu0 %v748_v40  ;;  %v697_v49 = vpop.xlane.xlu0 %696  ;;  %v723_v50 = vmul.f32 %v1276_v47, %v1576_v52 }
 0x38c   : > { %1281 = vrcp.f32 %v697_v49  ;;  %1165 = vmatprep.subr.bf16.mxu0 %v1395_v0 }
 0x38d   : > { %830 = vst [vmem:[%s1624_s8 + $0x20] sm:$0xff] %v723_v50 }
 0x38e   : > { %v1278_v44 = vpop.eup %1277 }
 0x38f   : > { %v699_v51 = vpop.xlane.xlu1 %698  ;;  %v725_v53 = vmul.f32 %v1278_v44, %v1580_v56 }
 0x390   : > { %1283 = vrcp.f32 %v699_v51 }
 0x391   : > { %v749_v48 = vpack.c.bf16 %v725_v53, %v723_v50  ;;  %831 = vst [vmem:[%s1624_s8 + $0x28] sm:$0xff] %v725_v53 }
 0x392   : > { %v1280_v54 = vpop.eup %1279 }
 0x393   : > { %1166 = vmatpush3.bf16.xpose.msra.mxu0 %v749_v48  ;;  %v701_v55 = vpop.xlane.xlu0 %700  ;;  %v727_v57 = vmul.f32 %v1280_v54, %v1584_v60 }
 0x394   : > { %1285 = vrcp.f32 %v701_v55  ;;  %1167 = vmatprep.subr.bf16.mxu0 %v1395_v0 }
 0x395   : > { %832 = vst [vmem:[%s1624_s8 + $0x30] sm:$0xff] %v727_v57 }
 0x396   : > { %v1282_v52 = vpop.eup %1281 }
 0x397   : > { %v703_v58 = vpop.xlane.xlu1 %702  ;;  %v729_v59 = vmul.f32 %v1282_v52, %v1588_v2 }
 0x398   : > { %1287 = vrcp.f32 %v703_v58 }
 0x399   : > { %v750_v56 = vpack.c.bf16 %v729_v59, %v727_v57  ;;  %833 = vst [vmem:[%s1624_s8 + $0x38] sm:$0xff] %v729_v59 }
 0x39a   : > { %v1284_v61 = vpop.eup %1283 }
 0x39b   : > { %1168 = vmatpush3.bf16.xpose.msra.mxu0 %v750_v56  ;;  %v705_v62 = vpop.xlane.xlu0 %704  ;;  %v731_v63 = vmul.f32 %v1284_v61, %v1593_v8 }
 0x39c   : > { %1289 = vrcp.f32 %v705_v62  ;;  %1169 = vmatprep.subr.bf16.mxu0 %v1395_v0 }
 0x39d   : > { %834 = vst [vmem:[%s1624_s8 + $0x40] sm:$0xff] %v731_v63 }
 0x39e   : > { %v1286_v60 = vpop.eup %1285 }
 0x39f   : > { %v707_v1 = vpop.xlane.xlu1 %706  ;;  %v709_v3 = vpop.xlane.xlu0 %708  ;;  %v733_v4 = vmul.f32 %v1286_v60, %v1598_v9 }
 0x3a0   : > { %1291 = vrcp.f32 %v707_v1 }
 0x3a1   : > { %1293 = vrcp.f32 %v709_v3  ;;  %v751_v2 = vpack.c.bf16 %v733_v4, %v731_v63  ;;  %835 = vst [vmem:[%s1624_s8 + $0x48] sm:$0xff] %v733_v4 }
 0x3a2   : > { %v1288_v5 = vpop.eup %1287 }
 0x3a3   : > { %v711_v6 = vpop.xlane.xlu1 %710  ;;  %1170 = vmatpush3.bf16.xpose.msra.mxu0 %v751_v2  ;;  %v713_v7 = vpop.xlane.xlu0 %712  ;;  %v735_v8 = vmul.f32 %v1288_v5, %v1602_v25 }
 0x3a4   : > { %1295 = vrcp.f32 %v711_v6  ;;  %1171 = vmatprep.subr.bf16.mxu0 %v1395_v0 }
 0x3a5   : > { %1297 = vrcp.f32 %v713_v7  ;;  %836 = vst [vmem:[%s1624_s8 + $0x50] sm:$0xff] %v735_v8 }
 0x3a6   : > { %v1290_v10 = vpop.eup %1289 }
 0x3a7   : > { %v737_v12 = vmul.f32 %v1290_v10, %v1605_v26 }
 0x3a9   : > { %v752_v13 = vpack.c.bf16 %v737_v12, %v735_v8  ;;  %837 = vst [vmem:[%s1624_s8 + $0x58] sm:$0xff] %v737_v12 }
 0x3aa   : > { %v1292_v14 = vpop.eup %1291 }
 0x3ab   : > { %v1294_v15 = vpop.eup %1293  ;;  %1172 = vmatpush3.bf16.xpose.msra.mxu0 %v752_v13  ;;  %v739_v9 = vmul.f32 %v1292_v14, %v1610_v27 }
 0x3ac   : > { %1173 = vmatprep.subr.bf16.mxu0 %v1395_v0  ;;  %v741_v16 = vmul.f32 %v1294_v15, %v1608_v19 }
 0x3ad   : > { %838 = vst [vmem:[%s1624_s8 + $0x60] sm:$0xff] %v739_v9 }
 0x3ae   : > { %v1296_v17 = vpop.eup %1295  ;;  %839 = vst [vmem:[%s1624_s8 + $0x68] sm:$0xff] %v741_v16  ;;  %v753_v11 = vpack.c.bf16 %v741_v16, %v739_v9 }
 0x3af   : > { %v1298_v21 = vpop.eup %1297  ;;  %v743_v18 = vmul.f32 %v1296_v17, %v1616_v28 }
 0x3b0   : > { %v745_v25 = vmul.f32 %v1298_v21, %v1614_v24 }
 0x3b1   : > { %840 = vst [vmem:[%s1624_s8 + $0x70] sm:$0xff] %v743_v18 }
 0x3b2   : > { %841 = vst [vmem:[%s1624_s8 + $0x78] sm:$0xff] %v745_v25  ;;  %v754_v26 = vpack.c.bf16 %v745_v25, %v743_v18 }
 0x3b3   : > { %1174 = vmatpush3.bf16.xpose.msra.mxu0 %v753_v11 }
 0x3b4   : > { %1175 = vmatprep.subr.bf16.mxu0 %v1395_v0 }
 0x3bb   : > { %1176 = vmatpush3.bf16.xpose.msra.mxu0 %v754_v26 }
 0x3c2   : > { %1178 = vmatmul.mubr.bf16.vlgmr.msra.gmra.mrb[0].mxu0 %v746_v23 }
 0x3c3   : > { %1312 = shalt.err (!%p1309_p3)
}
 0x3c4   : > { %s1313_s6 = scalar_lea.hbm %s1680_s14, 128  ;;  %s1317_s12 = scalar_lea.hbm %s1768_s2, 256 }
 0x3c5   : > { %p1314_p4 = scmp.ne.s32.totalorder %s1680_s14, %s1313_s6  ;;  %p1318_p9 = scmp.lt.u32.totalorder %s1680_s14, %s1768_s2 }
 0x3c6   : > { %p1319_p10 = scmp.lt.u32.totalorder %s1317_s12, %s1313_s6  ;;  %p1321_p12 = scmp.lt.u32.totalorder %s1313_s6, %s1680_s14 }
 0x3c7   : > { %p1315_p7 = pnand %p1314_p4, %p1470_p5 }
 0x3c8   : > { %p1320_p11 = por %p1319_p10, %p1318_p9 }
 0x3c9   : > { %p1316_p8 = pneg %p1315_p7 }
 0x3ca   : > { %p1322_p13 = por %p1321_p12, %p1320_p11 }
 0x3cc   : > { %p1323_p0 = pnand %p1322_p13, %p1316_p8 }
 0x3ce   : > { %1326 = shalt.err (!%p1323_p0)
}
 0x3cf   : > { %s1399_s17 = smov 64   ;;  %s1400_s25 = smov 4  }
 0x3d0   : > { %1182 = dma.vmem_to_hbm [thread:$0]  (%p1470_p5), %s1670_s9, 128, %s1680_s14, %s843_s15, %s1399_s17, %s1399_s17, %s1400_s25  }
 0x3d1   : > { %s1714_s7 = scalar_lea.hbm %s1769_s3, %s1084_s11  ;;  %s848_s8 = scalar_lea.sflag [#allocation5], %s1513_s16 }
 0x3d2   : > { %s1327_s12 = scalar_lea.vmem %s1672_s10, 128  ;;  %s1401_s13 = smov [#allocation4]  }
 0x3d3   : > { %p1328_p1 = scmp.ne.s32.totalorder %s1672_s10, %s1327_s12  ;;  %s1331_s23 = sshll.u32 %s1401_s13, 4  ;;  %s1332_s23 = int_to_ptr.vmem [resolvable:$false] %s1331_s23 }
 0x3d4   : > { %s1333_s0 = scalar_lea.vmem %s1332_s23, 256  ;;  %p1334_p4 = scmp.lt.s32.totalorder %s1672_s10, %s1332_s23 }
 0x3d5   : > { %p1329_p2 = pnand %p1328_p1, %p1470_p5  ;;  %p1335_p7 = scmp.lt.s32.totalorder %s1333_s0, %s1327_s12 }
 0x3d7   : > { %p1330_p3 = pneg %p1329_p2  ;;  %p1336_p8 = por %p1335_p7, %p1334_p4 }
 0x3d9   : > { %p1337_p9 = pnand %p1336_p8, %p1330_p3 }
 0x3db   : > { %1340 = shalt.err (!%p1337_p9)
}
 0x3dc   : > { %s1341_s22 = scalar_lea.hbm %s1714_s7, 128  ;;  %s1345_s14 = scalar_lea.hbm %s1769_s3, 256 }
 0x3dd   : > { %p1342_p10 = scmp.ne.s32.totalorder %s1714_s7, %s1341_s22  ;;  %p1346_p13 = scmp.lt.u32.totalorder %s1714_s7, %s1769_s3 }
 0x3de   : > { %p1347_p0 = scmp.lt.u32.totalorder %s1345_s14, %s1341_s22  ;;  %p1349_p2 = scmp.lt.u32.totalorder %s1341_s22, %s1714_s7 }
 0x3df   : > { %p1343_p11 = pnand %p1342_p10, %p1470_p5 }
 0x3e0   : > { %p1348_p1 = por %p1347_p0, %p1346_p13 }
 0x3e1   : > { %p1344_p12 = pneg %p1343_p11 }
 0x3e2   : > { %p1350_p3 = por %p1349_p2, %p1348_p1 }
 0x3e4   : > { %p1351_p4 = pnand %p1350_p3, %p1344_p12 }
 0x3e6   : > { %1354 = shalt.err (!%p1351_p4)
}
 0x3e7   : > { %1183 = dma.vmem_to_hbm [thread:$0]  (%p1470_p5), %s1672_s10, 128, %s1714_s7, %s848_s8, %s1399_s17, %s1399_s17, %s1400_s25  }
 0x3e8   : > { %s1076_s0 = sshll.u32 %s1485_s30, 3 }
 0x3e9   : > { %s252_s12 = scalar_lea.vmem %s1770_s4, %s1076_s0 }
 0x495   : > { %v789_v0 = vpop.f32.mrb[0].mxu0 }
 0x496   : > { %v814_v23 = vadd.f32 %v789_v0, %v1522_v20  ;;  %v1179_v19 = vpop.f32.mrb[1].mxu0 }
 0x497   : > { %v792_v27 = vpop.f32.mrb[2].mxu0 }
 0x498   : > { %v815_v24 = vadd.f32 %v792_v27, %v1524_v22  ;;  %v1180_v28 = vpop.f32.mrb[3].mxu0 }
 0x49a   : > { %v1099_v29 = vpack.c.bf16 %v815_v24, %v814_v23 }
 0x49c   : > { %1100 = vst [vmem:[%s252_s12] sm:$0xff] %v1099_v29  }
 0x49d PF: > { %p1193_p5 = scmp.ge.s32.totalorder %s1393_s21, 2  ;;  %s908_s16 = sand.u32 1, %s1381_s18  }
 0x49e   : > { %s909_s10 = scalar_lea.sflag [#allocation3], %s908_s16 }
 0x49f   : > { %p1187_p7 = pnand %p1193_p5, %p1474_p6 }
 0x4a1   : > { %1372 = dma.done.wait (!%p1187_p7), %s909_s10, 128  }
 0x4a2   : > { %1374 = vsyncadd (!%p1187_p7), %s909_s10, 4294967168  ;;  %s918_s30 = scalar_lea.sflag [#allocation5], %s908_s16 }
 0x4a3   : > { %1376 = dma.done.wait (!%p1187_p7), %s918_s30, 128  }
 0x4a4   : > { %1378 = vsyncadd (!%p1187_p7), %s918_s30, 4294967168  ;;  %p19_p8 = scmp.ge.s32.totalorder %s1457_s24, 4   ;;  %s1776_s18 = smov %s1385_s19 }
 0x4a5   : > { %s1777_s19 = smov %s1389_s20  ;;  %s1778_s20 = smov %s1468_s27 }
 0x4a6   : > { %s1779_s21 = smov %s1457_s24  ;;  %21 = sbr.rel (!%p19_p8) target bundleno = 7 (0x7), region = 104 }
 0x4ad   :  { %939 = vsyncpa [#allocation3], 1 }
 0x4ae   :  { %941 = vsyncpa [#allocation3 + $0x1], 1 }
 0x4af   :  { %942 = vsyncpa [#allocation5], 1 }
 0x4b0   :  { %944 = vsyncpa [#allocation5 + $0x1], 1 }

// kernel: view_transformer_forward.28
= control target key start
LH: loop header
LB: loop body
LE: loop exit
PB: predicated region body
PF: predicated region fallthrough
CT: control target
= control target key end

     0   :  { %s998_s9 = smov 0   ;;  %s1094_s0 = inlined_call_operand.vmem [shape: bf16[8,8,256], index: 0, kind: input, shape index: {}]   ;;  %s1095_s1 = inlined_call_operand.vmem [shape: bf16[9,16,8], index: 1, kind: input, shape index: {}]   ;;  %s1096_s2 = inlined_call_operand.vmem [shape: bf16[8,16,128], index: 2, kind: output, shape index: {}]  }
   0x1 LB: > { %s776_s10 = sadd.s32 4294967295, %s971_s9   ;;  %p780_p0 = scmp.ge.s32.totalorder %s971_s9, 1  ;;  %s971_s9 = sphi %s998_s9, %s12_s9  }
   0x2   : > { %p112_p1 = scmp.lt.s32.totalorder %s971_s9, 9 }
   0x4   : > { %p113_p2 = pnand %p780_p0, %p112_p1 }
   0x5   : > { %p134_p3 = scmp.lt.s32.totalorder (!%p113_p2), %s776_s10, 7  ;;  %v973_v0 = vmov (!%p113_p2), 0.0   ;;  %vm974_vm0 = vmmov (!%p113_p2), 0   ;;  %s975_s15 = smov (!%p113_p2), 127   ;;  %vm165_vm1 = vcmask (!%p113_p2), 1039360   ;;  %vm406_vm2 = vcmask (!%p113_p2), 957440  }
   0x6   : > { %116 = sbr.rel (%p113_p2) target bundleno = 412 (0x19c), region = 28  ;;  %852 = vmatprep.subr.bf16.mxu1 (!%p113_p2), %v973_v0  ;;  %876 = vmatprep.subr.bf16.mxu0 (!%p113_p2), %v973_v0  ;;  %s976_s16 = smov (!%p113_p2), 117   ;;  %vm171_vm3 = vcmask (!%p113_p2), 1043456   ;;  %vm469_vm4 = vcmask (!%p113_p2), 949248   ;;  %v956_v12 = vld [vmem:[%s1095_s1 + $0x8] sm:$0xff] (!%p113_p2)   ;;  %v957_v13 = vld [vmem:[%s1095_s1 + $0x20] sm:$0xff] (!%p113_p2)  }
   0x7   : > { %854 = vmatprep.mubr.msk.bf16.mxu1 (!%p113_p2), %vm974_vm0, %v973_v0  ;;  %878 = vmatprep.mubr.msk.bf16.mxu0 (!%p113_p2), %vm974_vm0, %v973_v0  ;;  %s977_s17 = smov (!%p113_p2), 116   ;;  %s978_s18 = smov (!%p113_p2), 108   ;;  %vm167_vm5 = vcmask (!%p113_p2), 64512   ;;  %vm532_vm6 = vcmask (!%p113_p2), 883712   ;;  %vm280_vm7 = vcmask (!%p113_p2), 1031168   ;;  %v958_v25 = vld [vmem:[%s1095_s1] sm:$0xff] (!%p113_p2)  }
   0x8   : > { %s979_s19 = smov (!%p113_p2), 126   ;;  %s980_s20 = smov (!%p113_p2), 107   ;;  %v959_v26 = vld [vmem:[%s1095_s1 + $0x28] sm:$0xff] (!%p113_p2)   ;;  %vm595_vm8 = vcmask (!%p113_p2), 875520   ;;  %vm343_vm9 = vcmask (!%p113_p2), 965632   ;;  %v960_v35 = vld [vmem:[%s1095_s1 + $0x10] sm:$0xff] (!%p113_p2)  }
   0x9   : > { %s981_s21 = smov (!%p113_p2), 118   ;;  %s982_s22 = smov (!%p113_p2), 106   ;;  %v961_v36 = vld [vmem:[%s1095_s1 + $0x30] sm:$0xff] (!%p113_p2)   ;;  %vm658_vm10 = vcmask (!%p113_p2), 867328   ;;  %v962_v42 = vld [vmem:[%s1095_s1 + $0x18] sm:$0xff] (!%p113_p2)   ;;  %v964_v45 = vld [vmem:[%s1095_s1 + $0x40] sm:$0xff] (!%p113_p2)  }
   0xa   : > { %v963_v43 = vld [vmem:[%s1095_s1 + $0x38] sm:$0xff] (!%p113_p2)  }
   0xd   : > { %s1098_s10 = smov (!%p134_p3, %s776_s10), 7 }
   0xe   : > { %s825_s11 = sshll.u32 %s1098_s10, 3 }
   0xf   : > { %s138_s14 = scalar_lea.vmem %s1094_s0, %s825_s11 }
  0x10   : > { %v145_v1 = vld [vmem:[%s138_s14] sm:$0xff] }
  0x11   : > { %v788_v2 = vcombine.low %v145_v1, %v145_v1  ;;  %v789_v3 = vcombine.high %v145_v1, %v145_v1  ;;  %v225_v16 = vsel %vm171_vm3, %v145_v1, 0 }
  0x13   : > { %161 = vrot.lane.b32.xlu1 %v788_v2, %s975_s15  ;;  %402 = vrot.lane.b32.xlu0 %v788_v2, %s976_s16 }
  0x17   : > { %163 = vrot.lane.b32.xlu1 %v789_v3, %s975_s15  ;;  %404 = vrot.lane.b32.xlu0 %v789_v3, %s976_s16 }
  0x1b   : > { %467 = vrot.lane.b32.xlu1 %v789_v3, %s977_s17  ;;  %465 = vrot.lane.b32.xlu0 %v788_v2, %s977_s17 }
  0x1f   : > { %530 = vrot.lane.b32.xlu1 %v789_v3, %s978_s18  ;;  %528 = vrot.lane.b32.xlu0 %v788_v2, %s978_s18  ;;  %s143_s18 = scalar_lea.vmem %s1096_s2, %s825_s11 }
  0x23   : > { %278 = vrot.lane.b32.xlu1 %v789_v3, %s979_s19  ;;  %276 = vrot.lane.b32.xlu0 %v788_v2, %s979_s19 }
  0x27   : > { %593 = vrot.lane.b32.xlu1 %v789_v3, %s980_s20  ;;  %591 = vrot.lane.b32.xlu0 %v788_v2, %s980_s20 }
  0x2b   : > { %341 = vrot.lane.b32.xlu1 %v789_v3, %s981_s21  ;;  %339 = vrot.lane.b32.xlu0 %v788_v2, %s981_s21 }
  0x2f   : > { %656 = vrot.lane.b32.xlu1 %v789_v3, %s982_s22  ;;  %654 = vrot.lane.b32.xlu0 %v788_v2, %s982_s22 }
  0x85   : > { %v162_v4 = vpop.permute.xlu1 %161  ;;  %v403_v5 = vpop.permute.xlu0 %402 }
  0x89   : > { %v164_v6 = vpop.permute.xlu1 %163  ;;  %v405_v7 = vpop.permute.xlu0 %404 }
  0x8a   : > { %v166_v8 = vsel %vm165_vm1, %v162_v4, %v164_v6  ;;  %v407_v9 = vsel %vm406_vm2, %v403_v5, %v405_v7 }
  0x8b   : > { %v173_v10 = vsel %vm171_vm3, %v166_v8, 0  ;;  %v412_v11 = vsel %vm171_vm3, %v407_v9, 0 }
  0x8c   : > { %853 = vmatpush3.bf16.msra.mxu1 %v173_v10  ;;  %877 = vmatpush3.bf16.msra.mxu0 %v412_v11 }
  0x8d   : > { %v468_v14 = vpop.permute.xlu1 %467  ;;  %v466_v15 = vpop.permute.xlu0 %465  ;;  %882 = vmatprep.subr.bf16.mxu0 %v973_v0  ;;  %858 = vmatprep.subr.bf16.mxu1 %v973_v0 }
  0x8e   : > { %v470_v17 = vsel %vm469_vm4, %v466_v15, %v468_v14 }
  0x8f   : > { %v475_v18 = vsel %vm171_vm3, %v470_v17, 0  ;;  %855 = vmatmul.mubr.msk.bf16.vlgmr.msra.gmra.mrb[0].mxu1 %vm167_vm5, %v956_v12  ;;  %879 = vmatmul.mubr.msk.bf16.vlgmr.msra.gmra.mrb[0].mxu0 %vm167_vm5, %v957_v13 }
  0x90   : > { %883 = vmatpush3.bf16.msra.mxu0 %v475_v18  ;;  %859 = vmatpush3.bf16.msra.mxu1 %v225_v16 }
  0x91   : > { %v531_v19 = vpop.permute.xlu1 %530  ;;  %v529_v20 = vpop.permute.xlu0 %528  ;;  %860 = vmatprep.mubr.msk.bf16.mxu1 %vm974_vm0, %v973_v0  ;;  %884 = vmatprep.mubr.msk.bf16.mxu0 %vm974_vm0, %v973_v0 }
  0x92   : > { %888 = vmatprep.subr.bf16.mxu0 %v973_v0  ;;  %864 = vmatprep.subr.bf16.mxu1 %v973_v0  ;;  %v533_v23 = vsel %vm532_vm6, %v529_v20, %v531_v19 }
  0x93   : > { %v538_v27 = vsel %vm171_vm3, %v533_v23, 0 }
  0x95   : > { %v279_v21 = vpop.permute.xlu1 %278  ;;  %v277_v22 = vpop.permute.xlu0 %276 }
  0x96   : > { %v281_v24 = vsel %vm280_vm7, %v277_v22, %v279_v21 }
  0x97   : > { %v286_v28 = vsel %vm171_vm3, %v281_v24, 0 }
  0x99   : > { %v594_v29 = vpop.permute.xlu1 %593  ;;  %v592_v30 = vpop.permute.xlu0 %591 }
  0x9a   : > { %v596_v33 = vsel %vm595_vm8, %v592_v30, %v594_v29 }
  0x9b   : > { %861 = vmatmul.mubr.msk.bf16.vlgmr.msra.gmra.mrb[0].mxu1 %vm167_vm5, %v958_v25  ;;  %885 = vmatmul.mubr.msk.bf16.vlgmr.msra.gmra.mrb[0].mxu0 %vm167_vm5, %v959_v26  ;;  %v601_v37 = vsel %vm171_vm3, %v596_v33, 0 }
  0x9c   : > { %889 = vmatpush3.bf16.msra.mxu0 %v538_v27  ;;  %865 = vmatpush3.bf16.msra.mxu1 %v286_v28 }
  0x9d   : > { %866 = vmatprep.mubr.msk.bf16.mxu1 %vm974_vm0, %v973_v0  ;;  %890 = vmatprep.mubr.msk.bf16.mxu0 %vm974_vm0, %v973_v0  ;;  %v342_v31 = vpop.permute.xlu1 %341  ;;  %v340_v32 = vpop.permute.xlu0 %339 }
  0x9e   : > { %894 = vmatprep.subr.bf16.mxu0 %v973_v0  ;;  %870 = vmatprep.subr.bf16.mxu1 %v973_v0  ;;  %v344_v34 = vsel %vm343_vm9, %v340_v32, %v342_v31 }
  0x9f   : > { %v349_v38 = vsel %vm171_vm3, %v344_v34, 0 }
  0xa1   : > { %v657_v39 = vpop.permute.xlu1 %656  ;;  %v655_v40 = vpop.permute.xlu0 %654 }
  0xa2   : > { %v659_v41 = vsel %vm658_vm10, %v655_v40, %v657_v39 }
  0xa3   : > { %v664_v44 = vsel %vm171_vm3, %v659_v41, 0 }
  0xa7   : > { %867 = vmatmul.mubr.msk.bf16.vlgmr.msra.gmra.mrb[0].mxu1 %vm167_vm5, %v960_v35  ;;  %891 = vmatmul.mubr.msk.bf16.vlgmr.msra.gmra.mrb[0].mxu0 %vm167_vm5, %v961_v36 }
  0xa8   : > { %895 = vmatpush3.bf16.msra.mxu0 %v601_v37  ;;  %871 = vmatpush3.bf16.msra.mxu1 %v349_v38 }
  0xa9   : > { %872 = vmatprep.mubr.msk.bf16.mxu1 %vm974_vm0, %v973_v0  ;;  %896 = vmatprep.mubr.msk.bf16.mxu0 %vm974_vm0, %v973_v0 }
  0xaa   : > { %900 = vmatprep.subr.bf16.mxu0 %v973_v0 }
  0xb3   : > { %873 = vmatmul.mubr.msk.bf16.vlgmr.msra.gmra.mrb[0].mxu1 %vm167_vm5, %v962_v42  ;;  %897 = vmatmul.mubr.msk.bf16.vlgmr.msra.gmra.mrb[0].mxu0 %vm167_vm5, %v963_v43 }
  0xb4   : > { %901 = vmatpush3.bf16.msra.mxu0 %v664_v44  ;;  %902 = vmatprep.mubr.msk.bf16.mxu0 %vm974_vm0, %v973_v0 }
  0xbf   : > { %903 = vmatmul.mubr.msk.bf16.vlgmr.msra.gmra.mrb[0].mxu0 %vm167_vm5, %v964_v45 }
 0x186   : > { %v385_v46 = vpop.f32.mrb[0].mxu1 }
 0x187   : > { %v874_v47 = vpop.f32.mrb[1].mxu1 }
 0x188   : > { %v388_v48 = vpop.f32.mrb[2].mxu1 }
 0x189   : > { %v875_v49 = vpop.f32.mrb[3].mxu1 }
 0x192   : > { %v700_v50 = vpop.f32.mrb[0].mxu0 }
 0x193   : > { %v906_v51 = vadd.f32 %v700_v50, %v385_v46  ;;  %v904_v52 = vpop.f32.mrb[1].mxu0 }
 0x194   : > { %v703_v53 = vpop.f32.mrb[2].mxu0 }
 0x195   : > { %v907_v54 = vadd.f32 %v703_v53, %v388_v48  ;;  %v905_v55 = vpop.f32.mrb[3].mxu0  ;;  %v709_v56 = vmax.f32 %v906_v51, 0.0 }
 0x197   : > { %v710_v57 = vmax.f32 %v907_v54, 0.0 }
 0x199   : > { %v832_v58 = vpack.c.bf16 %v710_v57, %v709_v56 }
 0x19b   : > { %833 = vst [vmem:[%s143_s18] sm:$0xff] %v832_v58  }
 0x19c PF: > { %s12_s9 = sadd.s32 1, %s971_s9  }
 0x19d   : > { %p9_p4 = scmp.ge.s32.totalorder %s12_s9, 10  }
 0x19f   :  { %11 = sbr.rel (!%p9_p4) target bundleno = 1 (0x1), region = 66 }

// kernel: view_transformer_forward.29
= control target key start
LH: loop header
LB: loop body
LE: loop exit
PB: predicated region body
PF: predicated region fallthrough
CT: control target
= control target key end

     0   :  { %s1595_s9 = smov 0   ;;  %s1753_s0 = inlined_call_operand.vmem [shape: bf16[8,8,512], index: 0, kind: input, shape index: {}]   ;;  %s1754_s1 = inlined_call_operand.vmem [shape: bf16[9,16,8], index: 1, kind: input, shape index: {}]   ;;  %s1755_s2 = inlined_call_operand.vmem [shape: bf16[8,16,384], index: 2, kind: output, shape index: {}]  }
   0x1 LB: > { %s1317_s10 = sadd.s32 4294967295, %s1567_s9   ;;  %p1321_p0 = scmp.ge.s32.totalorder %s1567_s9, 1  ;;  %s1567_s9 = sphi %s1595_s9, %s12_s9  }
   0x2   : > { %p112_p1 = scmp.lt.s32.totalorder %s1567_s9, 9 }
   0x4   : > { %p113_p2 = pnand %p1321_p0, %p112_p1 }
   0x5   : > { %p134_p3 = scmp.lt.s32.totalorder (!%p113_p2), %s1317_s10, 7  ;;  %v1569_v0 = vmov (!%p113_p2), 0.0   ;;  %v1570_v1 = vmov (!%p113_p2), 0   ;;  %vm1571_vm0 = vmmov (!%p113_p2), 0   ;;  %s1572_s15 = smov (!%p113_p2), 127   ;;  %vm175_vm1 = vcmask (!%p113_p2), 1039360  }
   0x6   : > { %116 = sbr.rel (%p113_p2) target bundleno = 459 (0x1cb), region = 28  ;;  %1410 = vmatprep.subr.bf16.mxu1 (!%p113_p2), %v1569_v0  ;;  %225 = vmatprep.mubr.bf16.mxu0 (!%p113_p2), %v1570_v1  ;;  %s1573_s16 = smov (!%p113_p2), 126   ;;  %vm183_vm2 = vcmask (!%p113_p2), 1043456   ;;  %v1552_v17 = vld [vmem:[%s1754_s1 + $0x8] sm:$0xff] (!%p113_p2)   ;;  %vm179_vm3 = vcmask (!%p113_p2), 64512   ;;  %vm394_vm4 = vcmask (!%p113_p2), 1031168  }
   0x7   : > { %1412 = vmatprep.mubr.msk.bf16.mxu1 (!%p113_p2), %vm1571_vm0, %v1569_v0  ;;  %s1574_s17 = smov (!%p113_p2), 110   ;;  %s1575_s18 = smov (!%p113_p2), 109   ;;  %v1553_v28 = vld [vmem:[%s1754_s1] sm:$0xff] (!%p113_p2)   ;;  %vm516_vm5 = vcmask (!%p113_p2), 900096   ;;  %v1554_v38 = vld [vmem:[%s1754_s1 + $0x10] sm:$0xff] (!%p113_p2)   ;;  %vm638_vm6 = vcmask (!%p113_p2), 891904  }
   0x8   : > { %s1576_s19 = smov (!%p113_p2), 108   ;;  %s1577_s20 = smov (!%p113_p2), 92   ;;  %v1555_v48 = vld [vmem:[%s1754_s1 + $0x18] sm:$0xff] (!%p113_p2)   ;;  %vm760_vm7 = vcmask (!%p113_p2), 883712   ;;  %v1556_v58 = vld [vmem:[%s1754_s1 + $0x20] sm:$0xff] (!%p113_p2)   ;;  %vm882_vm8 = vcmask (!%p113_p2), 752640  }
   0x9   : > { %s1578_s21 = smov (!%p113_p2), 91   ;;  %s1579_s22 = smov (!%p113_p2), 90   ;;  %vm1004_vm9 = vcmask (!%p113_p2), 744448   ;;  %vm1126_vm10 = vcmask (!%p113_p2), 736256  }
   0xd   : > { %s1757_s10 = smov (!%p134_p3, %s1317_s10), 7 }
   0xe   : > { %s1387_s11 = sshll.u32 %s1757_s10, 4 }
   0xf   : > { %s138_s14 = scalar_lea.vmem %s1753_s0, %s1387_s11 }
  0x10   : > { %v146_v2 = vld [vmem:[%s138_s14 + $0x8] sm:$0xff]  ;;  %v145_v3 = vld [vmem:[%s138_s14] sm:$0xff] }
  0x11   : > { %v1613_v4 = vcombine.low %v146_v2, %v146_v2  ;;  %v1328_v5 = vcombine.low %v145_v3, %v145_v3  ;;  %v1331_v6 = vcombine.high %v146_v2, %v146_v2  ;;  %v1329_v7 = vcombine.high %v145_v3, %v145_v3 }
  0x13   : > { %171 = vrot.lane.b32.xlu1 %v1613_v4, %s1572_s15  ;;  %167 = vrot.lane.b32.xlu0 %v1328_v5, %s1572_s15  ;;  %v286_v18 = vsel %vm183_vm2, %v1328_v5, 0  ;;  %v292_v19 = vsel %vm183_vm2, %v1613_v4, 0 }
  0x17   : > { %173 = vrot.lane.b32.xlu1 %v1331_v6, %s1572_s15  ;;  %169 = vrot.lane.b32.xlu0 %v1329_v7, %s1572_s15  ;;  %s1528_s15 = smul.u32 24, %s1757_s10 }
  0x1b   : > { %386 = vrot.lane.b32.xlu0 %v1328_v5, %s1573_s16  ;;  %388 = vrot.lane.b32.xlu1 %v1329_v7, %s1573_s16 }
  0x1f   : > { %390 = vrot.lane.b32.xlu0 %v1613_v4, %s1573_s16  ;;  %392 = vrot.lane.b32.xlu1 %v1331_v6, %s1573_s16 }
  0x23   : > { %508 = vrot.lane.b32.xlu0 %v1328_v5, %s1574_s17  ;;  %510 = vrot.lane.b32.xlu1 %v1329_v7, %s1574_s17 }
  0x27   : > { %512 = vrot.lane.b32.xlu0 %v1613_v4, %s1574_s17  ;;  %514 = vrot.lane.b32.xlu1 %v1331_v6, %s1574_s17 }
  0x2b   : > { %630 = vrot.lane.b32.xlu0 %v1328_v5, %s1575_s18  ;;  %632 = vrot.lane.b32.xlu1 %v1329_v7, %s1575_s18 }
  0x2f   : > { %634 = vrot.lane.b32.xlu0 %v1613_v4, %s1575_s18  ;;  %636 = vrot.lane.b32.xlu1 %v1331_v6, %s1575_s18  ;;  %s143_s18 = scalar_lea.vmem %s1755_s2, %s1528_s15 }
  0x33   : > { %752 = vrot.lane.b32.xlu0 %v1328_v5, %s1576_s19  ;;  %754 = vrot.lane.b32.xlu1 %v1329_v7, %s1576_s19 }
  0x37   : > { %756 = vrot.lane.b32.xlu0 %v1613_v4, %s1576_s19  ;;  %758 = vrot.lane.b32.xlu1 %v1331_v6, %s1576_s19 }
  0x3b   : > { %874 = vrot.lane.b32.xlu0 %v1328_v5, %s1577_s20  ;;  %876 = vrot.lane.b32.xlu1 %v1329_v7, %s1577_s20 }
  0x3f   : > { %878 = vrot.lane.b32.xlu0 %v1613_v4, %s1577_s20  ;;  %880 = vrot.lane.b32.xlu1 %v1331_v6, %s1577_s20 }
  0x43   : > { %996 = vrot.lane.b32.xlu0 %v1328_v5, %s1578_s21  ;;  %998 = vrot.lane.b32.xlu1 %v1329_v7, %s1578_s21 }
  0x47   : > { %1000 = vrot.lane.b32.xlu0 %v1613_v4, %s1578_s21  ;;  %1002 = vrot.lane.b32.xlu1 %v1331_v6, %s1578_s21 }
  0x4b   : > { %1118 = vrot.lane.b32.xlu0 %v1328_v5, %s1579_s22  ;;  %1120 = vrot.lane.b32.xlu1 %v1329_v7, %s1579_s22 }
  0x4f   : > { %1122 = vrot.lane.b32.xlu0 %v1613_v4, %s1579_s22  ;;  %1124 = vrot.lane.b32.xlu1 %v1331_v6, %s1579_s22  ;;  %v1557_v6 = vld [vmem:[%s1754_s1 + $0x28] sm:$0xff]  }
  0x85   : > { %v172_v8 = vpop.permute.xlu1 %171  ;;  %v168_v9 = vpop.permute.xlu0 %167 }
  0x89   : > { %v174_v10 = vpop.permute.xlu1 %173  ;;  %v170_v11 = vpop.permute.xlu0 %169 }
  0x8a   : > { %v177_v12 = vsel %vm175_vm1, %v170_v11, %v172_v8  ;;  %v176_v13 = vsel %vm175_vm1, %v168_v9, %v170_v11  ;;  %v178_v14 = vsel %vm175_vm1, %v172_v8, %v174_v10 }
  0x8b   : > { %1332 = vmatprep.subr.msk.bf16.mxu0 %vm183_vm2, %v177_v12  ;;  %v185_v15 = vsel %vm183_vm2, %v176_v13, 0  ;;  %v191_v16 = vsel %vm183_vm2, %v178_v14, 0 }
  0x8c   : > { %194 = vmatpush1.bf16.msra.mxu0 %v185_v15  ;;  %1411 = vmatpush3.bf16.msra.mxu1 %v191_v16  ;;  %v1558_v16 = vld [vmem:[%s1754_s1 + $0x30] sm:$0xff]  }
  0x8d   : > { %1336 = vmatprep.subr.msk.bf16.mxu0 %vm183_vm2, %v1329_v7  ;;  %1416 = vmatprep.subr.bf16.mxu1 %v1569_v0  ;;  %v387_v20 = vpop.permute.xlu0 %386  ;;  %v389_v21 = vpop.permute.xlu1 %388 }
  0x8e   : > { %v395_v26 = vsel %vm394_vm4, %v387_v20, %v389_v21 }
  0x8f   : > { %1333 = vmatmul.mubr.msk.bf16.vlgmr.msra.gmra.mrb[0].mxu0 %vm179_vm3, %v1552_v17  ;;  %1413 = vmatmul.mubr.msk.bf16.vlgmr.msra.gmra.mrb[0].mxu1 %vm179_vm3, %v1552_v17  ;;  %v402_v30 = vsel %vm183_vm2, %v395_v26, 0 }
  0x90   : > { %295 = vmatpush1.bf16.msra.mxu0 %v286_v18  ;;  %1417 = vmatpush3.bf16.msra.mxu1 %v292_v19 }
  0x91   : > { %v391_v22 = vpop.permute.xlu0 %390  ;;  %326 = vmatprep.mubr.bf16.mxu0 %v1570_v1  ;;  %1418 = vmatprep.mubr.msk.bf16.mxu1 %vm1571_vm0, %v1569_v0  ;;  %v393_v24 = vpop.permute.xlu1 %392 }
  0x92   : > { %v396_v23 = vsel %vm394_vm4, %v389_v21, %v391_v22  ;;  %1422 = vmatprep.subr.bf16.mxu1 %v1569_v0  ;;  %v397_v27 = vsel %vm394_vm4, %v391_v22, %v393_v24 }
  0x93   : > { %1342 = vmatprep.subr.msk.bf16.mxu0 %vm183_vm2, %v396_v23  ;;  %v408_v31 = vsel %vm183_vm2, %v397_v27, 0 }
  0x95   : > { %v509_v25 = vpop.permute.xlu0 %508  ;;  %v511_v29 = vpop.permute.xlu1 %510 }
  0x96   : > { %v517_v36 = vsel %vm516_vm5, %v509_v25, %v511_v29  ;;  %v1559_v25 = vld [vmem:[%s1754_s1 + $0x38] sm:$0xff]  }
  0x97   : > { %v524_v41 = vsel %vm183_vm2, %v517_v36, 0 }
  0x99   : > { %v513_v32 = vpop.permute.xlu0 %512  ;;  %v515_v35 = vpop.permute.xlu1 %514 }
  0x9a   : > { %v518_v33 = vsel %vm516_vm5, %v511_v29, %v513_v32  ;;  %v519_v37 = vsel %vm516_vm5, %v513_v32, %v515_v35 }
  0x9b   : > { %1337 = vmatmul.mubr.msk.bf16.vlgmr.msra.gmra.mrb[0].mxu0 %vm179_vm3, %v1553_v28  ;;  %1419 = vmatmul.mubr.msk.bf16.vlgmr.msra.gmra.mrb[0].mxu1 %vm179_vm3, %v1553_v28  ;;  %v530_v42 = vsel %vm183_vm2, %v519_v37, 0  ;;  %v1560_v28 = vld [vmem:[%s1754_s1 + $0x40] sm:$0xff]  }
  0x9c   : > { %411 = vmatpush1.bf16.msra.mxu0 %v402_v30  ;;  %1423 = vmatpush3.bf16.msra.mxu1 %v408_v31 }
  0x9d   : > { %1348 = vmatprep.subr.msk.bf16.mxu0 %vm183_vm2, %v518_v33  ;;  %442 = vmatprep.mubr.bf16.mxu0 %v1570_v1  ;;  %v631_v34 = vpop.permute.xlu0 %630  ;;  %v633_v39 = vpop.permute.xlu1 %632 }
  0x9e   : > { %1424 = vmatprep.mubr.msk.bf16.mxu1 %vm1571_vm0, %v1569_v0  ;;  %1428 = vmatprep.subr.bf16.mxu1 %v1569_v0  ;;  %v639_v46 = vsel %vm638_vm6, %v631_v34, %v633_v39 }
  0x9f   : > { %v646_v51 = vsel %vm183_vm2, %v639_v46, 0 }
  0xa1   : > { %v635_v40 = vpop.permute.xlu0 %634  ;;  %v637_v45 = vpop.permute.xlu1 %636 }
  0xa2   : > { %v640_v43 = vsel %vm638_vm6, %v633_v39, %v635_v40  ;;  %v641_v47 = vsel %vm638_vm6, %v635_v40, %v637_v45 }
  0xa3   : > { %v652_v52 = vsel %vm183_vm2, %v641_v47, 0 }
  0xa5   : > { %v753_v44 = vpop.permute.xlu0 %752  ;;  %v755_v49 = vpop.permute.xlu1 %754 }
  0xa6   : > { %v761_v56 = vsel %vm760_vm7, %v753_v44, %v755_v49 }
  0xa7   : > { %1343 = vmatmul.mubr.msk.bf16.vlgmr.msra.gmra.mrb[0].mxu0 %vm179_vm3, %v1554_v38  ;;  %1425 = vmatmul.mubr.msk.bf16.vlgmr.msra.gmra.mrb[0].mxu1 %vm179_vm3, %v1554_v38  ;;  %v768_v61 = vsel %vm183_vm2, %v761_v56, 0 }
  0xa8   : > { %533 = vmatpush1.bf16.msra.mxu0 %v524_v41  ;;  %1429 = vmatpush3.bf16.msra.mxu1 %v530_v42 }
  0xa9   : > { %1354 = vmatprep.subr.msk.bf16.mxu0 %vm183_vm2, %v640_v43  ;;  %564 = vmatprep.mubr.bf16.mxu0 %v1570_v1  ;;  %v757_v50 = vpop.permute.xlu0 %756  ;;  %v759_v55 = vpop.permute.xlu1 %758 }
  0xaa   : > { %1430 = vmatprep.mubr.msk.bf16.mxu1 %vm1571_vm0, %v1569_v0  ;;  %1434 = vmatprep.subr.bf16.mxu1 %v1569_v0  ;;  %v762_v53 = vsel %vm760_vm7, %v755_v49, %v757_v50  ;;  %v763_v57 = vsel %vm760_vm7, %v757_v50, %v759_v55 }
  0xab   : > { %v774_v62 = vsel %vm183_vm2, %v763_v57, 0 }
  0xad   : > { %v875_v54 = vpop.permute.xlu0 %874  ;;  %v877_v59 = vpop.permute.xlu1 %876 }
  0xae   : > { %v883_v4 = vsel %vm882_vm8, %v875_v54, %v877_v59 }
  0xaf   : > { %v890_v9 = vsel %vm183_vm2, %v883_v4, 0 }
  0xb1   : > { %v879_v60 = vpop.permute.xlu0 %878  ;;  %v881_v3 = vpop.permute.xlu1 %880 }
  0xb2   : > { %v884_v63 = vsel %vm882_vm8, %v877_v59, %v879_v60  ;;  %v885_v5 = vsel %vm882_vm8, %v879_v60, %v881_v3 }
  0xb3   : > { %1349 = vmatmul.mubr.msk.bf16.vlgmr.msra.gmra.mrb[0].mxu0 %vm179_vm3, %v1555_v48  ;;  %1431 = vmatmul.mubr.msk.bf16.vlgmr.msra.gmra.mrb[0].mxu1 %vm179_vm3, %v1555_v48  ;;  %v896_v10 = vsel %vm183_vm2, %v885_v5, 0 }
  0xb4   : > { %655 = vmatpush1.bf16.msra.mxu0 %v646_v51  ;;  %1435 = vmatpush3.bf16.msra.mxu1 %v652_v52 }
  0xb5   : > { %1360 = vmatprep.subr.msk.bf16.mxu0 %vm183_vm2, %v762_v53  ;;  %686 = vmatprep.mubr.bf16.mxu0 %v1570_v1  ;;  %v997_v2 = vpop.permute.xlu0 %996  ;;  %v999_v7 = vpop.permute.xlu1 %998 }
  0xb6   : > { %1436 = vmatprep.mubr.msk.bf16.mxu1 %vm1571_vm0, %v1569_v0  ;;  %1440 = vmatprep.subr.bf16.mxu1 %v1569_v0  ;;  %v1005_v14 = vsel %vm1004_vm9, %v997_v2, %v999_v7 }
  0xb7   : > { %v1012_v19 = vsel %vm183_vm2, %v1005_v14, 0 }
  0xb9   : > { %v1001_v8 = vpop.permute.xlu0 %1000  ;;  %v1003_v13 = vpop.permute.xlu1 %1002 }
  0xba   : > { %v1006_v11 = vsel %vm1004_vm9, %v999_v7, %v1001_v8  ;;  %v1007_v15 = vsel %vm1004_vm9, %v1001_v8, %v1003_v13 }
  0xbb   : > { %v1018_v20 = vsel %vm183_vm2, %v1007_v15, 0 }
  0xbd   : > { %v1119_v12 = vpop.permute.xlu0 %1118  ;;  %v1121_v17 = vpop.permute.xlu1 %1120 }
  0xbe   : > { %v1127_v23 = vsel %vm1126_vm10, %v1119_v12, %v1121_v17 }
  0xbf   : > { %1355 = vmatmul.mubr.msk.bf16.vlgmr.msra.gmra.mrb[0].mxu0 %vm179_vm3, %v1556_v58  ;;  %1437 = vmatmul.mubr.msk.bf16.vlgmr.msra.gmra.mrb[0].mxu1 %vm179_vm3, %v1556_v58  ;;  %v1134_v26 = vsel %vm183_vm2, %v1127_v23, 0 }
  0xc0   : > { %777 = vmatpush1.bf16.msra.mxu0 %v768_v61  ;;  %1441 = vmatpush3.bf16.msra.mxu1 %v774_v62 }
  0xc1   : > { %1366 = vmatprep.subr.msk.bf16.mxu0 %vm183_vm2, %v884_v63  ;;  %808 = vmatprep.mubr.bf16.mxu0 %v1570_v1  ;;  %v1123_v18 = vpop.permute.xlu0 %1122  ;;  %v1125_v22 = vpop.permute.xlu1 %1124 }
  0xc2   : > { %1442 = vmatprep.mubr.msk.bf16.mxu1 %vm1571_vm0, %v1569_v0  ;;  %1446 = vmatprep.subr.bf16.mxu1 %v1569_v0  ;;  %v1128_v21 = vsel %vm1126_vm10, %v1121_v17, %v1123_v18  ;;  %v1129_v24 = vsel %vm1126_vm10, %v1123_v18, %v1125_v22 }
  0xc3   : > { %v1140_v27 = vsel %vm183_vm2, %v1129_v24, 0 }
  0xcb   : > { %1361 = vmatmul.mubr.msk.bf16.vlgmr.msra.gmra.mrb[0].mxu0 %vm179_vm3, %v1557_v6  ;;  %1443 = vmatmul.mubr.msk.bf16.vlgmr.msra.gmra.mrb[0].mxu1 %vm179_vm3, %v1557_v6 }
  0xcc   : > { %899 = vmatpush1.bf16.msra.mxu0 %v890_v9  ;;  %1447 = vmatpush3.bf16.msra.mxu1 %v896_v10 }
  0xcd   : > { %1372 = vmatprep.subr.msk.bf16.mxu0 %vm183_vm2, %v1006_v11  ;;  %930 = vmatprep.mubr.bf16.mxu0 %v1570_v1 }
  0xce   : > { %1448 = vmatprep.mubr.msk.bf16.mxu1 %vm1571_vm0, %v1569_v0  ;;  %1452 = vmatprep.subr.bf16.mxu1 %v1569_v0 }
  0xd7   : > { %1367 = vmatmul.mubr.msk.bf16.vlgmr.msra.gmra.mrb[0].mxu0 %vm179_vm3, %v1558_v16  ;;  %1449 = vmatmul.mubr.msk.bf16.vlgmr.msra.gmra.mrb[0].mxu1 %vm179_vm3, %v1558_v16 }
  0xd8   : > { %1021 = vmatpush1.bf16.msra.mxu0 %v1012_v19  ;;  %1453 = vmatpush3.bf16.msra.mxu1 %v1018_v20 }
  0xd9   : > { %1378 = vmatprep.subr.msk.bf16.mxu0 %vm183_vm2, %v1128_v21  ;;  %1052 = vmatprep.mubr.bf16.mxu0 %v1570_v1 }
  0xda   : > { %1454 = vmatprep.mubr.msk.bf16.mxu1 %vm1571_vm0, %v1569_v0  ;;  %1458 = vmatprep.subr.bf16.mxu1 %v1569_v0 }
  0xe3   : > { %1373 = vmatmul.mubr.msk.bf16.vlgmr.msra.gmra.mrb[0].mxu0 %vm179_vm3, %v1559_v25  ;;  %1455 = vmatmul.mubr.msk.bf16.vlgmr.msra.gmra.mrb[0].mxu1 %vm179_vm3, %v1559_v25 }
  0xe4   : > { %1143 = vmatpush1.bf16.msra.mxu0 %v1134_v26  ;;  %1459 = vmatpush3.bf16.msra.mxu1 %v1140_v27 }
  0xe5   : > { %1174 = vmatprep.mubr.bf16.mxu0 %v1570_v1  ;;  %1460 = vmatprep.mubr.msk.bf16.mxu1 %vm1571_vm0, %v1569_v0 }
  0xef   : > { %1379 = vmatmul.mubr.msk.bf16.vlgmr.msra.gmra.mrb[0].mxu0 %vm179_vm3, %v1560_v28  ;;  %1461 = vmatmul.mubr.msk.bf16.vlgmr.msra.gmra.mrb[0].mxu1 %vm179_vm3, %v1560_v28 }
 0x1c2   : > { %v1176_v29 = vpop.f32.mrb[0].mxu0  ;;  %v1219_v30 = vpop.f32.mrb[0].mxu1 }
 0x1c3   : > { %v1232_v31 = vmax.f32 %v1176_v29, 0.0  ;;  %v1234_v32 = vmax.f32 %v1219_v30, 0.0  ;;  %v1178_v33 = vpop.f32.mrb[1].mxu0  ;;  %v1462_v34 = vpop.f32.mrb[1].mxu1 }
 0x1c4   : > { %v1233_v0 = vmax.f32 %v1178_v33, 0.0  ;;  %v1180_v1 = vpop.f32.mrb[2].mxu0  ;;  %v1222_v35 = vpop.f32.mrb[2].mxu1 }
 0x1c5   : > { %v1389_v36 = vpack.c.bf16 %v1234_v32, %v1234_v32  ;;  %v1235_v37 = vmax.f32 %v1180_v1, 0.0  ;;  %v1237_v38 = vmax.f32 %v1222_v35, 0.0  ;;  %v1182_v39 = vpop.f32.mrb[3].mxu0  ;;  %v1463_v40 = vpop.f32.mrb[3].mxu1 }
 0x1c6   : > { %v1388_v41 = vpack.c.bf16 %v1233_v0, %v1232_v31  ;;  %v1236_v42 = vmax.f32 %v1182_v39, 0.0 }
 0x1c7   : > { %1259 = vst [vmem:[%s143_s18 + $0x8] sm:$0xf] %v1389_v36  ;;  %v1391_v43 = vpack.c.bf16 %v1237_v38, %v1237_v38 }
 0x1c8   : > { %1258 = vst [vmem:[%s143_s18] sm:$0xff] %v1388_v41  ;;  %v1390_v44 = vpack.c.bf16 %v1236_v42, %v1235_v37 }
 0x1c9   : > { %1261 = vst [vmem:[%s143_s18 + $0x14] sm:$0xf] %v1391_v43 }
 0x1ca   : > { %1260 = vst [vmem:[%s143_s18 + $0xc] sm:$0xff] %v1390_v44 }
 0x1cb PF: > { %s12_s9 = sadd.s32 1, %s1567_s9  }
 0x1cc   : > { %p9_p4 = scmp.ge.s32.totalorder %s12_s9, 10  }
 0x1ce   :  { %11 = sbr.rel (!%p9_p4) target bundleno = 1 (0x1), region = 66 }

// kernel: view_transformer_forward.30
= control target key start
LH: loop header
LB: loop body
LE: loop exit
PB: predicated region body
PF: predicated region fallthrough
CT: control target
= control target key end

     0   :  { %s3419_s9 = smov 0   ;;  %s4064_s0 = inlined_call_operand.vmem [shape: bf16[8,8,1408], index: 0, kind: input, shape index: {}]   ;;  %s4065_s1 = inlined_call_operand.vmem [shape: bf16[9,16,8], index: 1, kind: input, shape index: {}]   ;;  %s4066_s2 = inlined_call_operand.vmem [shape: bf16[8,16,1280], index: 2, kind: output, shape index: {}]  }
   0x1 LB: > { %s3033_s10 = sadd.s32 4294967295, %s3393_s9   ;;  %p3037_p0 = scmp.ge.s32.totalorder %s3393_s9, 1  ;;  %s3393_s9 = sphi %s3419_s9, %s12_s9  }
   0x2   : > { %p112_p1 = scmp.lt.s32.totalorder %s3393_s9, 9 }
   0x4   : > { %p113_p2 = pnand %p3037_p0, %p112_p1 }
   0x5   : > { %p134_p3 = scmp.lt.s32.totalorder (!%p113_p2), %s3033_s10, 7  ;;  %v3395_v0 = vmov (!%p113_p2), 0   ;;  %vm226_vm0 = vcmask (!%p113_p2), 1043456   ;;  %s3396_s15 = smov (!%p113_p2), 127   ;;  %v3466_v13 = vld [vmem:[%s4065_s1] sm:$0xff] (!%p113_p2)   ;;  %vm222_vm1 = vcmask (!%p113_p2), 64512  }
   0x6   : > { %116 = sbr.rel (%p113_p2) target bundleno = 540 (0x21c), region = 28  ;;  %628 = vmatprep.mubr.bf16.mxu0 (!%p113_p2), %v3395_v0  ;;  %289 = vmatprep.mubr.bf16.mxu1 (!%p113_p2), %v3395_v0  ;;  %s3397_s18 = smov (!%p113_p2), 126   ;;  %vm211_vm2 = vcmask (!%p113_p2), 1039360   ;;  %vm755_vm3 = vcmask (!%p113_p2), 1031168   ;;  %v3606_v29 = vld [vmem:[%s4065_s1 + $0x8] sm:$0xff] (!%p113_p2)   ;;  %v3622_v35 = vld [vmem:[%s4065_s1 + $0x10] sm:$0xff] (!%p113_p2)  }
   0x7   : > { %s3398_s19 = smov (!%p113_p2), 94   ;;  %s3399_s20 = smov (!%p113_p2), 93   ;;  %vm1064_vm4 = vcmask (!%p113_p2), 769024   ;;  %vm1373_vm5 = vcmask (!%p113_p2), 760832   ;;  %vm1682_vm6 = vcmask (!%p113_p2), 752640   ;;  %vm1991_vm7 = vcmask (!%p113_p2), 490496  }
   0x8   : > { %s3400_s21 = smov (!%p113_p2), 92   ;;  %s3401_s22 = smov (!%p113_p2), 60   ;;  %vm2300_vm8 = vcmask (!%p113_p2), 482304   ;;  %vm2609_vm9 = vcmask (!%p113_p2), 474112  }
   0x9   : > { %s3402_s27 = smov (!%p113_p2), 59   ;;  %s3403_s28 = smov (!%p113_p2), 58  }
   0xd   : > { %s4068_s10 = smov (!%p134_p3, %s3033_s10), 7 }
   0xe   : > { %s3348_s11 = smul.u32 44, %s4068_s10 }
  0x10   : > { %s3435_s14 = scalar_lea.vmem %s4064_s0, %s3348_s11 }
  0x11   : > { %v146_v1 = vld [vmem:[%s3435_s14 + $0x8] sm:$0xff]  ;;  %v145_v2 = vld [vmem:[%s3435_s14] sm:$0xff]  ;;  %v147_v3 = vld [vmem:[%s3435_s14 + $0x10] sm:$0xff] }
  0x12   : > { %v3440_v4 = vcombine.low %v146_v1, %v146_v1  ;;  %v3442_v5 = vcombine.low %v145_v2, %v145_v2  ;;  %v3444_v6 = vcombine.low %v147_v3, %v147_v3  ;;  %v149_v7 = vld [vmem:[%s3435_s14 + $0x20] sm:$0xff]  ;;  %v3447_v8 = vcombine.high %v147_v3, %v147_v3  ;;  %v148_v16 = vld [vmem:[%s3435_s14 + $0x18] sm:$0xff]  ;;  %v3508_v18 = vld [vmem:[%s3435_s14 + $0x28] ss:$0 sps:$4 sm:$0xff]  }
  0x13   : > { %v3453_v9 = vcombine.high %v145_v2, %v145_v2  ;;  %v3457_v11 = vcombine.low %v149_v7, %v149_v7  ;;  %v3459_v12 = vcombine.high %v149_v7, %v149_v7  ;;  %v3483_v15 = vcombine.high %v146_v1, %v146_v1 }
  0x14   : > { %193 = vrot.lane.b32.xlu1 %v3440_v4, %s3396_s15  ;;  %189 = vrot.lane.b32.xlu0 %v3442_v5, %s3396_s15  ;;  %v493_v10 = vsel %vm226_vm0, %v3444_v6, 0  ;;  %v3497_v17 = vcombine.low %v148_v16, %v148_v16  ;;  %v3514_v19 = vcombine.high %v148_v16, %v148_v16 }
  0x15   : > { %3069 = vmatprep.subr.msk.bf16.mxu0 %vm226_vm0, %v3447_v8  ;;  %v505_v14 = vsel %vm226_vm0, %v3457_v11, 0 }
  0x16   : > { %597 = vmatpush1.bf16.msra.mxu0 %v493_v10 }
  0x17   : > { %3073 = vmatprep.subr.msk.bf16.mxu0 %vm226_vm0, %v3459_v12 }
  0x18   : > { %733 = vrot.lane.b32.xlu1 %v3442_v5, %s3397_s18  ;;  %191 = vrot.lane.b32.xlu0 %v3453_v9, %s3396_s15 }
  0x19   : > { %3070 = vmatmul.mubr.msk.bf16.vlgmr.msra.gmra.mrb[0].mxu0 %vm222_vm1, %v3466_v13 }
  0x1a   : > { %683 = vmatpush1.bf16.msra.mxu0 %v505_v14  ;;  %714 = vmatprep.mubr.bf16.mxu0 %v3395_v0  ;;  %v3715_v14 = vld [vmem:[%s4065_s1 + $0x18] sm:$0xff]  }
  0x1c   : > { %737 = vrot.lane.b32.xlu1 %v3440_v4, %s3397_s18  ;;  %735 = vrot.lane.b32.xlu0 %v3453_v9, %s3397_s18 }
  0x20   : > { %197 = vrot.lane.b32.xlu1 %v3444_v6, %s3396_s15  ;;  %195 = vrot.lane.b32.xlu0 %v3483_v15, %s3396_s15 }
  0x21   : > { %3074 = vmatmul.mubr.msk.bf16.vlgmr.msra.gmra.mrb[4].mxu0 %vm222_vm1, %v3466_v13 }
  0x22   : > { %831 = vmatprep.mubr.bf16.mxu0 %v3395_v0 }
  0x24   : > { %743 = vrot.lane.b32.xlu1 %v3447_v8, %s3397_s18  ;;  %741 = vrot.lane.b32.xlu0 %v3444_v6, %s3397_s18 }
  0x28   : > { %199 = vrot.lane.b32.xlu1 %v3447_v8, %s3396_s15  ;;  %745 = vrot.lane.b32.xlu0 %v3497_v17, %s3397_s18 }
  0x2c   : > { %749 = vrot.lane.b32.xlu1 %v3457_v11, %s3397_s18  ;;  %201 = vrot.lane.b32.xlu0 %v3497_v17, %s3396_s15 }
  0x30   : > { %753 = vrot.lane.b32.xlu1 %v3508_v18, %s3397_s18  ;;  %751 = vrot.lane.b32.xlu0 %v3459_v12, %s3397_s18 }
  0x34   : > { %205 = vrot.lane.b32.xlu1 %v3457_v11, %s3396_s15  ;;  %203 = vrot.lane.b32.xlu0 %v3514_v19, %s3396_s15 }
  0x38   : > { %1044 = vrot.lane.b32.xlu1 %v3453_v9, %s3398_s19  ;;  %1042 = vrot.lane.b32.xlu0 %v3442_v5, %s3398_s19 }
  0x3c   : > { %207 = vrot.lane.b32.xlu1 %v3459_v12, %s3396_s15  ;;  %1046 = vrot.lane.b32.xlu0 %v3440_v4, %s3398_s19 }
  0x40   : > { %1050 = vrot.lane.b32.xlu1 %v3444_v6, %s3398_s19  ;;  %209 = vrot.lane.b32.xlu0 %v3508_v18, %s3396_s15  ;;  %s3349_s15 = smul.u32 80, %s4068_s10 }
  0x44   : > { %1054 = vrot.lane.b32.xlu1 %v3497_v17, %s3398_s19  ;;  %1052 = vrot.lane.b32.xlu0 %v3447_v8, %s3398_s19 }
  0x48   : > { %1060 = vrot.lane.b32.xlu1 %v3459_v12, %s3398_s19  ;;  %1058 = vrot.lane.b32.xlu0 %v3457_v11, %s3398_s19 }
  0x4c   : > { %1351 = vrot.lane.b32.xlu1 %v3442_v5, %s3399_s20  ;;  %1062 = vrot.lane.b32.xlu0 %v3508_v18, %s3398_s19 }
  0x50   : > { %1355 = vrot.lane.b32.xlu1 %v3440_v4, %s3399_s20  ;;  %1353 = vrot.lane.b32.xlu0 %v3453_v9, %s3399_s20 }
  0x54   : > { %1361 = vrot.lane.b32.xlu1 %v3447_v8, %s3399_s20  ;;  %1359 = vrot.lane.b32.xlu0 %v3444_v6, %s3399_s20 }
  0x58   : > { %739 = vrot.lane.b32.xlu1 %v3483_v15, %s3397_s18  ;;  %1363 = vrot.lane.b32.xlu0 %v3497_v17, %s3399_s20 }
  0x5c   : > { %1369 = vrot.lane.b32.xlu1 %v3459_v12, %s3399_s20  ;;  %1367 = vrot.lane.b32.xlu0 %v3457_v11, %s3399_s20 }
  0x60   : > { %747 = vrot.lane.b32.xlu1 %v3514_v19, %s3397_s18  ;;  %1371 = vrot.lane.b32.xlu0 %v3508_v18, %s3399_s20  ;;  %s4049_s18 = scalar_lea.vmem %s4066_s2, %s3349_s15 }
  0x64   : > { %1662 = vrot.lane.b32.xlu1 %v3453_v9, %s3400_s21  ;;  %1660 = vrot.lane.b32.xlu0 %v3442_v5, %s3400_s21 }
  0x68   : > { %1048 = vrot.lane.b32.xlu1 %v3483_v15, %s3398_s19  ;;  %1664 = vrot.lane.b32.xlu0 %v3440_v4, %s3400_s21 }
  0x6c   : > { %1670 = vrot.lane.b32.xlu1 %v3447_v8, %s3400_s21  ;;  %1668 = vrot.lane.b32.xlu0 %v3444_v6, %s3400_s21 }
  0x70   : > { %1056 = vrot.lane.b32.xlu1 %v3514_v19, %s3398_s19  ;;  %1672 = vrot.lane.b32.xlu0 %v3497_v17, %s3400_s21 }
  0x74   : > { %1678 = vrot.lane.b32.xlu1 %v3459_v12, %s3400_s21  ;;  %1676 = vrot.lane.b32.xlu0 %v3457_v11, %s3400_s21 }
  0x78   : > { %1357 = vrot.lane.b32.xlu1 %v3483_v15, %s3399_s20  ;;  %1680 = vrot.lane.b32.xlu0 %v3508_v18, %s3400_s21 }
  0x7c   : > { %1971 = vrot.lane.b32.xlu1 %v3453_v9, %s3401_s22  ;;  %1969 = vrot.lane.b32.xlu0 %v3442_v5, %s3401_s22 }
  0x80   : > { %1365 = vrot.lane.b32.xlu1 %v3514_v19, %s3399_s20  ;;  %1973 = vrot.lane.b32.xlu0 %v3440_v4, %s3401_s22 }
  0x84   : > { %1979 = vrot.lane.b32.xlu1 %v3447_v8, %s3401_s22  ;;  %1977 = vrot.lane.b32.xlu0 %v3444_v6, %s3401_s22 }
  0x86   : > { %v194_v20 = vpop.permute.xlu1 %193  ;;  %v190_v21 = vpop.permute.xlu0 %189 }
  0x88   : > { %1666 = vrot.lane.b32.xlu1 %v3483_v15, %s3400_s21  ;;  %1981 = vrot.lane.b32.xlu0 %v3497_v17, %s3401_s22 }
  0x8a   : > { %v734_v22 = vpop.permute.xlu1 %733  ;;  %v192_v23 = vpop.permute.xlu0 %191 }
  0x8b   : > { %v213_v24 = vsel %vm211_vm2, %v192_v23, %v194_v20  ;;  %v212_v25 = vsel %vm211_vm2, %v190_v21, %v192_v23 }
  0x8c   : > { %1987 = vrot.lane.b32.xlu1 %v3459_v12, %s3401_s22  ;;  %3054 = vmatprep.subr.msk.bf16.mxu1 %vm226_vm0, %v213_v24  ;;  %v228_v26 = vsel %vm226_vm0, %v212_v25, 0  ;;  %v481_v25 = vsel %vm226_vm0, %v3442_v5, 0 }
  0x8d   : > { %258 = vmatpush1.bf16.msra.mxu1 %v228_v26  ;;  %1985 = vrot.lane.b32.xlu0 %v3457_v11, %s3401_s22 }
  0x8e   : > { %v3601_v27 = vpop.permute.xlu1 %737  ;;  %v736_v28 = vpop.permute.xlu0 %735 }
  0x8f   : > { %v756_v30 = vsel %vm755_vm3, %v734_v22, %v736_v28  ;;  %v757_v31 = vsel %vm755_vm3, %v736_v28, %v3601_v27 }
  0x90   : > { %v770_v32 = vsel %vm226_vm0, %v756_v30, 0  ;;  %1674 = vrot.lane.b32.xlu1 %v3514_v19, %s3400_s21  ;;  %3078 = vmatprep.subr.msk.bf16.mxu0 %vm226_vm0, %v757_v31  ;;  %v487_v31 = vsel %vm226_vm0, %v3440_v4, 0 }
  0x91   : > { %800 = vmatpush1.bf16.msra.mxu0 %v770_v32  ;;  %1989 = vrot.lane.b32.xlu0 %v3508_v18, %s3401_s22 }
  0x92   : > { %v198_v33 = vpop.permute.xlu1 %197  ;;  %v196_v34 = vpop.permute.xlu0 %195  ;;  %3055 = vmatmul.mubr.msk.bf16.vlgmr.msra.gmra.mrb[0].mxu1 %vm222_vm1, %v3606_v29 }
  0x93   : > { %v214_v36 = vsel %vm211_vm2, %v194_v20, %v196_v34  ;;  %v215_v37 = vsel %vm211_vm2, %v196_v34, %v198_v33  ;;  %332 = vmatprep.mubr.bf16.mxu1 %v3395_v0 }
  0x94   : > { %v234_v38 = vsel %vm226_vm0, %v214_v36, 0  ;;  %2280 = vrot.lane.b32.xlu1 %v3453_v9, %s3402_s27  ;;  %3056 = vmatprep.subr.msk.bf16.mxu1 %vm226_vm0, %v215_v37  ;;  %v499_v37 = vsel %vm226_vm0, %v3497_v17, 0 }
  0x95   : > { %301 = vmatpush1.bf16.msra.mxu1 %v234_v38  ;;  %2278 = vrot.lane.b32.xlu0 %v3442_v5, %s3402_s27 }
  0x96   : > { %v744_v39 = vpop.permute.xlu1 %743  ;;  %v3633_v40 = vpop.permute.xlu0 %741  ;;  %3079 = vmatmul.mubr.msk.bf16.vlgmr.msra.gmra.mrb[8].mxu0 %vm222_vm1, %v3622_v35 }
  0x97   : > { %917 = vmatprep.mubr.bf16.mxu0 %v3395_v0  ;;  %v760_v41 = vsel %vm755_vm3, %v3633_v40, %v744_v39 }
  0x98   : > { %1975 = vrot.lane.b32.xlu1 %v3483_v15, %s3401_s22  ;;  %v782_v45 = vsel %vm226_vm0, %v760_v41, 0 }
  0x99   : > { %2282 = vrot.lane.b32.xlu0 %v3440_v4, %s3402_s27 }
  0x9a   : > { %v200_v42 = vpop.permute.xlu1 %199  ;;  %v3644_v43 = vpop.permute.xlu0 %745  ;;  %3057 = vmatmul.mubr.msk.bf16.vlgmr.msra.gmra.mrb[4].mxu1 %vm222_vm1, %v3606_v29 }
  0x9b   : > { %v761_v44 = vsel %vm755_vm3, %v744_v39, %v3644_v43  ;;  %375 = vmatprep.mubr.bf16.mxu1 %v3395_v0  ;;  %v216_v46 = vsel %vm211_vm2, %v198_v33, %v200_v42 }
  0x9c   : > { %2288 = vrot.lane.b32.xlu1 %v3447_v8, %s3402_s27  ;;  %3082 = vmatprep.subr.msk.bf16.mxu0 %vm226_vm0, %v761_v44  ;;  %v240_v50 = vsel %vm226_vm0, %v216_v46, 0 }
  0x9d   : > { %886 = vmatpush1.bf16.msra.mxu0 %v782_v45  ;;  %2286 = vrot.lane.b32.xlu0 %v3444_v6, %s3402_s27 }
  0x9e   : > { %v3658_v47 = vpop.permute.xlu1 %749  ;;  %v202_v48 = vpop.permute.xlu0 %201 }
  0x9f   : > { %v217_v49 = vsel %vm211_vm2, %v200_v42, %v202_v48 }
  0xa0   : > { %1983 = vrot.lane.b32.xlu1 %v3514_v19, %s3401_s22  ;;  %3058 = vmatprep.subr.msk.bf16.mxu1 %vm226_vm0, %v217_v49 }
  0xa1   : > { %344 = vmatpush1.bf16.msra.mxu1 %v240_v50  ;;  %2290 = vrot.lane.b32.xlu0 %v3497_v17, %s3402_s27 }
  0xa2   : > { %v754_v51 = vpop.permute.xlu1 %753  ;;  %v752_v52 = vpop.permute.xlu0 %751  ;;  %3083 = vmatmul.mubr.msk.bf16.vlgmr.msra.gmra.mrb[0].mxu0 %vm222_vm1, %v3622_v35 }
  0xa3   : > { %v764_v53 = vsel %vm755_vm3, %v3658_v47, %v752_v52  ;;  %v765_v54 = vsel %vm755_vm3, %v752_v52, %v754_v51  ;;  %1003 = vmatprep.mubr.bf16.mxu0 %v3395_v0 }
  0xa4   : > { %v794_v55 = vsel %vm226_vm0, %v764_v53, 0  ;;  %2296 = vrot.lane.b32.xlu1 %v3459_v12, %s3402_s27  ;;  %3086 = vmatprep.subr.msk.bf16.mxu0 %vm226_vm0, %v765_v54 }
  0xa5   : > { %972 = vmatpush1.bf16.msra.mxu0 %v794_v55  ;;  %2294 = vrot.lane.b32.xlu0 %v3457_v11, %s3402_s27 }
  0xa6   : > { %v206_v56 = vpop.permute.xlu1 %205  ;;  %v204_v57 = vpop.permute.xlu0 %203  ;;  %3059 = vmatmul.mubr.msk.bf16.vlgmr.msra.gmra.mrb[8].mxu1 %vm222_vm1, %v3606_v29 }
  0xa7   : > { %v218_v58 = vsel %vm211_vm2, %v202_v48, %v204_v57  ;;  %v219_v59 = vsel %vm211_vm2, %v204_v57, %v206_v56  ;;  %418 = vmatprep.mubr.bf16.mxu1 %v3395_v0 }
  0xa8   : > { %v246_v60 = vsel %vm226_vm0, %v218_v58, 0  ;;  %2284 = vrot.lane.b32.xlu1 %v3483_v15, %s3402_s27  ;;  %3060 = vmatprep.subr.msk.bf16.mxu1 %vm226_vm0, %v219_v59 }
  0xa9   : > { %387 = vmatpush1.bf16.msra.mxu1 %v246_v60  ;;  %2298 = vrot.lane.b32.xlu0 %v3508_v18, %s3402_s27 }
  0xaa   : > { %v1045_v61 = vpop.permute.xlu1 %1044  ;;  %v1043_v62 = vpop.permute.xlu0 %1042  ;;  %3087 = vmatmul.mubr.msk.bf16.vlgmr.msra.gmra.mrb[4].mxu0 %vm222_vm1, %v3622_v35 }
  0xab   : > { %1140 = vmatprep.mubr.bf16.mxu0 %v3395_v0  ;;  %v1065_v63 = vsel %vm1064_vm4, %v1043_v62, %v1045_v61 }
  0xac   : > { %2589 = vrot.lane.b32.xlu1 %v3453_v9, %s3403_s28  ;;  %v1079_v7 = vsel %vm226_vm0, %v1065_v63, 0 }
  0xad   : > { %2587 = vrot.lane.b32.xlu0 %v3442_v5, %s3403_s28 }
  0xae   : > { %v208_v1 = vpop.permute.xlu1 %207  ;;  %v3698_v2 = vpop.permute.xlu0 %1046  ;;  %3061 = vmatmul.mubr.msk.bf16.vlgmr.msra.gmra.mrb[12].mxu1 %vm222_vm1, %v3606_v29 }
  0xaf   : > { %v1066_v3 = vsel %vm1064_vm4, %v1045_v61, %v3698_v2  ;;  %461 = vmatprep.mubr.bf16.mxu1 %v3395_v0  ;;  %v220_v10 = vsel %vm211_vm2, %v206_v56, %v208_v1 }
  0xb0   : > { %2292 = vrot.lane.b32.xlu1 %v3514_v19, %s3402_s27  ;;  %3091 = vmatprep.subr.msk.bf16.mxu0 %vm226_vm0, %v1066_v3  ;;  %v252_v22 = vsel %vm226_vm0, %v220_v10, 0 }
  0xb1   : > { %1109 = vmatpush1.bf16.msra.mxu0 %v1079_v7  ;;  %2591 = vrot.lane.b32.xlu0 %v3440_v4, %s3403_s28 }
  0xb2   : > { %v3717_v16 = vpop.permute.xlu1 %1050  ;;  %v210_v20 = vpop.permute.xlu0 %209 }
  0xb3   : > { %v221_v21 = vsel %vm211_vm2, %v208_v1, %v210_v20 }
  0xb4   : > { %2597 = vrot.lane.b32.xlu1 %v3447_v8, %s3403_s28  ;;  %3062 = vmatprep.subr.msk.bf16.mxu1 %vm226_vm0, %v221_v21 }
  0xb5   : > { %3092 = vmatmul.mubr.msk.bf16.vlgmr.msra.gmra.mrb[8].mxu0 %vm222_vm1, %v3715_v14  ;;  %430 = vmatpush1.bf16.msra.mxu1 %v252_v22 }
  0xb6   : > { %v3726_v23 = vpop.permute.xlu1 %1054  ;;  %2595 = vrot.lane.b32.xlu0 %v3444_v6, %s3403_s28  ;;  %v1053_v24 = vpop.permute.xlu0 %1052  ;;  %1226 = vmatprep.mubr.bf16.mxu0 %v3395_v0 }
  0xb7   : > { %v1069_v8 = vsel %vm1064_vm4, %v3717_v16, %v1053_v24  ;;  %v1070_v26 = vsel %vm1064_vm4, %v1053_v24, %v3726_v23  ;;  %3065 = vmatprep.subr.msk.bf16.mxu1 %vm226_vm0, %v3453_v9 }
  0xb8   : > { %v1091_v28 = vsel %vm226_vm0, %v1069_v8, 0  ;;  %2593 = vrot.lane.b32.xlu1 %v3483_v15, %s3403_s28  ;;  %3063 = vmatmul.mubr.msk.bf16.vlgmr.msra.gmra.mrb[16].mxu1 %vm222_vm1, %v3606_v29 }
  0xb9   : > { %3095 = vmatprep.subr.msk.bf16.mxu0 %vm226_vm0, %v1070_v26  ;;  %511 = vmatpush1.bf16.msra.mxu1 %v481_v25 }
  0xba   : > { %1195 = vmatpush1.bf16.msra.mxu0 %v1091_v28  ;;  %v1061_v5 = vpop.permute.xlu1 %1060  ;;  %2599 = vrot.lane.b32.xlu0 %v3497_v17, %s3403_s28  ;;  %v3747_v6 = vpop.permute.xlu0 %1058 }
  0xbb   : > { %542 = vmatprep.mubr.bf16.mxu1 %v3395_v0  ;;  %3067 = vmatprep.subr.msk.bf16.mxu1 %vm226_vm0, %v3483_v15  ;;  %v1073_v9 = vsel %vm1064_vm4, %v3747_v6, %v1061_v5 }
  0xbc   : > { %2605 = vrot.lane.b32.xlu1 %v3459_v12, %s3403_s28  ;;  %v1103_v12 = vsel %vm226_vm0, %v1073_v9, 0 }
  0xbd   : > { %3096 = vmatmul.mubr.msk.bf16.vlgmr.msra.gmra.mrb[0].mxu0 %vm222_vm1, %v3715_v14 }
  0xbe   : > { %v1352_v29 = vpop.permute.xlu1 %1351  ;;  %2603 = vrot.lane.b32.xlu0 %v3457_v11, %s3403_s28  ;;  %v1063_v30 = vpop.permute.xlu0 %1062  ;;  %1312 = vmatprep.mubr.bf16.mxu0 %v3395_v0 }
  0xbf   : > { %v1074_v15 = vsel %vm1064_vm4, %v1061_v5, %v1063_v30 }
  0xc0   : > { %2601 = vrot.lane.b32.xlu1 %v3514_v19, %s3403_s28  ;;  %3066 = vmatmul.mubr.msk.bf16.vlgmr.msra.gmra.mrb[0].mxu1 %vm222_vm1, %v3466_v13 }
  0xc1   : > { %3099 = vmatprep.subr.msk.bf16.mxu0 %vm226_vm0, %v1074_v15  ;;  %554 = vmatpush1.bf16.msra.mxu1 %v487_v31 }
  0xc2   : > { %1281 = vmatpush1.bf16.msra.mxu0 %v1103_v12  ;;  %v3770_v11 = vpop.permute.xlu1 %1355  ;;  %2607 = vrot.lane.b32.xlu0 %v3508_v18, %s3403_s28  ;;  %v1354_v4 = vpop.permute.xlu0 %1353 }
  0xc3   : > { %v1374_v32 = vsel %vm1373_vm5, %v1352_v29, %v1354_v4  ;;  %v1375_v33 = vsel %vm1373_vm5, %v1354_v4, %v3770_v11  ;;  %585 = vmatprep.mubr.bf16.mxu1 %v3395_v0  ;;  %3071 = vmatprep.subr.msk.bf16.mxu1 %vm226_vm0, %v3514_v19  ;;  %v3796_v19 = vld [vmem:[%s4065_s1 + $0x20] sm:$0xff]  }
  0xc4   : > { %v1388_v34 = vsel %vm226_vm0, %v1374_v32, 0  ;;  %3104 = vmatprep.subr.msk.bf16.mxu0 %vm226_vm0, %v1375_v33 }
  0xc5   : > { %3100 = vmatmul.mubr.msk.bf16.vlgmr.msra.gmra.mrb[4].mxu0 %vm222_vm1, %v3715_v14 }
  0xc6   : > { %v1362_v36 = vpop.permute.xlu1 %1361  ;;  %1418 = vmatpush1.bf16.msra.mxu0 %v1388_v34  ;;  %v3784_v18 = vpop.permute.xlu0 %1359  ;;  %1449 = vmatprep.mubr.bf16.mxu0 %v3395_v0 }
  0xc7   : > { %v1378_v38 = vsel %vm1373_vm5, %v3784_v18, %v1362_v36 }
  0xc8   : > { %3068 = vmatmul.mubr.msk.bf16.vlgmr.msra.gmra.mrb[4].mxu1 %vm222_vm1, %v3466_v13  ;;  %v1400_v17 = vsel %vm226_vm0, %v1378_v38, 0  ;;  %v3920_v38 = vld [vmem:[%s4065_s1 + $0x30] sm:$0xff]  }
  0xc9   : > { %640 = vmatpush1.bf16.msra.mxu1 %v499_v37  ;;  %671 = vmatprep.mubr.bf16.mxu1 %v3395_v0 }
  0xca   : > { %v740_v39 = vpop.permute.xlu1 %739  ;;  %v3799_v41 = vpop.permute.xlu0 %1363 }
  0xcb   : > { %v759_v42 = vsel %vm755_vm3, %v740_v39, %v3633_v40  ;;  %v1379_v44 = vsel %vm1373_vm5, %v1362_v36, %v3799_v41  ;;  %v758_v45 = vsel %vm755_vm3, %v3601_v27, %v740_v39 }
  0xcc   : > { %3080 = vmatprep.subr.msk.bf16.mxu1 %vm226_vm0, %v759_v42  ;;  %3108 = vmatprep.subr.msk.bf16.mxu0 %vm226_vm0, %v1379_v44  ;;  %v776_v40 = vsel %vm226_vm0, %v758_v45, 0 }
  0xcd   : > { %3105 = vmatmul.mubr.msk.bf16.vlgmr.msra.gmra.mrb[8].mxu0 %vm222_vm1, %v3796_v19 }
  0xce   : > { %v1370_v46 = vpop.permute.xlu1 %1369  ;;  %1504 = vmatpush1.bf16.msra.mxu0 %v1400_v17  ;;  %v3812_v48 = vpop.permute.xlu0 %1367  ;;  %1535 = vmatprep.mubr.bf16.mxu0 %v3395_v0 }
  0xcf   : > { %v1382_v49 = vsel %vm1373_vm5, %v3812_v48, %v1370_v46 }
  0xd0   : > { %3072 = vmatmul.mubr.msk.bf16.vlgmr.msra.gmra.mrb[12].mxu1 %vm222_vm1, %v3466_v13  ;;  %v1412_v51 = vsel %vm226_vm0, %v1382_v49, 0 }
  0xd1   : > { %843 = vmatpush1.bf16.msra.mxu1 %v776_v40  ;;  %874 = vmatprep.mubr.bf16.mxu1 %v3395_v0 }
  0xd2   : > { %v748_v27 = vpop.permute.xlu1 %747  ;;  %v1372_v50 = vpop.permute.xlu0 %1371 }
  0xd3   : > { %v763_v52 = vsel %vm755_vm3, %v748_v27, %v3658_v47  ;;  %v1383_v53 = vsel %vm1373_vm5, %v1370_v46, %v1372_v50  ;;  %v762_v54 = vsel %vm755_vm3, %v3644_v43, %v748_v27 }
  0xd4   : > { %3084 = vmatprep.subr.msk.bf16.mxu1 %vm226_vm0, %v763_v52  ;;  %3112 = vmatprep.subr.msk.bf16.mxu0 %vm226_vm0, %v1383_v53  ;;  %v788_v47 = vsel %vm226_vm0, %v762_v54, 0 }
  0xd5   : > { %3109 = vmatmul.mubr.msk.bf16.vlgmr.msra.gmra.mrb[0].mxu0 %vm222_vm1, %v3796_v19 }
  0xd6   : > { %v1663_v13 = vpop.permute.xlu1 %1662  ;;  %1590 = vmatpush1.bf16.msra.mxu0 %v1412_v51  ;;  %v1661_v55 = vpop.permute.xlu0 %1660  ;;  %1621 = vmatprep.mubr.bf16.mxu0 %v3395_v0 }
  0xd7   : > { %v1683_v56 = vsel %vm1682_vm6, %v1661_v55, %v1663_v13 }
  0xd8   : > { %3081 = vmatmul.mubr.msk.bf16.vlgmr.msra.gmra.mrb[4].mxu1 %vm222_vm1, %v3622_v35  ;;  %v1697_v58 = vsel %vm226_vm0, %v1683_v56, 0 }
  0xd9   : > { %929 = vmatpush1.bf16.msra.mxu1 %v788_v47  ;;  %960 = vmatprep.mubr.bf16.mxu1 %v3395_v0 }
  0xda   : > { %v1049_v43 = vpop.permute.xlu1 %1048  ;;  %v3837_v57 = vpop.permute.xlu0 %1664 }
  0xdb   : > { %v1068_v59 = vsel %vm1064_vm4, %v1049_v43, %v3717_v16  ;;  %v1684_v60 = vsel %vm1682_vm6, %v1663_v13, %v3837_v57  ;;  %v1067_v61 = vsel %vm1064_vm4, %v3698_v2, %v1049_v43  ;;  %v3861_v2 = vld [vmem:[%s4065_s1 + $0x28] sm:$0xff]  }
  0xdc   : > { %3093 = vmatprep.subr.msk.bf16.mxu1 %vm226_vm0, %v1068_v59  ;;  %3117 = vmatprep.subr.msk.bf16.mxu0 %vm226_vm0, %v1684_v60  ;;  %v1085_v1 = vsel %vm226_vm0, %v1067_v61, 0 }
  0xdd   : > { %3113 = vmatmul.mubr.msk.bf16.vlgmr.msra.gmra.mrb[4].mxu0 %vm222_vm1, %v3796_v19 }
  0xde   : > { %v1671_v62 = vpop.permute.xlu1 %1670  ;;  %1727 = vmatpush1.bf16.msra.mxu0 %v1697_v58  ;;  %v3850_v63 = vpop.permute.xlu0 %1668  ;;  %1758 = vmatprep.mubr.bf16.mxu0 %v3395_v0 }
  0xdf   : > { %v1687_v3 = vsel %vm1682_vm6, %v3850_v63, %v1671_v62 }
  0xe0   : > { %3085 = vmatmul.mubr.msk.bf16.vlgmr.msra.gmra.mrb[12].mxu1 %vm222_vm1, %v3622_v35  ;;  %v1709_v16 = vsel %vm226_vm0, %v1687_v3, 0  ;;  %v3971_v3 = vld [vmem:[%s4065_s1 + $0x38] sm:$0xff]  }
  0xe1   : > { %1152 = vmatpush1.bf16.msra.mxu1 %v1085_v1  ;;  %1183 = vmatprep.mubr.bf16.mxu1 %v3395_v0 }
  0xe2   : > { %v1057_v7 = vpop.permute.xlu1 %1056  ;;  %v3864_v10 = vpop.permute.xlu0 %1672 }
  0xe3   : > { %v1072_v20 = vsel %vm1064_vm4, %v1057_v7, %v3747_v6  ;;  %v1688_v21 = vsel %vm1682_vm6, %v1671_v62, %v3864_v10  ;;  %v1071_v35 = vsel %vm1064_vm4, %v3726_v23, %v1057_v7 }
  0xe4   : > { %3097 = vmatprep.subr.msk.bf16.mxu1 %vm226_vm0, %v1072_v20  ;;  %3121 = vmatprep.subr.msk.bf16.mxu0 %vm226_vm0, %v1688_v21  ;;  %v1097_v25 = vsel %vm226_vm0, %v1071_v35, 0 }
  0xe5   : > { %3118 = vmatmul.mubr.msk.bf16.vlgmr.msra.gmra.mrb[8].mxu0 %vm222_vm1, %v3861_v2 }
  0xe6   : > { %v1679_v22 = vpop.permute.xlu1 %1678  ;;  %1813 = vmatpush1.bf16.msra.mxu0 %v1709_v16  ;;  %v3877_v24 = vpop.permute.xlu0 %1676  ;;  %1844 = vmatprep.mubr.bf16.mxu0 %v3395_v0 }
  0xe7   : > { %v1691_v8 = vsel %vm1682_vm6, %v3877_v24, %v1679_v22 }
  0xe8   : > { %3094 = vmatmul.mubr.msk.bf16.vlgmr.msra.gmra.mrb[4].mxu1 %vm222_vm1, %v3715_v14  ;;  %v1721_v28 = vsel %vm226_vm0, %v1691_v8, 0 }
  0xe9   : > { %1238 = vmatpush1.bf16.msra.mxu1 %v1097_v25  ;;  %1269 = vmatprep.mubr.bf16.mxu1 %v3395_v0 }
  0xea   : > { %v1358_v23 = vpop.permute.xlu1 %1357  ;;  %v1681_v26 = vpop.permute.xlu0 %1680 }
  0xeb   : > { %v1377_v5 = vsel %vm1373_vm5, %v1358_v23, %v3784_v18  ;;  %v1692_v6 = vsel %vm1682_vm6, %v1679_v22, %v1681_v26  ;;  %v1376_v9 = vsel %vm1373_vm5, %v3770_v11, %v1358_v23 }
  0xec   : > { %3106 = vmatprep.subr.msk.bf16.mxu1 %vm226_vm0, %v1377_v5  ;;  %3125 = vmatprep.subr.msk.bf16.mxu0 %vm226_vm0, %v1692_v6  ;;  %v1394_v31 = vsel %vm226_vm0, %v1376_v9, 0 }
  0xed   : > { %3122 = vmatmul.mubr.msk.bf16.vlgmr.msra.gmra.mrb[0].mxu0 %vm222_vm1, %v3861_v2 }
  0xee   : > { %v1972_v29 = vpop.permute.xlu1 %1971  ;;  %1899 = vmatpush1.bf16.msra.mxu0 %v1721_v28  ;;  %v1970_v30 = vpop.permute.xlu0 %1969  ;;  %1930 = vmatprep.mubr.bf16.mxu0 %v3395_v0 }
  0xef   : > { %v1992_v15 = vsel %vm1991_vm7, %v1970_v30, %v1972_v29 }
  0xf0   : > { %3098 = vmatmul.mubr.msk.bf16.vlgmr.msra.gmra.mrb[12].mxu1 %vm222_vm1, %v3715_v14  ;;  %v2006_v4 = vsel %vm226_vm0, %v1992_v15, 0 }
  0xf1   : > { %1461 = vmatpush1.bf16.msra.mxu1 %v1394_v31  ;;  %1492 = vmatprep.mubr.bf16.mxu1 %v3395_v0 }
  0xf2   : > { %v1366_v12 = vpop.permute.xlu1 %1365  ;;  %v1974_v11 = vpop.permute.xlu0 %1973 }
  0xf3   : > { %v1381_v32 = vsel %vm1373_vm5, %v1366_v12, %v3812_v48  ;;  %v1993_v33 = vsel %vm1991_vm7, %v1972_v29, %v1974_v11  ;;  %v1380_v34 = vsel %vm1373_vm5, %v3799_v41, %v1366_v12 }
  0xf4   : > { %3110 = vmatprep.subr.msk.bf16.mxu1 %vm226_vm0, %v1381_v32  ;;  %3130 = vmatprep.subr.msk.bf16.mxu0 %vm226_vm0, %v1993_v33  ;;  %v1406_v18 = vsel %vm226_vm0, %v1380_v34, 0 }
  0xf5   : > { %3126 = vmatmul.mubr.msk.bf16.vlgmr.msra.gmra.mrb[4].mxu0 %vm222_vm1, %v3861_v2 }
  0xf6   : > { %v1980_v14 = vpop.permute.xlu1 %1979  ;;  %2036 = vmatpush1.bf16.msra.mxu0 %v2006_v4  ;;  %v1978_v36 = vpop.permute.xlu0 %1977  ;;  %2067 = vmatprep.mubr.bf16.mxu0 %v3395_v0 }
  0xf7   : > { %v1996_v37 = vsel %vm1991_vm7, %v1978_v36, %v1980_v14 }
  0xf8   : > { %3107 = vmatmul.mubr.msk.bf16.vlgmr.msra.gmra.mrb[4].mxu1 %vm222_vm1, %v3796_v19  ;;  %v2018_v17 = vsel %vm226_vm0, %v1996_v37, 0  ;;  %v3386_v37 = vld [vmem:[%s4065_s1 + $0x40] sm:$0xff]  }
  0xf9   : > { %1547 = vmatpush1.bf16.msra.mxu1 %v1406_v18  ;;  %1578 = vmatprep.mubr.bf16.mxu1 %v3395_v0 }
  0xfa   : > { %v1667_v39 = vpop.permute.xlu1 %1666  ;;  %v1982_v41 = vpop.permute.xlu0 %1981 }
  0xfb   : > { %v1686_v42 = vsel %vm1682_vm6, %v1667_v39, %v3850_v63  ;;  %v1997_v44 = vsel %vm1991_vm7, %v1980_v14, %v1982_v41  ;;  %v1685_v45 = vsel %vm1682_vm6, %v3837_v57, %v1667_v39 }
  0xfc   : > { %3119 = vmatprep.subr.msk.bf16.mxu1 %vm226_vm0, %v1686_v42  ;;  %3134 = vmatprep.subr.msk.bf16.mxu0 %vm226_vm0, %v1997_v44  ;;  %v1703_v40 = vsel %vm226_vm0, %v1685_v45, 0 }
  0xfd   : > { %3131 = vmatmul.mubr.msk.bf16.vlgmr.msra.gmra.mrb[8].mxu0 %vm222_vm1, %v3920_v38 }
  0xfe   : > { %v1988_v46 = vpop.permute.xlu1 %1987  ;;  %2122 = vmatpush1.bf16.msra.mxu0 %v2018_v17  ;;  %2153 = vmatprep.mubr.bf16.mxu0 %v3395_v0 }
  0xff   : > { %v1986_v48 = vpop.permute.xlu0 %1985 }
 0x100   : > { %v2000_v49 = vsel %vm1991_vm7, %v1986_v48, %v1988_v46  ;;  %3111 = vmatmul.mubr.msk.bf16.vlgmr.msra.gmra.mrb[12].mxu1 %vm222_vm1, %v3796_v19 }
 0x101   : > { %1770 = vmatpush1.bf16.msra.mxu1 %v1703_v40  ;;  %1801 = vmatprep.mubr.bf16.mxu1 %v3395_v0  ;;  %v2030_v50 = vsel %vm226_vm0, %v2000_v49, 0 }
 0x102   : > { %v1675_v27 = vpop.permute.xlu1 %1674 }
 0x103   : > { %v1690_v51 = vsel %vm1682_vm6, %v1675_v27, %v3877_v24  ;;  %v1990_v52 = vpop.permute.xlu0 %1989  ;;  %v1689_v54 = vsel %vm1682_vm6, %v3864_v10, %v1675_v27 }
 0x104   : > { %v2001_v53 = vsel %vm1991_vm7, %v1988_v46, %v1990_v52  ;;  %3123 = vmatprep.subr.msk.bf16.mxu1 %vm226_vm0, %v1690_v51  ;;  %v1715_v55 = vsel %vm226_vm0, %v1689_v54, 0 }
 0x105   : > { %3135 = vmatmul.mubr.msk.bf16.vlgmr.msra.gmra.mrb[0].mxu0 %vm222_vm1, %v3920_v38  ;;  %3138 = vmatprep.subr.msk.bf16.mxu0 %vm226_vm0, %v2001_v53 }
 0x106   : > { %v2281_v19 = vpop.permute.xlu1 %2280  ;;  %2208 = vmatpush1.bf16.msra.mxu0 %v2030_v50  ;;  %2239 = vmatprep.mubr.bf16.mxu0 %v3395_v0 }
 0x107   : > { %v2279_v13 = vpop.permute.xlu0 %2278 }
 0x108   : > { %v2301_v47 = vsel %vm2300_vm8, %v2279_v13, %v2281_v19  ;;  %3120 = vmatmul.mubr.msk.bf16.vlgmr.msra.gmra.mrb[4].mxu1 %vm222_vm1, %v3861_v2 }
 0x109   : > { %1856 = vmatpush1.bf16.msra.mxu1 %v1715_v55  ;;  %1887 = vmatprep.mubr.bf16.mxu1 %v3395_v0  ;;  %v2315_v43 = vsel %vm226_vm0, %v2301_v47, 0 }
 0x10a   : > { %v1976_v56 = vpop.permute.xlu1 %1975 }
 0x10b   : > { %v1995_v57 = vsel %vm1991_vm7, %v1976_v56, %v1978_v36  ;;  %v2283_v58 = vpop.permute.xlu0 %2282  ;;  %v1994_v60 = vsel %vm1991_vm7, %v1974_v11, %v1976_v56 }
 0x10c   : > { %v2302_v59 = vsel %vm2300_vm8, %v2281_v19, %v2283_v58  ;;  %3132 = vmatprep.subr.msk.bf16.mxu1 %vm226_vm0, %v1995_v57  ;;  %v2012_v63 = vsel %vm226_vm0, %v1994_v60, 0 }
 0x10d   : > { %3139 = vmatmul.mubr.msk.bf16.vlgmr.msra.gmra.mrb[4].mxu0 %vm222_vm1, %v3920_v38  ;;  %3143 = vmatprep.subr.msk.bf16.mxu0 %vm226_vm0, %v2302_v59 }
 0x10e   : > { %v2289_v61 = vpop.permute.xlu1 %2288  ;;  %2345 = vmatpush1.bf16.msra.mxu0 %v2315_v43  ;;  %2376 = vmatprep.mubr.bf16.mxu0 %v3395_v0 }
 0x10f   : > { %v2287_v62 = vpop.permute.xlu0 %2286 }
 0x110   : > { %v2305_v1 = vsel %vm2300_vm8, %v2287_v62, %v2289_v61  ;;  %3124 = vmatmul.mubr.msk.bf16.vlgmr.msra.gmra.mrb[12].mxu1 %vm222_vm1, %v3861_v2 }
 0x111   : > { %2079 = vmatpush1.bf16.msra.mxu1 %v2012_v63  ;;  %2110 = vmatprep.mubr.bf16.mxu1 %v3395_v0  ;;  %v2327_v10 = vsel %vm226_vm0, %v2305_v1, 0 }
 0x112   : > { %v1984_v7 = vpop.permute.xlu1 %1983 }
 0x113   : > { %v1999_v16 = vsel %vm1991_vm7, %v1984_v7, %v1986_v48  ;;  %v2291_v20 = vpop.permute.xlu0 %2290  ;;  %v1998_v2 = vsel %vm1991_vm7, %v1982_v41, %v1984_v7 }
 0x114   : > { %v2306_v21 = vsel %vm2300_vm8, %v2289_v61, %v2291_v20  ;;  %3136 = vmatprep.subr.msk.bf16.mxu1 %vm226_vm0, %v1999_v16  ;;  %v2024_v24 = vsel %vm226_vm0, %v1998_v2, 0 }
 0x115   : > { %3144 = vmatmul.mubr.msk.bf16.vlgmr.msra.gmra.mrb[8].mxu0 %vm222_vm1, %v3971_v3  ;;  %3147 = vmatprep.subr.msk.bf16.mxu0 %vm226_vm0, %v2306_v21 }
 0x116   : > { %v2297_v35 = vpop.permute.xlu1 %2296  ;;  %2431 = vmatpush1.bf16.msra.mxu0 %v2327_v10  ;;  %2462 = vmatprep.mubr.bf16.mxu0 %v3395_v0 }
 0x117   : > { %v2295_v22 = vpop.permute.xlu0 %2294 }
 0x118   : > { %v2309_v25 = vsel %vm2300_vm8, %v2295_v22, %v2297_v35  ;;  %3133 = vmatmul.mubr.msk.bf16.vlgmr.msra.gmra.mrb[4].mxu1 %vm222_vm1, %v3920_v38 }
 0x119   : > { %2165 = vmatpush1.bf16.msra.mxu1 %v2024_v24  ;;  %2196 = vmatprep.mubr.bf16.mxu1 %v3395_v0  ;;  %v2339_v23 = vsel %vm226_vm0, %v2309_v25, 0 }
 0x11a   : > { %v2285_v8 = vpop.permute.xlu1 %2284 }
 0x11b   : > { %v2304_v26 = vsel %vm2300_vm8, %v2285_v8, %v2287_v62  ;;  %v2299_v28 = vpop.permute.xlu0 %2298  ;;  %v2303_v6 = vsel %vm2300_vm8, %v2283_v58, %v2285_v8 }
 0x11c   : > { %v2310_v5 = vsel %vm2300_vm8, %v2297_v35, %v2299_v28  ;;  %3145 = vmatprep.subr.msk.bf16.mxu1 %vm226_vm0, %v2304_v26  ;;  %v2321_v30 = vsel %vm226_vm0, %v2303_v6, 0 }
 0x11d   : > { %3148 = vmatmul.mubr.msk.bf16.vlgmr.msra.gmra.mrb[0].mxu0 %vm222_vm1, %v3971_v3  ;;  %3151 = vmatprep.subr.msk.bf16.mxu0 %vm226_vm0, %v2310_v5 }
 0x11e   : > { %v2590_v9 = vpop.permute.xlu1 %2589  ;;  %2517 = vmatpush1.bf16.msra.mxu0 %v2339_v23  ;;  %2548 = vmatprep.mubr.bf16.mxu0 %v3395_v0 }
 0x11f   : > { %v2588_v29 = vpop.permute.xlu0 %2587 }
 0x120   : > { %v2610_v31 = vsel %vm2609_vm9, %v2588_v29, %v2590_v9  ;;  %3137 = vmatmul.mubr.msk.bf16.vlgmr.msra.gmra.mrb[12].mxu1 %vm222_vm1, %v3920_v38 }
 0x121   : > { %2388 = vmatpush1.bf16.msra.mxu1 %v2321_v30  ;;  %2419 = vmatprep.mubr.bf16.mxu1 %v3395_v0  ;;  %v2624_v12 = vsel %vm226_vm0, %v2610_v31, 0 }
 0x122   : > { %v2293_v15 = vpop.permute.xlu1 %2292 }
 0x123   : > { %v2308_v11 = vsel %vm2300_vm8, %v2293_v15, %v2295_v22  ;;  %v2592_v4 = vpop.permute.xlu0 %2591  ;;  %v2307_v33 = vsel %vm2300_vm8, %v2291_v20, %v2293_v15 }
 0x124   : > { %v2611_v32 = vsel %vm2609_vm9, %v2590_v9, %v2592_v4  ;;  %3149 = vmatprep.subr.msk.bf16.mxu1 %vm226_vm0, %v2308_v11  ;;  %v2333_v14 = vsel %vm226_vm0, %v2307_v33, 0 }
 0x125   : > { %3152 = vmatmul.mubr.msk.bf16.vlgmr.msra.gmra.mrb[4].mxu0 %vm222_vm1, %v3971_v3  ;;  %3156 = vmatprep.subr.msk.bf16.mxu0 %vm226_vm0, %v2611_v32 }
 0x126   : > { %v2598_v34 = vpop.permute.xlu1 %2597  ;;  %2654 = vmatpush1.bf16.msra.mxu0 %v2624_v12  ;;  %2685 = vmatprep.mubr.bf16.mxu0 %v3395_v0 }
 0x128   : > { %v2596_v36 = vpop.permute.xlu0 %2595  ;;  %3146 = vmatmul.mubr.msk.bf16.vlgmr.msra.gmra.mrb[4].mxu1 %vm222_vm1, %v3971_v3 }
 0x129   : > { %v2614_v18 = vsel %vm2609_vm9, %v2596_v36, %v2598_v34  ;;  %2474 = vmatpush1.bf16.msra.mxu1 %v2333_v14  ;;  %2505 = vmatprep.mubr.bf16.mxu1 %v3395_v0 }
 0x12a   : > { %v2594_v38 = vpop.permute.xlu1 %2593  ;;  %v2636_v41 = vsel %vm226_vm0, %v2614_v18, 0 }
 0x12b   : > { %v2613_v39 = vsel %vm2609_vm9, %v2594_v38, %v2596_v36  ;;  %v2612_v42 = vsel %vm2609_vm9, %v2592_v4, %v2594_v38 }
 0x12c   : > { %v2600_v17 = vpop.permute.xlu0 %2599  ;;  %3158 = vmatprep.subr.msk.bf16.mxu1 %vm226_vm0, %v2613_v39  ;;  %v2630_v46 = vsel %vm226_vm0, %v2612_v42, 0 }
 0x12d   : > { %3157 = vmatmul.mubr.msk.bf16.vlgmr.msra.gmra.mrb[8].mxu0 %vm222_vm1, %v3386_v37  ;;  %v2615_v44 = vsel %vm2609_vm9, %v2598_v34, %v2600_v17 }
 0x12e   : > { %v2606_v45 = vpop.permute.xlu1 %2605  ;;  %3160 = vmatprep.subr.msk.bf16.mxu0 %vm226_vm0, %v2615_v44  ;;  %2771 = vmatprep.mubr.bf16.mxu0 %v3395_v0 }
 0x12f   : > { %2740 = vmatpush1.bf16.msra.mxu0 %v2636_v41 }
 0x130   : > { %v2604_v48 = vpop.permute.xlu0 %2603  ;;  %3150 = vmatmul.mubr.msk.bf16.vlgmr.msra.gmra.mrb[12].mxu1 %vm222_vm1, %v3971_v3 }
 0x131   : > { %v2618_v40 = vsel %vm2609_vm9, %v2604_v48, %v2606_v45  ;;  %2697 = vmatpush1.bf16.msra.mxu1 %v2630_v46  ;;  %2728 = vmatprep.mubr.bf16.mxu1 %v3395_v0 }
 0x132   : > { %v2602_v49 = vpop.permute.xlu1 %2601  ;;  %v2648_v50 = vsel %vm226_vm0, %v2618_v40, 0 }
 0x133   : > { %v2617_v27 = vsel %vm2609_vm9, %v2602_v49, %v2604_v48  ;;  %v2616_v52 = vsel %vm2609_vm9, %v2600_v17, %v2602_v49 }
 0x134   : > { %v2608_v51 = vpop.permute.xlu0 %2607  ;;  %3162 = vmatprep.subr.msk.bf16.mxu1 %vm226_vm0, %v2617_v27  ;;  %v2642_v54 = vsel %vm226_vm0, %v2616_v52, 0 }
 0x135   : > { %3161 = vmatmul.mubr.msk.bf16.vlgmr.msra.gmra.mrb[0].mxu0 %vm222_vm1, %v3386_v37  ;;  %v2619_v53 = vsel %vm2609_vm9, %v2606_v45, %v2608_v51 }
 0x136   : > { %3164 = vmatprep.subr.msk.bf16.mxu0 %vm226_vm0, %v2619_v53  ;;  %2857 = vmatprep.mubr.bf16.mxu0 %v3395_v0 }
 0x137   : > { %2826 = vmatpush1.bf16.msra.mxu0 %v2648_v50 }
 0x138   : > { %3159 = vmatmul.mubr.msk.bf16.vlgmr.msra.gmra.mrb[4].mxu1 %vm222_vm1, %v3386_v37 }
 0x139   : > { %2783 = vmatpush1.bf16.msra.mxu1 %v2642_v54  ;;  %2814 = vmatprep.mubr.bf16.mxu1 %v3395_v0 }
 0x13d   : > { %3165 = vmatmul.mubr.msk.bf16.vlgmr.msra.gmra.mrb[4].mxu0 %vm222_vm1, %v3386_v37 }
 0x140   : > { %3163 = vmatmul.mubr.msk.bf16.vlgmr.msra.gmra.mrb[12].mxu1 %vm222_vm1, %v3386_v37 }
 0x179   : > { %v377_v19 = vpop.f32.mrb[8].mxu1 }
 0x17a   : > { %v379_v13 = vpop.f32.mrb[9].mxu1 }
 0x17b   : > { %v381_v55 = vpop.f32.mrb[10].mxu1 }
 0x17c   : > { %v383_v47 = vpop.f32.mrb[11].mxu1 }
 0x18b   : > { %v463_v56 = vpop.f32.mrb[16].mxu1 }
 0x18c   : > { %v465_v43 = vpop.f32.mrb[17].mxu1 }
 0x18d   : > { %v467_v57 = vpop.f32.mrb[18].mxu1 }
 0x18e   : > { %v469_v58 = vpop.f32.mrb[19].mxu1 }
 0x193   : > { %v544_v59 = vpop.f32.mrb[0].mxu1 }
 0x194   : > { %v546_v60 = vpop.f32.mrb[1].mxu1 }
 0x195   : > { %v548_v61 = vpop.f32.mrb[2].mxu1 }
 0x196   : > { %v550_v62 = vpop.f32.mrb[3].mxu1 }
 0x200   : > { %v2687_v63 = vpop.f32.mrb[8].mxu0 }
 0x201   : > { %v3188_v1 = vadd.f32 %v2687_v63, %v544_v59  ;;  %v2689_v0 = vpop.f32.mrb[9].mxu0 }
 0x202   : > { %v3189_v3 = vadd.f32 %v2689_v0, %v546_v60  ;;  %v2691_v7 = vpop.f32.mrb[10].mxu0 }
 0x203   : > { %v2888_v10 = vmax.f32 %v3188_v1, 0.0  ;;  %v3190_v16 = vadd.f32 %v2691_v7, %v548_v61  ;;  %v2693_v20 = vpop.f32.mrb[11].mxu0 }
 0x204   : > { %v2889_v21 = vmax.f32 %v3189_v3, 0.0  ;;  %v3191_v2 = vadd.f32 %v2693_v20, %v550_v62 }
 0x205   : > { %v2898_v35 = vmax.f32 %v3190_v16, 0.0 }
 0x206   : > { %v3178_v22 = vpack.c.bf16 %v2889_v21, %v2888_v10  ;;  %v2899_v24 = vmax.f32 %v3191_v2, 0.0 }
 0x208   : > { %2968 = vst [vmem:[%s4049_s18] sm:$0xff] %v3178_v22  ;;  %v3183_v25 = vpack.c.bf16 %v2899_v24, %v2898_v35  ;;  %v2773_v8 = vpop.f32.mrb[0].mxu0 }
 0x209   : > { %v3192_v23 = vadd.f32 %v2773_v8, %v377_v19  ;;  %v2775_v26 = vpop.f32.mrb[1].mxu0 }
 0x20a   : > { %2973 = vst [vmem:[%s4049_s18 + $0x28] sm:$0xff] %v3183_v25  ;;  %v3193_v28 = vadd.f32 %v2775_v26, %v379_v13  ;;  %v2777_v5 = vpop.f32.mrb[2].mxu0 }
 0x20b   : > { %v2892_v6 = vmax.f32 %v3192_v23, 0.0  ;;  %v3194_v9 = vadd.f32 %v2777_v5, %v381_v55  ;;  %v2779_v29 = vpop.f32.mrb[3].mxu0  ;;  %v2730_v30 = vpop.f32.mrb[4].mxu1 }
 0x20c   : > { %v2893_v31 = vmax.f32 %v3193_v28, 0.0  ;;  %v3195_v15 = vadd.f32 %v2779_v29, %v383_v47  ;;  %v2890_v12 = vmax.f32 %v2730_v30, 0.0  ;;  %v2732_v11 = vpop.f32.mrb[5].mxu1 }
 0x20d   : > { %v2902_v4 = vmax.f32 %v3194_v9, 0.0  ;;  %v2891_v32 = vmax.f32 %v2732_v11, 0.0  ;;  %v2734_v33 = vpop.f32.mrb[6].mxu1 }
 0x20e   : > { %v3180_v34 = vpack.c.bf16 %v2893_v31, %v2892_v6  ;;  %v2903_v14 = vmax.f32 %v3195_v15, 0.0  ;;  %v2900_v36 = vmax.f32 %v2734_v33, 0.0  ;;  %v2736_v18 = vpop.f32.mrb[7].mxu1 }
 0x20f   : > { %v3179_v37 = vpack.c.bf16 %v2891_v32, %v2890_v12  ;;  %v2901_v38 = vmax.f32 %v2736_v18, 0.0 }
 0x210   : > { %2970 = vst [vmem:[%s4049_s18 + $0x10] sm:$0xff] %v3180_v34  ;;  %v3185_v39 = vpack.c.bf16 %v2903_v14, %v2902_v4  ;;  %v2859_v41 = vpop.f32.mrb[4].mxu0 }
 0x211   : > { %2969 = vst [vmem:[%s4049_s18 + $0x8] sm:$0xff] %v3179_v37  ;;  %v3184_v17 = vpack.c.bf16 %v2901_v38, %v2900_v36  ;;  %v3196_v42 = vadd.f32 %v2859_v41, %v463_v56  ;;  %v2861_v44 = vpop.f32.mrb[5].mxu0 }
 0x212   : > { %2975 = vst [vmem:[%s4049_s18 + $0x38] sm:$0xff] %v3185_v39  ;;  %v3197_v45 = vadd.f32 %v2861_v44, %v465_v43  ;;  %v2863_v46 = vpop.f32.mrb[6].mxu0 }
 0x213   : > { %2974 = vst [vmem:[%s4049_s18 + $0x30] sm:$0xff] %v3184_v17  ;;  %v2896_v48 = vmax.f32 %v3196_v42, 0.0  ;;  %v3198_v40 = vadd.f32 %v2863_v46, %v467_v57  ;;  %v2865_v49 = vpop.f32.mrb[7].mxu0  ;;  %v2816_v27 = vpop.f32.mrb[12].mxu1 }
 0x214   : > { %v2897_v50 = vmax.f32 %v3197_v45, 0.0  ;;  %v3199_v51 = vadd.f32 %v2865_v49, %v469_v58  ;;  %v2894_v52 = vmax.f32 %v2816_v27, 0.0  ;;  %v2818_v53 = vpop.f32.mrb[13].mxu1 }
 0x215   : > { %v2906_v54 = vmax.f32 %v3198_v40, 0.0  ;;  %v2895_v19 = vmax.f32 %v2818_v53, 0.0  ;;  %v2820_v13 = vpop.f32.mrb[14].mxu1 }
 0x216   : > { %v3182_v55 = vpack.c.bf16 %v2897_v50, %v2896_v48  ;;  %v2907_v47 = vmax.f32 %v3199_v51, 0.0  ;;  %v2904_v56 = vmax.f32 %v2820_v13, 0.0  ;;  %v2822_v43 = vpop.f32.mrb[15].mxu1 }
 0x217   : > { %v3181_v59 = vpack.c.bf16 %v2895_v19, %v2894_v52  ;;  %v2905_v60 = vmax.f32 %v2822_v43, 0.0 }
 0x218   : > { %2972 = vst [vmem:[%s4049_s18 + $0x20] sm:$0xff] %v3182_v55  ;;  %v3187_v57 = vpack.c.bf16 %v2907_v47, %v2906_v54 }
 0x219   : > { %2971 = vst [vmem:[%s4049_s18 + $0x18] sm:$0xff] %v3181_v59  ;;  %v3186_v61 = vpack.c.bf16 %v2905_v60, %v2904_v56 }
 0x21a   : > { %2977 = vst [vmem:[%s4049_s18 + $0x48] sm:$0xff] %v3187_v57 }
 0x21b   : > { %2976 = vst [vmem:[%s4049_s18 + $0x40] sm:$0xff] %v3186_v61 }
 0x21c PF: > { %s12_s9 = sadd.s32 1, %s3393_s9  }
 0x21d   : > { %p9_p4 = scmp.ge.s32.totalorder %s12_s9, 10  }
 0x21f   :  { %11 = sbr.rel (!%p9_p4) target bundleno = 1 (0x1), region = 66 }

// kernel: view_transformer_forward.31
= control target key start
LH: loop header
LB: loop body
LE: loop exit
PB: predicated region body
PF: predicated region fallthrough
CT: control target
= control target key end

     0   :  { %s3329_s9 = smov 0   ;;  %s3984_s0 = inlined_call_operand.vmem [shape: bf16[8,8,1408], index: 0, kind: input, shape index: {}]   ;;  %s3985_s1 = inlined_call_operand.vmem [shape: bf16[9,16,8], index: 1, kind: input, shape index: {}]   ;;  %s3986_s2 = inlined_call_operand.vmem [shape: f32[8,16,1280], index: 2, kind: output, shape index: {}]  }
   0x1 LB: > { %s2963_s10 = sadd.s32 4294967295, %s3303_s9   ;;  %p2967_p0 = scmp.ge.s32.totalorder %s3303_s9, 1  ;;  %s3303_s9 = sphi %s3329_s9, %s12_s9  }
   0x2   : > { %p112_p1 = scmp.lt.s32.totalorder %s3303_s9, 9 }
   0x4   : > { %p113_p2 = pnand %p2967_p0, %p112_p1 }
   0x5   : > { %p134_p3 = scmp.lt.s32.totalorder (!%p113_p2), %s2963_s10, 7  ;;  %v3305_v0 = vmov (!%p113_p2), 0   ;;  %vm226_vm0 = vcmask (!%p113_p2), 1043456   ;;  %s3306_s15 = smov (!%p113_p2), 127   ;;  %v3376_v13 = vld [vmem:[%s3985_s1] sm:$0xff] (!%p113_p2)   ;;  %vm222_vm1 = vcmask (!%p113_p2), 64512  }
   0x6   : > { %116 = sbr.rel (%p113_p2) target bundleno = 536 (0x218), region = 28  ;;  %628 = vmatprep.mubr.bf16.mxu0 (!%p113_p2), %v3305_v0  ;;  %289 = vmatprep.mubr.bf16.mxu1 (!%p113_p2), %v3305_v0  ;;  %s3307_s18 = smov (!%p113_p2), 126   ;;  %vm211_vm2 = vcmask (!%p113_p2), 1039360   ;;  %vm755_vm3 = vcmask (!%p113_p2), 1031168   ;;  %v3516_v29 = vld [vmem:[%s3985_s1 + $0x8] sm:$0xff] (!%p113_p2)   ;;  %v3532_v35 = vld [vmem:[%s3985_s1 + $0x10] sm:$0xff] (!%p113_p2)  }
   0x7   : > { %s3308_s19 = smov (!%p113_p2), 94   ;;  %s3309_s20 = smov (!%p113_p2), 93   ;;  %vm1064_vm4 = vcmask (!%p113_p2), 769024   ;;  %vm1373_vm5 = vcmask (!%p113_p2), 760832   ;;  %vm1682_vm6 = vcmask (!%p113_p2), 752640   ;;  %vm1991_vm7 = vcmask (!%p113_p2), 490496  }
   0x8   : > { %s3310_s21 = smov (!%p113_p2), 92   ;;  %s3311_s22 = smov (!%p113_p2), 60   ;;  %vm2300_vm8 = vcmask (!%p113_p2), 482304   ;;  %vm2609_vm9 = vcmask (!%p113_p2), 474112  }
   0x9   : > { %s3312_s27 = smov (!%p113_p2), 59   ;;  %s3313_s28 = smov (!%p113_p2), 58  }
   0xd   : > { %s3988_s10 = smov (!%p134_p3, %s2963_s10), 7 }
   0xe   : > { %s3258_s11 = smul.u32 44, %s3988_s10 }
  0x10   : > { %s3345_s14 = scalar_lea.vmem %s3984_s0, %s3258_s11 }
  0x11   : > { %v146_v1 = vld [vmem:[%s3345_s14 + $0x8] sm:$0xff]  ;;  %v145_v2 = vld [vmem:[%s3345_s14] sm:$0xff]  ;;  %v147_v3 = vld [vmem:[%s3345_s14 + $0x10] sm:$0xff] }
  0x12   : > { %v3350_v4 = vcombine.low %v146_v1, %v146_v1  ;;  %v3352_v5 = vcombine.low %v145_v2, %v145_v2  ;;  %v3354_v6 = vcombine.low %v147_v3, %v147_v3  ;;  %v149_v7 = vld [vmem:[%s3345_s14 + $0x20] sm:$0xff]  ;;  %v3357_v8 = vcombine.high %v147_v3, %v147_v3  ;;  %v148_v16 = vld [vmem:[%s3345_s14 + $0x18] sm:$0xff]  ;;  %v3418_v18 = vld [vmem:[%s3345_s14 + $0x28] ss:$0 sps:$4 sm:$0xff]  }
  0x13   : > { %v3363_v9 = vcombine.high %v145_v2, %v145_v2  ;;  %v3367_v11 = vcombine.low %v149_v7, %v149_v7  ;;  %v3369_v12 = vcombine.high %v149_v7, %v149_v7  ;;  %v3393_v15 = vcombine.high %v146_v1, %v146_v1 }
  0x14   : > { %193 = vrot.lane.b32.xlu1 %v3350_v4, %s3306_s15  ;;  %189 = vrot.lane.b32.xlu0 %v3352_v5, %s3306_s15  ;;  %v493_v10 = vsel %vm226_vm0, %v3354_v6, 0  ;;  %v3407_v17 = vcombine.low %v148_v16, %v148_v16  ;;  %v3424_v19 = vcombine.high %v148_v16, %v148_v16 }
  0x15   : > { %2999 = vmatprep.subr.msk.bf16.mxu0 %vm226_vm0, %v3357_v8  ;;  %v505_v14 = vsel %vm226_vm0, %v3367_v11, 0 }
  0x16   : > { %597 = vmatpush1.bf16.msra.mxu0 %v493_v10 }
  0x17   : > { %3003 = vmatprep.subr.msk.bf16.mxu0 %vm226_vm0, %v3369_v12 }
  0x18   : > { %733 = vrot.lane.b32.xlu1 %v3352_v5, %s3307_s18  ;;  %191 = vrot.lane.b32.xlu0 %v3363_v9, %s3306_s15 }
  0x19   : > { %3000 = vmatmul.mubr.msk.bf16.vlgmr.msra.gmra.mrb[0].mxu0 %vm222_vm1, %v3376_v13 }
  0x1a   : > { %683 = vmatpush1.bf16.msra.mxu0 %v505_v14  ;;  %714 = vmatprep.mubr.bf16.mxu0 %v3305_v0  ;;  %v3625_v14 = vld [vmem:[%s3985_s1 + $0x18] sm:$0xff]  }
  0x1c   : > { %737 = vrot.lane.b32.xlu1 %v3350_v4, %s3307_s18  ;;  %735 = vrot.lane.b32.xlu0 %v3363_v9, %s3307_s18 }
  0x20   : > { %197 = vrot.lane.b32.xlu1 %v3354_v6, %s3306_s15  ;;  %195 = vrot.lane.b32.xlu0 %v3393_v15, %s3306_s15 }
  0x21   : > { %3004 = vmatmul.mubr.msk.bf16.vlgmr.msra.gmra.mrb[4].mxu0 %vm222_vm1, %v3376_v13 }
  0x22   : > { %831 = vmatprep.mubr.bf16.mxu0 %v3305_v0 }
  0x24   : > { %743 = vrot.lane.b32.xlu1 %v3357_v8, %s3307_s18  ;;  %741 = vrot.lane.b32.xlu0 %v3354_v6, %s3307_s18 }
  0x28   : > { %199 = vrot.lane.b32.xlu1 %v3357_v8, %s3306_s15  ;;  %745 = vrot.lane.b32.xlu0 %v3407_v17, %s3307_s18 }
  0x2c   : > { %749 = vrot.lane.b32.xlu1 %v3367_v11, %s3307_s18  ;;  %201 = vrot.lane.b32.xlu0 %v3407_v17, %s3306_s15 }
  0x30   : > { %753 = vrot.lane.b32.xlu1 %v3418_v18, %s3307_s18  ;;  %751 = vrot.lane.b32.xlu0 %v3369_v12, %s3307_s18 }
  0x34   : > { %205 = vrot.lane.b32.xlu1 %v3367_v11, %s3306_s15  ;;  %203 = vrot.lane.b32.xlu0 %v3424_v19, %s3306_s15 }
  0x38   : > { %1044 = vrot.lane.b32.xlu1 %v3363_v9, %s3308_s19  ;;  %1042 = vrot.lane.b32.xlu0 %v3352_v5, %s3308_s19 }
  0x3c   : > { %207 = vrot.lane.b32.xlu1 %v3369_v12, %s3306_s15  ;;  %1046 = vrot.lane.b32.xlu0 %v3350_v4, %s3308_s19 }
  0x40   : > { %1050 = vrot.lane.b32.xlu1 %v3354_v6, %s3308_s19  ;;  %209 = vrot.lane.b32.xlu0 %v3418_v18, %s3306_s15  ;;  %s3259_s15 = smul.u32 160, %s3988_s10 }
  0x44   : > { %1054 = vrot.lane.b32.xlu1 %v3407_v17, %s3308_s19  ;;  %1052 = vrot.lane.b32.xlu0 %v3357_v8, %s3308_s19 }
  0x48   : > { %1060 = vrot.lane.b32.xlu1 %v3369_v12, %s3308_s19  ;;  %1058 = vrot.lane.b32.xlu0 %v3367_v11, %s3308_s19 }
  0x4c   : > { %1351 = vrot.lane.b32.xlu1 %v3352_v5, %s3309_s20  ;;  %1062 = vrot.lane.b32.xlu0 %v3418_v18, %s3308_s19 }
  0x50   : > { %1355 = vrot.lane.b32.xlu1 %v3350_v4, %s3309_s20  ;;  %1353 = vrot.lane.b32.xlu0 %v3363_v9, %s3309_s20 }
  0x54   : > { %1361 = vrot.lane.b32.xlu1 %v3357_v8, %s3309_s20  ;;  %1359 = vrot.lane.b32.xlu0 %v3354_v6, %s3309_s20 }
  0x58   : > { %739 = vrot.lane.b32.xlu1 %v3393_v15, %s3307_s18  ;;  %1363 = vrot.lane.b32.xlu0 %v3407_v17, %s3309_s20 }
  0x5c   : > { %1369 = vrot.lane.b32.xlu1 %v3369_v12, %s3309_s20  ;;  %1367 = vrot.lane.b32.xlu0 %v3367_v11, %s3309_s20 }
  0x60   : > { %747 = vrot.lane.b32.xlu1 %v3424_v19, %s3307_s18  ;;  %1371 = vrot.lane.b32.xlu0 %v3418_v18, %s3309_s20  ;;  %s3959_s18 = scalar_lea.vmem %s3986_s2, %s3259_s15 }
  0x64   : > { %1662 = vrot.lane.b32.xlu1 %v3363_v9, %s3310_s21  ;;  %1660 = vrot.lane.b32.xlu0 %v3352_v5, %s3310_s21 }
  0x68   : > { %1048 = vrot.lane.b32.xlu1 %v3393_v15, %s3308_s19  ;;  %1664 = vrot.lane.b32.xlu0 %v3350_v4, %s3310_s21 }
  0x6c   : > { %1670 = vrot.lane.b32.xlu1 %v3357_v8, %s3310_s21  ;;  %1668 = vrot.lane.b32.xlu0 %v3354_v6, %s3310_s21 }
  0x70   : > { %1056 = vrot.lane.b32.xlu1 %v3424_v19, %s3308_s19  ;;  %1672 = vrot.lane.b32.xlu0 %v3407_v17, %s3310_s21 }
  0x74   : > { %1678 = vrot.lane.b32.xlu1 %v3369_v12, %s3310_s21  ;;  %1676 = vrot.lane.b32.xlu0 %v3367_v11, %s3310_s21 }
  0x78   : > { %1357 = vrot.lane.b32.xlu1 %v3393_v15, %s3309_s20  ;;  %1680 = vrot.lane.b32.xlu0 %v3418_v18, %s3310_s21 }
  0x7c   : > { %1971 = vrot.lane.b32.xlu1 %v3363_v9, %s3311_s22  ;;  %1969 = vrot.lane.b32.xlu0 %v3352_v5, %s3311_s22 }
  0x80   : > { %1365 = vrot.lane.b32.xlu1 %v3424_v19, %s3309_s20  ;;  %1973 = vrot.lane.b32.xlu0 %v3350_v4, %s3311_s22 }
  0x84   : > { %1979 = vrot.lane.b32.xlu1 %v3357_v8, %s3311_s22  ;;  %1977 = vrot.lane.b32.xlu0 %v3354_v6, %s3311_s22 }
  0x86   : > { %v194_v20 = vpop.permute.xlu1 %193  ;;  %v190_v21 = vpop.permute.xlu0 %189 }
  0x88   : > { %1666 = vrot.lane.b32.xlu1 %v3393_v15, %s3310_s21  ;;  %1981 = vrot.lane.b32.xlu0 %v3407_v17, %s3311_s22 }
  0x8a   : > { %v734_v22 = vpop.permute.xlu1 %733  ;;  %v192_v23 = vpop.permute.xlu0 %191 }
  0x8b   : > { %v213_v24 = vsel %vm211_vm2, %v192_v23, %v194_v20  ;;  %v212_v25 = vsel %vm211_vm2, %v190_v21, %v192_v23 }
  0x8c   : > { %1987 = vrot.lane.b32.xlu1 %v3369_v12, %s3311_s22  ;;  %2984 = vmatprep.subr.msk.bf16.mxu1 %vm226_vm0, %v213_v24  ;;  %v228_v26 = vsel %vm226_vm0, %v212_v25, 0  ;;  %v481_v25 = vsel %vm226_vm0, %v3352_v5, 0 }
  0x8d   : > { %258 = vmatpush1.bf16.msra.mxu1 %v228_v26  ;;  %1985 = vrot.lane.b32.xlu0 %v3367_v11, %s3311_s22 }
  0x8e   : > { %v3511_v27 = vpop.permute.xlu1 %737  ;;  %v736_v28 = vpop.permute.xlu0 %735 }
  0x8f   : > { %v756_v30 = vsel %vm755_vm3, %v734_v22, %v736_v28  ;;  %v757_v31 = vsel %vm755_vm3, %v736_v28, %v3511_v27 }
  0x90   : > { %v770_v32 = vsel %vm226_vm0, %v756_v30, 0  ;;  %1674 = vrot.lane.b32.xlu1 %v3424_v19, %s3310_s21  ;;  %3008 = vmatprep.subr.msk.bf16.mxu0 %vm226_vm0, %v757_v31  ;;  %v487_v31 = vsel %vm226_vm0, %v3350_v4, 0 }
  0x91   : > { %800 = vmatpush1.bf16.msra.mxu0 %v770_v32  ;;  %1989 = vrot.lane.b32.xlu0 %v3418_v18, %s3311_s22 }
  0x92   : > { %v198_v33 = vpop.permute.xlu1 %197  ;;  %v196_v34 = vpop.permute.xlu0 %195  ;;  %2985 = vmatmul.mubr.msk.bf16.vlgmr.msra.gmra.mrb[0].mxu1 %vm222_vm1, %v3516_v29 }
  0x93   : > { %v214_v36 = vsel %vm211_vm2, %v194_v20, %v196_v34  ;;  %v215_v37 = vsel %vm211_vm2, %v196_v34, %v198_v33  ;;  %332 = vmatprep.mubr.bf16.mxu1 %v3305_v0 }
  0x94   : > { %v234_v38 = vsel %vm226_vm0, %v214_v36, 0  ;;  %2280 = vrot.lane.b32.xlu1 %v3363_v9, %s3312_s27  ;;  %2986 = vmatprep.subr.msk.bf16.mxu1 %vm226_vm0, %v215_v37  ;;  %v499_v37 = vsel %vm226_vm0, %v3407_v17, 0 }
  0x95   : > { %301 = vmatpush1.bf16.msra.mxu1 %v234_v38  ;;  %2278 = vrot.lane.b32.xlu0 %v3352_v5, %s3312_s27 }
  0x96   : > { %v744_v39 = vpop.permute.xlu1 %743  ;;  %v3543_v40 = vpop.permute.xlu0 %741  ;;  %3009 = vmatmul.mubr.msk.bf16.vlgmr.msra.gmra.mrb[8].mxu0 %vm222_vm1, %v3532_v35 }
  0x97   : > { %917 = vmatprep.mubr.bf16.mxu0 %v3305_v0  ;;  %v760_v41 = vsel %vm755_vm3, %v3543_v40, %v744_v39 }
  0x98   : > { %1975 = vrot.lane.b32.xlu1 %v3393_v15, %s3311_s22  ;;  %v782_v45 = vsel %vm226_vm0, %v760_v41, 0 }
  0x99   : > { %2282 = vrot.lane.b32.xlu0 %v3350_v4, %s3312_s27 }
  0x9a   : > { %v200_v42 = vpop.permute.xlu1 %199  ;;  %v3554_v43 = vpop.permute.xlu0 %745  ;;  %2987 = vmatmul.mubr.msk.bf16.vlgmr.msra.gmra.mrb[4].mxu1 %vm222_vm1, %v3516_v29 }
  0x9b   : > { %v761_v44 = vsel %vm755_vm3, %v744_v39, %v3554_v43  ;;  %375 = vmatprep.mubr.bf16.mxu1 %v3305_v0  ;;  %v216_v46 = vsel %vm211_vm2, %v198_v33, %v200_v42 }
  0x9c   : > { %2288 = vrot.lane.b32.xlu1 %v3357_v8, %s3312_s27  ;;  %3012 = vmatprep.subr.msk.bf16.mxu0 %vm226_vm0, %v761_v44  ;;  %v240_v50 = vsel %vm226_vm0, %v216_v46, 0 }
  0x9d   : > { %886 = vmatpush1.bf16.msra.mxu0 %v782_v45  ;;  %2286 = vrot.lane.b32.xlu0 %v3354_v6, %s3312_s27 }
  0x9e   : > { %v3568_v47 = vpop.permute.xlu1 %749  ;;  %v202_v48 = vpop.permute.xlu0 %201 }
  0x9f   : > { %v217_v49 = vsel %vm211_vm2, %v200_v42, %v202_v48 }
  0xa0   : > { %1983 = vrot.lane.b32.xlu1 %v3424_v19, %s3311_s22  ;;  %2988 = vmatprep.subr.msk.bf16.mxu1 %vm226_vm0, %v217_v49 }
  0xa1   : > { %344 = vmatpush1.bf16.msra.mxu1 %v240_v50  ;;  %2290 = vrot.lane.b32.xlu0 %v3407_v17, %s3312_s27 }
  0xa2   : > { %v754_v51 = vpop.permute.xlu1 %753  ;;  %v752_v52 = vpop.permute.xlu0 %751  ;;  %3013 = vmatmul.mubr.msk.bf16.vlgmr.msra.gmra.mrb[0].mxu0 %vm222_vm1, %v3532_v35 }
  0xa3   : > { %v764_v53 = vsel %vm755_vm3, %v3568_v47, %v752_v52  ;;  %v765_v54 = vsel %vm755_vm3, %v752_v52, %v754_v51  ;;  %1003 = vmatprep.mubr.bf16.mxu0 %v3305_v0 }
  0xa4   : > { %v794_v55 = vsel %vm226_vm0, %v764_v53, 0  ;;  %2296 = vrot.lane.b32.xlu1 %v3369_v12, %s3312_s27  ;;  %3016 = vmatprep.subr.msk.bf16.mxu0 %vm226_vm0, %v765_v54 }
  0xa5   : > { %972 = vmatpush1.bf16.msra.mxu0 %v794_v55  ;;  %2294 = vrot.lane.b32.xlu0 %v3367_v11, %s3312_s27 }
  0xa6   : > { %v206_v56 = vpop.permute.xlu1 %205  ;;  %v204_v57 = vpop.permute.xlu0 %203  ;;  %2989 = vmatmul.mubr.msk.bf16.vlgmr.msra.gmra.mrb[8].mxu1 %vm222_vm1, %v3516_v29 }
  0xa7   : > { %v218_v58 = vsel %vm211_vm2, %v202_v48, %v204_v57  ;;  %v219_v59 = vsel %vm211_vm2, %v204_v57, %v206_v56  ;;  %418 = vmatprep.mubr.bf16.mxu1 %v3305_v0 }
  0xa8   : > { %v246_v60 = vsel %vm226_vm0, %v218_v58, 0  ;;  %2284 = vrot.lane.b32.xlu1 %v3393_v15, %s3312_s27  ;;  %2990 = vmatprep.subr.msk.bf16.mxu1 %vm226_vm0, %v219_v59 }
  0xa9   : > { %387 = vmatpush1.bf16.msra.mxu1 %v246_v60  ;;  %2298 = vrot.lane.b32.xlu0 %v3418_v18, %s3312_s27 }
  0xaa   : > { %v1045_v61 = vpop.permute.xlu1 %1044  ;;  %v1043_v62 = vpop.permute.xlu0 %1042  ;;  %3017 = vmatmul.mubr.msk.bf16.vlgmr.msra.gmra.mrb[4].mxu0 %vm222_vm1, %v3532_v35 }
  0xab   : > { %1140 = vmatprep.mubr.bf16.mxu0 %v3305_v0  ;;  %v1065_v63 = vsel %vm1064_vm4, %v1043_v62, %v1045_v61 }
  0xac   : > { %2589 = vrot.lane.b32.xlu1 %v3363_v9, %s3313_s28  ;;  %v1079_v7 = vsel %vm226_vm0, %v1065_v63, 0 }
  0xad   : > { %2587 = vrot.lane.b32.xlu0 %v3352_v5, %s3313_s28 }
  0xae   : > { %v208_v1 = vpop.permute.xlu1 %207  ;;  %v3608_v2 = vpop.permute.xlu0 %1046  ;;  %2991 = vmatmul.mubr.msk.bf16.vlgmr.msra.gmra.mrb[12].mxu1 %vm222_vm1, %v3516_v29 }
  0xaf   : > { %v1066_v3 = vsel %vm1064_vm4, %v1045_v61, %v3608_v2  ;;  %461 = vmatprep.mubr.bf16.mxu1 %v3305_v0  ;;  %v220_v10 = vsel %vm211_vm2, %v206_v56, %v208_v1 }
  0xb0   : > { %2292 = vrot.lane.b32.xlu1 %v3424_v19, %s3312_s27  ;;  %3021 = vmatprep.subr.msk.bf16.mxu0 %vm226_vm0, %v1066_v3  ;;  %v252_v22 = vsel %vm226_vm0, %v220_v10, 0 }
  0xb1   : > { %1109 = vmatpush1.bf16.msra.mxu0 %v1079_v7  ;;  %2591 = vrot.lane.b32.xlu0 %v3350_v4, %s3313_s28 }
  0xb2   : > { %v3627_v16 = vpop.permute.xlu1 %1050  ;;  %v210_v20 = vpop.permute.xlu0 %209 }
  0xb3   : > { %v221_v21 = vsel %vm211_vm2, %v208_v1, %v210_v20 }
  0xb4   : > { %2597 = vrot.lane.b32.xlu1 %v3357_v8, %s3313_s28  ;;  %2992 = vmatprep.subr.msk.bf16.mxu1 %vm226_vm0, %v221_v21 }
  0xb5   : > { %3022 = vmatmul.mubr.msk.bf16.vlgmr.msra.gmra.mrb[8].mxu0 %vm222_vm1, %v3625_v14  ;;  %430 = vmatpush1.bf16.msra.mxu1 %v252_v22 }
  0xb6   : > { %v3636_v23 = vpop.permute.xlu1 %1054  ;;  %2595 = vrot.lane.b32.xlu0 %v3354_v6, %s3313_s28  ;;  %v1053_v24 = vpop.permute.xlu0 %1052  ;;  %1226 = vmatprep.mubr.bf16.mxu0 %v3305_v0 }
  0xb7   : > { %v1069_v8 = vsel %vm1064_vm4, %v3627_v16, %v1053_v24  ;;  %v1070_v26 = vsel %vm1064_vm4, %v1053_v24, %v3636_v23  ;;  %2995 = vmatprep.subr.msk.bf16.mxu1 %vm226_vm0, %v3363_v9 }
  0xb8   : > { %v1091_v28 = vsel %vm226_vm0, %v1069_v8, 0  ;;  %2593 = vrot.lane.b32.xlu1 %v3393_v15, %s3313_s28  ;;  %2993 = vmatmul.mubr.msk.bf16.vlgmr.msra.gmra.mrb[16].mxu1 %vm222_vm1, %v3516_v29 }
  0xb9   : > { %3025 = vmatprep.subr.msk.bf16.mxu0 %vm226_vm0, %v1070_v26  ;;  %511 = vmatpush1.bf16.msra.mxu1 %v481_v25 }
  0xba   : > { %1195 = vmatpush1.bf16.msra.mxu0 %v1091_v28  ;;  %v1061_v5 = vpop.permute.xlu1 %1060  ;;  %2599 = vrot.lane.b32.xlu0 %v3407_v17, %s3313_s28  ;;  %v3657_v6 = vpop.permute.xlu0 %1058 }
  0xbb   : > { %542 = vmatprep.mubr.bf16.mxu1 %v3305_v0  ;;  %2997 = vmatprep.subr.msk.bf16.mxu1 %vm226_vm0, %v3393_v15  ;;  %v1073_v9 = vsel %vm1064_vm4, %v3657_v6, %v1061_v5 }
  0xbc   : > { %2605 = vrot.lane.b32.xlu1 %v3369_v12, %s3313_s28  ;;  %v1103_v12 = vsel %vm226_vm0, %v1073_v9, 0 }
  0xbd   : > { %3026 = vmatmul.mubr.msk.bf16.vlgmr.msra.gmra.mrb[0].mxu0 %vm222_vm1, %v3625_v14 }
  0xbe   : > { %v1352_v29 = vpop.permute.xlu1 %1351  ;;  %2603 = vrot.lane.b32.xlu0 %v3367_v11, %s3313_s28  ;;  %v1063_v30 = vpop.permute.xlu0 %1062  ;;  %1312 = vmatprep.mubr.bf16.mxu0 %v3305_v0 }
  0xbf   : > { %v1074_v15 = vsel %vm1064_vm4, %v1061_v5, %v1063_v30 }
  0xc0   : > { %2601 = vrot.lane.b32.xlu1 %v3424_v19, %s3313_s28  ;;  %2996 = vmatmul.mubr.msk.bf16.vlgmr.msra.gmra.mrb[0].mxu1 %vm222_vm1, %v3376_v13 }
  0xc1   : > { %3029 = vmatprep.subr.msk.bf16.mxu0 %vm226_vm0, %v1074_v15  ;;  %554 = vmatpush1.bf16.msra.mxu1 %v487_v31 }
  0xc2   : > { %1281 = vmatpush1.bf16.msra.mxu0 %v1103_v12  ;;  %v3680_v11 = vpop.permute.xlu1 %1355  ;;  %2607 = vrot.lane.b32.xlu0 %v3418_v18, %s3313_s28  ;;  %v1354_v4 = vpop.permute.xlu0 %1353 }
  0xc3   : > { %v1374_v32 = vsel %vm1373_vm5, %v1352_v29, %v1354_v4  ;;  %v1375_v33 = vsel %vm1373_vm5, %v1354_v4, %v3680_v11  ;;  %585 = vmatprep.mubr.bf16.mxu1 %v3305_v0  ;;  %3001 = vmatprep.subr.msk.bf16.mxu1 %vm226_vm0, %v3424_v19  ;;  %v3706_v19 = vld [vmem:[%s3985_s1 + $0x20] sm:$0xff]  }
  0xc4   : > { %v1388_v34 = vsel %vm226_vm0, %v1374_v32, 0  ;;  %3034 = vmatprep.subr.msk.bf16.mxu0 %vm226_vm0, %v1375_v33 }
  0xc5   : > { %3030 = vmatmul.mubr.msk.bf16.vlgmr.msra.gmra.mrb[4].mxu0 %vm222_vm1, %v3625_v14 }
  0xc6   : > { %v1362_v36 = vpop.permute.xlu1 %1361  ;;  %1418 = vmatpush1.bf16.msra.mxu0 %v1388_v34  ;;  %v3694_v18 = vpop.permute.xlu0 %1359  ;;  %1449 = vmatprep.mubr.bf16.mxu0 %v3305_v0 }
  0xc7   : > { %v1378_v38 = vsel %vm1373_vm5, %v3694_v18, %v1362_v36 }
  0xc8   : > { %2998 = vmatmul.mubr.msk.bf16.vlgmr.msra.gmra.mrb[4].mxu1 %vm222_vm1, %v3376_v13  ;;  %v1400_v17 = vsel %vm226_vm0, %v1378_v38, 0  ;;  %v3830_v38 = vld [vmem:[%s3985_s1 + $0x30] sm:$0xff]  }
  0xc9   : > { %640 = vmatpush1.bf16.msra.mxu1 %v499_v37  ;;  %671 = vmatprep.mubr.bf16.mxu1 %v3305_v0 }
  0xca   : > { %v740_v39 = vpop.permute.xlu1 %739  ;;  %v3709_v41 = vpop.permute.xlu0 %1363 }
  0xcb   : > { %v759_v42 = vsel %vm755_vm3, %v740_v39, %v3543_v40  ;;  %v1379_v44 = vsel %vm1373_vm5, %v1362_v36, %v3709_v41  ;;  %v758_v45 = vsel %vm755_vm3, %v3511_v27, %v740_v39 }
  0xcc   : > { %3010 = vmatprep.subr.msk.bf16.mxu1 %vm226_vm0, %v759_v42  ;;  %3038 = vmatprep.subr.msk.bf16.mxu0 %vm226_vm0, %v1379_v44  ;;  %v776_v40 = vsel %vm226_vm0, %v758_v45, 0 }
  0xcd   : > { %3035 = vmatmul.mubr.msk.bf16.vlgmr.msra.gmra.mrb[8].mxu0 %vm222_vm1, %v3706_v19 }
  0xce   : > { %v1370_v46 = vpop.permute.xlu1 %1369  ;;  %1504 = vmatpush1.bf16.msra.mxu0 %v1400_v17  ;;  %v3722_v48 = vpop.permute.xlu0 %1367  ;;  %1535 = vmatprep.mubr.bf16.mxu0 %v3305_v0 }
  0xcf   : > { %v1382_v49 = vsel %vm1373_vm5, %v3722_v48, %v1370_v46 }
  0xd0   : > { %3002 = vmatmul.mubr.msk.bf16.vlgmr.msra.gmra.mrb[12].mxu1 %vm222_vm1, %v3376_v13  ;;  %v1412_v51 = vsel %vm226_vm0, %v1382_v49, 0 }
  0xd1   : > { %843 = vmatpush1.bf16.msra.mxu1 %v776_v40  ;;  %874 = vmatprep.mubr.bf16.mxu1 %v3305_v0 }
  0xd2   : > { %v748_v27 = vpop.permute.xlu1 %747  ;;  %v1372_v50 = vpop.permute.xlu0 %1371 }
  0xd3   : > { %v763_v52 = vsel %vm755_vm3, %v748_v27, %v3568_v47  ;;  %v1383_v53 = vsel %vm1373_vm5, %v1370_v46, %v1372_v50  ;;  %v762_v54 = vsel %vm755_vm3, %v3554_v43, %v748_v27 }
  0xd4   : > { %3014 = vmatprep.subr.msk.bf16.mxu1 %vm226_vm0, %v763_v52  ;;  %3042 = vmatprep.subr.msk.bf16.mxu0 %vm226_vm0, %v1383_v53  ;;  %v788_v47 = vsel %vm226_vm0, %v762_v54, 0 }
  0xd5   : > { %3039 = vmatmul.mubr.msk.bf16.vlgmr.msra.gmra.mrb[0].mxu0 %vm222_vm1, %v3706_v19 }
  0xd6   : > { %v1663_v13 = vpop.permute.xlu1 %1662  ;;  %1590 = vmatpush1.bf16.msra.mxu0 %v1412_v51  ;;  %v1661_v55 = vpop.permute.xlu0 %1660  ;;  %1621 = vmatprep.mubr.bf16.mxu0 %v3305_v0 }
  0xd7   : > { %v1683_v56 = vsel %vm1682_vm6, %v1661_v55, %v1663_v13 }
  0xd8   : > { %3011 = vmatmul.mubr.msk.bf16.vlgmr.msra.gmra.mrb[4].mxu1 %vm222_vm1, %v3532_v35  ;;  %v1697_v58 = vsel %vm226_vm0, %v1683_v56, 0 }
  0xd9   : > { %929 = vmatpush1.bf16.msra.mxu1 %v788_v47  ;;  %960 = vmatprep.mubr.bf16.mxu1 %v3305_v0 }
  0xda   : > { %v1049_v43 = vpop.permute.xlu1 %1048  ;;  %v3747_v57 = vpop.permute.xlu0 %1664 }
  0xdb   : > { %v1068_v59 = vsel %vm1064_vm4, %v1049_v43, %v3627_v16  ;;  %v1684_v60 = vsel %vm1682_vm6, %v1663_v13, %v3747_v57  ;;  %v1067_v61 = vsel %vm1064_vm4, %v3608_v2, %v1049_v43  ;;  %v3771_v2 = vld [vmem:[%s3985_s1 + $0x28] sm:$0xff]  }
  0xdc   : > { %3023 = vmatprep.subr.msk.bf16.mxu1 %vm226_vm0, %v1068_v59  ;;  %3047 = vmatprep.subr.msk.bf16.mxu0 %vm226_vm0, %v1684_v60  ;;  %v1085_v1 = vsel %vm226_vm0, %v1067_v61, 0 }
  0xdd   : > { %3043 = vmatmul.mubr.msk.bf16.vlgmr.msra.gmra.mrb[4].mxu0 %vm222_vm1, %v3706_v19 }
  0xde   : > { %v1671_v62 = vpop.permute.xlu1 %1670  ;;  %1727 = vmatpush1.bf16.msra.mxu0 %v1697_v58  ;;  %v3760_v63 = vpop.permute.xlu0 %1668  ;;  %1758 = vmatprep.mubr.bf16.mxu0 %v3305_v0 }
  0xdf   : > { %v1687_v3 = vsel %vm1682_vm6, %v3760_v63, %v1671_v62 }
  0xe0   : > { %3015 = vmatmul.mubr.msk.bf16.vlgmr.msra.gmra.mrb[12].mxu1 %vm222_vm1, %v3532_v35  ;;  %v1709_v16 = vsel %vm226_vm0, %v1687_v3, 0  ;;  %v3881_v3 = vld [vmem:[%s3985_s1 + $0x38] sm:$0xff]  }
  0xe1   : > { %1152 = vmatpush1.bf16.msra.mxu1 %v1085_v1  ;;  %1183 = vmatprep.mubr.bf16.mxu1 %v3305_v0 }
  0xe2   : > { %v1057_v7 = vpop.permute.xlu1 %1056  ;;  %v3774_v10 = vpop.permute.xlu0 %1672 }
  0xe3   : > { %v1072_v20 = vsel %vm1064_vm4, %v1057_v7, %v3657_v6  ;;  %v1688_v21 = vsel %vm1682_vm6, %v1671_v62, %v3774_v10  ;;  %v1071_v35 = vsel %vm1064_vm4, %v3636_v23, %v1057_v7 }
  0xe4   : > { %3027 = vmatprep.subr.msk.bf16.mxu1 %vm226_vm0, %v1072_v20  ;;  %3051 = vmatprep.subr.msk.bf16.mxu0 %vm226_vm0, %v1688_v21  ;;  %v1097_v25 = vsel %vm226_vm0, %v1071_v35, 0 }
  0xe5   : > { %3048 = vmatmul.mubr.msk.bf16.vlgmr.msra.gmra.mrb[8].mxu0 %vm222_vm1, %v3771_v2 }
  0xe6   : > { %v1679_v22 = vpop.permute.xlu1 %1678  ;;  %1813 = vmatpush1.bf16.msra.mxu0 %v1709_v16  ;;  %v3787_v24 = vpop.permute.xlu0 %1676  ;;  %1844 = vmatprep.mubr.bf16.mxu0 %v3305_v0 }
  0xe7   : > { %v1691_v8 = vsel %vm1682_vm6, %v3787_v24, %v1679_v22 }
  0xe8   : > { %3024 = vmatmul.mubr.msk.bf16.vlgmr.msra.gmra.mrb[4].mxu1 %vm222_vm1, %v3625_v14  ;;  %v1721_v28 = vsel %vm226_vm0, %v1691_v8, 0 }
  0xe9   : > { %1238 = vmatpush1.bf16.msra.mxu1 %v1097_v25  ;;  %1269 = vmatprep.mubr.bf16.mxu1 %v3305_v0 }
  0xea   : > { %v1358_v23 = vpop.permute.xlu1 %1357  ;;  %v1681_v26 = vpop.permute.xlu0 %1680 }
  0xeb   : > { %v1377_v5 = vsel %vm1373_vm5, %v1358_v23, %v3694_v18  ;;  %v1692_v6 = vsel %vm1682_vm6, %v1679_v22, %v1681_v26  ;;  %v1376_v9 = vsel %vm1373_vm5, %v3680_v11, %v1358_v23 }
  0xec   : > { %3036 = vmatprep.subr.msk.bf16.mxu1 %vm226_vm0, %v1377_v5  ;;  %3055 = vmatprep.subr.msk.bf16.mxu0 %vm226_vm0, %v1692_v6  ;;  %v1394_v31 = vsel %vm226_vm0, %v1376_v9, 0 }
  0xed   : > { %3052 = vmatmul.mubr.msk.bf16.vlgmr.msra.gmra.mrb[0].mxu0 %vm222_vm1, %v3771_v2 }
  0xee   : > { %v1972_v29 = vpop.permute.xlu1 %1971  ;;  %1899 = vmatpush1.bf16.msra.mxu0 %v1721_v28  ;;  %v1970_v30 = vpop.permute.xlu0 %1969  ;;  %1930 = vmatprep.mubr.bf16.mxu0 %v3305_v0 }
  0xef   : > { %v1992_v15 = vsel %vm1991_vm7, %v1970_v30, %v1972_v29 }
  0xf0   : > { %3028 = vmatmul.mubr.msk.bf16.vlgmr.msra.gmra.mrb[12].mxu1 %vm222_vm1, %v3625_v14  ;;  %v2006_v4 = vsel %vm226_vm0, %v1992_v15, 0 }
  0xf1   : > { %1461 = vmatpush1.bf16.msra.mxu1 %v1394_v31  ;;  %1492 = vmatprep.mubr.bf16.mxu1 %v3305_v0 }
  0xf2   : > { %v1366_v12 = vpop.permute.xlu1 %1365  ;;  %v1974_v11 = vpop.permute.xlu0 %1973 }
  0xf3   : > { %v1381_v32 = vsel %vm1373_vm5, %v1366_v12, %v3722_v48  ;;  %v1993_v33 = vsel %vm1991_vm7, %v1972_v29, %v1974_v11  ;;  %v1380_v34 = vsel %vm1373_vm5, %v3709_v41, %v1366_v12 }
  0xf4   : > { %3040 = vmatprep.subr.msk.bf16.mxu1 %vm226_vm0, %v1381_v32  ;;  %3060 = vmatprep.subr.msk.bf16.mxu0 %vm226_vm0, %v1993_v33  ;;  %v1406_v18 = vsel %vm226_vm0, %v1380_v34, 0 }
  0xf5   : > { %3056 = vmatmul.mubr.msk.bf16.vlgmr.msra.gmra.mrb[4].mxu0 %vm222_vm1, %v3771_v2 }
  0xf6   : > { %v1980_v14 = vpop.permute.xlu1 %1979  ;;  %2036 = vmatpush1.bf16.msra.mxu0 %v2006_v4  ;;  %v1978_v36 = vpop.permute.xlu0 %1977  ;;  %2067 = vmatprep.mubr.bf16.mxu0 %v3305_v0 }
  0xf7   : > { %v1996_v37 = vsel %vm1991_vm7, %v1978_v36, %v1980_v14 }
  0xf8   : > { %3037 = vmatmul.mubr.msk.bf16.vlgmr.msra.gmra.mrb[4].mxu1 %vm222_vm1, %v3706_v19  ;;  %v2018_v17 = vsel %vm226_vm0, %v1996_v37, 0  ;;  %v3296_v37 = vld [vmem:[%s3985_s1 + $0x40] sm:$0xff]  }
  0xf9   : > { %1547 = vmatpush1.bf16.msra.mxu1 %v1406_v18  ;;  %1578 = vmatprep.mubr.bf16.mxu1 %v3305_v0 }
  0xfa   : > { %v1667_v39 = vpop.permute.xlu1 %1666  ;;  %v1982_v41 = vpop.permute.xlu0 %1981 }
  0xfb   : > { %v1686_v42 = vsel %vm1682_vm6, %v1667_v39, %v3760_v63  ;;  %v1997_v44 = vsel %vm1991_vm7, %v1980_v14, %v1982_v41  ;;  %v1685_v45 = vsel %vm1682_vm6, %v3747_v57, %v1667_v39 }
  0xfc   : > { %3049 = vmatprep.subr.msk.bf16.mxu1 %vm226_vm0, %v1686_v42  ;;  %3064 = vmatprep.subr.msk.bf16.mxu0 %vm226_vm0, %v1997_v44  ;;  %v1703_v40 = vsel %vm226_vm0, %v1685_v45, 0 }
  0xfd   : > { %3061 = vmatmul.mubr.msk.bf16.vlgmr.msra.gmra.mrb[8].mxu0 %vm222_vm1, %v3830_v38 }
  0xfe   : > { %v1988_v46 = vpop.permute.xlu1 %1987  ;;  %2122 = vmatpush1.bf16.msra.mxu0 %v2018_v17  ;;  %2153 = vmatprep.mubr.bf16.mxu0 %v3305_v0 }
  0xff   : > { %v1986_v48 = vpop.permute.xlu0 %1985 }
 0x100   : > { %v2000_v49 = vsel %vm1991_vm7, %v1986_v48, %v1988_v46  ;;  %3041 = vmatmul.mubr.msk.bf16.vlgmr.msra.gmra.mrb[12].mxu1 %vm222_vm1, %v3706_v19 }
 0x101   : > { %1770 = vmatpush1.bf16.msra.mxu1 %v1703_v40  ;;  %1801 = vmatprep.mubr.bf16.mxu1 %v3305_v0  ;;  %v2030_v50 = vsel %vm226_vm0, %v2000_v49, 0 }
 0x102   : > { %v1675_v27 = vpop.permute.xlu1 %1674 }
 0x103   : > { %v1690_v51 = vsel %vm1682_vm6, %v1675_v27, %v3787_v24  ;;  %v1990_v52 = vpop.permute.xlu0 %1989  ;;  %v1689_v54 = vsel %vm1682_vm6, %v3774_v10, %v1675_v27 }
 0x104   : > { %v2001_v53 = vsel %vm1991_vm7, %v1988_v46, %v1990_v52  ;;  %3053 = vmatprep.subr.msk.bf16.mxu1 %vm226_vm0, %v1690_v51  ;;  %v1715_v55 = vsel %vm226_vm0, %v1689_v54, 0 }
 0x105   : > { %3065 = vmatmul.mubr.msk.bf16.vlgmr.msra.gmra.mrb[0].mxu0 %vm222_vm1, %v3830_v38  ;;  %3068 = vmatprep.subr.msk.bf16.mxu0 %vm226_vm0, %v2001_v53 }
 0x106   : > { %v2281_v19 = vpop.permute.xlu1 %2280  ;;  %2208 = vmatpush1.bf16.msra.mxu0 %v2030_v50  ;;  %2239 = vmatprep.mubr.bf16.mxu0 %v3305_v0 }
 0x107   : > { %v2279_v13 = vpop.permute.xlu0 %2278 }
 0x108   : > { %v2301_v47 = vsel %vm2300_vm8, %v2279_v13, %v2281_v19  ;;  %3050 = vmatmul.mubr.msk.bf16.vlgmr.msra.gmra.mrb[4].mxu1 %vm222_vm1, %v3771_v2 }
 0x109   : > { %1856 = vmatpush1.bf16.msra.mxu1 %v1715_v55  ;;  %1887 = vmatprep.mubr.bf16.mxu1 %v3305_v0  ;;  %v2315_v43 = vsel %vm226_vm0, %v2301_v47, 0 }
 0x10a   : > { %v1976_v56 = vpop.permute.xlu1 %1975 }
 0x10b   : > { %v1995_v57 = vsel %vm1991_vm7, %v1976_v56, %v1978_v36  ;;  %v2283_v58 = vpop.permute.xlu0 %2282  ;;  %v1994_v60 = vsel %vm1991_vm7, %v1974_v11, %v1976_v56 }
 0x10c   : > { %v2302_v59 = vsel %vm2300_vm8, %v2281_v19, %v2283_v58  ;;  %3062 = vmatprep.subr.msk.bf16.mxu1 %vm226_vm0, %v1995_v57  ;;  %v2012_v63 = vsel %vm226_vm0, %v1994_v60, 0 }
 0x10d   : > { %3069 = vmatmul.mubr.msk.bf16.vlgmr.msra.gmra.mrb[4].mxu0 %vm222_vm1, %v3830_v38  ;;  %3073 = vmatprep.subr.msk.bf16.mxu0 %vm226_vm0, %v2302_v59 }
 0x10e   : > { %v2289_v61 = vpop.permute.xlu1 %2288  ;;  %2345 = vmatpush1.bf16.msra.mxu0 %v2315_v43  ;;  %2376 = vmatprep.mubr.bf16.mxu0 %v3305_v0 }
 0x10f   : > { %v2287_v62 = vpop.permute.xlu0 %2286 }
 0x110   : > { %v2305_v1 = vsel %vm2300_vm8, %v2287_v62, %v2289_v61  ;;  %3054 = vmatmul.mubr.msk.bf16.vlgmr.msra.gmra.mrb[12].mxu1 %vm222_vm1, %v3771_v2 }
 0x111   : > { %2079 = vmatpush1.bf16.msra.mxu1 %v2012_v63  ;;  %2110 = vmatprep.mubr.bf16.mxu1 %v3305_v0  ;;  %v2327_v10 = vsel %vm226_vm0, %v2305_v1, 0 }
 0x112   : > { %v1984_v7 = vpop.permute.xlu1 %1983 }
 0x113   : > { %v1999_v16 = vsel %vm1991_vm7, %v1984_v7, %v1986_v48  ;;  %v2291_v20 = vpop.permute.xlu0 %2290  ;;  %v1998_v2 = vsel %vm1991_vm7, %v1982_v41, %v1984_v7 }
 0x114   : > { %v2306_v21 = vsel %vm2300_vm8, %v2289_v61, %v2291_v20  ;;  %3066 = vmatprep.subr.msk.bf16.mxu1 %vm226_vm0, %v1999_v16  ;;  %v2024_v24 = vsel %vm226_vm0, %v1998_v2, 0 }
 0x115   : > { %3074 = vmatmul.mubr.msk.bf16.vlgmr.msra.gmra.mrb[8].mxu0 %vm222_vm1, %v3881_v3  ;;  %3077 = vmatprep.subr.msk.bf16.mxu0 %vm226_vm0, %v2306_v21 }
 0x116   : > { %v2297_v35 = vpop.permute.xlu1 %2296  ;;  %2431 = vmatpush1.bf16.msra.mxu0 %v2327_v10  ;;  %2462 = vmatprep.mubr.bf16.mxu0 %v3305_v0 }
 0x117   : > { %v2295_v22 = vpop.permute.xlu0 %2294 }
 0x118   : > { %v2309_v25 = vsel %vm2300_vm8, %v2295_v22, %v2297_v35  ;;  %3063 = vmatmul.mubr.msk.bf16.vlgmr.msra.gmra.mrb[4].mxu1 %vm222_vm1, %v3830_v38 }
 0x119   : > { %2165 = vmatpush1.bf16.msra.mxu1 %v2024_v24  ;;  %2196 = vmatprep.mubr.bf16.mxu1 %v3305_v0  ;;  %v2339_v23 = vsel %vm226_vm0, %v2309_v25, 0 }
 0x11a   : > { %v2285_v8 = vpop.permute.xlu1 %2284 }
 0x11b   : > { %v2304_v26 = vsel %vm2300_vm8, %v2285_v8, %v2287_v62  ;;  %v2299_v28 = vpop.permute.xlu0 %2298  ;;  %v2303_v6 = vsel %vm2300_vm8, %v2283_v58, %v2285_v8 }
 0x11c   : > { %v2310_v5 = vsel %vm2300_vm8, %v2297_v35, %v2299_v28  ;;  %3075 = vmatprep.subr.msk.bf16.mxu1 %vm226_vm0, %v2304_v26  ;;  %v2321_v30 = vsel %vm226_vm0, %v2303_v6, 0 }
 0x11d   : > { %3078 = vmatmul.mubr.msk.bf16.vlgmr.msra.gmra.mrb[0].mxu0 %vm222_vm1, %v3881_v3  ;;  %3081 = vmatprep.subr.msk.bf16.mxu0 %vm226_vm0, %v2310_v5 }
 0x11e   : > { %v2590_v9 = vpop.permute.xlu1 %2589  ;;  %2517 = vmatpush1.bf16.msra.mxu0 %v2339_v23  ;;  %2548 = vmatprep.mubr.bf16.mxu0 %v3305_v0 }
 0x11f   : > { %v2588_v29 = vpop.permute.xlu0 %2587 }
 0x120   : > { %v2610_v31 = vsel %vm2609_vm9, %v2588_v29, %v2590_v9  ;;  %3067 = vmatmul.mubr.msk.bf16.vlgmr.msra.gmra.mrb[12].mxu1 %vm222_vm1, %v3830_v38 }
 0x121   : > { %2388 = vmatpush1.bf16.msra.mxu1 %v2321_v30  ;;  %2419 = vmatprep.mubr.bf16.mxu1 %v3305_v0  ;;  %v2624_v12 = vsel %vm226_vm0, %v2610_v31, 0 }
 0x122   : > { %v2293_v15 = vpop.permute.xlu1 %2292 }
 0x123   : > { %v2308_v11 = vsel %vm2300_vm8, %v2293_v15, %v2295_v22  ;;  %v2592_v4 = vpop.permute.xlu0 %2591  ;;  %v2307_v33 = vsel %vm2300_vm8, %v2291_v20, %v2293_v15 }
 0x124   : > { %v2611_v32 = vsel %vm2609_vm9, %v2590_v9, %v2592_v4  ;;  %3079 = vmatprep.subr.msk.bf16.mxu1 %vm226_vm0, %v2308_v11  ;;  %v2333_v14 = vsel %vm226_vm0, %v2307_v33, 0 }
 0x125   : > { %3082 = vmatmul.mubr.msk.bf16.vlgmr.msra.gmra.mrb[4].mxu0 %vm222_vm1, %v3881_v3  ;;  %3086 = vmatprep.subr.msk.bf16.mxu0 %vm226_vm0, %v2611_v32 }
 0x126   : > { %v2598_v34 = vpop.permute.xlu1 %2597  ;;  %2654 = vmatpush1.bf16.msra.mxu0 %v2624_v12  ;;  %2685 = vmatprep.mubr.bf16.mxu0 %v3305_v0 }
 0x128   : > { %v2596_v36 = vpop.permute.xlu0 %2595  ;;  %3076 = vmatmul.mubr.msk.bf16.vlgmr.msra.gmra.mrb[4].mxu1 %vm222_vm1, %v3881_v3 }
 0x129   : > { %v2614_v18 = vsel %vm2609_vm9, %v2596_v36, %v2598_v34  ;;  %2474 = vmatpush1.bf16.msra.mxu1 %v2333_v14  ;;  %2505 = vmatprep.mubr.bf16.mxu1 %v3305_v0 }
 0x12a   : > { %v2594_v38 = vpop.permute.xlu1 %2593  ;;  %v2636_v41 = vsel %vm226_vm0, %v2614_v18, 0 }
 0x12b   : > { %v2613_v39 = vsel %vm2609_vm9, %v2594_v38, %v2596_v36  ;;  %v2612_v42 = vsel %vm2609_vm9, %v2592_v4, %v2594_v38 }
 0x12c   : > { %v2600_v17 = vpop.permute.xlu0 %2599  ;;  %3088 = vmatprep.subr.msk.bf16.mxu1 %vm226_vm0, %v2613_v39  ;;  %v2630_v46 = vsel %vm226_vm0, %v2612_v42, 0 }
 0x12d   : > { %3087 = vmatmul.mubr.msk.bf16.vlgmr.msra.gmra.mrb[8].mxu0 %vm222_vm1, %v3296_v37  ;;  %v2615_v44 = vsel %vm2609_vm9, %v2598_v34, %v2600_v17 }
 0x12e   : > { %v2606_v45 = vpop.permute.xlu1 %2605  ;;  %3090 = vmatprep.subr.msk.bf16.mxu0 %vm226_vm0, %v2615_v44  ;;  %2771 = vmatprep.mubr.bf16.mxu0 %v3305_v0 }
 0x12f   : > { %2740 = vmatpush1.bf16.msra.mxu0 %v2636_v41 }
 0x130   : > { %v2604_v48 = vpop.permute.xlu0 %2603  ;;  %3080 = vmatmul.mubr.msk.bf16.vlgmr.msra.gmra.mrb[12].mxu1 %vm222_vm1, %v3881_v3 }
 0x131   : > { %v2618_v40 = vsel %vm2609_vm9, %v2604_v48, %v2606_v45  ;;  %2697 = vmatpush1.bf16.msra.mxu1 %v2630_v46  ;;  %2728 = vmatprep.mubr.bf16.mxu1 %v3305_v0 }
 0x132   : > { %v2602_v49 = vpop.permute.xlu1 %2601  ;;  %v2648_v50 = vsel %vm226_vm0, %v2618_v40, 0 }
 0x133   : > { %v2617_v27 = vsel %vm2609_vm9, %v2602_v49, %v2604_v48  ;;  %v2616_v52 = vsel %vm2609_vm9, %v2600_v17, %v2602_v49 }
 0x134   : > { %v2608_v51 = vpop.permute.xlu0 %2607  ;;  %3092 = vmatprep.subr.msk.bf16.mxu1 %vm226_vm0, %v2617_v27  ;;  %v2642_v54 = vsel %vm226_vm0, %v2616_v52, 0 }
 0x135   : > { %3091 = vmatmul.mubr.msk.bf16.vlgmr.msra.gmra.mrb[0].mxu0 %vm222_vm1, %v3296_v37  ;;  %v2619_v53 = vsel %vm2609_vm9, %v2606_v45, %v2608_v51 }
 0x136   : > { %3094 = vmatprep.subr.msk.bf16.mxu0 %vm226_vm0, %v2619_v53  ;;  %2857 = vmatprep.mubr.bf16.mxu0 %v3305_v0 }
 0x137   : > { %2826 = vmatpush1.bf16.msra.mxu0 %v2648_v50 }
 0x138   : > { %3089 = vmatmul.mubr.msk.bf16.vlgmr.msra.gmra.mrb[4].mxu1 %vm222_vm1, %v3296_v37 }
 0x139   : > { %2783 = vmatpush1.bf16.msra.mxu1 %v2642_v54  ;;  %2814 = vmatprep.mubr.bf16.mxu1 %v3305_v0 }
 0x13d   : > { %3095 = vmatmul.mubr.msk.bf16.vlgmr.msra.gmra.mrb[4].mxu0 %vm222_vm1, %v3296_v37 }
 0x140   : > { %3093 = vmatmul.mubr.msk.bf16.vlgmr.msra.gmra.mrb[12].mxu1 %vm222_vm1, %v3296_v37 }
 0x179   : > { %v377_v19 = vpop.f32.mrb[8].mxu1 }
 0x17a   : > { %v379_v13 = vpop.f32.mrb[9].mxu1 }
 0x17b   : > { %v381_v55 = vpop.f32.mrb[10].mxu1 }
 0x17c   : > { %v383_v47 = vpop.f32.mrb[11].mxu1 }
 0x18b   : > { %v463_v56 = vpop.f32.mrb[16].mxu1 }
 0x18c   : > { %v465_v43 = vpop.f32.mrb[17].mxu1 }
 0x18d   : > { %v467_v57 = vpop.f32.mrb[18].mxu1 }
 0x18e   : > { %v469_v58 = vpop.f32.mrb[19].mxu1 }
 0x193   : > { %v544_v59 = vpop.f32.mrb[0].mxu1 }
 0x194   : > { %v546_v60 = vpop.f32.mrb[1].mxu1 }
 0x195   : > { %v548_v61 = vpop.f32.mrb[2].mxu1 }
 0x196   : > { %v550_v62 = vpop.f32.mrb[3].mxu1 }
 0x200   : > { %v2687_v0 = vpop.f32.mrb[8].mxu0 }
 0x201   : > { %v3098_v63 = vadd.f32 %v2687_v0, %v544_v59  ;;  %v2689_v1 = vpop.f32.mrb[9].mxu0 }
 0x202   : > { %v3099_v3 = vadd.f32 %v2689_v1, %v546_v60  ;;  %v2691_v7 = vpop.f32.mrb[10].mxu0 }
 0x203   : > { %2888 = vst [vmem:[%s3959_s18] sm:$0xff] %v3098_v63  ;;  %v3100_v10 = vadd.f32 %v2691_v7, %v548_v61  ;;  %v2693_v16 = vpop.f32.mrb[11].mxu0 }
 0x204   : > { %2889 = vst [vmem:[%s3959_s18 + $0x8] sm:$0xff] %v3099_v3  ;;  %v3101_v20 = vadd.f32 %v2693_v16, %v550_v62 }
 0x205   : > { %2898 = vst [vmem:[%s3959_s18 + $0x50] sm:$0xff] %v3100_v10 }
 0x206   : > { %2899 = vst [vmem:[%s3959_s18 + $0x58] sm:$0xff] %v3101_v20 }
 0x208   : > { %v2773_v21 = vpop.f32.mrb[0].mxu0 }
 0x209   : > { %v3102_v2 = vadd.f32 %v2773_v21, %v377_v19  ;;  %v2775_v35 = vpop.f32.mrb[1].mxu0 }
 0x20a   : > { %v3103_v22 = vadd.f32 %v2775_v35, %v379_v13  ;;  %v2777_v24 = vpop.f32.mrb[2].mxu0 }
 0x20b   : > { %2892 = vst [vmem:[%s3959_s18 + $0x20] sm:$0xff] %v3102_v2  ;;  %v3104_v25 = vadd.f32 %v2777_v24, %v381_v55  ;;  %v2779_v8 = vpop.f32.mrb[3].mxu0  ;;  %v2730_v23 = vpop.f32.mrb[4].mxu1 }
 0x20c   : > { %2893 = vst [vmem:[%s3959_s18 + $0x28] sm:$0xff] %v3103_v22  ;;  %v3105_v26 = vadd.f32 %v2779_v8, %v383_v47  ;;  %2890 = vst [vmem:[%s3959_s18 + $0x10] sm:$0xff] %v2730_v23  ;;  %v2732_v28 = vpop.f32.mrb[5].mxu1 }
 0x20d   : > { %2902 = vst [vmem:[%s3959_s18 + $0x70] sm:$0xff] %v3104_v25  ;;  %2891 = vst [vmem:[%s3959_s18 + $0x18] sm:$0xff] %v2732_v28  ;;  %v2734_v5 = vpop.f32.mrb[6].mxu1 }
 0x20e   : > { %2903 = vst [vmem:[%s3959_s18 + $0x78] sm:$0xff] %v3105_v26  ;;  %2900 = vst [vmem:[%s3959_s18 + $0x60] sm:$0xff] %v2734_v5  ;;  %v2736_v6 = vpop.f32.mrb[7].mxu1 }
 0x20f   : > { %2901 = vst [vmem:[%s3959_s18 + $0x68] sm:$0xff] %v2736_v6 }
 0x210   : > { %v2859_v9 = vpop.f32.mrb[4].mxu0 }
 0x211   : > { %v3106_v29 = vadd.f32 %v2859_v9, %v463_v56  ;;  %v2861_v30 = vpop.f32.mrb[5].mxu0 }
 0x212   : > { %v3107_v31 = vadd.f32 %v2861_v30, %v465_v43  ;;  %v2863_v15 = vpop.f32.mrb[6].mxu0 }
 0x213   : > { %2896 = vst [vmem:[%s3959_s18 + $0x40] sm:$0xff] %v3106_v29  ;;  %v3108_v12 = vadd.f32 %v2863_v15, %v467_v57  ;;  %v2865_v11 = vpop.f32.mrb[7].mxu0  ;;  %v2816_v4 = vpop.f32.mrb[12].mxu1 }
 0x214   : > { %2897 = vst [vmem:[%s3959_s18 + $0x48] sm:$0xff] %v3107_v31  ;;  %v3109_v32 = vadd.f32 %v2865_v11, %v469_v58  ;;  %2894 = vst [vmem:[%s3959_s18 + $0x30] sm:$0xff] %v2816_v4  ;;  %v2818_v33 = vpop.f32.mrb[13].mxu1 }
 0x215   : > { %2906 = vst [vmem:[%s3959_s18 + $0x90] sm:$0xff] %v3108_v12  ;;  %2895 = vst [vmem:[%s3959_s18 + $0x38] sm:$0xff] %v2818_v33  ;;  %v2820_v34 = vpop.f32.mrb[14].mxu1 }
 0x216   : > { %2907 = vst [vmem:[%s3959_s18 + $0x98] sm:$0xff] %v3109_v32  ;;  %2904 = vst [vmem:[%s3959_s18 + $0x80] sm:$0xff] %v2820_v34  ;;  %v2822_v14 = vpop.f32.mrb[15].mxu1 }
 0x217   : > { %2905 = vst [vmem:[%s3959_s18 + $0x88] sm:$0xff] %v2822_v14 }
 0x218 PF: > { %s12_s9 = sadd.s32 1, %s3303_s9  }
 0x219   : > { %p9_p4 = scmp.ge.s32.totalorder %s12_s9, 10  }
 0x21b   :  { %11 = sbr.rel (!%p9_p4) target bundleno = 1 (0x1), region = 66 }

</bundles_post_ra>
